<compile_context>
chip_gen: v6e
topology: v6e:2x2x1
jax: 0.10.0
libtpu: 0.0.40
codegen_flags: <defaults>
</compile_context>

<pallas_src>
import functools

import jax
import jax.numpy as jnp
from jax.experimental import pallas as pl
from jax.experimental.pallas import tpu as pltpu


def _attention2d_kernel(x_ref, wqkv_ref, bqkv_ref, wo_ref, bo_ref, wpw_ref,
                        o_ref, *, num_heads, d_k):
    # x_ref:    (1, C, S)   activations for one batch element, S on lanes
    # wqkv_ref: (3C, C)     fused in_proj weight (PyTorch layout, used as-is)
    # bqkv_ref: (3C, 1)     fused in_proj bias (column vector)
    # wo_ref:   (C, C)      out_proj weight
    # bo_ref:   (C, 1)      out_proj bias
    # wpw_ref:  (C, C)      1x1 pointwise conv weight (Cout, Cin)
    # o_ref:    (1, C, S)
    C = num_heads * d_k
    scale = 1.0 / (float(d_k) ** 0.5)

    x = x_ref[0].astype(jnp.float32)                              # (C, S)

    # Fused QKV projection in the native (C, S) orientation: contraction over C,
    # spatial axis stays lane-dense.  q[c, s] == (x_s @ Wq^T)[c] of PyTorch.
    qkv = jnp.dot(wqkv_ref[...].astype(jnp.float32), x,
                  preferred_element_type=jnp.float32) + bqkv_ref[...]   # (3C, S)
    q = qkv[0:C, :]
    k = qkv[C:2 * C, :]
    v = qkv[2 * C:3 * C, :]

    # Per-head attention.  Heads are contiguous sublane bands of d_k rows, so the
    # slices are sublane-tile aligned; the only transpose is a small in-VMEM one.
    heads = []
    for h in range(num_heads):
        lo = h * d_k
        qh = q[lo:lo + d_k, :]                                    # (d_k, S)
        kh = k[lo:lo + d_k, :]
        vh = v[lo:lo + d_k, :]

        # scores[i, j] = sum_d qh[d, i] * kh[d, j]
        s = jnp.dot(qh.T, kh, preferred_element_type=jnp.float32) * scale   # (S, S)

        # softmax over the key axis (lane-axis reductions)
        s = s - jnp.max(s, axis=-1, keepdims=True)
        p = jnp.exp(s)
        p = p / jnp.sum(p, axis=-1, keepdims=True)

        # out_h[d, i] = sum_j vh[d, j] * p[i, j]   (contract the key axis of both)
        oh = jax.lax.dot_general(
            vh, p, dimension_numbers=(((1,), (1,)), ((), ())),
            preferred_element_type=jnp.float32)                    # (d_k, S)
        heads.append(oh)

    attn = jnp.concatenate(heads, axis=0)                          # (C, S)

    # out_proj followed by the 1x1 pointwise conv (both are channel matmuls in
    # the same orientation, so they fuse back-to-back on the MXU).
    out = jnp.dot(wo_ref[...].astype(jnp.float32), attn,
                  preferred_element_type=jnp.float32) + bo_ref[...]        # (C, S)
    y = jnp.dot(wpw_ref[...].astype(jnp.float32), out,
                preferred_element_type=jnp.float32)                        # (C, S)

    o_ref[0] = y.astype(o_ref.dtype)


def attention2d_forward(x, w_qkv, b_qkv, w_o, b_o, w_pw, *, num_heads):
    """Attention2d forward.

    x:      (N, C, H, W)           C == d_model
    w_qkv:  (3C, C)                nn.MultiheadAttention.in_proj_weight
    b_qkv:  (3C,)                  in_proj_bias
    w_o:    (C, C)                 out_proj.weight
    b_o:    (C,)                   out_proj.bias
    w_pw:   (C, C)                 pointwise Conv2d weight (Cout, Cin, 1, 1) squeezed
    returns (N, C, H, W)
    """
    N, C, H, W = x.shape
    assert C % num_heads == 0, "d_model must be divisible by num_heads"
    d_k = C // num_heads
    S = H * W

    # Free, contiguous reshape only (no transpose, no pad): spatial axis -> lanes.
    x_flat = x.reshape(N, C, S)

    kernel = functools.partial(_attention2d_kernel, num_heads=num_heads, d_k=d_k)

    out_flat = pl.pallas_call(
        kernel,
        out_shape=jax.ShapeDtypeStruct((N, C, S), x.dtype),
        grid_spec=pltpu.PrefetchScalarGridSpec(
            num_scalar_prefetch=0,
            grid=(N,),
            in_specs=[
                pl.BlockSpec((1, C, S), lambda n: (n, 0, 0)),      # activations
                pl.BlockSpec((3 * C, C), lambda n: (0, 0)),        # in_proj weight
                pl.BlockSpec((3 * C, 1), lambda n: (0, 0)),        # in_proj bias
                pl.BlockSpec((C, C), lambda n: (0, 0)),            # out_proj weight
                pl.BlockSpec((C, 1), lambda n: (0, 0)),            # out_proj bias
                pl.BlockSpec((C, C), lambda n: (0, 0)),            # pointwise conv weight
            ],
            out_specs=pl.BlockSpec((1, C, S), lambda n: (n, 0, 0)),
        ),
        compiler_params=pltpu.CompilerParams(
            dimension_semantics=("parallel",)),
    )(x_flat,
      w_qkv.astype(x.dtype),
      b_qkv.reshape(3 * C, 1).astype(jnp.float32),
      w_o.astype(x.dtype),
      b_o.reshape(C, 1).astype(jnp.float32),
      w_pw.astype(x.dtype))

    return out_flat.reshape(N, C, H, W)


def _reference(x, w_qkv, b_qkv, w_o, b_o, w_pw, num_heads):
    """Pure-JAX reference mirroring the PyTorch Attention2d forward (eval mode)."""
    N, C, H, W = x.shape
    S = H * W
    d_k = C // num_heads
    xs = jnp.transpose(x.reshape(N, C, S), (0, 2, 1))              # (N, S, C)
    qkv = xs @ w_qkv.T + b_qkv                                     # (N, S, 3C)
    q, k, v = jnp.split(qkv, 3, axis=-1)

    def heads(t):
        return jnp.transpose(t.reshape(N, S, num_heads, d_k), (0, 2, 1, 3))

    qh, kh, vh = heads(q), heads(k), heads(v)
    scores = jnp.einsum("nhqd,nhkd->nhqk", qh, kh) / (d_k ** 0.5)
    p = jax.nn.softmax(scores, axis=-1)
    o = jnp.einsum("nhqk,nhkd->nhqd", p, vh)                       # (N, nh, S, d_k)
    o = jnp.transpose(o, (0, 2, 1, 3)).reshape(N, S, C)
    o = o @ w_o.T + b_o                                            # (N, S, C)
    o = jnp.transpose(o, (0, 2, 1)).reshape(N, C, H, W)
    return jnp.einsum("oc,nchw->nohw", w_pw, o)


if __name__ == "__main__":
    key = jax.random.PRNGKey(0)
    ks = jax.random.split(key, 6)

    N, d_model, H, W = 2, 32, 16, 16
    num_heads = 4   # d_k = 8

    x = jax.random.normal(ks[0], (N, d_model, H, W), dtype=jnp.float32)

    bound = 1.0 / (d_model ** 0.5)
    w_qkv = jax.random.uniform(ks[1], (3 * d_model, d_model), minval=-bound,
                               maxval=bound, dtype=jnp.float32)
    b_qkv = jax.random.uniform(ks[2], (3 * d_model,), minval=-bound,
                               maxval=bound, dtype=jnp.float32)
    w_o = jax.random.uniform(ks[3], (d_model, d_model), minval=-bound,
                             maxval=bound, dtype=jnp.float32)
    b_o = jax.random.uniform(ks[4], (d_model,), minval=-bound,
                             maxval=bound, dtype=jnp.float32)
    w_pw = jax.random.uniform(ks[5], (d_model, d_model), minval=-bound,
                              maxval=bound, dtype=jnp.float32)

    fwd = jax.jit(functools.partial(attention2d_forward, num_heads=num_heads))
    out = jax.block_until_ready(fwd(x, w_qkv, b_qkv, w_o, b_o, w_pw))

    ref = _reference(x, w_qkv, b_qkv, w_o, b_o, w_pw, num_heads)
    assert out.shape == (N, d_model, H, W)
    max_diff = float(jnp.max(jnp.abs(out - ref)))
    assert jnp.allclose(out, ref, atol=2e-2, rtol=2e-2), f"max diff {max_diff}"

    print("KERNEL_OK")
</pallas_src>

<mosaic_0001>
module attributes {stable_mosaic.version = 11 : i64} {
  func.func @_attention2d_kernel(%arg0: i32, %arg1: memref<1x32x256xf32, #tpu.memory_space<vmem>>, %arg2: memref<96x32xf32, #tpu.memory_space<vmem>>, %arg3: memref<96x1xf32, #tpu.memory_space<vmem>>, %arg4: memref<32x32xf32, #tpu.memory_space<vmem>>, %arg5: memref<32x1xf32, #tpu.memory_space<vmem>>, %arg6: memref<32x32xf32, #tpu.memory_space<vmem>>, %arg7: memref<1x32x256xf32, #tpu.memory_space<vmem>>) attributes {dimension_semantics = [#tpu.dimension_semantics<parallel>], iteration_bounds = array<i64: 2>, scalar_prefetch = 0 : i64, scratch_operands = 0 : i64, tpu.core_type = #tpu.core_type<tc>, window_params = [{transform_indices = @transform_0, window_bounds = array<i64: 1, 32, 256>}, {pipeline_mode = #tpu.pipeline_mode<synchronous>, transform_indices = @transform_1, window_bounds = array<i64: 96, 32>}, {pipeline_mode = #tpu.pipeline_mode<synchronous>, transform_indices = @transform_2, window_bounds = array<i64: 96, 1>}, {pipeline_mode = #tpu.pipeline_mode<synchronous>, transform_indices = @transform_3, window_bounds = array<i64: 32, 32>}, {pipeline_mode = #tpu.pipeline_mode<synchronous>, transform_indices = @transform_4, window_bounds = array<i64: 32, 1>}, {pipeline_mode = #tpu.pipeline_mode<synchronous>, transform_indices = @transform_5, window_bounds = array<i64: 32, 32>}, {transform_indices = @transform_6, window_bounds = array<i64: 1, 32, 256>}]} {
    %c0 = arith.constant 0 : index
    %c0_0 = arith.constant 0 : index
    %c0_1 = arith.constant 0 : index
    %0 = vector.load %arg1[%c0, %c0_0, %c0_1] : memref<1x32x256xf32, #tpu.memory_space<vmem>>, vector<1x32x256xf32>
    %1 = vector.shape_cast %0 : vector<1x32x256xf32> to vector<32x256xf32>
    %c0_2 = arith.constant 0 : index
    %c0_3 = arith.constant 0 : index
    %2 = vector.load %arg2[%c0_2, %c0_3] : memref<96x32xf32, #tpu.memory_space<vmem>>, vector<96x32xf32>
    %cst = arith.constant dense<0.000000e+00> : vector<96x256xf32>
    %3 = tpu.matmul %2, %1, %cst {dimension_numbers = #tpu.dot_dimension_numbers<[1], [0], [0], [1], [0, 0, 1, 1], [], []>} : vector<96x32xf32>, vector<32x256xf32>, vector<96x256xf32> -> vector<96x256xf32>
    %c0_4 = arith.constant 0 : index
    %c0_5 = arith.constant 0 : index
    %4 = vector.load %arg3[%c0_4, %c0_5] : memref<96x1xf32, #tpu.memory_space<vmem>>, vector<96x1xf32>
    %5 = vector.broadcast %4 : vector<96x1xf32> to vector<96x256xf32>
    %6 = arith.addf %3, %5 : vector<96x256xf32>
    %7 = vector.extract_strided_slice %6 {offsets = [0, 0], sizes = [32, 256], strides = [1, 1]} : vector<96x256xf32> to vector<32x256xf32>
    %8 = vector.extract_strided_slice %6 {offsets = [32, 0], sizes = [32, 256], strides = [1, 1]} : vector<96x256xf32> to vector<32x256xf32>
    %9 = vector.extract_strided_slice %6 {offsets = [64, 0], sizes = [32, 256], strides = [1, 1]} : vector<96x256xf32> to vector<32x256xf32>
    %10 = vector.extract_strided_slice %7 {offsets = [0, 0], sizes = [8, 256], strides = [1, 1]} : vector<32x256xf32> to vector<8x256xf32>
    %11 = vector.extract_strided_slice %8 {offsets = [0, 0], sizes = [8, 256], strides = [1, 1]} : vector<32x256xf32> to vector<8x256xf32>
    %12 = vector.extract_strided_slice %9 {offsets = [0, 0], sizes = [8, 256], strides = [1, 1]} : vector<32x256xf32> to vector<8x256xf32>
    %13 = tpu.transpose %10, [1, 0] : vector<8x256xf32> -> vector<256x8xf32>
    %cst_6 = arith.constant dense<0.000000e+00> : vector<256x256xf32>
    %14 = tpu.matmul %13, %11, %cst_6 {dimension_numbers = #tpu.dot_dimension_numbers<[1], [0], [0], [1], [0, 0, 1, 1], [], []>} : vector<256x8xf32>, vector<8x256xf32>, vector<256x256xf32> -> vector<256x256xf32>
    %cst_7 = arith.constant 0.353553385 : f32
    %15 = vector.broadcast %cst_7 : f32 to vector<256x256xf32>
    %16 = arith.mulf %14, %15 : vector<256x256xf32>
    %cst_8 = arith.constant dense<0xFF800000> : vector<256xf32>
    %17 = vector.multi_reduction <maximumf>, %16, %cst_8 [1] : vector<256x256xf32> to vector<256xf32>
    %18 = vector.shape_cast %17 : vector<256xf32> to vector<256x1xf32>
    %19 = vector.broadcast %18 : vector<256x1xf32> to vector<256x256xf32>
    %20 = arith.subf %16, %19 : vector<256x256xf32>
    %21 = math.exp %20 : vector<256x256xf32>
    %cst_9 = arith.constant dense<0.000000e+00> : vector<256xf32>
    %22 = vector.multi_reduction <add>, %21, %cst_9 [1] : vector<256x256xf32> to vector<256xf32>
    %23 = vector.shape_cast %22 : vector<256xf32> to vector<256x1xf32>
    %24 = vector.broadcast %23 : vector<256x1xf32> to vector<256x256xf32>
    %25 = arith.divf %21, %24 : vector<256x256xf32>
    %cst_10 = arith.constant dense<0.000000e+00> : vector<8x256xf32>
    %26 = tpu.matmul %12, %25, %cst_10 {dimension_numbers = #tpu.dot_dimension_numbers<[1], [1], [0], [0], [0, 0, 1, 0], [], []>} : vector<8x256xf32>, vector<256x256xf32>, vector<8x256xf32> -> vector<8x256xf32>
    %27 = vector.extract_strided_slice %7 {offsets = [8, 0], sizes = [8, 256], strides = [1, 1]} : vector<32x256xf32> to vector<8x256xf32>
    %28 = vector.extract_strided_slice %8 {offsets = [8, 0], sizes = [8, 256], strides = [1, 1]} : vector<32x256xf32> to vector<8x256xf32>
    %29 = vector.extract_strided_slice %9 {offsets = [8, 0], sizes = [8, 256], strides = [1, 1]} : vector<32x256xf32> to vector<8x256xf32>
    %30 = tpu.transpose %27, [1, 0] : vector<8x256xf32> -> vector<256x8xf32>
    %cst_11 = arith.constant dense<0.000000e+00> : vector<256x256xf32>
    %31 = tpu.matmul %30, %28, %cst_11 {dimension_numbers = #tpu.dot_dimension_numbers<[1], [0], [0], [1], [0, 0, 1, 1], [], []>} : vector<256x8xf32>, vector<8x256xf32>, vector<256x256xf32> -> vector<256x256xf32>
    %cst_12 = arith.constant 0.353553385 : f32
    %32 = vector.broadcast %cst_12 : f32 to vector<256x256xf32>
    %33 = arith.mulf %31, %32 : vector<256x256xf32>
    %cst_13 = arith.constant dense<0xFF800000> : vector<256xf32>
    %34 = vector.multi_reduction <maximumf>, %33, %cst_13 [1] : vector<256x256xf32> to vector<256xf32>
    %35 = vector.shape_cast %34 : vector<256xf32> to vector<256x1xf32>
    %36 = vector.broadcast %35 : vector<256x1xf32> to vector<256x256xf32>
    %37 = arith.subf %33, %36 : vector<256x256xf32>
    %38 = math.exp %37 : vector<256x256xf32>
    %cst_14 = arith.constant dense<0.000000e+00> : vector<256xf32>
    %39 = vector.multi_reduction <add>, %38, %cst_14 [1] : vector<256x256xf32> to vector<256xf32>
    %40 = vector.shape_cast %39 : vector<256xf32> to vector<256x1xf32>
    %41 = vector.broadcast %40 : vector<256x1xf32> to vector<256x256xf32>
    %42 = arith.divf %38, %41 : vector<256x256xf32>
    %cst_15 = arith.constant dense<0.000000e+00> : vector<8x256xf32>
    %43 = tpu.matmul %29, %42, %cst_15 {dimension_numbers = #tpu.dot_dimension_numbers<[1], [1], [0], [0], [0, 0, 1, 0], [], []>} : vector<8x256xf32>, vector<256x256xf32>, vector<8x256xf32> -> vector<8x256xf32>
    %44 = vector.extract_strided_slice %7 {offsets = [16, 0], sizes = [8, 256], strides = [1, 1]} : vector<32x256xf32> to vector<8x256xf32>
    %45 = vector.extract_strided_slice %8 {offsets = [16, 0], sizes = [8, 256], strides = [1, 1]} : vector<32x256xf32> to vector<8x256xf32>
    %46 = vector.extract_strided_slice %9 {offsets = [16, 0], sizes = [8, 256], strides = [1, 1]} : vector<32x256xf32> to vector<8x256xf32>
    %47 = tpu.transpose %44, [1, 0] : vector<8x256xf32> -> vector<256x8xf32>
    %cst_16 = arith.constant dense<0.000000e+00> : vector<256x256xf32>
    %48 = tpu.matmul %47, %45, %cst_16 {dimension_numbers = #tpu.dot_dimension_numbers<[1], [0], [0], [1], [0, 0, 1, 1], [], []>} : vector<256x8xf32>, vector<8x256xf32>, vector<256x256xf32> -> vector<256x256xf32>
    %cst_17 = arith.constant 0.353553385 : f32
    %49 = vector.broadcast %cst_17 : f32 to vector<256x256xf32>
    %50 = arith.mulf %48, %49 : vector<256x256xf32>
    %cst_18 = arith.constant dense<0xFF800000> : vector<256xf32>
    %51 = vector.multi_reduction <maximumf>, %50, %cst_18 [1] : vector<256x256xf32> to vector<256xf32>
    %52 = vector.shape_cast %51 : vector<256xf32> to vector<256x1xf32>
    %53 = vector.broadcast %52 : vector<256x1xf32> to vector<256x256xf32>
    %54 = arith.subf %50, %53 : vector<256x256xf32>
    %55 = math.exp %54 : vector<256x256xf32>
    %cst_19 = arith.constant dense<0.000000e+00> : vector<256xf32>
    %56 = vector.multi_reduction <add>, %55, %cst_19 [1] : vector<256x256xf32> to vector<256xf32>
    %57 = vector.shape_cast %56 : vector<256xf32> to vector<256x1xf32>
    %58 = vector.broadcast %57 : vector<256x1xf32> to vector<256x256xf32>
    %59 = arith.divf %55, %58 : vector<256x256xf32>
    %cst_20 = arith.constant dense<0.000000e+00> : vector<8x256xf32>
    %60 = tpu.matmul %46, %59, %cst_20 {dimension_numbers = #tpu.dot_dimension_numbers<[1], [1], [0], [0], [0, 0, 1, 0], [], []>} : vector<8x256xf32>, vector<256x256xf32>, vector<8x256xf32> -> vector<8x256xf32>
    %61 = vector.extract_strided_slice %7 {offsets = [24, 0], sizes = [8, 256], strides = [1, 1]} : vector<32x256xf32> to vector<8x256xf32>
    %62 = vector.extract_strided_slice %8 {offsets = [24, 0], sizes = [8, 256], strides = [1, 1]} : vector<32x256xf32> to vector<8x256xf32>
    %63 = vector.extract_strided_slice %9 {offsets = [24, 0], sizes = [8, 256], strides = [1, 1]} : vector<32x256xf32> to vector<8x256xf32>
    %64 = tpu.transpose %61, [1, 0] : vector<8x256xf32> -> vector<256x8xf32>
    %cst_21 = arith.constant dense<0.000000e+00> : vector<256x256xf32>
    %65 = tpu.matmul %64, %62, %cst_21 {dimension_numbers = #tpu.dot_dimension_numbers<[1], [0], [0], [1], [0, 0, 1, 1], [], []>} : vector<256x8xf32>, vector<8x256xf32>, vector<256x256xf32> -> vector<256x256xf32>
    %cst_22 = arith.constant 0.353553385 : f32
    %66 = vector.broadcast %cst_22 : f32 to vector<256x256xf32>
    %67 = arith.mulf %65, %66 : vector<256x256xf32>
    %cst_23 = arith.constant dense<0xFF800000> : vector<256xf32>
    %68 = vector.multi_reduction <maximumf>, %67, %cst_23 [1] : vector<256x256xf32> to vector<256xf32>
    %69 = vector.shape_cast %68 : vector<256xf32> to vector<256x1xf32>
    %70 = vector.broadcast %69 : vector<256x1xf32> to vector<256x256xf32>
    %71 = arith.subf %67, %70 : vector<256x256xf32>
    %72 = math.exp %71 : vector<256x256xf32>
    %cst_24 = arith.constant dense<0.000000e+00> : vector<256xf32>
    %73 = vector.multi_reduction <add>, %72, %cst_24 [1] : vector<256x256xf32> to vector<256xf32>
    %74 = vector.shape_cast %73 : vector<256xf32> to vector<256x1xf32>
    %75 = vector.broadcast %74 : vector<256x1xf32> to vector<256x256xf32>
    %76 = arith.divf %72, %75 : vector<256x256xf32>
    %cst_25 = arith.constant dense<0.000000e+00> : vector<8x256xf32>
    %77 = tpu.matmul %63, %76, %cst_25 {dimension_numbers = #tpu.dot_dimension_numbers<[1], [1], [0], [0], [0, 0, 1, 0], [], []>} : vector<8x256xf32>, vector<256x256xf32>, vector<8x256xf32> -> vector<8x256xf32>
    %78 = tpu.concatenate %26, %43, %60, %77 in 0 : vector<8x256xf32>, vector<8x256xf32>, vector<8x256xf32>, vector<8x256xf32> -> vector<32x256xf32>
    %c0_26 = arith.constant 0 : index
    %c0_27 = arith.constant 0 : index
    %79 = vector.load %arg4[%c0_26, %c0_27] : memref<32x32xf32, #tpu.memory_space<vmem>>, vector<32x32xf32>
    %cst_28 = arith.constant dense<0.000000e+00> : vector<32x256xf32>
    %80 = tpu.matmul %79, %78, %cst_28 {dimension_numbers = #tpu.dot_dimension_numbers<[1], [0], [0], [1], [0, 0, 1, 1], [], []>} : vector<32x32xf32>, vector<32x256xf32>, vector<32x256xf32> -> vector<32x256xf32>
    %c0_29 = arith.constant 0 : index
    %c0_30 = arith.constant 0 : index
    %81 = vector.load %arg5[%c0_29, %c0_30] : memref<32x1xf32, #tpu.memory_space<vmem>>, vector<32x1xf32>
    %82 = vector.broadcast %81 : vector<32x1xf32> to vector<32x256xf32>
    %83 = arith.addf %80, %82 : vector<32x256xf32>
    %c0_31 = arith.constant 0 : index
    %c0_32 = arith.constant 0 : index
    %84 = vector.load %arg6[%c0_31, %c0_32] : memref<32x32xf32, #tpu.memory_space<vmem>>, vector<32x32xf32>
    %cst_33 = arith.constant dense<0.000000e+00> : vector<32x256xf32>
    %85 = tpu.matmul %84, %83, %cst_33 {dimension_numbers = #tpu.dot_dimension_numbers<[1], [0], [0], [1], [0, 0, 1, 1], [], []>} : vector<32x32xf32>, vector<32x256xf32>, vector<32x256xf32> -> vector<32x256xf32>
    %c0_34 = arith.constant 0 : index
    %c0_35 = arith.constant 0 : index
    %c0_36 = arith.constant 0 : index
    %86 = vector.load %arg7[%c0_34, %c0_35, %c0_36] : memref<1x32x256xf32, #tpu.memory_space<vmem>>, vector<1x32x256xf32>
    %87 = vector.shape_cast %86 : vector<1x32x256xf32> to vector<32x256xf32>
    %88 = vector.shape_cast %85 : vector<32x256xf32> to vector<1x32x256xf32>
    tpu.vector_store %arg7[%c0_34, %c0_35, %c0_36], %88 {strides = array<i32>} : memref<1x32x256xf32, #tpu.memory_space<vmem>>, vector<1x32x256xf32>,
    return
  }
  func.func @transform_0(%arg0: i32) -> (i32, i32, i32) {
    %c0_i32 = arith.constant 0 : i32
    %c0_i32_0 = arith.constant 0 : i32
    %c0_i32_1 = arith.constant 0 : i32
    return %arg0, %c0_i32, %c0_i32_0 : i32, i32, i32
  }
  func.func @transform_1(%arg0: i32) -> (i32, i32) {
    %c0_i32 = arith.constant 0 : i32
    %c0_i32_0 = arith.constant 0 : i32
    %c0_i32_1 = arith.constant 0 : i32
    return %c0_i32, %c0_i32_0 : i32, i32
  }
  func.func @transform_2(%arg0: i32) -> (i32, i32) {
    %c0_i32 = arith.constant 0 : i32
    %c0_i32_0 = arith.constant 0 : i32
    %c0_i32_1 = arith.constant 0 : i32
    return %c0_i32, %c0_i32_0 : i32, i32
  }
  func.func @transform_3(%arg0: i32) -> (i32, i32) {
    %c0_i32 = arith.constant 0 : i32
    %c0_i32_0 = arith.constant 0 : i32
    %c0_i32_1 = arith.constant 0 : i32
    return %c0_i32, %c0_i32_0 : i32, i32
  }
  func.func @transform_4(%arg0: i32) -> (i32, i32) {
    %c0_i32 = arith.constant 0 : i32
    %c0_i32_0 = arith.constant 0 : i32
    %c0_i32_1 = arith.constant 0 : i32
    return %c0_i32, %c0_i32_0 : i32, i32
  }
  func.func @transform_5(%arg0: i32) -> (i32, i32) {
    %c0_i32 = arith.constant 0 : i32
    %c0_i32_0 = arith.constant 0 : i32
    %c0_i32_1 = arith.constant 0 : i32
    return %c0_i32, %c0_i32_0 : i32, i32
  }
  func.func @transform_6(%arg0: i32) -> (i32, i32, i32) {
    %c0_i32 = arith.constant 0 : i32
    %c0_i32_0 = arith.constant 0 : i32
    %c0_i32_1 = arith.constant 0 : i32
    return %arg0, %c0_i32, %c0_i32_0 : i32, i32, i32
  }
}

</mosaic_0001>

<bundles_post_ra>
// kernel: attention2d_forward.1
= control target key start
LH: loop header
LB: loop body
LE: loop exit
PB: predicated region body
PF: predicated region fallthrough
CT: control target
= control target key end

     0   :  { %s5938_s21 = smov 0   ;;  %s8881_s0 = inlined_call_operand.vmem [shape: f32[2,32,256], index: 0, kind: input, shape index: {}]   ;;  %s8882_s1 = inlined_call_operand.vmem [shape: f32[96,32], index: 1, kind: input, shape index: {}]   ;;  %s8883_s2 = inlined_call_operand.vmem [shape: f32[96,1], index: 2, kind: input, shape index: {}]   ;;  %s8884_s3 = inlined_call_operand.vmem [shape: f32[32,32], index: 3, kind: input, shape index: {}]   ;;  %s8885_s4 = inlined_call_operand.vmem [shape: f32[32,1], index: 4, kind: input, shape index: {}]   ;;  %s8886_s5 = inlined_call_operand.vmem [shape: f32[32,32], index: 5, kind: input, shape index: {}]   ;;  %s8887_s6 = inlined_call_operand.vmem [shape: f32[2,32,256], index: 6, kind: output, shape index: {}]  }
   0x1 LB: > { %s4944_s22 = sadd.s32 4294967295, %s5899_s21   ;;  %p4948_p0 = scmp.ge.s32.totalorder %s5899_s21, 1  ;;  %s5899_s21 = sphi %s5938_s21, %s16_s21  }
   0x2   : > { %p212_p1 = scmp.lt.s32.totalorder %s5899_s21, 3 }
   0x4   : > { %p213_p2 = pnand %p4948_p0, %p212_p1 }
   0x6   : > { %216 = sbr.rel (%p213_p2) target bundleno = 2499 (0x9c3), region = 44 }
   0xb   : > { %p242_p3 = scmp.lt.s32.totalorder %s4944_s22, 1  ;;  %v8888_v0 = vmov 0.0   ;;  %v5902_v1 = vmov 0   ;;  %v273_v2 = vld [vmem:[%s8883_s2 + $0x8] sm:$0xff]  ;;  %v272_v3 = vld [vmem:[%s8883_s2] sm:$0xff]  ;;  %vm344_vm0 = vcmask 261120  }
   0xc   : > { %445 = vmatprep.mubr.f32.mxu0 %v8888_v0  ;;  %5123 = vset.pattern.permute.xlu0 %v5902_v1  ;;  %v277_v4 = vld [vmem:[%s8883_s2 + $0x28] sm:$0xff]  ;;  %v276_v5 = vld [vmem:[%s8883_s2 + $0x20] sm:$0xff]  ;;  %v262_v16 = vld [vmem:[%s8882_s1 + $0x10] sm:$0xff]  ;;  %vm582_vm1 = vcmask 64512  }
   0xd   : > { %s9967_s22 = smov (!%p242_p3, %s4944_s22), 1  ;;  %291 = vperm.xlu0 %5123, %v273_v2   ;;  %5124 = vset.pattern.permute.xlu1 %v5902_v1  ;;  %v260_v14 = vld [vmem:[%s8882_s1] sm:$0xff]  ;;  %v261_v15 = vld [vmem:[%s8882_s1 + $0x8] sm:$0xff]  ;;  %v263_v17 = vld [vmem:[%s8882_s1 + $0x18] sm:$0xff] }
   0xe   : > { %511 = vmatprep.mubr.f32.mxu1 %v8888_v0  ;;  %s5103_s29 = sshll.u32 %s9967_s22, 6  ;;  %311 = vperm.xlu1 %5124, %v277_v4   ;;  %v264_v18 = vld [vmem:[%s8882_s1 + $0x20] sm:$0xff]  ;;  %v265_v19 = vld [vmem:[%s8882_s1 + $0x28] sm:$0xff]  ;;  %v271_v20 = vld [vmem:[%s8882_s1 + $0x58] sm:$0xff] }
   0xf   : > { %s246_s8 = scalar_lea.vmem %s8881_s0, %s5103_s29  ;;  %v266_v21 = vld [vmem:[%s8882_s1 + $0x30] sm:$0xff]  ;;  %v267_v22 = vld [vmem:[%s8882_s1 + $0x38] sm:$0xff]  ;;  %v268_v23 = vld [vmem:[%s8882_s1 + $0x40] sm:$0xff]  ;;  %s251_s14 = scalar_lea.vmem %s8887_s6, %s5103_s29 }
  0x10   : > { %v259_v6 = vld [vmem:[%s246_s8 + $0x38] sm:$0xff]  ;;  %v258_v7 = vld [vmem:[%s246_s8 + $0x30] sm:$0xff]  ;;  %v257_v8 = vld [vmem:[%s246_s8 + $0x28] sm:$0xff] }
  0x11   : > { %286 = vperm.xlu0 %5123, %v272_v3   ;;  %405 = vmatprep.subr.mxu0 %v259_v6  ;;  %v256_v9 = vld [vmem:[%s246_s8 + $0x20] sm:$0xff]  ;;  %v255_v10 = vld [vmem:[%s246_s8 + $0x18] sm:$0xff]  ;;  %v254_v11 = vld [vmem:[%s246_s8 + $0x10] sm:$0xff] }
  0x12   : > { %5105 = vmatprep.subr.mxu1 %v259_v6  ;;  %406 = vmatpush1.msra.mxu0 %v258_v7  ;;  %v253_v12 = vld [vmem:[%s246_s8 + $0x8] sm:$0xff]  ;;  %v252_v13 = vld [vmem:[%s246_s8] sm:$0xff]  ;;  %v270_v25 = vld [vmem:[%s8882_s1 + $0x50] sm:$0xff] }
  0x13   : > { %306 = vperm.xlu1 %5124, %v276_v5   ;;  %407 = vmatprep.subr.mxu0 %v257_v8  ;;  %v269_v24 = vld [vmem:[%s8882_s1 + $0x48] sm:$0xff] }
  0x14   : > { %5109 = vmatpush1.msra.mxu1 %v258_v7  ;;  %408 = vmatpush1.msra.mxu0 %v256_v9 }
  0x15   : > { %5106 = vmatprep.subr.mxu1 %v257_v8  ;;  %409 = vmatprep.subr.mxu0 %v255_v10 }
  0x16   : > { %5110 = vmatpush1.msra.mxu1 %v256_v9  ;;  %410 = vmatpush1.msra.mxu0 %v254_v11 }
  0x17   : > { %5107 = vmatprep.subr.mxu1 %v255_v10  ;;  %411 = vmatprep.subr.mxu0 %v253_v12 }
  0x18   : > { %5111 = vmatpush1.msra.mxu1 %v254_v11  ;;  %412 = vmatpush1.msra.mxu0 %v252_v13 }
  0x19   : > { %5108 = vmatprep.subr.mxu1 %v253_v12  ;;  %4953 = vmatmul.mubr.msk.f32.vlgmr.msra.gmra.mxu0 %vm344_vm0, %v260_v14 }
  0x1a   : > { %5112 = vmatpush1.msra.mxu1 %v252_v13  ;;  %451 = vmatprep.mubr.f32.mxu0 %v8888_v0 }
  0x1b   : > { %4964 = vmatmul.mubr.msk.f32.vlgmr.msra.gmra.mxu1 %vm344_vm0, %v271_v20 }
  0x1c   : > { %743 = vmatprep.mubr.f32.mxu1 %v8888_v0 }
  0x1d   : > { %4954 = vmatmul.mubr.msk.f32.gmra.mxu0 %vm344_vm0, %v261_v15 }
  0x1e   : > { %457 = vmatprep.mubr.f32.mxu0 %v8888_v0 }
  0x21   : > { %4955 = vmatmul.mubr.msk.f32.gmra.mxu0 %vm344_vm0, %v262_v16 }
  0x22   : > { %463 = vmatprep.mubr.f32.mxu0 %v8888_v0 }
  0x25   : > { %4956 = vmatmul.mubr.msk.f32.gmra.mxu0 %vm344_vm0, %v263_v17 }
  0x26   : > { %469 = vmatprep.mubr.f32.mxu0 %v8888_v0 }
  0x29   : > { %4957 = vmatmul.mubr.msk.f32.gmra.mxu0 %vm344_vm0, %v264_v18 }
  0x2a   : > { %475 = vmatprep.mubr.f32.mxu0 %v8888_v0 }
  0x2d   : > { %4958 = vmatmul.mubr.msk.f32.gmra.mxu0 %vm344_vm0, %v265_v19 }
  0x2e   : > { %481 = vmatprep.mubr.f32.mxu0 %v8888_v0 }
  0x31   : > { %4959 = vmatmul.mubr.msk.f32.gmra.mxu0 %vm344_vm0, %v266_v21 }
  0x32   : > { %487 = vmatprep.mubr.f32.mxu0 %v8888_v0 }
  0x35   : > { %4960 = vmatmul.mubr.msk.f32.gmra.mxu0 %vm344_vm0, %v267_v22 }
  0x36   : > { %493 = vmatprep.mubr.f32.mxu0 %v8888_v0 }
  0x39   : > { %4961 = vmatmul.mubr.msk.f32.gmra.mxu0 %vm344_vm0, %v268_v23 }
  0x3a   : > { %499 = vmatprep.mubr.f32.mxu0 %v8888_v0 }
  0x3d   : > { %4962 = vmatmul.mubr.msk.f32.gmra.mxu0 %vm344_vm0, %v269_v24 }
  0x3e   : > { %505 = vmatprep.mubr.f32.mxu0 %v8888_v0 }
  0x41   : > { %4963 = vmatmul.mubr.msk.f32.gmra.mxu0 %vm344_vm0, %v270_v25 }
  0x42   : > { %1775 = vmatprep.mubr.f32.mxu0 %v8888_v0 }
  0x88   : > { %v292_v26 = vpop.permute.xlu0 %291 }
  0x89   : > { %v312_v35 = vpop.permute.xlu1 %311 }
  0x8c   : > { %v287_v27 = vpop.permute.xlu0 %286 }
  0x8e   : > { %v307_v39 = vpop.permute.xlu1 %306 }
  0xd9   : > { %v447_v28 = vpop.f32.mrf.mxu0 }
  0xda   : > { %v448_v29 = vadd.f32 %v447_v28, %v287_v27 }
  0xdb   : > { %v449_v30 = vpop.f32.mrf.mxu0 }
  0xdc   : > { %518 = vxpose.xlu1.b32.start.end [1/1] (short) %v448_v29, 128  ;;  %v450_v48 = vadd.f32 %v449_v30, %v287_v27 }
  0xdd   : > { %v453_v31 = vpop.f32.mrf.mxu0 }
  0xde   : > { %v454_v32 = vadd.f32 %v453_v31, %v292_v26 }
  0xdf   : > { %v455_v33 = vpop.f32.mrf.mxu0 }
  0xe0   : > { %1551 = vxpose.xlu0.b32.start.end [1/1] (short) %v454_v32, 128  ;;  %v456_v49 = vadd.f32 %v455_v33, %v292_v26 }
  0xe1   : > { %v6028_v34 = vpop.f32.mrf.mxu0 }
  0xe2   : > { %9224 = vst [vmem:[#allocation2_spill] sm:$0xff] %v6028_v34 }
  0xe3   : > { %v6030_v36 = vpop.f32.mrf.mxu0 }
  0xe4   : > { %9225 = vst [vmem:[#allocation3_spill] sm:$0xff] %v6030_v36 }
  0xe5   : > { %v6032_v37 = vpop.f32.mrf.mxu0 }
  0xe6   : > { %9226 = vst [vmem:[#allocation4_spill] sm:$0xff] %v6032_v37 }
  0xe7   : > { %v6034_v38 = vpop.f32.mrf.mxu0 }
  0xe8   : > { %9227 = vst [vmem:[#allocation5_spill] sm:$0xff] %v6034_v38 }
  0xe9   : > { %v471_v40 = vpop.f32.mrf.mxu0 }
  0xea   : > { %v472_v42 = vadd.f32 %v471_v40, %v307_v39 }
  0xeb   : > { %v473_v41 = vpop.f32.mrf.mxu0 }
  0xec   : > { %v474_v43 = vadd.f32 %v473_v41, %v307_v39 }
  0xed   : > { %v477_v44 = vpop.f32.mrf.mxu0 }
  0xee   : > { %709 = vmatprep.subr.mxu1 %v474_v43  ;;  %v478_v45 = vadd.f32 %v477_v44, %v312_v35 }
  0xef   : > { %v479_v46 = vpop.f32.mrf.mxu0  ;;  %710 = vmatpush1.msra.mxu1 %v472_v42 }
  0xf0   : > { %v480_v47 = vadd.f32 %v479_v46, %v312_v35 }
  0xf2   : > { %1741 = vmatprep.subr.mxu0 %v480_v47 }
  0xf3   : > { %1742 = vmatpush1.msra.mxu0 %v478_v45 }
 0x119   : > { %550 = vxpose.xlu1.b32.start.end [1/1] (short) %v450_v48, 128 }
 0x11d   : > { %1583 = vxpose.xlu0.b32.start.end [1/1] (short) %v456_v49, 128 }
 0x158   : > { %v534_v50 = vpop.trf.xlu1 }
 0x159   : > { %4965 = vmatmul.mubr.msk.f32.vlgmr.msra.gmra.mxu1 %vm582_vm1, %v534_v50 }
 0x15a   : > { %749 = vmatprep.mubr.f32.mxu1 %v8888_v0 }
 0x15c   : > { %v1567_v51 = vpop.trf.xlu0  ;;  %v535_v52 = vpop.trf.xlu1 }
 0x15d   : > { %4966 = vmatmul.mubr.msk.f32.gmra.mxu1 %vm582_vm1, %v535_v52  ;;  %4997 = vmatmul.mubr.msk.f32.vlgmr.msra.gmra.mxu0 %vm582_vm1, %v1567_v51 }
 0x15e   : > { %1781 = vmatprep.mubr.f32.mxu0 %v8888_v0  ;;  %755 = vmatprep.mubr.f32.mxu1 %v8888_v0 }
 0x160   : > { %v1568_v53 = vpop.trf.xlu0  ;;  %v536_v54 = vpop.trf.xlu1 }
 0x161   : > { %4967 = vmatmul.mubr.msk.f32.gmra.mxu1 %vm582_vm1, %v536_v54  ;;  %4998 = vmatmul.mubr.msk.f32.gmra.mxu0 %vm582_vm1, %v1568_v53 }
 0x162   : > { %1787 = vmatprep.mubr.f32.mxu0 %v8888_v0  ;;  %761 = vmatprep.mubr.f32.mxu1 %v8888_v0 }
 0x164   : > { %v1569_v55 = vpop.trf.xlu0  ;;  %v537_v56 = vpop.trf.xlu1 }
 0x165   : > { %4968 = vmatmul.mubr.msk.f32.gmra.mxu1 %vm582_vm1, %v537_v56  ;;  %4999 = vmatmul.mubr.msk.f32.gmra.mxu0 %vm582_vm1, %v1569_v55  ;;  %v6162_v55 = vpop.f32.mrf.mxu0 }
 0x166   : > { %1793 = vmatprep.mubr.f32.mxu0 %v8888_v0  ;;  %767 = vmatprep.mubr.f32.mxu1 %v8888_v0  ;;  %9228 = vst [vmem:[#allocation6_spill] sm:$0xff] %v6162_v55 }
 0x167   : > { %v6164_v56 = vpop.f32.mrf.mxu0 }
 0x168   : > { %v1570_v57 = vpop.trf.xlu0  ;;  %v538_v58 = vpop.trf.xlu1  ;;  %9229 = vst [vmem:[#allocation7_spill] sm:$0xff] %v6164_v56 }
 0x169   : > { %4969 = vmatmul.mubr.msk.f32.gmra.mxu1 %vm582_vm1, %v538_v58  ;;  %5000 = vmatmul.mubr.msk.f32.gmra.mxu0 %vm582_vm1, %v1570_v57  ;;  %v6166_v57 = vpop.f32.mrf.mxu0 }
 0x16a   : > { %1799 = vmatprep.mubr.f32.mxu0 %v8888_v0  ;;  %773 = vmatprep.mubr.f32.mxu1 %v8888_v0  ;;  %9230 = vst [vmem:[#allocation8_spill] sm:$0xff] %v6166_v57 }
 0x16b   : > { %v6168_v58 = vpop.f32.mrf.mxu0 }
 0x16c   : > { %v1571_v59 = vpop.trf.xlu0  ;;  %v539_v60 = vpop.trf.xlu1  ;;  %9231 = vst [vmem:[#allocation9_spill] sm:$0xff] %v6168_v58 }
 0x16d   : > { %4970 = vmatmul.mubr.msk.f32.gmra.mxu1 %vm582_vm1, %v539_v60  ;;  %5001 = vmatmul.mubr.msk.f32.gmra.mxu0 %vm582_vm1, %v1571_v59  ;;  %v6170_v59 = vpop.f32.mrf.mxu0 }
 0x16e   : > { %1805 = vmatprep.mubr.f32.mxu0 %v8888_v0  ;;  %779 = vmatprep.mubr.f32.mxu1 %v8888_v0  ;;  %9232 = vst [vmem:[#allocation10_spill] sm:$0xff] %v6170_v59 }
 0x16f   : > { %v6172_v60 = vpop.f32.mrf.mxu0 }
 0x170   : > { %v1572_v61 = vpop.trf.xlu0  ;;  %v540_v62 = vpop.trf.xlu1  ;;  %9233 = vst [vmem:[#allocation11_spill] sm:$0xff] %v6172_v60 }
 0x171   : > { %4971 = vmatmul.mubr.msk.f32.gmra.mxu1 %vm582_vm1, %v540_v62  ;;  %5002 = vmatmul.mubr.msk.f32.gmra.mxu0 %vm582_vm1, %v1572_v61  ;;  %v6174_v61 = vpop.f32.mrf.mxu0  ;;  %v6176_v62 = vpop.f32.mrf.mxu1 }
 0x172   : > { %1811 = vmatprep.mubr.f32.mxu0 %v8888_v0  ;;  %785 = vmatprep.mubr.f32.mxu1 %v8888_v0  ;;  %9234 = vst [vmem:[#allocation12_spill] sm:$0xff] %v6174_v61  ;;  %9235 = vst [vmem:[#allocation13_spill] sm:$0xff] %v6176_v62 }
 0x174   : > { %v1573_v63 = vpop.trf.xlu0  ;;  %v541_v1 = vpop.trf.xlu1 }
 0x175   : > { %4972 = vmatmul.mubr.msk.f32.gmra.mxu1 %vm582_vm1, %v541_v1  ;;  %5003 = vmatmul.mubr.msk.f32.gmra.mxu0 %vm582_vm1, %v1573_v63  ;;  %v6178_v63 = vpop.f32.mrf.mxu0  ;;  %v6180_v1 = vpop.f32.mrf.mxu1 }
 0x176   : > { %1817 = vmatprep.mubr.f32.mxu0 %v8888_v0  ;;  %791 = vmatprep.mubr.f32.mxu1 %v8888_v0  ;;  %9236 = vst [vmem:[#allocation14_spill] sm:$0xff] %v6178_v63  ;;  %9237 = vst [vmem:[#allocation15_spill] sm:$0xff] %v6180_v1 }
 0x178   : > { %v1574_v2 = vpop.trf.xlu0  ;;  %v542_v3 = vpop.trf.xlu1 }
 0x179   : > { %4973 = vmatmul.mubr.msk.f32.gmra.mxu1 %vm582_vm1, %v542_v3  ;;  %5004 = vmatmul.mubr.msk.f32.gmra.mxu0 %vm582_vm1, %v1574_v2  ;;  %v6182_v2 = vpop.f32.mrf.mxu0 }
 0x17a   : > { %1823 = vmatprep.mubr.f32.mxu0 %v8888_v0  ;;  %797 = vmatprep.mubr.f32.mxu1 %v8888_v0  ;;  %9238 = vst [vmem:[#allocation16_spill] sm:$0xff] %v6182_v2 }
 0x17c   : > { %v1575_v4 = vpop.trf.xlu0  ;;  %v543_v5 = vpop.trf.xlu1 }
 0x17d   : > { %4974 = vmatmul.mubr.msk.f32.gmra.mxu1 %vm582_vm1, %v543_v5  ;;  %5005 = vmatmul.mubr.msk.f32.gmra.mxu0 %vm582_vm1, %v1575_v4  ;;  %v6184_v4 = vpop.f32.mrf.mxu0 }
 0x17e   : > { %1829 = vmatprep.mubr.f32.mxu0 %v8888_v0  ;;  %803 = vmatprep.mubr.f32.mxu1 %v8888_v0  ;;  %9239 = vst [vmem:[#allocation17_spill] sm:$0xff] %v6184_v4 }
 0x180   : > { %v1576_v6 = vpop.trf.xlu0  ;;  %v544_v7 = vpop.trf.xlu1 }
 0x181   : > { %4975 = vmatmul.mubr.msk.f32.gmra.mxu1 %vm582_vm1, %v544_v7  ;;  %5006 = vmatmul.mubr.msk.f32.gmra.mxu0 %vm582_vm1, %v1576_v6 }
 0x182   : > { %1835 = vmatprep.mubr.f32.mxu0 %v8888_v0  ;;  %809 = vmatprep.mubr.f32.mxu1 %v8888_v0 }
 0x184   : > { %v1577_v8 = vpop.trf.xlu0  ;;  %v545_v9 = vpop.trf.xlu1 }
 0x185   : > { %4976 = vmatmul.mubr.msk.f32.gmra.mxu1 %vm582_vm1, %v545_v9  ;;  %5007 = vmatmul.mubr.msk.f32.gmra.mxu0 %vm582_vm1, %v1577_v8 }
 0x186   : > { %1841 = vmatprep.mubr.f32.mxu0 %v8888_v0  ;;  %815 = vmatprep.mubr.f32.mxu1 %v8888_v0 }
 0x188   : > { %v1578_v10 = vpop.trf.xlu0  ;;  %v546_v11 = vpop.trf.xlu1 }
 0x189   : > { %4977 = vmatmul.mubr.msk.f32.gmra.mxu1 %vm582_vm1, %v546_v11  ;;  %5008 = vmatmul.mubr.msk.f32.gmra.mxu0 %vm582_vm1, %v1578_v10 }
 0x18a   : > { %1847 = vmatprep.mubr.f32.mxu0 %v8888_v0  ;;  %821 = vmatprep.mubr.f32.mxu1 %v8888_v0 }
 0x18c   : > { %v1579_v12 = vpop.trf.xlu0  ;;  %v547_v13 = vpop.trf.xlu1 }
 0x18d   : > { %4978 = vmatmul.mubr.msk.f32.gmra.mxu1 %vm582_vm1, %v547_v13  ;;  %5009 = vmatmul.mubr.msk.f32.gmra.mxu0 %vm582_vm1, %v1579_v12 }
 0x18e   : > { %1853 = vmatprep.mubr.f32.mxu0 %v8888_v0  ;;  %827 = vmatprep.mubr.f32.mxu1 %v8888_v0 }
 0x190   : > { %v1580_v14 = vpop.trf.xlu0  ;;  %v548_v15 = vpop.trf.xlu1 }
 0x191   : > { %4979 = vmatmul.mubr.msk.f32.gmra.mxu1 %vm582_vm1, %v548_v15  ;;  %5010 = vmatmul.mubr.msk.f32.gmra.mxu0 %vm582_vm1, %v1580_v14 }
 0x192   : > { %1859 = vmatprep.mubr.f32.mxu0 %v8888_v0  ;;  %833 = vmatprep.mubr.f32.mxu1 %v8888_v0 }
 0x194   : > { %v1581_v16 = vpop.trf.xlu0  ;;  %v549_v17 = vpop.trf.xlu1 }
 0x195   : > { %4980 = vmatmul.mubr.msk.f32.gmra.mxu1 %vm582_vm1, %v549_v17  ;;  %5011 = vmatmul.mubr.msk.f32.gmra.mxu0 %vm582_vm1, %v1581_v16 }
 0x196   : > { %1865 = vmatprep.mubr.f32.mxu0 %v8888_v0  ;;  %839 = vmatprep.mubr.f32.mxu1 %v8888_v0 }
 0x198   : > { %v1582_v18 = vpop.trf.xlu0  ;;  %v566_v19 = vpop.trf.xlu1 }
 0x199   : > { %5012 = vmatmul.mubr.msk.f32.gmra.mxu0 %vm582_vm1, %v1582_v18  ;;  %4981 = vmatmul.mubr.msk.f32.gmra.mxu1 %vm582_vm1, %v566_v19 }
 0x19a   : > { %1871 = vmatprep.mubr.f32.mxu0 %v8888_v0  ;;  %845 = vmatprep.mubr.f32.mxu1 %v8888_v0 }
 0x19c   : > { %v1599_v20 = vpop.trf.xlu0  ;;  %v567_v21 = vpop.trf.xlu1 }
 0x19d   : > { %5013 = vmatmul.mubr.msk.f32.gmra.mxu0 %vm582_vm1, %v1599_v20  ;;  %4982 = vmatmul.mubr.msk.f32.gmra.mxu1 %vm582_vm1, %v567_v21 }
 0x19e   : > { %1877 = vmatprep.mubr.f32.mxu0 %v8888_v0  ;;  %851 = vmatprep.mubr.f32.mxu1 %v8888_v0 }
 0x1a0   : > { %v1600_v22 = vpop.trf.xlu0  ;;  %v568_v23 = vpop.trf.xlu1 }
 0x1a1   : > { %5014 = vmatmul.mubr.msk.f32.gmra.mxu0 %vm582_vm1, %v1600_v22  ;;  %4983 = vmatmul.mubr.msk.f32.gmra.mxu1 %vm582_vm1, %v568_v23 }
 0x1a2   : > { %1883 = vmatprep.mubr.f32.mxu0 %v8888_v0  ;;  %857 = vmatprep.mubr.f32.mxu1 %v8888_v0 }
 0x1a4   : > { %v1601_v24 = vpop.trf.xlu0  ;;  %v569_v25 = vpop.trf.xlu1 }
 0x1a5   : > { %5015 = vmatmul.mubr.msk.f32.gmra.mxu0 %vm582_vm1, %v1601_v24  ;;  %4984 = vmatmul.mubr.msk.f32.gmra.mxu1 %vm582_vm1, %v569_v25 }
 0x1a6   : > { %1889 = vmatprep.mubr.f32.mxu0 %v8888_v0  ;;  %863 = vmatprep.mubr.f32.mxu1 %v8888_v0 }
 0x1a8   : > { %v1602_v26 = vpop.trf.xlu0  ;;  %v570_v27 = vpop.trf.xlu1 }
 0x1a9   : > { %5016 = vmatmul.mubr.msk.f32.gmra.mxu0 %vm582_vm1, %v1602_v26  ;;  %4985 = vmatmul.mubr.msk.f32.gmra.mxu1 %vm582_vm1, %v570_v27 }
 0x1aa   : > { %1895 = vmatprep.mubr.f32.mxu0 %v8888_v0  ;;  %869 = vmatprep.mubr.f32.mxu1 %v8888_v0 }
 0x1ac   : > { %v1603_v28 = vpop.trf.xlu0  ;;  %v571_v29 = vpop.trf.xlu1 }
 0x1ad   : > { %5017 = vmatmul.mubr.msk.f32.gmra.mxu0 %vm582_vm1, %v1603_v28  ;;  %4986 = vmatmul.mubr.msk.f32.gmra.mxu1 %vm582_vm1, %v571_v29 }
 0x1ae   : > { %1901 = vmatprep.mubr.f32.mxu0 %v8888_v0  ;;  %875 = vmatprep.mubr.f32.mxu1 %v8888_v0 }
 0x1b0   : > { %v1604_v30 = vpop.trf.xlu0  ;;  %v572_v31 = vpop.trf.xlu1 }
 0x1b1   : > { %5018 = vmatmul.mubr.msk.f32.gmra.mxu0 %vm582_vm1, %v1604_v30  ;;  %4987 = vmatmul.mubr.msk.f32.gmra.mxu1 %vm582_vm1, %v572_v31 }
 0x1b2   : > { %1907 = vmatprep.mubr.f32.mxu0 %v8888_v0  ;;  %881 = vmatprep.mubr.f32.mxu1 %v8888_v0 }
 0x1b4   : > { %v1605_v32 = vpop.trf.xlu0  ;;  %v573_v33 = vpop.trf.xlu1 }
 0x1b5   : > { %5019 = vmatmul.mubr.msk.f32.gmra.mxu0 %vm582_vm1, %v1605_v32  ;;  %4988 = vmatmul.mubr.msk.f32.gmra.mxu1 %vm582_vm1, %v573_v33 }
 0x1b6   : > { %1913 = vmatprep.mubr.f32.mxu0 %v8888_v0  ;;  %887 = vmatprep.mubr.f32.mxu1 %v8888_v0 }
 0x1b8   : > { %v1606_v35 = vpop.trf.xlu0  ;;  %v574_v39 = vpop.trf.xlu1 }
 0x1b9   : > { %5020 = vmatmul.mubr.msk.f32.gmra.mxu0 %vm582_vm1, %v1606_v35  ;;  %4989 = vmatmul.mubr.msk.f32.gmra.mxu1 %vm582_vm1, %v574_v39 }
 0x1ba   : > { %1919 = vmatprep.mubr.f32.mxu0 %v8888_v0  ;;  %893 = vmatprep.mubr.f32.mxu1 %v8888_v0 }
 0x1bc   : > { %v1607_v40 = vpop.trf.xlu0  ;;  %v575_v41 = vpop.trf.xlu1 }
 0x1bd   : > { %5021 = vmatmul.mubr.msk.f32.gmra.mxu0 %vm582_vm1, %v1607_v40  ;;  %4990 = vmatmul.mubr.msk.f32.gmra.mxu1 %vm582_vm1, %v575_v41 }
 0x1be   : > { %1925 = vmatprep.mubr.f32.mxu0 %v8888_v0  ;;  %899 = vmatprep.mubr.f32.mxu1 %v8888_v0 }
 0x1c0   : > { %v1608_v42 = vpop.trf.xlu0  ;;  %v576_v43 = vpop.trf.xlu1 }
 0x1c1   : > { %5022 = vmatmul.mubr.msk.f32.gmra.mxu0 %vm582_vm1, %v1608_v42  ;;  %4991 = vmatmul.mubr.msk.f32.gmra.mxu1 %vm582_vm1, %v576_v43 }
 0x1c2   : > { %1931 = vmatprep.mubr.f32.mxu0 %v8888_v0  ;;  %905 = vmatprep.mubr.f32.mxu1 %v8888_v0 }
 0x1c4   : > { %v1609_v44 = vpop.trf.xlu0  ;;  %v577_v45 = vpop.trf.xlu1 }
 0x1c5   : > { %5023 = vmatmul.mubr.msk.f32.gmra.mxu0 %vm582_vm1, %v1609_v44  ;;  %4992 = vmatmul.mubr.msk.f32.gmra.mxu1 %vm582_vm1, %v577_v45 }
 0x1c6   : > { %1937 = vmatprep.mubr.f32.mxu0 %v8888_v0  ;;  %911 = vmatprep.mubr.f32.mxu1 %v8888_v0 }
 0x1c8   : > { %v1610_v46 = vpop.trf.xlu0  ;;  %v578_v47 = vpop.trf.xlu1 }
 0x1c9   : > { %5024 = vmatmul.mubr.msk.f32.gmra.mxu0 %vm582_vm1, %v1610_v46  ;;  %4993 = vmatmul.mubr.msk.f32.gmra.mxu1 %vm582_vm1, %v578_v47 }
 0x1ca   : > { %1943 = vmatprep.mubr.f32.mxu0 %v8888_v0  ;;  %917 = vmatprep.mubr.f32.mxu1 %v8888_v0 }
 0x1cc   : > { %v1611_v48 = vpop.trf.xlu0  ;;  %v579_v49 = vpop.trf.xlu1 }
 0x1cd   : > { %5025 = vmatmul.mubr.msk.f32.gmra.mxu0 %vm582_vm1, %v1611_v48  ;;  %4994 = vmatmul.mubr.msk.f32.gmra.mxu1 %vm582_vm1, %v579_v49 }
 0x1ce   : > { %1949 = vmatprep.mubr.f32.mxu0 %v8888_v0  ;;  %923 = vmatprep.mubr.f32.mxu1 %v8888_v0 }
 0x1d0   : > { %v1612_v50 = vpop.trf.xlu0  ;;  %v580_v51 = vpop.trf.xlu1 }
 0x1d1   : > { %5026 = vmatmul.mubr.msk.f32.gmra.mxu0 %vm582_vm1, %v1612_v50  ;;  %4995 = vmatmul.mubr.msk.f32.gmra.mxu1 %vm582_vm1, %v580_v51 }
 0x1d2   : > { %1955 = vmatprep.mubr.f32.mxu0 %v8888_v0  ;;  %929 = vmatprep.mubr.f32.mxu1 %v8888_v0 }
 0x1d4   : > { %v1613_v52 = vpop.trf.xlu0  ;;  %v581_v53 = vpop.trf.xlu1 }
 0x1d5   : > { %5027 = vmatmul.mubr.msk.f32.gmra.mxu0 %vm582_vm1, %v1613_v52  ;;  %4996 = vmatmul.mubr.msk.f32.gmra.mxu1 %vm582_vm1, %v581_v53 }
 0x1d6   : > { %1961 = vmatprep.mubr.f32.mxu0 %v8888_v0 }
 0x1d8   : > { %v1614_v54 = vpop.trf.xlu0 }
 0x1d9   : > { %5028 = vmatmul.mubr.msk.f32.gmra.mxu0 %vm582_vm1, %v1614_v54 }
 0x219   : > { %v745_v3 = vpop.f32.mrf.mxu1 }
 0x21a   : > { %v6186_v6 = vmul.f32 0.35355338, %v745_v3 }
 0x21b   : > { %v747_v5 = vpop.f32.mrf.mxu1 }
 0x21c   : > { %v6188_v7 = vmul.f32 0.35355338, %v747_v5 }
 0x21d   : > { %v751_v8 = vpop.f32.mrf.mxu1  ;;  %v1777_v9 = vpop.f32.mrf.mxu0 }
 0x21e   : > { %v1000_v10 = vmax.f32 %v6186_v6, %v6188_v7  ;;  %v6192_v11 = vmul.f32 0.35355338, %v751_v8  ;;  %v6194_v14 = vmul.f32 0.35355338, %v1777_v9 }
 0x21f   : > { %v753_v12 = vpop.f32.mrf.mxu1  ;;  %v1779_v13 = vpop.f32.mrf.mxu0 }
 0x220   : > { %v6196_v15 = vmul.f32 0.35355338, %v753_v12  ;;  %v6198_v16 = vmul.f32 0.35355338, %v1779_v13  ;;  %1001 = vmax.xlane.f32.xlu0 %v1000_v10 }
 0x221   : > { %v757_v17 = vpop.f32.mrf.mxu1  ;;  %v1783_v18 = vpop.f32.mrf.mxu0 }
 0x222   : > { %v2032_v19 = vmax.f32 %v6194_v14, %v6198_v16  ;;  %v1003_v20 = vmax.f32 %v6192_v11, %v6196_v15  ;;  %v6204_v21 = vmul.f32 0.35355338, %v757_v17  ;;  %v6206_v24 = vmul.f32 0.35355338, %v1783_v18 }
 0x223   : > { %v759_v22 = vpop.f32.mrf.mxu1  ;;  %v1785_v23 = vpop.f32.mrf.mxu0 }
 0x224   : > { %v6208_v25 = vmul.f32 0.35355338, %v759_v22  ;;  %v6210_v26 = vmul.f32 0.35355338, %v1785_v23  ;;  %2033 = vmax.xlane.f32.xlu1 %v2032_v19  ;;  %1004 = vmax.xlane.f32.xlu0 %v1003_v20 }
 0x225   : > { %v763_v27 = vpop.f32.mrf.mxu1  ;;  %v1789_v28 = vpop.f32.mrf.mxu0 }
 0x226   : > { %v2035_v29 = vmax.f32 %v6206_v24, %v6210_v26  ;;  %v1006_v30 = vmax.f32 %v6204_v21, %v6208_v25  ;;  %v6216_v31 = vmul.f32 0.35355338, %v763_v27  ;;  %v6218_v35 = vmul.f32 0.35355338, %v1789_v28 }
 0x227   : > { %v765_v32 = vpop.f32.mrf.mxu1  ;;  %v1791_v33 = vpop.f32.mrf.mxu0 }
 0x228   : > { %v6220_v39 = vmul.f32 0.35355338, %v765_v32  ;;  %v6222_v40 = vmul.f32 0.35355338, %v1791_v33  ;;  %2036 = vmax.xlane.f32.xlu1 %v2035_v29  ;;  %1007 = vmax.xlane.f32.xlu0 %v1006_v30 }
 0x229   : > { %v769_v41 = vpop.f32.mrf.mxu1  ;;  %v1795_v42 = vpop.f32.mrf.mxu0 }
 0x22a   : > { %v2038_v43 = vmax.f32 %v6218_v35, %v6222_v40  ;;  %v1009_v44 = vmax.f32 %v6216_v31, %v6220_v39  ;;  %v6228_v45 = vmul.f32 0.35355338, %v769_v41  ;;  %v6230_v48 = vmul.f32 0.35355338, %v1795_v42 }
 0x22b   : > { %v771_v46 = vpop.f32.mrf.mxu1  ;;  %v1797_v47 = vpop.f32.mrf.mxu0 }
 0x22c   : > { %v6232_v49 = vmul.f32 0.35355338, %v771_v46  ;;  %v6234_v50 = vmul.f32 0.35355338, %v1797_v47  ;;  %2039 = vmax.xlane.f32.xlu1 %v2038_v43  ;;  %1010 = vmax.xlane.f32.xlu0 %v1009_v44 }
 0x22d   : > { %v775_v51 = vpop.f32.mrf.mxu1  ;;  %v1801_v52 = vpop.f32.mrf.mxu0 }
 0x22e   : > { %v2041_v53 = vmax.f32 %v6230_v48, %v6234_v50  ;;  %v1012_v54 = vmax.f32 %v6228_v45, %v6232_v49  ;;  %v6240_v3 = vmul.f32 0.35355338, %v775_v51  ;;  %v6242_v9 = vmul.f32 0.35355338, %v1801_v52 }
 0x22f   : > { %v777_v5 = vpop.f32.mrf.mxu1  ;;  %v1803_v8 = vpop.f32.mrf.mxu0 }
 0x230   : > { %v6244_v10 = vmul.f32 0.35355338, %v777_v5  ;;  %v6246_v12 = vmul.f32 0.35355338, %v1803_v8  ;;  %2042 = vmax.xlane.f32.xlu1 %v2041_v53  ;;  %1013 = vmax.xlane.f32.xlu0 %v1012_v54 }
 0x231   : > { %v781_v13 = vpop.f32.mrf.mxu1  ;;  %v1807_v17 = vpop.f32.mrf.mxu0 }
 0x232   : > { %v2044_v18 = vmax.f32 %v6242_v9, %v6246_v12  ;;  %v1015_v19 = vmax.f32 %v6240_v3, %v6244_v10  ;;  %v6252_v20 = vmul.f32 0.35355338, %v781_v13  ;;  %v6254_v27 = vmul.f32 0.35355338, %v1807_v17 }
 0x233   : > { %v783_v22 = vpop.f32.mrf.mxu1  ;;  %v1809_v23 = vpop.f32.mrf.mxu0 }
 0x234   : > { %v6256_v28 = vmul.f32 0.35355338, %v783_v22  ;;  %v6258_v29 = vmul.f32 0.35355338, %v1809_v23  ;;  %2045 = vmax.xlane.f32.xlu1 %v2044_v18  ;;  %1016 = vmax.xlane.f32.xlu0 %v1015_v19 }
 0x235   : > { %v787_v30 = vpop.f32.mrf.mxu1  ;;  %v1813_v32 = vpop.f32.mrf.mxu0 }
 0x236   : > { %v2047_v33 = vmax.f32 %v6254_v27, %v6258_v29  ;;  %v1018_v41 = vmax.f32 %v6252_v20, %v6256_v28  ;;  %v6264_v42 = vmul.f32 0.35355338, %v787_v30  ;;  %v6266_v46 = vmul.f32 0.35355338, %v1813_v32 }
 0x237   : > { %v789_v43 = vpop.f32.mrf.mxu1  ;;  %v1815_v44 = vpop.f32.mrf.mxu0 }
 0x238   : > { %v6268_v47 = vmul.f32 0.35355338, %v789_v43  ;;  %v6270_v51 = vmul.f32 0.35355338, %v1815_v44  ;;  %2048 = vmax.xlane.f32.xlu1 %v2047_v33  ;;  %1019 = vmax.xlane.f32.xlu0 %v1018_v41 }
 0x239   : > { %v793_v52 = vpop.f32.mrf.mxu1  ;;  %v1819_v53 = vpop.f32.mrf.mxu0 }
 0x23a   : > { %v2050_v54 = vmax.f32 %v6266_v46, %v6270_v51  ;;  %v1021_v5 = vmax.f32 %v6264_v42, %v6268_v47  ;;  %v6276_v8 = vmul.f32 0.35355338, %v793_v52  ;;  %v6278_v18 = vmul.f32 0.35355338, %v1819_v53 }
 0x23b   : > { %v795_v13 = vpop.f32.mrf.mxu1  ;;  %v1821_v17 = vpop.f32.mrf.mxu0 }
 0x23c   : > { %v6280_v19 = vmul.f32 0.35355338, %v795_v13  ;;  %v6282_v22 = vmul.f32 0.35355338, %v1821_v17  ;;  %2051 = vmax.xlane.f32.xlu1 %v2050_v54  ;;  %1022 = vmax.xlane.f32.xlu0 %v1021_v5 }
 0x23d   : > { %v799_v23 = vpop.f32.mrf.mxu1  ;;  %v1825_v30 = vpop.f32.mrf.mxu0 }
 0x23e   : > { %v2053_v32 = vmax.f32 %v6278_v18, %v6282_v22  ;;  %v1024_v33 = vmax.f32 %v6276_v8, %v6280_v19  ;;  %v6288_v41 = vmul.f32 0.35355338, %v799_v23  ;;  %v6290_v52 = vmul.f32 0.35355338, %v1825_v30 }
 0x23f   : > { %v801_v43 = vpop.f32.mrf.mxu1  ;;  %v1827_v44 = vpop.f32.mrf.mxu0 }
 0x240   : > { %v6292_v53 = vmul.f32 0.35355338, %v801_v43  ;;  %v6294_v13 = vmul.f32 0.35355338, %v1827_v44  ;;  %2054 = vmax.xlane.f32.xlu1 %v2053_v32  ;;  %1025 = vmax.xlane.f32.xlu0 %v1024_v33 }
 0x241   : > { %v805_v54 = vpop.f32.mrf.mxu1  ;;  %v1831_v5 = vpop.f32.mrf.mxu0 }
 0x242   : > { %v2056_v17 = vmax.f32 %v6290_v52, %v6294_v13  ;;  %v1027_v0 = vmax.f32 %v6288_v41, %v6292_v53  ;;  %v6300_v23 = vmul.f32 0.35355338, %v805_v54  ;;  %v6302_v30 = vmul.f32 0.35355338, %v1831_v5 }
 0x243   : > { %v807_v2 = vpop.f32.mrf.mxu1  ;;  %v1833_v62 = vpop.f32.mrf.mxu0 }
 0x244   : > { %v6304_v43 = vmul.f32 0.35355338, %v807_v2  ;;  %v6306_v44 = vmul.f32 0.35355338, %v1833_v62  ;;  %2057 = vmax.xlane.f32.xlu1 %v2056_v17  ;;  %1028 = vmax.xlane.f32.xlu0 %v1027_v0 }
 0x245   : > { %v811_v32 = vpop.f32.mrf.mxu1  ;;  %v1837_v33 = vpop.f32.mrf.mxu0 }
 0x246   : > { %v2059_v4 = vmax.f32 %v6302_v30, %v6306_v44  ;;  %v1030_v1 = vmax.f32 %v6300_v23, %v6304_v43  ;;  %v6312_v54 = vmul.f32 0.35355338, %v811_v32  ;;  %v6314_v5 = vmul.f32 0.35355338, %v1837_v33 }
 0x247   : > { %v813_v57 = vpop.f32.mrf.mxu1  ;;  %v1839_v61 = vpop.f32.mrf.mxu0 }
 0x248   : > { %v6316_v2 = vmul.f32 0.35355338, %v813_v57  ;;  %v6318_v62 = vmul.f32 0.35355338, %v1839_v61  ;;  %2060 = vmax.xlane.f32.xlu1 %v2059_v4  ;;  %1031 = vmax.xlane.f32.xlu0 %v1030_v1 }
 0x249   : > { %v817_v0 = vpop.f32.mrf.mxu1  ;;  %v1843_v17 = vpop.f32.mrf.mxu0 }
 0x24a   : > { %v2062_v55 = vmax.f32 %v6314_v5, %v6318_v62  ;;  %v1033_v58 = vmax.f32 %v6312_v54, %v6316_v2  ;;  %v6324_v32 = vmul.f32 0.35355338, %v817_v0  ;;  %v6326_v33 = vmul.f32 0.35355338, %v1843_v17 }
 0x24b   : > { %v819_v59 = vpop.f32.mrf.mxu1  ;;  %v1845_v56 = vpop.f32.mrf.mxu0 }
 0x24c   : > { %9240 = vst [vmem:[#allocation18_spill] sm:$0xff] %v6324_v32  ;;  %9241 = vst [vmem:[#allocation19_spill] sm:$0xff] %v6326_v33  ;;  %v6328_v57 = vmul.f32 0.35355338, %v819_v59  ;;  %v6330_v61 = vmul.f32 0.35355338, %v1845_v56  ;;  %2063 = vmax.xlane.f32.xlu1 %v2062_v55  ;;  %1034 = vmax.xlane.f32.xlu0 %v1033_v58 }
 0x24d   : > { %v823_v1 = vpop.f32.mrf.mxu1  ;;  %v1849_v4 = vpop.f32.mrf.mxu0 }
 0x24e   : > { %9242 = vst [vmem:[#allocation20_spill] sm:$0xff] %v6328_v57  ;;  %9243 = vst [vmem:[#allocation21_spill] sm:$0xff] %v6330_v61  ;;  %v2065_v36 = vmax.f32 %v6326_v33, %v6330_v61  ;;  %v1036_v38 = vmax.f32 %v6324_v32, %v6328_v57  ;;  %v6336_v0 = vmul.f32 0.35355338, %v823_v1  ;;  %v6338_v17 = vmul.f32 0.35355338, %v1849_v4 }
 0x24f   : > { %v825_v60 = vpop.f32.mrf.mxu1  ;;  %v1851_v63 = vpop.f32.mrf.mxu0 }
 0x250   : > { %9244 = vst [vmem:[#allocation22_spill] sm:$0xff] %v6336_v0  ;;  %9245 = vst [vmem:[#allocation23_spill] sm:$0xff] %v6338_v17  ;;  %v6340_v59 = vmul.f32 0.35355338, %v825_v60  ;;  %v6342_v56 = vmul.f32 0.35355338, %v1851_v63  ;;  %2066 = vmax.xlane.f32.xlu1 %v2065_v36  ;;  %1037 = vmax.xlane.f32.xlu0 %v1036_v38 }
 0x251   : > { %v829_v55 = vpop.f32.mrf.mxu1  ;;  %v1855_v58 = vpop.f32.mrf.mxu0 }
 0x252   : > { %9246 = vst [vmem:[#allocation24_spill] sm:$0xff] %v6340_v59  ;;  %9247 = vst [vmem:[#allocation25_spill] sm:$0xff] %v6342_v56  ;;  %v2068_v34 = vmax.f32 %v6338_v17, %v6342_v56  ;;  %v1039_v37 = vmax.f32 %v6336_v0, %v6340_v59  ;;  %v6348_v1 = vmul.f32 0.35355338, %v829_v55  ;;  %v6350_v4 = vmul.f32 0.35355338, %v1855_v58 }
 0x253   : > { %v831_v61 = vpop.f32.mrf.mxu1  ;;  %v1857_v33 = vpop.f32.mrf.mxu0 }
 0x254   : > { %9248 = vst [vmem:[#allocation26_spill] sm:$0xff] %v6348_v1  ;;  %9249 = vst [vmem:[#allocation27_spill] sm:$0xff] %v6350_v4  ;;  %v6352_v60 = vmul.f32 0.35355338, %v831_v61  ;;  %v6354_v63 = vmul.f32 0.35355338, %v1857_v33  ;;  %2069 = vmax.xlane.f32.xlu1 %v2068_v34  ;;  %1040 = vmax.xlane.f32.xlu0 %v1039_v37 }
 0x255   : > { %v835_v36 = vpop.f32.mrf.mxu1  ;;  %v1861_v38 = vpop.f32.mrf.mxu0 }
 0x256   : > { %9250 = vst [vmem:[#allocation28_spill] sm:$0xff] %v6352_v60  ;;  %9251 = vst [vmem:[#allocation29_spill] sm:$0xff] %v6354_v63  ;;  %v6356_v57 = vmul.f32 0.35355338, %v835_v36  ;;  %v2071_v56 = vmax.f32 %v6350_v4, %v6354_v63  ;;  %v1042_v55 = vmax.f32 %v6348_v1, %v6352_v60  ;;  %v6362_v58 = vmul.f32 0.35355338, %v1861_v38 }
 0x257   : > { %v837_v17 = vpop.f32.mrf.mxu1  ;;  %v1863_v59 = vpop.f32.mrf.mxu0 }
 0x258   : > { %9252 = vst [vmem:[#allocation30_spill] sm:$0xff] %v6356_v57  ;;  %9253 = vst [vmem:[#allocation31_spill] sm:$0xff] %v6362_v58  ;;  %v6364_v61 = vmul.f32 0.35355338, %v837_v17  ;;  %v6366_v33 = vmul.f32 0.35355338, %v1863_v59  ;;  %2072 = vmax.xlane.f32.xlu1 %v2071_v56  ;;  %1043 = vmax.xlane.f32.xlu0 %v1042_v55 }
 0x259   : > { %v1867_v34 = vpop.f32.mrf.mxu0  ;;  %v841_v37 = vpop.f32.mrf.mxu1 }
 0x25a   : > { %9254 = vst [vmem:[#allocation32_spill] sm:$0xff] %v6364_v61  ;;  %9255 = vst [vmem:[#allocation33_spill] sm:$0xff] %v6366_v33  ;;  %v2074_v36 = vmax.f32 %v6362_v58, %v6366_v33  ;;  %v1045_v63 = vmax.f32 %v6356_v57, %v6364_v61  ;;  %v6372_v1 = vmul.f32 0.35355338, %v1867_v34  ;;  %v6376_v17 = vmul.f32 0.35355338, %v841_v37 }
 0x25b   : > { %v1869_v4 = vpop.f32.mrf.mxu0  ;;  %v843_v60 = vpop.f32.mrf.mxu1 }
 0x25c   : > { %9256 = vst [vmem:[#allocation34_spill] sm:$0xff] %v6372_v1  ;;  %v6374_v38 = vmul.f32 0.35355338, %v1869_v4  ;;  %2075 = vmax.xlane.f32.xlu0 %v2074_v36  ;;  %1046 = vmax.xlane.f32.xlu1 %v1045_v63  ;;  %9258 = vst [vmem:[#allocation36_spill] sm:$0xff] %v6376_v17  ;;  %v6378_v59 = vmul.f32 0.35355338, %v843_v60 }
 0x25d   : > { %v1873_v56 = vpop.f32.mrf.mxu0  ;;  %v847_v55 = vpop.f32.mrf.mxu1 }
 0x25e   : > { %9257 = vst [vmem:[#allocation35_spill] sm:$0xff] %v6374_v38  ;;  %9259 = vst [vmem:[#allocation37_spill] sm:$0xff] %v6378_v59  ;;  %v2077_v33 = vmax.f32 %v6372_v1, %v6374_v38  ;;  %v6382_v58 = vmul.f32 0.35355338, %v1873_v56  ;;  %v1048_v4 = vmax.f32 %v6376_v17, %v6378_v59  ;;  %v6388_v37 = vmul.f32 0.35355338, %v847_v55 }
 0x25f   : > { %v1875_v61 = vpop.f32.mrf.mxu0  ;;  %v849_v57 = vpop.f32.mrf.mxu1 }
 0x260   : > { %9260 = vst [vmem:[#allocation38_spill] sm:$0xff] %v6382_v58  ;;  %v6384_v0 = vmul.f32 0.35355338, %v1875_v61  ;;  %2078 = vmax.xlane.f32.xlu0 %v2077_v33  ;;  %9262 = vst [vmem:[#allocation40_spill] sm:$0xff] %v6388_v37  ;;  %v6392_v36 = vmul.f32 0.35355338, %v849_v57 }
 0x261   : > { %v1879_v63 = vpop.f32.mrf.mxu0  ;;  %v853_v34 = vpop.f32.mrf.mxu1 }
 0x262   : > { %9261 = vst [vmem:[#allocation39_spill] sm:$0xff] %v6384_v0  ;;  %v2080_v60 = vmax.f32 %v6382_v58, %v6384_v0  ;;  %9263 = vst [vmem:[#allocation41_spill] sm:$0xff] %v6392_v36  ;;  %v6394_v38 = vmul.f32 0.35355338, %v1879_v63  ;;  %v6398_v61 = vmul.f32 0.35355338, %v853_v34  ;;  %v1051_v17 = vmax.f32 %v6388_v37, %v6392_v36 }
 0x263   : > { %v1881_v56 = vpop.f32.mrf.mxu0  ;;  %v855_v1 = vpop.f32.mrf.mxu1 }
 0x264   : > { %9264 = vst [vmem:[#allocation42_spill] sm:$0xff] %v6394_v38  ;;  %v6396_v32 = vmul.f32 0.35355338, %v1881_v56  ;;  %2081 = vmax.xlane.f32.xlu1 %v2080_v60  ;;  %1049 = vmax.xlane.f32.xlu0 %v1048_v4  ;;  %9266 = vst [vmem:[#allocation44_spill] sm:$0xff] %v6398_v61  ;;  %v6400_v33 = vmul.f32 0.35355338, %v855_v1 }
 0x265   : > { %v1885_v59 = vpop.f32.mrf.mxu0  ;;  %v859_v55 = vpop.f32.mrf.mxu1 }
 0x266   : > { %9265 = vst [vmem:[#allocation43_spill] sm:$0xff] %v6396_v32  ;;  %9267 = vst [vmem:[#allocation45_spill] sm:$0xff] %v6400_v33  ;;  %v2083_v57 = vmax.f32 %v6394_v38, %v6396_v32  ;;  %v6406_v63 = vmul.f32 0.35355338, %v1885_v59  ;;  %v1054_v1 = vmax.f32 %v6398_v61, %v6400_v33  ;;  %v6412_v60 = vmul.f32 0.35355338, %v859_v55 }
 0x267   : > { %v1887_v0 = vpop.f32.mrf.mxu0  ;;  %v861_v58 = vpop.f32.mrf.mxu1 }
 0x268   : > { %9268 = vst [vmem:[#allocation46_spill] sm:$0xff] %v6406_v63  ;;  %v6408_v56 = vmul.f32 0.35355338, %v1887_v0  ;;  %2084 = vmax.xlane.f32.xlu1 %v2083_v57  ;;  %1052 = vmax.xlane.f32.xlu0 %v1051_v17  ;;  %9270 = vst [vmem:[#allocation48_spill] sm:$0xff] %v6412_v60  ;;  %v6416_v37 = vmul.f32 0.35355338, %v861_v58 }
 0x269   : > { %v1891_v4 = vpop.f32.mrf.mxu0  ;;  %v865_v34 = vpop.f32.mrf.mxu1 }
 0x26a   : > { %9269 = vst [vmem:[#allocation47_spill] sm:$0xff] %v6408_v56  ;;  %v2086_v36 = vmax.f32 %v6406_v63, %v6408_v56  ;;  %9271 = vst [vmem:[#allocation49_spill] sm:$0xff] %v6416_v37  ;;  %v6418_v59 = vmul.f32 0.35355338, %v1891_v4  ;;  %v6422_v17 = vmul.f32 0.35355338, %v865_v34  ;;  %v1057_v61 = vmax.f32 %v6412_v60, %v6416_v37 }
 0x26b   : > { %v1893_v32 = vpop.f32.mrf.mxu0  ;;  %v867_v38 = vpop.f32.mrf.mxu1 }
 0x26c   : > { %9272 = vst [vmem:[#allocation50_spill] sm:$0xff] %v6418_v59  ;;  %v6420_v0 = vmul.f32 0.35355338, %v1893_v32  ;;  %2087 = vmax.xlane.f32.xlu1 %v2086_v36  ;;  %1055 = vmax.xlane.f32.xlu0 %v1054_v1  ;;  %9274 = vst [vmem:[#allocation52_spill] sm:$0xff] %v6422_v17  ;;  %v6424_v57 = vmul.f32 0.35355338, %v867_v38 }
 0x26d   : > { %v1897_v33 = vpop.f32.mrf.mxu0  ;;  %v871_v55 = vpop.f32.mrf.mxu1 }
 0x26e   : > { %9273 = vst [vmem:[#allocation51_spill] sm:$0xff] %v6420_v0  ;;  %9275 = vst [vmem:[#allocation53_spill] sm:$0xff] %v6424_v57  ;;  %v2089_v58 = vmax.f32 %v6418_v59, %v6420_v0  ;;  %v6430_v4 = vmul.f32 0.35355338, %v1897_v33  ;;  %v1060_v38 = vmax.f32 %v6422_v17, %v6424_v57  ;;  %v6436_v34 = vmul.f32 0.35355338, %v871_v55 }
 0x26f   : > { %v1899_v56 = vpop.f32.mrf.mxu0  ;;  %v873_v63 = vpop.f32.mrf.mxu1 }
 0x270   : > { %9276 = vst [vmem:[#allocation54_spill] sm:$0xff] %v6430_v4  ;;  %v6432_v32 = vmul.f32 0.35355338, %v1899_v56  ;;  %2090 = vmax.xlane.f32.xlu1 %v2089_v58  ;;  %1058 = vmax.xlane.f32.xlu0 %v1057_v61  ;;  %9278 = vst [vmem:[#allocation56_spill] sm:$0xff] %v6436_v34  ;;  %v6440_v60 = vmul.f32 0.35355338, %v873_v63 }
 0x271   : > { %v1903_v36 = vpop.f32.mrf.mxu0  ;;  %v877_v1 = vpop.f32.mrf.mxu1 }
 0x272   : > { %9277 = vst [vmem:[#allocation55_spill] sm:$0xff] %v6432_v32  ;;  %v2092_v37 = vmax.f32 %v6430_v4, %v6432_v32  ;;  %9279 = vst [vmem:[#allocation57_spill] sm:$0xff] %v6440_v60  ;;  %v6442_v33 = vmul.f32 0.35355338, %v1903_v36  ;;  %v6446_v61 = vmul.f32 0.35355338, %v877_v1  ;;  %v1063_v17 = vmax.f32 %v6436_v34, %v6440_v60 }
 0x273   : > { %v1905_v0 = vpop.f32.mrf.mxu0  ;;  %v879_v59 = vpop.f32.mrf.mxu1 }
 0x274   : > { %9280 = vst [vmem:[#allocation58_spill] sm:$0xff] %v6442_v33  ;;  %v6444_v56 = vmul.f32 0.35355338, %v1905_v0  ;;  %2093 = vmax.xlane.f32.xlu1 %v2092_v37  ;;  %1061 = vmax.xlane.f32.xlu0 %v1060_v38  ;;  %9282 = vst [vmem:[#allocation60_spill] sm:$0xff] %v6446_v61  ;;  %v6448_v58 = vmul.f32 0.35355338, %v879_v59 }
 0x275   : > { %v1909_v57 = vpop.f32.mrf.mxu0  ;;  %v883_v55 = vpop.f32.mrf.mxu1 }
 0x276   : > { %9281 = vst [vmem:[#allocation59_spill] sm:$0xff] %v6444_v56  ;;  %9283 = vst [vmem:[#allocation61_spill] sm:$0xff] %v6448_v58  ;;  %v2095_v63 = vmax.f32 %v6442_v33, %v6444_v56  ;;  %v6454_v36 = vmul.f32 0.35355338, %v1909_v57  ;;  %v1066_v37 = vmax.f32 %v6446_v61, %v6448_v58  ;;  %v6460_v1 = vmul.f32 0.35355338, %v883_v55 }
 0x277   : > { %v1911_v32 = vpop.f32.mrf.mxu0  ;;  %v885_v4 = vpop.f32.mrf.mxu1 }
 0x278   : > { %9284 = vst [vmem:[#allocation62_spill] sm:$0xff] %v6454_v36  ;;  %v6456_v0 = vmul.f32 0.35355338, %v1911_v32  ;;  %2096 = vmax.xlane.f32.xlu1 %v2095_v63  ;;  %1064 = vmax.xlane.f32.xlu0 %v1063_v17  ;;  %9286 = vst [vmem:[#allocation64_spill] sm:$0xff] %v6460_v1  ;;  %v6464_v34 = vmul.f32 0.35355338, %v885_v4 }
 0x279   : > { %v1915_v59 = vpop.f32.mrf.mxu0  ;;  %v889_v38 = vpop.f32.mrf.mxu1 }
 0x27a   : > { %9285 = vst [vmem:[#allocation63_spill] sm:$0xff] %v6456_v0  ;;  %v2098_v60 = vmax.f32 %v6454_v36, %v6456_v0  ;;  %9287 = vst [vmem:[#allocation65_spill] sm:$0xff] %v6464_v34  ;;  %v6466_v57 = vmul.f32 0.35355338, %v1915_v59  ;;  %v6470_v17 = vmul.f32 0.35355338, %v889_v38  ;;  %v1069_v61 = vmax.f32 %v6460_v1, %v6464_v34 }
 0x27b   : > { %v1917_v56 = vpop.f32.mrf.mxu0  ;;  %v891_v33 = vpop.f32.mrf.mxu1 }
 0x27c   : > { %9288 = vst [vmem:[#allocation66_spill] sm:$0xff] %v6466_v57  ;;  %v6468_v32 = vmul.f32 0.35355338, %v1917_v56  ;;  %2099 = vmax.xlane.f32.xlu1 %v2098_v60  ;;  %1067 = vmax.xlane.f32.xlu0 %v1066_v37  ;;  %9290 = vst [vmem:[#allocation68_spill] sm:$0xff] %v6470_v17  ;;  %v6472_v63 = vmul.f32 0.35355338, %v891_v33 }
 0x27d   : > { %v1921_v58 = vpop.f32.mrf.mxu0  ;;  %v895_v55 = vpop.f32.mrf.mxu1 }
 0x27e   : > { %9289 = vst [vmem:[#allocation67_spill] sm:$0xff] %v6468_v32  ;;  %9291 = vst [vmem:[#allocation69_spill] sm:$0xff] %v6472_v63  ;;  %v2101_v4 = vmax.f32 %v6466_v57, %v6468_v32  ;;  %v6478_v59 = vmul.f32 0.35355338, %v1921_v58  ;;  %v1072_v60 = vmax.f32 %v6470_v17, %v6472_v63  ;;  %v6484_v38 = vmul.f32 0.35355338, %v895_v55 }
 0x27f   : > { %v1923_v0 = vpop.f32.mrf.mxu0  ;;  %v897_v36 = vpop.f32.mrf.mxu1 }
 0x280   : > { %9292 = vst [vmem:[#allocation70_spill] sm:$0xff] %v6478_v59  ;;  %v6480_v56 = vmul.f32 0.35355338, %v1923_v0  ;;  %2102 = vmax.xlane.f32.xlu1 %v2101_v4  ;;  %1070 = vmax.xlane.f32.xlu0 %v1069_v61  ;;  %9294 = vst [vmem:[#allocation72_spill] sm:$0xff] %v6484_v38  ;;  %v6488_v1 = vmul.f32 0.35355338, %v897_v36 }
 0x281   : > { %v1927_v33 = vpop.f32.mrf.mxu0  ;;  %v901_v37 = vpop.f32.mrf.mxu1 }
 0x282   : > { %9293 = vst [vmem:[#allocation71_spill] sm:$0xff] %v6480_v56  ;;  %v2104_v34 = vmax.f32 %v6478_v59, %v6480_v56  ;;  %9295 = vst [vmem:[#allocation73_spill] sm:$0xff] %v6488_v1  ;;  %v6490_v58 = vmul.f32 0.35355338, %v1927_v33  ;;  %v6494_v61 = vmul.f32 0.35355338, %v901_v37  ;;  %v1075_v17 = vmax.f32 %v6484_v38, %v6488_v1 }
 0x283   : > { %v1929_v32 = vpop.f32.mrf.mxu0  ;;  %v903_v57 = vpop.f32.mrf.mxu1 }
 0x284   : > { %9296 = vst [vmem:[#allocation74_spill] sm:$0xff] %v6490_v58  ;;  %v6492_v0 = vmul.f32 0.35355338, %v1929_v32  ;;  %2105 = vmax.xlane.f32.xlu1 %v2104_v34  ;;  %1073 = vmax.xlane.f32.xlu0 %v1072_v60  ;;  %9298 = vst [vmem:[#allocation76_spill] sm:$0xff] %v6494_v61  ;;  %v6496_v4 = vmul.f32 0.35355338, %v903_v57 }
 0x285   : > { %v1933_v63 = vpop.f32.mrf.mxu0  ;;  %v907_v55 = vpop.f32.mrf.mxu1 }
 0x286   : > { %9297 = vst [vmem:[#allocation75_spill] sm:$0xff] %v6492_v0  ;;  %9299 = vst [vmem:[#allocation77_spill] sm:$0xff] %v6496_v4  ;;  %v2107_v36 = vmax.f32 %v6490_v58, %v6492_v0  ;;  %v6502_v33 = vmul.f32 0.35355338, %v1933_v63  ;;  %v1078_v34 = vmax.f32 %v6494_v61, %v6496_v4  ;;  %v6508_v37 = vmul.f32 0.35355338, %v907_v55 }
 0x287   : > { %v1935_v56 = vpop.f32.mrf.mxu0  ;;  %v909_v59 = vpop.f32.mrf.mxu1 }
 0x288   : > { %9300 = vst [vmem:[#allocation78_spill] sm:$0xff] %v6502_v33  ;;  %v6504_v32 = vmul.f32 0.35355338, %v1935_v56  ;;  %2108 = vmax.xlane.f32.xlu1 %v2107_v36  ;;  %1076 = vmax.xlane.f32.xlu0 %v1075_v17  ;;  %9302 = vst [vmem:[#allocation80_spill] sm:$0xff] %v6508_v37  ;;  %v6512_v38 = vmul.f32 0.35355338, %v909_v59 }
 0x289   : > { %v1939_v57 = vpop.f32.mrf.mxu0  ;;  %v913_v60 = vpop.f32.mrf.mxu1 }
 0x28a   : > { %9301 = vst [vmem:[#allocation79_spill] sm:$0xff] %v6504_v32  ;;  %v2110_v1 = vmax.f32 %v6502_v33, %v6504_v32  ;;  %9303 = vst [vmem:[#allocation81_spill] sm:$0xff] %v6512_v38  ;;  %v6514_v63 = vmul.f32 0.35355338, %v1939_v57  ;;  %v6518_v17 = vmul.f32 0.35355338, %v913_v60  ;;  %v1081_v61 = vmax.f32 %v6508_v37, %v6512_v38 }
 0x28b   : > { %v1941_v0 = vpop.f32.mrf.mxu0  ;;  %v915_v58 = vpop.f32.mrf.mxu1 }
 0x28c   : > { %9304 = vst [vmem:[#allocation82_spill] sm:$0xff] %v6514_v63  ;;  %v6516_v56 = vmul.f32 0.35355338, %v1941_v0  ;;  %2111 = vmax.xlane.f32.xlu1 %v2110_v1  ;;  %1079 = vmax.xlane.f32.xlu0 %v1078_v34  ;;  %9306 = vst [vmem:[#allocation84_spill] sm:$0xff] %v6518_v17  ;;  %v6520_v36 = vmul.f32 0.35355338, %v915_v58 }
 0x28d   : > { %v1945_v4 = vpop.f32.mrf.mxu0  ;;  %v919_v55 = vpop.f32.mrf.mxu1 }
 0x28e   : > { %9305 = vst [vmem:[#allocation83_spill] sm:$0xff] %v6516_v56  ;;  %9307 = vst [vmem:[#allocation85_spill] sm:$0xff] %v6520_v36  ;;  %v2113_v59 = vmax.f32 %v6514_v63, %v6516_v56  ;;  %v6526_v57 = vmul.f32 0.35355338, %v1945_v4  ;;  %v1084_v1 = vmax.f32 %v6518_v17, %v6520_v36  ;;  %v6532_v60 = vmul.f32 0.35355338, %v919_v55 }
 0x28f   : > { %v1947_v32 = vpop.f32.mrf.mxu0  ;;  %v921_v33 = vpop.f32.mrf.mxu1 }
 0x290   : > { %9308 = vst [vmem:[#allocation86_spill] sm:$0xff] %v6526_v57  ;;  %v6528_v0 = vmul.f32 0.35355338, %v1947_v32  ;;  %2114 = vmax.xlane.f32.xlu1 %v2113_v59  ;;  %1082 = vmax.xlane.f32.xlu0 %v1081_v61  ;;  %v6536_v37 = vmul.f32 0.35355338, %v921_v33 }
 0x291   : > { %v1951_v58 = vpop.f32.mrf.mxu0  ;;  %v925_v34 = vpop.f32.mrf.mxu1 }
 0x292   : > { %9309 = vst [vmem:[#allocation87_spill] sm:$0xff] %v6528_v0  ;;  %v2116_v38 = vmax.f32 %v6526_v57, %v6528_v0  ;;  %9310 = vst [vmem:[#allocation88_spill] sm:$0xff] %v6536_v37  ;;  %v6538_v4 = vmul.f32 0.35355338, %v1951_v58  ;;  %v6542_v61 = vmul.f32 0.35355338, %v925_v34  ;;  %v1087_v17 = vmax.f32 %v6532_v60, %v6536_v37 }
 0x293   : > { %v1953_v56 = vpop.f32.mrf.mxu0  ;;  %v927_v63 = vpop.f32.mrf.mxu1 }
 0x294   : > { %9311 = vst [vmem:[#allocation89_spill] sm:$0xff] %v6538_v4  ;;  %v6540_v32 = vmul.f32 0.35355338, %v1953_v56  ;;  %2117 = vmax.xlane.f32.xlu1 %v2116_v38  ;;  %1085 = vmax.xlane.f32.xlu0 %v1084_v1  ;;  %v6544_v59 = vmul.f32 0.35355338, %v927_v63 }
 0x295   : > { %v1957_v36 = vpop.f32.mrf.mxu0  ;;  %v931_v55 = vpop.f32.mrf.mxu1 }
 0x296   : > { %9312 = vst [vmem:[#allocation90_spill] sm:$0xff] %v6540_v32  ;;  %v2119_v33 = vmax.f32 %v6538_v4, %v6540_v32  ;;  %v6550_v58 = vmul.f32 0.35355338, %v1957_v36  ;;  %v1090_v38 = vmax.f32 %v6542_v61, %v6544_v59  ;;  %v6556_v1 = vmul.f32 0.35355338, %v931_v55 }
 0x297   : > { %v1959_v0 = vpop.f32.mrf.mxu0  ;;  %v933_v57 = vpop.f32.mrf.mxu1 }
 0x298   : > { %9313 = vst [vmem:[#allocation91_spill] sm:$0xff] %v6550_v58  ;;  %v6552_v56 = vmul.f32 0.35355338, %v1959_v0  ;;  %2120 = vmax.xlane.f32.xlu1 %v2119_v33  ;;  %1088 = vmax.xlane.f32.xlu0 %v1087_v17  ;;  %9315 = vst [vmem:[#allocation93_spill] sm:$0xff] %v6556_v1  ;;  %v6560_v37 = vmul.f32 0.35355338, %v933_v57 }
 0x299   : > { %v1963_v63 = vpop.f32.mrf.mxu0 }
 0x29a   : > { %9314 = vst [vmem:[#allocation92_spill] sm:$0xff] %v6552_v56  ;;  %v2122_v34 = vmax.f32 %v6550_v58, %v6552_v56  ;;  %9316 = vst [vmem:[#allocation94_spill] sm:$0xff] %v6560_v37  ;;  %v6562_v32 = vmul.f32 0.35355338, %v1963_v63  ;;  %v1093_v17 = vmax.f32 %v6556_v1, %v6560_v37 }
 0x29b   : > { %v1965_v36 = vpop.f32.mrf.mxu0 }
 0x29c   : > { %9317 = vst [vmem:[#allocation95_spill] sm:$0xff] %v6562_v32  ;;  %v6564_v4 = vmul.f32 0.35355338, %v1965_v36  ;;  %2123 = vmax.xlane.f32.xlu1 %v2122_v34  ;;  %1091 = vmax.xlane.f32.xlu0 %v1090_v38 }
 0x29e   : > { %9318 = vst [vmem:[#allocation96_spill] sm:$0xff] %v6564_v4  ;;  %v2125_v0 = vmax.f32 %v6562_v32, %v6564_v4 }
 0x2a0   : > { %2126 = vmax.xlane.f32.xlu1 %v2125_v0  ;;  %1094 = vmax.xlane.f32.xlu0 %v1093_v17 }
 0x2a9   : > { %v1002_v55 = vpop.xlane.xlu0 %1001 }
 0x2aa   : > { %v1096_v33 = vsub.f32 %v6186_v6, %v1002_v55  ;;  %v1097_v57 = vsub.f32 %v6188_v7, %v1002_v55 }
 0x2ac   : > { %v1160_v63 = vmul.f32 1.442695, %v1096_v33  ;;  %v1162_v56 = vmul.f32 1.442695, %v1097_v57 }
 0x2ad   : > { %v1005_v58 = vpop.xlane.xlu0 %1004  ;;  %v2034_v36 = vpop.xlane.xlu1 %2033 }
 0x2ae   : > { %v1098_v34 = vsub.f32 %v6192_v11, %v1005_v58  ;;  %v1099_v38 = vsub.f32 %v6196_v15, %v1005_v58  ;;  %v2128_v37 = vsub.f32 %v6194_v14, %v2034_v36  ;;  %v2129_v1 = vsub.f32 %v6198_v16, %v2034_v36 }
 0x2af   : > { %5125 = vpow2.f32 %v1160_v63 }
 0x2b0   : > { %v1164_v0 = vmul.f32 1.442695, %v1098_v34  ;;  %v1166_v17 = vmul.f32 1.442695, %v1099_v38  ;;  %v2192_v4 = vmul.f32 1.442695, %v2128_v37  ;;  %5127 = vpow2.f32 %v1162_v56 }
 0x2b1   : > { %v2194_v6 = vmul.f32 1.442695, %v2129_v1  ;;  %v1008_v32 = vpop.xlane.xlu0 %1007  ;;  %v2037_v7 = vpop.xlane.xlu1 %2036 }
 0x2b2   : > { %5129 = vpow2.f32 %v1164_v0  ;;  %v1100_v55 = vsub.f32 %v6204_v21, %v1008_v32  ;;  %v1101_v33 = vsub.f32 %v6208_v25, %v1008_v32  ;;  %v2130_v11 = vsub.f32 %v6206_v24, %v2037_v7 }
 0x2b3   : > { %5131 = vpow2.f32 %v1166_v17  ;;  %v2131_v14 = vsub.f32 %v6210_v26, %v2037_v7 }
 0x2b4   : > { %5133 = vpow2.f32 %v2192_v4  ;;  %v1168_v15 = vmul.f32 1.442695, %v1100_v55  ;;  %v1170_v16 = vmul.f32 1.442695, %v1101_v33  ;;  %v2196_v58 = vmul.f32 1.442695, %v2130_v11 }
 0x2b5   : > { %5135 = vpow2.f32 %v2194_v6  ;;  %v2198_v37 = vmul.f32 1.442695, %v2131_v14  ;;  %v1011_v56 = vpop.xlane.xlu0 %1010  ;;  %v2040_v1 = vpop.xlane.xlu1 %2039 }
 0x2b6   : > { %5137 = vpow2.f32 %v1168_v15  ;;  %v1102_v57 = vsub.f32 %v6216_v31, %v1011_v56  ;;  %v1103_v21 = vsub.f32 %v6220_v39, %v1011_v56  ;;  %v2132_v25 = vsub.f32 %v6218_v35, %v2040_v1 }
 0x2b7   : > { %5139 = vpow2.f32 %v1170_v16  ;;  %v2133_v24 = vsub.f32 %v6222_v40, %v2040_v1 }
 0x2b8   : > { %5141 = vpow2.f32 %v2196_v58  ;;  %v1172_v26 = vmul.f32 1.442695, %v1102_v57  ;;  %v1174_v4 = vmul.f32 1.442695, %v1103_v21  ;;  %v2200_v32 = vmul.f32 1.442695, %v2132_v25 }
 0x2b9   : > { %5143 = vpow2.f32 %v2198_v37  ;;  %v2202_v63 = vmul.f32 1.442695, %v2133_v24  ;;  %v1014_v36 = vpop.xlane.xlu0 %1013  ;;  %v2043_v34 = vpop.xlane.xlu1 %2042 }
 0x2ba   : > { %5145 = vpow2.f32 %v1172_v26  ;;  %v1104_v38 = vsub.f32 %v6228_v45, %v1014_v36  ;;  %v1105_v31 = vsub.f32 %v6232_v49, %v1014_v36  ;;  %v2134_v39 = vsub.f32 %v6230_v48, %v2043_v34 }
 0x2bb   : > { %5147 = vpow2.f32 %v1174_v4  ;;  %v2135_v35 = vsub.f32 %v6234_v50, %v2043_v34 }
 0x2bc   : > { %5149 = vpow2.f32 %v2200_v32  ;;  %v1176_v40 = vmul.f32 1.442695, %v1104_v38  ;;  %v1178_v0 = vmul.f32 1.442695, %v1105_v31  ;;  %v2204_v17 = vmul.f32 1.442695, %v2134_v39  ;;  %v6588_v6 = vpop.eup %5125 }
 0x2bd   : > { %9319 = vst [vmem:[#allocation97_spill] sm:$0xff] %v6588_v6  ;;  %5151 = vpow2.f32 %v2202_v63  ;;  %v2206_v7 = vmul.f32 1.442695, %v2135_v35  ;;  %v1017_v55 = vpop.xlane.xlu0 %1016  ;;  %v2046_v33 = vpop.xlane.xlu1 %2045 }
 0x2be   : > { %v6590_v11 = vpop.eup %5127  ;;  %5153 = vpow2.f32 %v1176_v40  ;;  %v1106_v45 = vsub.f32 %v6240_v3, %v1017_v55  ;;  %v1107_v48 = vsub.f32 %v6244_v10, %v1017_v55  ;;  %v2136_v49 = vsub.f32 %v6242_v9, %v2046_v33 }
 0x2bf   : > { %9320 = vst [vmem:[#allocation98_spill] sm:$0xff] %v6590_v11  ;;  %v6595_v50 = vpop.eup %5129  ;;  %5155 = vpow2.f32 %v1178_v0  ;;  %v2137_v14 = vsub.f32 %v6246_v12, %v2046_v33 }
 0x2c0   : > { %9321 = vst [vmem:[#allocation99_spill] sm:$0xff] %v6595_v50  ;;  %v6598_v15 = vpop.eup %5131  ;;  %5157 = vpow2.f32 %v2204_v17  ;;  %v1180_v16 = vmul.f32 1.442695, %v1106_v45  ;;  %v1182_v58 = vmul.f32 1.442695, %v1107_v48 }
 0x2c1   : > { %9322 = vst [vmem:[#allocation100_spill] sm:$0xff] %v6598_v15  ;;  %v2208_v37 = vmul.f32 1.442695, %v2136_v49  ;;  %v6600_v56 = vpop.eup %5133  ;;  %5159 = vpow2.f32 %v2206_v7  ;;  %v2210_v1 = vmul.f32 1.442695, %v2137_v14  ;;  %v1020_v3 = vpop.xlane.xlu0 %1019  ;;  %v1291_v9 = vadd.f32 %v6598_v15, %v6595_v50 }
 0x2c2   : > { %9323 = vst [vmem:[#allocation101_spill] sm:$0xff] %v6600_v56  ;;  %v2049_v57 = vpop.xlane.xlu1 %2048  ;;  %v6604_v10 = vpop.eup %5135  ;;  %5161 = vpow2.f32 %v1180_v16  ;;  %v1108_v12 = vsub.f32 %v6252_v20, %v1020_v3  ;;  %v1109_v21 = vsub.f32 %v6256_v28, %v1020_v3 }
 0x2c3   : > { %9324 = vst [vmem:[#allocation102_spill] sm:$0xff] %v6604_v10  ;;  %v2138_v25 = vsub.f32 %v6254_v27, %v2049_v57  ;;  %v6609_v24 = vpop.eup %5137  ;;  %5163 = vpow2.f32 %v1182_v58  ;;  %v2139_v26 = vsub.f32 %v6258_v29, %v2049_v57  ;;  %1292 = vadd.xlane.f32.xlu0 %v1291_v9  ;;  %v2320_v4 = vadd.f32 %v6604_v10, %v6600_v56 }
 0x2c4   : > { %9325 = vst [vmem:[#allocation103_spill] sm:$0xff] %v6609_v24  ;;  %v6614_v32 = vpop.eup %5139  ;;  %5165 = vpow2.f32 %v2208_v37  ;;  %v1184_v63 = vmul.f32 1.442695, %v1108_v12  ;;  %v1186_v36 = vmul.f32 1.442695, %v1109_v21 }
 0x2c5   : > { %9326 = vst [vmem:[#allocation104_spill] sm:$0xff] %v6614_v32  ;;  %v2212_v34 = vmul.f32 1.442695, %v2138_v25  ;;  %v6616_v20 = vpop.eup %5141  ;;  %5167 = vpow2.f32 %v2210_v1  ;;  %v2214_v28 = vmul.f32 1.442695, %v2139_v26  ;;  %2321 = vadd.xlane.f32.xlu1 %v2320_v4  ;;  %v1023_v27 = vpop.xlane.xlu0 %1022  ;;  %v1294_v29 = vadd.f32 %v6614_v32, %v6609_v24  ;;  %v9370_v32 = vld [vmem:[#allocation44_spill] sm:$0xff] }
 0x2c6   : > { %9327 = vst [vmem:[#allocation105_spill] sm:$0xff] %v6616_v20  ;;  %v2052_v38 = vpop.xlane.xlu1 %2051  ;;  %v6620_v31 = vpop.eup %5143  ;;  %5169 = vpow2.f32 %v1184_v63  ;;  %v1110_v39 = vsub.f32 %v6264_v42, %v1023_v27  ;;  %v1111_v35 = vsub.f32 %v6268_v47, %v1023_v27 }
 0x2c7   : > { %9328 = vst [vmem:[#allocation106_spill] sm:$0xff] %v6620_v31  ;;  %v2140_v40 = vsub.f32 %v6266_v46, %v2052_v38  ;;  %v6625_v0 = vpop.eup %5145  ;;  %5171 = vpow2.f32 %v1186_v36  ;;  %v2141_v17 = vsub.f32 %v6270_v51, %v2052_v38  ;;  %1295 = vadd.xlane.f32.xlu0 %v1294_v29  ;;  %v2323_v7 = vadd.f32 %v6620_v31, %v6616_v20 }
 0x2c8   : > { %9329 = vst [vmem:[#allocation107_spill] sm:$0xff] %v6625_v0  ;;  %v6630_v55 = vpop.eup %5147  ;;  %5173 = vpow2.f32 %v2212_v34  ;;  %v1188_v33 = vmul.f32 1.442695, %v1110_v39  ;;  %v1190_v45 = vmul.f32 1.442695, %v1111_v35 }
 0x2c9   : > { %9330 = vst [vmem:[#allocation108_spill] sm:$0xff] %v6630_v55  ;;  %v2216_v48 = vmul.f32 1.442695, %v2140_v40  ;;  %v6632_v42 = vpop.eup %5149  ;;  %5175 = vpow2.f32 %v2214_v28  ;;  %v2218_v47 = vmul.f32 1.442695, %v2141_v17  ;;  %2324 = vadd.xlane.f32.xlu1 %v2323_v7  ;;  %v1026_v46 = vpop.xlane.xlu0 %1025  ;;  %v1297_v51 = vadd.f32 %v6630_v55, %v6625_v0 }
 0x2ca   : > { %9331 = vst [vmem:[#allocation109_spill] sm:$0xff] %v6632_v42  ;;  %v2055_v49 = vpop.xlane.xlu1 %2054  ;;  %v6636_v14 = vpop.eup %5151  ;;  %5177 = vpow2.f32 %v1188_v33  ;;  %v1112_v16 = vsub.f32 %v6276_v8, %v1026_v46  ;;  %v1113_v58 = vsub.f32 %v6280_v19, %v1026_v46 }
 0x2cb   : > { %9332 = vst [vmem:[#allocation110_spill] sm:$0xff] %v6636_v14  ;;  %v2142_v37 = vsub.f32 %v6278_v18, %v2055_v49  ;;  %v6641_v1 = vpop.eup %5153  ;;  %5179 = vpow2.f32 %v1190_v45  ;;  %v2143_v3 = vsub.f32 %v6282_v22, %v2055_v49  ;;  %1298 = vadd.xlane.f32.xlu0 %v1297_v51  ;;  %v2326_v57 = vadd.f32 %v6636_v14, %v6632_v42 }
 0x2cc   : > { %9333 = vst [vmem:[#allocation111_spill] sm:$0xff] %v6641_v1  ;;  %v6646_v9 = vpop.eup %5155  ;;  %5181 = vpow2.f32 %v2216_v48  ;;  %v1192_v12 = vmul.f32 1.442695, %v1112_v16  ;;  %v1194_v21 = vmul.f32 1.442695, %v1113_v58 }
 0x2cd   : > { %9334 = vst [vmem:[#allocation112_spill] sm:$0xff] %v6646_v9  ;;  %v2220_v25 = vmul.f32 1.442695, %v2142_v37  ;;  %v6648_v8 = vpop.eup %5157  ;;  %5183 = vpow2.f32 %v2218_v47  ;;  %v2222_v19 = vmul.f32 1.442695, %v2143_v3  ;;  %2327 = vadd.xlane.f32.xlu1 %v2326_v57  ;;  %v1029_v18 = vpop.xlane.xlu0 %1028  ;;  %v1300_v22 = vadd.f32 %v6646_v9, %v6641_v1 }
 0x2ce   : > { %9335 = vst [vmem:[#allocation113_spill] sm:$0xff] %v6648_v8  ;;  %v2058_v26 = vpop.xlane.xlu1 %2057  ;;  %v6652_v4 = vpop.eup %5159  ;;  %5185 = vpow2.f32 %v1192_v12  ;;  %v1114_v63 = vsub.f32 %v6288_v41, %v1029_v18  ;;  %v1115_v36 = vsub.f32 %v6292_v53, %v1029_v18 }
 0x2cf   : > { %9336 = vst [vmem:[#allocation114_spill] sm:$0xff] %v6652_v4  ;;  %v2144_v34 = vsub.f32 %v6290_v52, %v2058_v26  ;;  %v6657_v28 = vpop.eup %5161  ;;  %5187 = vpow2.f32 %v1194_v21  ;;  %v2145_v27 = vsub.f32 %v6294_v13, %v2058_v26  ;;  %1301 = vadd.xlane.f32.xlu0 %v1300_v22  ;;  %v2329_v38 = vadd.f32 %v6652_v4, %v6648_v8 }
 0x2d0   : > { %9337 = vst [vmem:[#allocation115_spill] sm:$0xff] %v6657_v28  ;;  %v6662_v29 = vpop.eup %5163  ;;  %5189 = vpow2.f32 %v2220_v25  ;;  %v1196_v39 = vmul.f32 1.442695, %v1114_v63  ;;  %v1198_v35 = vmul.f32 1.442695, %v1115_v36 }
 0x2d1   : > { %9338 = vst [vmem:[#allocation116_spill] sm:$0xff] %v6662_v29  ;;  %v2224_v40 = vmul.f32 1.442695, %v2144_v34  ;;  %v6664_v41 = vpop.eup %5165  ;;  %5191 = vpow2.f32 %v2222_v19  ;;  %v2226_v53 = vmul.f32 1.442695, %v2145_v27  ;;  %2330 = vadd.xlane.f32.xlu1 %v2329_v38  ;;  %v1032_v52 = vpop.xlane.xlu0 %1031  ;;  %v1303_v13 = vadd.f32 %v6662_v29, %v6657_v28 }
 0x2d2   : > { %9339 = vst [vmem:[#allocation117_spill] sm:$0xff] %v6664_v41  ;;  %v2061_v17 = vpop.xlane.xlu1 %2060  ;;  %v6668_v7 = vpop.eup %5167  ;;  %5193 = vpow2.f32 %v1196_v39  ;;  %v1116_v33 = vsub.f32 %v6300_v23, %v1032_v52  ;;  %v1117_v45 = vsub.f32 %v6304_v43, %v1032_v52  ;;  %v9347_v39 = vld [vmem:[#allocation18_spill] sm:$0xff]  ;;  %v9349_v52 = vld [vmem:[#allocation19_spill] sm:$0xff] }
 0x2d3   : > { %9340 = vst [vmem:[#allocation118_spill] sm:$0xff] %v6668_v7  ;;  %v2146_v48 = vsub.f32 %v6302_v30, %v2061_v17  ;;  %v6673_v47 = vpop.eup %5169  ;;  %5195 = vpow2.f32 %v1198_v35  ;;  %v2147_v46 = vsub.f32 %v6306_v44, %v2061_v17  ;;  %1304 = vadd.xlane.f32.xlu0 %v1303_v13  ;;  %v2332_v49 = vadd.f32 %v6668_v7, %v6664_v41  ;;  %v9372_v41 = vld [vmem:[#allocation46_spill] sm:$0xff] }
 0x2d4   : > { %9341 = vst [vmem:[#allocation119_spill] sm:$0xff] %v6673_v47  ;;  %v6678_v51 = vpop.eup %5171  ;;  %5197 = vpow2.f32 %v2224_v40  ;;  %v1200_v16 = vmul.f32 1.442695, %v1116_v33  ;;  %v1202_v58 = vmul.f32 1.442695, %v1117_v45  ;;  %v9348_v40 = vld [vmem:[#allocation20_spill] sm:$0xff] }
 0x2d5   : > { %9342 = vst [vmem:[#allocation120_spill] sm:$0xff] %v6678_v51  ;;  %v2228_v37 = vmul.f32 1.442695, %v2146_v48  ;;  %v6680_v23 = vpop.eup %5173  ;;  %5199 = vpow2.f32 %v2226_v53  ;;  %v2230_v43 = vmul.f32 1.442695, %v2147_v46  ;;  %2333 = vadd.xlane.f32.xlu1 %v2332_v49  ;;  %v1035_v30 = vpop.xlane.xlu0 %1034  ;;  %v1306_v44 = vadd.f32 %v6678_v51, %v6673_v47  ;;  %v9350_v33 = vld [vmem:[#allocation21_spill] sm:$0xff] }
 0x2d6   : > { %9343 = vst [vmem:[#allocation121_spill] sm:$0xff] %v6680_v23  ;;  %v2064_v3 = vpop.xlane.xlu1 %2063  ;;  %v6684_v57 = vpop.eup %5175  ;;  %5201 = vpow2.f32 %v1200_v16  ;;  %v1118_v12 = vsub.f32 %v6312_v54, %v1035_v30  ;;  %v1119_v21 = vsub.f32 %v6316_v2, %v1035_v30  ;;  %v9380_v47 = vld [vmem:[#allocation54_spill] sm:$0xff] }
 0x2d7   : > { %9344 = vst [vmem:[#allocation122_spill] sm:$0xff] %v6684_v57  ;;  %v2148_v25 = vsub.f32 %v6314_v5, %v2064_v3  ;;  %v6689_v19 = vpop.eup %5177  ;;  %5203 = vpow2.f32 %v1202_v58  ;;  %v2149_v18 = vsub.f32 %v6318_v62, %v2064_v3  ;;  %1307 = vadd.xlane.f32.xlu0 %v1306_v44  ;;  %v2335_v26 = vadd.f32 %v6684_v57, %v6680_v23 }
 0x2d8   : > { %v6694_v22 = vpop.eup %5179  ;;  %5205 = vpow2.f32 %v2228_v37  ;;  %v1204_v63 = vmul.f32 1.442695, %v1118_v12  ;;  %v1206_v36 = vmul.f32 1.442695, %v1119_v21  ;;  %v9353_v21 = vld [vmem:[#allocation22_spill] sm:$0xff] }
 0x2d9   : > { %v2232_v34 = vmul.f32 1.442695, %v2148_v25  ;;  %v6696_v54 = vpop.eup %5181  ;;  %5207 = vpow2.f32 %v2230_v43  ;;  %v2234_v2 = vmul.f32 1.442695, %v2149_v18  ;;  %2336 = vadd.xlane.f32.xlu1 %v2335_v26  ;;  %v1038_v5 = vpop.xlane.xlu0 %1037  ;;  %v1309_v62 = vadd.f32 %v6694_v22, %v6689_v19  ;;  %v9354_v18 = vld [vmem:[#allocation24_spill] sm:$0xff] }
 0x2da   : > { %9345 = vst [vmem:[#allocation123_spill] sm:$0xff] %v6696_v54  ;;  %v2067_v27 = vpop.xlane.xlu1 %2066  ;;  %v6700_v38 = vpop.eup %5183  ;;  %5209 = vpow2.f32 %v1204_v63  ;;  %v1120_v35 = vsub.f32 %v9347_v39, %v1038_v5  ;;  %v1121_v53 = vsub.f32 %v9348_v40, %v1038_v5  ;;  %v9355_v63 = vld [vmem:[#allocation23_spill] sm:$0xff] }
 0x2db   : > { %9346 = vst [vmem:[#allocation124_spill] sm:$0xff] %v6700_v38  ;;  %v2150_v17 = vsub.f32 %v9349_v52, %v2067_v27  ;;  %v6705_v13 = vpop.eup %5185  ;;  %5211 = vpow2.f32 %v1206_v36  ;;  %v2151_v45 = vsub.f32 %v9350_v33, %v2067_v27  ;;  %1310 = vadd.xlane.f32.xlu0 %v1309_v62  ;;  %v2338_v48 = vadd.f32 %v6700_v38, %v6696_v54  ;;  %v9375_v54 = vld [vmem:[#allocation49_spill] sm:$0xff] }
 0x2dc   : > { %v6710_v46 = vpop.eup %5187  ;;  %5213 = vpow2.f32 %v2232_v34  ;;  %v1208_v49 = vmul.f32 1.442695, %v1120_v35  ;;  %v1210_v16 = vmul.f32 1.442695, %v1121_v53 }
 0x2dd   : > { %v2236_v58 = vmul.f32 1.442695, %v2150_v17  ;;  %v6712_v37 = vpop.eup %5189  ;;  %5215 = vpow2.f32 %v2234_v2  ;;  %v2238_v43 = vmul.f32 1.442695, %v2151_v45  ;;  %2339 = vadd.xlane.f32.xlu1 %v2338_v48  ;;  %v1041_v30 = vpop.xlane.xlu0 %1040  ;;  %v1312_v44 = vadd.f32 %v6710_v46, %v6705_v13  ;;  %v9356_v2 = vld [vmem:[#allocation25_spill] sm:$0xff] }
 0x2de   : > { %9351 = vst [vmem:[#allocation18_spill] sm:$0xff] %v6712_v37  ;;  %v2070_v3 = vpop.xlane.xlu1 %2069  ;;  %v6716_v12 = vpop.eup %5191  ;;  %5217 = vpow2.f32 %v1208_v49  ;;  %v1122_v25 = vsub.f32 %v9353_v21, %v1041_v30  ;;  %v1123_v26 = vsub.f32 %v9354_v18, %v1041_v30  ;;  %v9358_v49 = vld [vmem:[#allocation26_spill] sm:$0xff]  ;;  %v9359_v30 = vld [vmem:[#allocation28_spill] sm:$0xff] }
 0x2df   : > { %9352 = vst [vmem:[#allocation20_spill] sm:$0xff] %v6716_v12  ;;  %v2152_v36 = vsub.f32 %v9355_v63, %v2070_v3  ;;  %v6721_v34 = vpop.eup %5193  ;;  %5219 = vpow2.f32 %v1210_v16  ;;  %v2153_v5 = vsub.f32 %v9356_v2, %v2070_v3  ;;  %1313 = vadd.xlane.f32.xlu0 %v1312_v44  ;;  %v2341_v27 = vadd.f32 %v6716_v12, %v6712_v37  ;;  %v9360_v3 = vld [vmem:[#allocation27_spill] sm:$0xff] }
 0x2e0   : > { %v6726_v62 = vpop.eup %5195  ;;  %5221 = vpow2.f32 %v2236_v58  ;;  %v1212_v39 = vmul.f32 1.442695, %v1122_v25  ;;  %v1214_v35 = vmul.f32 1.442695, %v1123_v26 }
 0x2e1   : > { %v2240_v40 = vmul.f32 1.442695, %v2152_v36  ;;  %v6728_v53 = vpop.eup %5197  ;;  %5223 = vpow2.f32 %v2238_v43  ;;  %v2242_v52 = vmul.f32 1.442695, %v2153_v5  ;;  %2342 = vadd.xlane.f32.xlu1 %v2341_v27  ;;  %v1044_v17 = vpop.xlane.xlu0 %1043  ;;  %v1315_v45 = vadd.f32 %v6726_v62, %v6721_v34  ;;  %v9361_v43 = vld [vmem:[#allocation29_spill] sm:$0xff] }
 0x2e2   : > { %9357 = vst [vmem:[#allocation19_spill] sm:$0xff] %v6728_v53  ;;  %v2073_v33 = vpop.xlane.xlu1 %2072  ;;  %v6732_v48 = vpop.eup %5199  ;;  %5225 = vpow2.f32 %v1212_v39  ;;  %v1124_v16 = vsub.f32 %v9358_v49, %v1044_v17  ;;  %v1125_v58 = vsub.f32 %v9359_v30, %v1044_v17  ;;  %v9363_v30 = vld [vmem:[#allocation33_spill] sm:$0xff] }
 0x2e3   : > { %v2154_v44 = vsub.f32 %v9360_v3, %v2073_v33  ;;  %v6737_v21 = vpop.eup %5201  ;;  %5227 = vpow2.f32 %v1214_v35  ;;  %v2155_v25 = vsub.f32 %v9361_v43, %v2073_v33  ;;  %1316 = vadd.xlane.f32.xlu0 %v1315_v45  ;;  %v2344_v18 = vadd.f32 %v6732_v48, %v6728_v53  ;;  %v9362_v45 = vld [vmem:[#allocation31_spill] sm:$0xff] }
 0x2e4   : > { %v6742_v26 = vpop.eup %5203  ;;  %5229 = vpow2.f32 %v2240_v40  ;;  %v1216_v63 = vmul.f32 1.442695, %v1124_v16  ;;  %v1218_v36 = vmul.f32 1.442695, %v1125_v58  ;;  %v9364_v16 = vld [vmem:[#allocation30_spill] sm:$0xff] }
 0x2e5   : > { %v2244_v2 = vmul.f32 1.442695, %v2154_v44  ;;  %v6744_v5 = vpop.eup %5205  ;;  %5231 = vpow2.f32 %v2242_v52  ;;  %v2246_v27 = vmul.f32 1.442695, %v2155_v25  ;;  %2345 = vadd.xlane.f32.xlu1 %v2344_v18  ;;  %v2076_v39 = vpop.xlane.xlu0 %2075  ;;  %v1318_v35 = vadd.f32 %v6742_v26, %v6737_v21  ;;  %v9365_v52 = vld [vmem:[#allocation32_spill] sm:$0xff] }
 0x2e6   : > { %v1047_v17 = vpop.xlane.xlu1 %1046  ;;  %v6748_v33 = vpop.eup %5207  ;;  %5233 = vpow2.f32 %v1216_v63  ;;  %v2156_v49 = vsub.f32 %v9362_v45, %v2076_v39  ;;  %v2157_v40 = vsub.f32 %v9363_v30, %v2076_v39 }
 0x2e7   : > { %v1126_v58 = vsub.f32 %v9364_v16, %v1047_v17  ;;  %v6753_v3 = vpop.eup %5209  ;;  %5235 = vpow2.f32 %v1218_v36  ;;  %v1127_v44 = vsub.f32 %v9365_v52, %v1047_v17  ;;  %1319 = vadd.xlane.f32.xlu0 %v1318_v35  ;;  %v2347_v43 = vadd.f32 %v6748_v33, %v6744_v5  ;;  %v9366_v35 = vld [vmem:[#allocation34_spill] sm:$0xff]  ;;  %v9367_v52 = vld [vmem:[#allocation35_spill] sm:$0xff] }
 0x2e8   : > { %v6758_v25 = vpop.eup %5211  ;;  %5237 = vpow2.f32 %v2244_v2  ;;  %v2248_v18 = vmul.f32 1.442695, %v2156_v49  ;;  %v2250_v63 = vmul.f32 1.442695, %v2157_v40 }
 0x2e9   : > { %v1220_v56 = vmul.f32 1.442695, %v1126_v58  ;;  %v6760_v45 = vpop.eup %5213  ;;  %5239 = vpow2.f32 %v2246_v27  ;;  %v1222_v39 = vmul.f32 1.442695, %v1127_v44  ;;  %2348 = vadd.xlane.f32.xlu1 %v2347_v43  ;;  %v2079_v30 = vpop.xlane.xlu0 %2078  ;;  %v1321_v36 = vadd.f32 %v6758_v25, %v6753_v3 }
 0x2ea   : > { %v6764_v17 = vpop.eup %5215  ;;  %5241 = vpow2.f32 %v2248_v18  ;;  %v2158_v16 = vsub.f32 %v9366_v35, %v2079_v30  ;;  %v2159_v10 = vsub.f32 %v9367_v52, %v2079_v30 }
 0x2eb   : > { %v6768_v2 = vpop.eup %5217  ;;  %5243 = vpow2.f32 %v2250_v63  ;;  %1322 = vadd.xlane.f32.xlu0 %v1321_v36  ;;  %v2350_v27 = vadd.f32 %v6764_v17, %v6760_v45 }
 0x2ec   : > { %v6772_v49 = vpop.eup %5219  ;;  %5245 = vpow2.f32 %v1220_v56  ;;  %v2252_v40 = vmul.f32 1.442695, %v2158_v16  ;;  %v2254_v58 = vmul.f32 1.442695, %v2159_v10 }
 0x2ed   : > { %v6774_v44 = vpop.eup %5221  ;;  %5247 = vpow2.f32 %v1222_v39  ;;  %2351 = vadd.xlane.f32.xlu1 %v2350_v27  ;;  %v6776_v43 = vpop.xlane.xlu0 %1049  ;;  %v1324_v63 = vadd.f32 %v6772_v49, %v6768_v2 }
 0x2ee   : > { %v6778_v18 = vpop.xlane.xlu1 %2081  ;;  %v6782_v30 = vpop.eup %5223  ;;  %5249 = vpow2.f32 %v2252_v40  ;;  %v9368_v40 = vld [vmem:[#allocation42_spill] sm:$0xff] }
 0x2ef   : > { %v6784_v36 = vpop.eup %5225  ;;  %5251 = vpow2.f32 %v2254_v58  ;;  %1325 = vadd.xlane.f32.xlu0 %v1324_v63  ;;  %v2353_v56 = vadd.f32 %v6782_v30, %v6774_v44  ;;  %v9369_v63 = vld [vmem:[#allocation43_spill] sm:$0xff] }
 0x2f0   : > { %v6788_v10 = vpop.eup %5227 }
 0x2f1   : > { %v6790_v39 = vpop.eup %5229  ;;  %2354 = vadd.xlane.f32.xlu1 %v2353_v56  ;;  %v6792_v35 = vpop.xlane.xlu0 %1052  ;;  %v1327_v52 = vadd.f32 %v6788_v10, %v6784_v36 }
 0x2f2   : > { %v2085_v16 = vpop.xlane.xlu1 %2084  ;;  %v6796_v27 = vpop.eup %5231 }
 0x2f3   : > { %v2162_v20 = vsub.f32 %v9368_v40, %v2085_v16  ;;  %v6799_v58 = vpop.eup %5233  ;;  %v2163_v31 = vsub.f32 %v9369_v63, %v2085_v16  ;;  %1328 = vadd.xlane.f32.xlu0 %v1327_v52  ;;  %v2356_v42 = vadd.f32 %v6796_v27, %v6790_v39  ;;  %v9371_v52 = vld [vmem:[#allocation45_spill] sm:$0xff] }
 0x2f4   : > { %v6804_v50 = vpop.eup %5235 }
 0x2f5   : > { %v2260_v56 = vmul.f32 1.442695, %v2162_v20  ;;  %v6806_v14 = vpop.eup %5237  ;;  %v2262_v15 = vmul.f32 1.442695, %v2163_v31  ;;  %2357 = vadd.xlane.f32.xlu1 %v2356_v42  ;;  %v1056_v8 = vpop.xlane.xlu0 %1055  ;;  %v1330_v40 = vadd.f32 %v6804_v50, %v6799_v58  ;;  %v9373_v20 = vld [vmem:[#allocation47_spill] sm:$0xff] }
 0x2f6   : > { %v2088_v24 = vpop.xlane.xlu1 %2087  ;;  %v6810_v4 = vpop.eup %5239  ;;  %v1132_v16 = vsub.f32 %v9370_v32, %v1056_v8  ;;  %v1133_v63 = vsub.f32 %v9371_v52, %v1056_v8  ;;  %v9374_v52 = vld [vmem:[#allocation48_spill] sm:$0xff] }
 0x2f7   : > { %v2164_v0 = vsub.f32 %v9372_v41, %v2088_v24  ;;  %v6815_v7 = vpop.eup %5241  ;;  %v2165_v55 = vsub.f32 %v9373_v20, %v2088_v24  ;;  %1331 = vadd.xlane.f32.xlu0 %v1330_v40  ;;  %v2359_v31 = vadd.f32 %v6810_v4, %v6806_v14  ;;  %5253 = vpow2.f32 %v2260_v56 }
 0x2f8   : > { %v6820_v42 = vpop.eup %5243  ;;  %v1232_v23 = vmul.f32 1.442695, %v1132_v16  ;;  %v1234_v1 = vmul.f32 1.442695, %v1133_v63  ;;  %5255 = vpow2.f32 %v2262_v15  ;;  %v9376_v16 = vld [vmem:[#allocation50_spill] sm:$0xff]  ;;  %v9377_v15 = vld [vmem:[#allocation51_spill] sm:$0xff] }
 0x2f9   : > { %v2264_v57 = vmul.f32 1.442695, %v2164_v0  ;;  %v6822_v9 = vpop.eup %5245  ;;  %v2266_v32 = vmul.f32 1.442695, %v2165_v55  ;;  %2360 = vadd.xlane.f32.xlu1 %v2359_v31  ;;  %v1059_v8 = vpop.xlane.xlu0 %1058  ;;  %v2362_v24 = vadd.f32 %v6820_v42, %v6815_v7 }
 0x2fa   : > { %v2091_v41 = vpop.xlane.xlu1 %2090  ;;  %v6826_v40 = vpop.eup %5247  ;;  %5257 = vpow2.f32 %v1232_v23  ;;  %v1134_v20 = vsub.f32 %v9374_v52, %v1059_v8  ;;  %v1135_v56 = vsub.f32 %v9375_v54, %v1059_v8 }
 0x2fb   : > { %v2166_v63 = vsub.f32 %v9376_v16, %v2091_v41  ;;  %v6831_v0 = vpop.eup %5249  ;;  %5259 = vpow2.f32 %v1234_v1  ;;  %v2167_v55 = vsub.f32 %v9377_v15, %v2091_v41  ;;  %v1333_v31 = vadd.f32 %v6826_v40, %v6822_v9  ;;  %v9378_v41 = vld [vmem:[#allocation52_spill] sm:$0xff]  ;;  %v9379_v15 = vld [vmem:[#allocation53_spill] sm:$0xff] }
 0x2fc   : > { %v6836_v28 = vpop.eup %5251  ;;  %5261 = vpow2.f32 %v2264_v57  ;;  %v1236_v38 = vmul.f32 1.442695, %v1134_v20  ;;  %v1238_v29 = vmul.f32 1.442695, %v1135_v56  ;;  %v9381_v57 = vld [vmem:[#allocation55_spill] sm:$0xff] }
 0x2fd   : > { %v2268_v23 = vmul.f32 1.442695, %v2166_v63  ;;  %5263 = vpow2.f32 %v2266_v32  ;;  %v2270_v52 = vmul.f32 1.442695, %v2167_v55  ;;  %2363 = vadd.xlane.f32.xlu1 %v2362_v24  ;;  %1334 = vadd.xlane.f32.xlu0 %v1333_v31  ;;  %v1062_v54 = vpop.xlane.xlu0 %1061  ;;  %v2365_v1 = vadd.f32 %v6836_v28, %v6831_v0 }
 0x2fe   : > { %v2094_v8 = vpop.xlane.xlu1 %2093  ;;  %5265 = vpow2.f32 %v1236_v38  ;;  %v1136_v16 = vsub.f32 %v9378_v41, %v1062_v54  ;;  %v1137_v37 = vsub.f32 %v9379_v15, %v1062_v54  ;;  %v1288_v32 = vadd.f32 %v6590_v11, %v6588_v6  ;;  %v9382_v54 = vld [vmem:[#allocation56_spill] sm:$0xff]  ;;  %v9384_v15 = vld [vmem:[#allocation58_spill] sm:$0xff] }
 0x2ff   : > { %v2168_v12 = vsub.f32 %v9380_v47, %v2094_v8  ;;  %5267 = vpow2.f32 %v1238_v29  ;;  %v2169_v20 = vsub.f32 %v9381_v57, %v2094_v8  ;;  %v9383_v47 = vld [vmem:[#allocation57_spill] sm:$0xff]  ;;  %v9385_v57 = vld [vmem:[#allocation59_spill] sm:$0xff] }
 0x300   : > { %5269 = vpow2.f32 %v2268_v23  ;;  %v1240_v24 = vmul.f32 1.442695, %v1136_v16  ;;  %v1242_v56 = vmul.f32 1.442695, %v1137_v37 }
 0x301   : > { %v2272_v63 = vmul.f32 1.442695, %v2168_v12  ;;  %5271 = vpow2.f32 %v2270_v52  ;;  %v2274_v55 = vmul.f32 1.442695, %v2169_v20  ;;  %2366 = vadd.xlane.f32.xlu1 %v2365_v1  ;;  %1289 = vadd.xlane.f32.xlu0 %v1288_v32  ;;  %v1065_v38 = vpop.xlane.xlu0 %1064 }
 0x302   : > { %v2097_v31 = vpop.xlane.xlu1 %2096  ;;  %5273 = vpow2.f32 %v1240_v24  ;;  %v1138_v41 = vsub.f32 %v9382_v54, %v1065_v38  ;;  %v1139_v29 = vsub.f32 %v9383_v47, %v1065_v38  ;;  %v9388_v24 = vld [vmem:[#allocation60_spill] sm:$0xff]  ;;  %v9389_v54 = vld [vmem:[#allocation61_spill] sm:$0xff] }
 0x303   : > { %v2170_v8 = vsub.f32 %v9384_v15, %v2097_v31  ;;  %5275 = vpow2.f32 %v1242_v56  ;;  %v2171_v6 = vsub.f32 %v9385_v57, %v2097_v31  ;;  %v9390_v56 = vld [vmem:[#allocation62_spill] sm:$0xff] }
 0x304   : > { %5277 = vpow2.f32 %v2272_v63  ;;  %v1244_v23 = vmul.f32 1.442695, %v1138_v41  ;;  %v1246_v37 = vmul.f32 1.442695, %v1139_v29  ;;  %v6850_v52 = vpop.eup %5253  ;;  %v9392_v63 = vld [vmem:[#allocation63_spill] sm:$0xff] }
 0x305   : > { %v2276_v12 = vmul.f32 1.442695, %v2170_v8  ;;  %9386 = vst [vmem:[#allocation21_spill] sm:$0xff] %v6850_v52  ;;  %5279 = vpow2.f32 %v2274_v55  ;;  %v2278_v1 = vmul.f32 1.442695, %v2171_v6  ;;  %v1068_v16 = vpop.xlane.xlu0 %1067  ;;  %v6852_v32 = vpop.eup %5255 }
 0x306   : > { %v2100_v20 = vpop.xlane.xlu1 %2099  ;;  %9387 = vst [vmem:[#allocation22_spill] sm:$0xff] %v6852_v32  ;;  %5281 = vpow2.f32 %v1244_v23  ;;  %v1140_v38 = vsub.f32 %v9388_v24, %v1068_v16  ;;  %v1141_v47 = vsub.f32 %v9389_v54, %v1068_v16 }
 0x307   : > { %v2172_v15 = vsub.f32 %v9390_v56, %v2100_v20  ;;  %v6857_v31 = vpop.eup %5257  ;;  %5283 = vpow2.f32 %v1246_v37  ;;  %v2173_v41 = vsub.f32 %v9392_v63, %v2100_v20  ;;  %v9396_v37 = vld [vmem:[#allocation64_spill] sm:$0xff]  ;;  %v9397_v56 = vld [vmem:[#allocation65_spill] sm:$0xff] }
 0x308   : > { %9391 = vst [vmem:[#allocation24_spill] sm:$0xff] %v6857_v31  ;;  %v6860_v29 = vpop.eup %5259  ;;  %5285 = vpow2.f32 %v2276_v12  ;;  %v1248_v6 = vmul.f32 1.442695, %v1140_v38  ;;  %v1250_v55 = vmul.f32 1.442695, %v1141_v47  ;;  %v9398_v12 = vld [vmem:[#allocation66_spill] sm:$0xff] }
 0x309   : > { %9393 = vst [vmem:[#allocation23_spill] sm:$0xff] %v6860_v29  ;;  %v2280_v8 = vmul.f32 1.442695, %v2172_v15  ;;  %v6862_v57 = vpop.eup %5261  ;;  %5287 = vpow2.f32 %v2278_v1  ;;  %v2282_v23 = vmul.f32 1.442695, %v2173_v41  ;;  %v1071_v24 = vpop.xlane.xlu0 %1070  ;;  %v1342_v16 = vadd.f32 %v6860_v29, %v6857_v31  ;;  %v9400_v15 = vld [vmem:[#allocation67_spill] sm:$0xff] }
 0x30a   : > { %9394 = vst [vmem:[#allocation25_spill] sm:$0xff] %v6862_v57  ;;  %v2103_v11 = vpop.xlane.xlu1 %2102  ;;  %v6866_v54 = vpop.eup %5263  ;;  %5289 = vpow2.f32 %v1248_v6  ;;  %v1142_v20 = vsub.f32 %v9396_v37, %v1071_v24  ;;  %v1143_v63 = vsub.f32 %v9397_v56, %v1071_v24 }
 0x30b   : > { %9395 = vst [vmem:[#allocation26_spill] sm:$0xff] %v6866_v54  ;;  %v2174_v38 = vsub.f32 %v9398_v12, %v2103_v11  ;;  %v6871_v47 = vpop.eup %5265  ;;  %5291 = vpow2.f32 %v1250_v55  ;;  %v2175_v1 = vsub.f32 %v9400_v15, %v2103_v11  ;;  %1343 = vadd.xlane.f32.xlu0 %v1342_v16  ;;  %v2374_v41 = vadd.f32 %v6866_v54, %v6862_v57  ;;  %v9404_v16 = vld [vmem:[#allocation68_spill] sm:$0xff]  ;;  %v9405_v57 = vld [vmem:[#allocation69_spill] sm:$0xff] }
 0x30c   : > { %9399 = vst [vmem:[#allocation28_spill] sm:$0xff] %v6871_v47  ;;  %v6876_v51 = vpop.eup %5267  ;;  %5293 = vpow2.f32 %v2280_v8  ;;  %v1252_v31 = vmul.f32 1.442695, %v1142_v20  ;;  %v1254_v6 = vmul.f32 1.442695, %v1143_v63  ;;  %v9406_v20 = vld [vmem:[#allocation70_spill] sm:$0xff] }
 0x30d   : > { %9401 = vst [vmem:[#allocation27_spill] sm:$0xff] %v6876_v51  ;;  %v2284_v29 = vmul.f32 1.442695, %v2174_v38  ;;  %v6878_v37 = vpop.eup %5269  ;;  %5295 = vpow2.f32 %v2282_v23  ;;  %v2286_v24 = vmul.f32 1.442695, %v2175_v1  ;;  %2375 = vadd.xlane.f32.xlu1 %v2374_v41  ;;  %v1074_v56 = vpop.xlane.xlu0 %1073  ;;  %v1345_v11 = vadd.f32 %v6876_v51, %v6871_v47  ;;  %v9408_v23 = vld [vmem:[#allocation71_spill] sm:$0xff] }
 0x30e   : > { %9402 = vst [vmem:[#allocation29_spill] sm:$0xff] %v6878_v37  ;;  %v2106_v12 = vpop.xlane.xlu1 %2105  ;;  %v6882_v55 = vpop.eup %5271  ;;  %5297 = vpow2.f32 %v1252_v31  ;;  %v1144_v15 = vsub.f32 %v9404_v16, %v1074_v56  ;;  %v1145_v8 = vsub.f32 %v9405_v57, %v1074_v56 }
 0x30f   : > { %9403 = vst [vmem:[#allocation31_spill] sm:$0xff] %v6882_v55  ;;  %v2176_v63 = vsub.f32 %v9406_v20, %v2106_v12  ;;  %v6887_v38 = vpop.eup %5273  ;;  %5299 = vpow2.f32 %v1254_v6  ;;  %v2177_v1 = vsub.f32 %v9408_v23, %v2106_v12  ;;  %1346 = vadd.xlane.f32.xlu0 %v1345_v11  ;;  %v2377_v41 = vadd.f32 %v6882_v55, %v6878_v37  ;;  %v9412_v11 = vld [vmem:[#allocation72_spill] sm:$0xff]  ;;  %v9413_v37 = vld [vmem:[#allocation73_spill] sm:$0xff] }
 0x310   : > { %9407 = vst [vmem:[#allocation33_spill] sm:$0xff] %v6887_v38  ;;  %v6892_v54 = vpop.eup %5275  ;;  %5301 = vpow2.f32 %v2284_v29  ;;  %v1256_v47 = vmul.f32 1.442695, %v1144_v15  ;;  %v1258_v31 = vmul.f32 1.442695, %v1145_v8  ;;  %v9414_v15 = vld [vmem:[#allocation74_spill] sm:$0xff] }
 0x311   : > { %9409 = vst [vmem:[#allocation30_spill] sm:$0xff] %v6892_v54  ;;  %v2288_v51 = vmul.f32 1.442695, %v2176_v63  ;;  %v6894_v16 = vpop.eup %5277  ;;  %5303 = vpow2.f32 %v2286_v24  ;;  %v2290_v57 = vmul.f32 1.442695, %v2177_v1  ;;  %2378 = vadd.xlane.f32.xlu1 %v2377_v41  ;;  %v1077_v56 = vpop.xlane.xlu0 %1076  ;;  %v1348_v6 = vadd.f32 %v6892_v54, %v6887_v38  ;;  %v9416_v24 = vld [vmem:[#allocation75_spill] sm:$0xff] }
 0x312   : > { %9410 = vst [vmem:[#allocation32_spill] sm:$0xff] %v6894_v16  ;;  %v2109_v20 = vpop.xlane.xlu1 %2108  ;;  %v6898_v12 = vpop.eup %5279  ;;  %5305 = vpow2.f32 %v1256_v47  ;;  %v1146_v23 = vsub.f32 %v9412_v11, %v1077_v56  ;;  %v1147_v29 = vsub.f32 %v9413_v37, %v1077_v56 }
 0x313   : > { %9411 = vst [vmem:[#allocation34_spill] sm:$0xff] %v6898_v12  ;;  %v2178_v8 = vsub.f32 %v9414_v15, %v2109_v20  ;;  %v6903_v63 = vpop.eup %5281  ;;  %5307 = vpow2.f32 %v1258_v31  ;;  %v2179_v1 = vsub.f32 %v9416_v24, %v2109_v20  ;;  %1349 = vadd.xlane.f32.xlu0 %v1348_v6  ;;  %v2380_v41 = vadd.f32 %v6898_v12, %v6894_v16  ;;  %v9420_v6 = vld [vmem:[#allocation76_spill] sm:$0xff]  ;;  %v9421_v16 = vld [vmem:[#allocation77_spill] sm:$0xff] }
 0x314   : > { %9415 = vst [vmem:[#allocation35_spill] sm:$0xff] %v6903_v63  ;;  %v6908_v55 = vpop.eup %5283  ;;  %5309 = vpow2.f32 %v2288_v51  ;;  %v1260_v38 = vmul.f32 1.442695, %v1146_v23  ;;  %v1262_v47 = vmul.f32 1.442695, %v1147_v29  ;;  %v9422_v23 = vld [vmem:[#allocation78_spill] sm:$0xff] }
 0x315   : > { %9417 = vst [vmem:[#allocation42_spill] sm:$0xff] %v6908_v55  ;;  %v2292_v54 = vmul.f32 1.442695, %v2178_v8  ;;  %v6910_v11 = vpop.eup %5285  ;;  %5311 = vpow2.f32 %v2290_v57  ;;  %v2294_v37 = vmul.f32 1.442695, %v2179_v1  ;;  %2381 = vadd.xlane.f32.xlu1 %v2380_v41  ;;  %v1080_v56 = vpop.xlane.xlu0 %1079  ;;  %v1351_v31 = vadd.f32 %v6908_v55, %v6903_v63  ;;  %v9424_v57 = vld [vmem:[#allocation79_spill] sm:$0xff] }
 0x316   : > { %9418 = vst [vmem:[#allocation43_spill] sm:$0xff] %v6910_v11  ;;  %v2112_v15 = vpop.xlane.xlu1 %2111  ;;  %v6914_v20 = vpop.eup %5287  ;;  %5313 = vpow2.f32 %v1260_v38  ;;  %v1148_v24 = vsub.f32 %v9420_v6, %v1080_v56  ;;  %v1149_v51 = vsub.f32 %v9421_v16, %v1080_v56 }
 0x317   : > { %9419 = vst [vmem:[#allocation44_spill] sm:$0xff] %v6914_v20  ;;  %v2180_v29 = vsub.f32 %v9422_v23, %v2112_v15  ;;  %v6919_v8 = vpop.eup %5289  ;;  %5315 = vpow2.f32 %v1262_v47  ;;  %v2181_v1 = vsub.f32 %v9424_v57, %v2112_v15  ;;  %1352 = vadd.xlane.f32.xlu0 %v1351_v31  ;;  %v2383_v41 = vadd.f32 %v6914_v20, %v6910_v11  ;;  %v9428_v31 = vld [vmem:[#allocation80_spill] sm:$0xff]  ;;  %v9429_v11 = vld [vmem:[#allocation81_spill] sm:$0xff] }
 0x318   : > { %9423 = vst [vmem:[#allocation45_spill] sm:$0xff] %v6919_v8  ;;  %v6924_v12 = vpop.eup %5291  ;;  %5317 = vpow2.f32 %v2292_v54  ;;  %v1264_v63 = vmul.f32 1.442695, %v1148_v24  ;;  %v1266_v38 = vmul.f32 1.442695, %v1149_v51  ;;  %v9430_v24 = vld [vmem:[#allocation82_spill] sm:$0xff] }
 0x319   : > { %9425 = vst [vmem:[#allocation46_spill] sm:$0xff] %v6924_v12  ;;  %v2296_v55 = vmul.f32 1.442695, %v2180_v29  ;;  %v6926_v6 = vpop.eup %5293  ;;  %5319 = vpow2.f32 %v2294_v37  ;;  %v2298_v16 = vmul.f32 1.442695, %v2181_v1  ;;  %2384 = vadd.xlane.f32.xlu1 %v2383_v41  ;;  %v1083_v56 = vpop.xlane.xlu0 %1082  ;;  %v1354_v47 = vadd.f32 %v6924_v12, %v6919_v8  ;;  %v9432_v37 = vld [vmem:[#allocation83_spill] sm:$0xff] }
 0x31a   : > { %9426 = vst [vmem:[#allocation47_spill] sm:$0xff] %v6926_v6  ;;  %v2115_v23 = vpop.xlane.xlu1 %2114  ;;  %v6930_v15 = vpop.eup %5295  ;;  %5321 = vpow2.f32 %v1264_v63  ;;  %v1150_v57 = vsub.f32 %v9428_v31, %v1083_v56  ;;  %v1151_v54 = vsub.f32 %v9429_v11, %v1083_v56 }
 0x31b   : > { %9427 = vst [vmem:[#allocation48_spill] sm:$0xff] %v6930_v15  ;;  %v2182_v51 = vsub.f32 %v9430_v24, %v2115_v23  ;;  %v6935_v29 = vpop.eup %5297  ;;  %5323 = vpow2.f32 %v1266_v38  ;;  %v2183_v1 = vsub.f32 %v9432_v37, %v2115_v23  ;;  %1355 = vadd.xlane.f32.xlu0 %v1354_v47  ;;  %v2386_v41 = vadd.f32 %v6930_v15, %v6926_v6  ;;  %v9436_v47 = vld [vmem:[#allocation84_spill] sm:$0xff]  ;;  %v9437_v6 = vld [vmem:[#allocation85_spill] sm:$0xff] }
 0x31c   : > { %9431 = vst [vmem:[#allocation49_spill] sm:$0xff] %v6935_v29  ;;  %v6940_v20 = vpop.eup %5299  ;;  %5325 = vpow2.f32 %v2296_v55  ;;  %v1268_v8 = vmul.f32 1.442695, %v1150_v57  ;;  %v1270_v63 = vmul.f32 1.442695, %v1151_v54  ;;  %v9438_v57 = vld [vmem:[#allocation86_spill] sm:$0xff] }
 0x31d   : > { %9433 = vst [vmem:[#allocation50_spill] sm:$0xff] %v6940_v20  ;;  %v2300_v12 = vmul.f32 1.442695, %v2182_v51  ;;  %v6942_v31 = vpop.eup %5301  ;;  %5327 = vpow2.f32 %v2298_v16  ;;  %v2302_v11 = vmul.f32 1.442695, %v2183_v1  ;;  %2387 = vadd.xlane.f32.xlu1 %v2386_v41  ;;  %v1086_v56 = vpop.xlane.xlu0 %1085  ;;  %v1357_v38 = vadd.f32 %v6940_v20, %v6935_v29  ;;  %v9440_v16 = vld [vmem:[#allocation87_spill] sm:$0xff] }
 0x31e   : > { %9434 = vst [vmem:[#allocation51_spill] sm:$0xff] %v6942_v31  ;;  %v2118_v24 = vpop.xlane.xlu1 %2117  ;;  %v6946_v23 = vpop.eup %5303  ;;  %5329 = vpow2.f32 %v1268_v8  ;;  %v1152_v37 = vsub.f32 %v9436_v47, %v1086_v56  ;;  %v1153_v55 = vsub.f32 %v9437_v6, %v1086_v56 }
 0x31f   : > { %9435 = vst [vmem:[#allocation52_spill] sm:$0xff] %v6946_v23  ;;  %v2184_v54 = vsub.f32 %v9438_v57, %v2118_v24  ;;  %v6951_v51 = vpop.eup %5305  ;;  %5331 = vpow2.f32 %v1270_v63  ;;  %v2185_v1 = vsub.f32 %v9440_v16, %v2118_v24  ;;  %1358 = vadd.xlane.f32.xlu0 %v1357_v38  ;;  %v2389_v41 = vadd.f32 %v6946_v23, %v6942_v31  ;;  %v9444_v16 = vld [vmem:[#allocation88_spill] sm:$0xff] }
 0x320   : > { %9439 = vst [vmem:[#allocation53_spill] sm:$0xff] %v6951_v51  ;;  %v6956_v15 = vpop.eup %5307  ;;  %5333 = vpow2.f32 %v2300_v12  ;;  %v1272_v29 = vmul.f32 1.442695, %v1152_v37  ;;  %v1274_v8 = vmul.f32 1.442695, %v1153_v55  ;;  %v9445_v37 = vld [vmem:[#allocation89_spill] sm:$0xff] }
 0x321   : > { %9441 = vst [vmem:[#allocation54_spill] sm:$0xff] %v6956_v15  ;;  %v2304_v20 = vmul.f32 1.442695, %v2184_v54  ;;  %v6958_v47 = vpop.eup %5309  ;;  %5335 = vpow2.f32 %v2302_v11  ;;  %v2306_v6 = vmul.f32 1.442695, %v2185_v1  ;;  %2390 = vadd.xlane.f32.xlu1 %v2389_v41  ;;  %v1089_v56 = vpop.xlane.xlu0 %1088  ;;  %v1360_v63 = vadd.f32 %v6956_v15, %v6951_v51  ;;  %v9447_v11 = vld [vmem:[#allocation90_spill] sm:$0xff] }
 0x322   : > { %9442 = vst [vmem:[#allocation55_spill] sm:$0xff] %v6958_v47  ;;  %v2121_v57 = vpop.xlane.xlu1 %2120  ;;  %v6962_v24 = vpop.eup %5311  ;;  %5337 = vpow2.f32 %v1272_v29  ;;  %v1154_v38 = vsub.f32 %v6532_v60, %v1089_v56  ;;  %v1155_v12 = vsub.f32 %v9444_v16, %v1089_v56 }
 0x323   : > { %9443 = vst [vmem:[#allocation56_spill] sm:$0xff] %v6962_v24  ;;  %v2186_v55 = vsub.f32 %v9445_v37, %v2121_v57  ;;  %v6967_v54 = vpop.eup %5313  ;;  %5339 = vpow2.f32 %v1274_v8  ;;  %v2187_v1 = vsub.f32 %v9447_v11, %v2121_v57  ;;  %1361 = vadd.xlane.f32.xlu0 %v1360_v63  ;;  %v2392_v41 = vadd.f32 %v6962_v24, %v6958_v47 }
 0x324   : > { %9446 = vst [vmem:[#allocation57_spill] sm:$0xff] %v6967_v54  ;;  %v6972_v31 = vpop.eup %5315  ;;  %5341 = vpow2.f32 %v2304_v20  ;;  %v1276_v23 = vmul.f32 1.442695, %v1154_v38  ;;  %v1278_v29 = vmul.f32 1.442695, %v1155_v12  ;;  %v9451_v38 = vld [vmem:[#allocation91_spill] sm:$0xff] }
 0x325   : > { %9448 = vst [vmem:[#allocation58_spill] sm:$0xff] %v6972_v31  ;;  %v2308_v51 = vmul.f32 1.442695, %v2186_v55  ;;  %v6974_v60 = vpop.eup %5317  ;;  %5343 = vpow2.f32 %v2306_v6  ;;  %v2310_v56 = vmul.f32 1.442695, %v2187_v1  ;;  %2393 = vadd.xlane.f32.xlu1 %v2392_v41  ;;  %v1092_v16 = vpop.xlane.xlu0 %1091  ;;  %v1363_v8 = vadd.f32 %v6972_v31, %v6967_v54  ;;  %v9453_v6 = vld [vmem:[#allocation92_spill] sm:$0xff] }
 0x326   : > { %9449 = vst [vmem:[#allocation59_spill] sm:$0xff] %v6974_v60  ;;  %v2124_v37 = vpop.xlane.xlu1 %2123  ;;  %v6978_v57 = vpop.eup %5319  ;;  %5345 = vpow2.f32 %v1276_v23  ;;  %v1156_v63 = vsub.f32 %v6542_v61, %v1092_v16  ;;  %v1157_v20 = vsub.f32 %v6544_v59, %v1092_v16 }
 0x327   : > { %9450 = vst [vmem:[#allocation60_spill] sm:$0xff] %v6978_v57  ;;  %v2188_v12 = vsub.f32 %v9451_v38, %v2124_v37  ;;  %v6983_v55 = vpop.eup %5321  ;;  %5347 = vpow2.f32 %v1278_v29  ;;  %v2189_v11 = vsub.f32 %v9453_v6, %v2124_v37  ;;  %1364 = vadd.xlane.f32.xlu0 %v1363_v8  ;;  %v2395_v1 = vadd.f32 %v6978_v57, %v6974_v60  ;;  %v9457_v8 = vld [vmem:[#allocation93_spill] sm:$0xff]  ;;  %v9458_v60 = vld [vmem:[#allocation94_spill] sm:$0xff] }
 0x328   : > { %9452 = vst [vmem:[#allocation61_spill] sm:$0xff] %v6983_v55  ;;  %v6988_v41 = vpop.eup %5323  ;;  %5349 = vpow2.f32 %v2308_v51  ;;  %v1280_v47 = vmul.f32 1.442695, %v1156_v63  ;;  %v1282_v23 = vmul.f32 1.442695, %v1157_v20  ;;  %v9459_v63 = vld [vmem:[#allocation95_spill] sm:$0xff] }
 0x329   : > { %9454 = vst [vmem:[#allocation62_spill] sm:$0xff] %v6988_v41  ;;  %v2312_v24 = vmul.f32 1.442695, %v2188_v12  ;;  %v6990_v61 = vpop.eup %5325  ;;  %5351 = vpow2.f32 %v2310_v56  ;;  %v2314_v59 = vmul.f32 1.442695, %v2189_v11  ;;  %2396 = vadd.xlane.f32.xlu1 %v2395_v1  ;;  %v1095_v16 = vpop.xlane.xlu0 %1094  ;;  %v1366_v29 = vadd.f32 %v6988_v41, %v6983_v55  ;;  %v9461_v56 = vld [vmem:[#allocation96_spill] sm:$0xff] }
 0x32a   : > { %9455 = vst [vmem:[#allocation63_spill] sm:$0xff] %v6990_v61  ;;  %v2127_v38 = vpop.xlane.xlu1 %2126  ;;  %v6994_v37 = vpop.eup %5327  ;;  %5353 = vpow2.f32 %v1280_v47  ;;  %v1158_v6 = vsub.f32 %v9457_v8, %v1095_v16  ;;  %v1159_v51 = vsub.f32 %v9458_v60, %v1095_v16 }
 0x32b   : > { %9456 = vst [vmem:[#allocation64_spill] sm:$0xff] %v6994_v37  ;;  %v2190_v20 = vsub.f32 %v9459_v63, %v2127_v38  ;;  %v6999_v12 = vpop.eup %5329  ;;  %5355 = vpow2.f32 %v1282_v23  ;;  %v2191_v11 = vsub.f32 %v9461_v56, %v2127_v38  ;;  %1367 = vadd.xlane.f32.xlu0 %v1366_v29  ;;  %v2398_v1 = vadd.f32 %v6994_v37, %v6990_v61 }
 0x32c   : > { %9460 = vst [vmem:[#allocation65_spill] sm:$0xff] %v6999_v12  ;;  %v7004_v15 = vpop.eup %5331  ;;  %5357 = vpow2.f32 %v2312_v24  ;;  %v1284_v54 = vmul.f32 1.442695, %v1158_v6  ;;  %v1286_v47 = vmul.f32 1.442695, %v1159_v51 }
 0x32d   : > { %9462 = vst [vmem:[#allocation66_spill] sm:$0xff] %v7004_v15  ;;  %v2316_v57 = vmul.f32 1.442695, %v2190_v20  ;;  %v7006_v8 = vpop.eup %5333  ;;  %5359 = vpow2.f32 %v2314_v59  ;;  %v2318_v60 = vmul.f32 1.442695, %v2191_v11  ;;  %2399 = vadd.xlane.f32.xlu1 %v2398_v1  ;;  %v1369_v23 = vadd.f32 %v7004_v15, %v6999_v12 }
 0x32e   : > { %9463 = vst [vmem:[#allocation67_spill] sm:$0xff] %v7006_v8  ;;  %v7010_v16 = vpop.eup %5335  ;;  %5361 = vpow2.f32 %v1284_v54 }
 0x32f   : > { %9464 = vst [vmem:[#allocation68_spill] sm:$0xff] %v7010_v16  ;;  %v7012_v38 = vpop.eup %5337  ;;  %5363 = vpow2.f32 %v1286_v47  ;;  %1370 = vadd.xlane.f32.xlu0 %v1369_v23  ;;  %v2401_v24 = vadd.f32 %v7010_v16, %v7006_v8 }
 0x330   : > { %9465 = vst [vmem:[#allocation69_spill] sm:$0xff] %v7012_v38  ;;  %v7016_v29 = vpop.eup %5339  ;;  %5365 = vpow2.f32 %v2316_v57 }
 0x331   : > { %9466 = vst [vmem:[#allocation70_spill] sm:$0xff] %v7016_v29  ;;  %v7018_v6 = vpop.eup %5341  ;;  %5367 = vpow2.f32 %v2318_v60  ;;  %2402 = vadd.xlane.f32.xlu1 %v2401_v24  ;;  %v1372_v59 = vadd.f32 %v7016_v29, %v7012_v38 }
 0x332   : > { %9467 = vst [vmem:[#allocation71_spill] sm:$0xff] %v7018_v6  ;;  %v7022_v51 = vpop.eup %5343 }
 0x333   : > { %9468 = vst [vmem:[#allocation72_spill] sm:$0xff] %v7022_v51  ;;  %v7024_v54 = vpop.eup %5345  ;;  %1373 = vadd.xlane.f32.xlu0 %v1372_v59  ;;  %v2404_v63 = vadd.f32 %v7022_v51, %v7018_v6  ;;  %v9487_v6 = vld [vmem:[#allocation40_spill] sm:$0xff] }
 0x334   : > { %9469 = vst [vmem:[#allocation73_spill] sm:$0xff] %v7024_v54  ;;  %v7028_v20 = vpop.eup %5347  ;;  %v1130_v15 = vsub.f32 %v9487_v6, %v6792_v35 }
 0x335   : > { %9470 = vst [vmem:[#allocation74_spill] sm:$0xff] %v7028_v20  ;;  %v7030_v56 = vpop.eup %5349  ;;  %2405 = vadd.xlane.f32.xlu1 %v2404_v63  ;;  %v1375_v57 = vadd.f32 %v7028_v20, %v7024_v54  ;;  %v9490_v54 = vld [vmem:[#allocation39_spill] sm:$0xff] }
 0x336   : > { %9471 = vst [vmem:[#allocation75_spill] sm:$0xff] %v7030_v56  ;;  %v7034_v11 = vpop.eup %5351 }
 0x337   : > { %9472 = vst [vmem:[#allocation76_spill] sm:$0xff] %v7034_v11  ;;  %v7036_v1 = vpop.eup %5353  ;;  %1376 = vadd.xlane.f32.xlu0 %v1375_v57  ;;  %v2407_v47 = vadd.f32 %v7034_v11, %v7030_v56  ;;  %v9489_v56 = vld [vmem:[#allocation38_spill] sm:$0xff]  ;;  %v2161_v11 = vsub.f32 %v9490_v54, %v6778_v18 }
 0x338   : > { %9473 = vst [vmem:[#allocation77_spill] sm:$0xff] %v7036_v1  ;;  %v7040_v60 = vpop.eup %5355  ;;  %v2160_v29 = vsub.f32 %v9489_v56, %v6778_v18 }
 0x339   : > { %9474 = vst [vmem:[#allocation78_spill] sm:$0xff] %v7040_v60  ;;  %v7042_v23 = vpop.eup %5357  ;;  %2408 = vadd.xlane.f32.xlu1 %v2407_v47  ;;  %v1378_v24 = vadd.f32 %v7040_v60, %v7036_v1  ;;  %v1228_v1 = vmul.f32 1.442695, %v1130_v15 }
 0x33a   : > { %9475 = vst [vmem:[#allocation79_spill] sm:$0xff] %v7042_v23  ;;  %v7046_v59 = vpop.eup %5359 }
 0x33b   : > { %9476 = vst [vmem:[#allocation80_spill] sm:$0xff] %v7046_v59  ;;  %v7048_v63 = vpop.eup %5361  ;;  %1379 = vadd.xlane.f32.xlu0 %v1378_v24  ;;  %v2410_v61 = vadd.f32 %v7046_v59, %v7042_v23  ;;  %v2371_v24 = vadd.f32 %v6852_v32, %v6850_v52  ;;  %v9492_v59 = vld [vmem:[#allocation37_spill] sm:$0xff]  ;;  %5369 = vpow2.f32 %v1228_v1 }
 0x33c   : > { %9477 = vst [vmem:[#allocation81_spill] sm:$0xff] %v7048_v63  ;;  %v7052_v57 = vpop.eup %5363  ;;  %v1129_v6 = vsub.f32 %v9492_v59, %v6776_v43 }
 0x33d   : > { %9478 = vst [vmem:[#allocation82_spill] sm:$0xff] %v7052_v57  ;;  %v7054_v31 = vpop.eup %5365  ;;  %2411 = vadd.xlane.f32.xlu1 %v2410_v61  ;;  %v1381_v55 = vadd.f32 %v7052_v57, %v7048_v63  ;;  %v275_v61 = vld [vmem:[%s8883_s2 + $0x18] sm:$0xff] }
 0x33e   : > { %9479 = vst [vmem:[#allocation83_spill] sm:$0xff] %v7054_v31  ;;  %v7058_v47 = vpop.eup %5367  ;;  %v1226_v63 = vmul.f32 1.442695, %v1129_v6 }
 0x33f   : > { %9480 = vst [vmem:[#allocation84_spill] sm:$0xff] %v7058_v47  ;;  %1382 = vadd.xlane.f32.xlu0 %v1381_v55  ;;  %v2413_v37 = vadd.f32 %v7058_v47, %v7054_v31 }
 0x341   : > { %2414 = vadd.xlane.f32.xlu1 %v2413_v37 }
 0x343   : > { %2372 = vadd.xlane.f32.xlu0 %v2371_v24  ;;  %v274_v24 = vld [vmem:[%s8883_s2 + $0x10] sm:$0xff] }
 0x34c   : > { %v7064_v8 = vpop.xlane.xlu0 %1292 }
 0x34d   : > { %9481 = vst [vmem:[#allocation85_spill] sm:$0xff] %v7064_v8 }
 0x34e   : > { %v7066_v41 = vpop.xlane.xlu1 %2321 }
 0x34f   : > { %9482 = vst [vmem:[#allocation86_spill] sm:$0xff] %v7066_v41 }
 0x350   : > { %v7071_v12 = vpop.xlane.xlu0 %1295 }
 0x351   : > { %9483 = vst [vmem:[#allocation87_spill] sm:$0xff] %v7071_v12 }
 0x352   : > { %301 = vperm.xlu1 %5124, %v275_v61   ;;  %v7073_v55 = vpop.xlane.xlu1 %2324  ;;  %v9488_v61 = vld [vmem:[#allocation41_spill] sm:$0xff] }
 0x353   : > { %9484 = vst [vmem:[#allocation88_spill] sm:$0xff] %v7073_v55  ;;  %v1131_v38 = vsub.f32 %v9488_v61, %v6792_v35  ;;  %v2256_v35 = vmul.f32 1.442695, %v2160_v29  ;;  %v2258_v61 = vmul.f32 1.442695, %v2161_v11 }
 0x354   : > { %v7075_v16 = vpop.xlane.xlu0 %1298 }
 0x355   : > { %v1230_v60 = vmul.f32 1.442695, %v1131_v38 }
 0x356   : > { %v7077_v37 = vpop.xlane.xlu1 %2327 }
 0x357   : > { %9485 = vst [vmem:[#allocation89_spill] sm:$0xff] %v7077_v37  ;;  %5371 = vpow2.f32 %v1230_v60 }
 0x358   : > { %v7082_v52 = vpop.xlane.xlu0 %1301  ;;  %5373 = vpow2.f32 %v2256_v35 }
 0x359   : > { %296 = vperm.xlu0 %5123, %v274_v24   ;;  %v9491_v24 = vld [vmem:[#allocation36_spill] sm:$0xff]  ;;  %5375 = vpow2.f32 %v2258_v61 }
 0x35a   : > { %v7084_v32 = vpop.xlane.xlu1 %2330  ;;  %v1128_v20 = vsub.f32 %v9491_v24, %v6776_v43 }
 0x35b   : > { %9486 = vst [vmem:[#allocation90_spill] sm:$0xff] %v7084_v32 }
 0x35c   : > { %v7090_v51 = vpop.xlane.xlu0 %1304  ;;  %v1224_v56 = vmul.f32 1.442695, %v1128_v20  ;;  %v7118_v20 = vpop.eup %5369 }
 0x35d   : > { %9493 = vst [vmem:[#allocation91_spill] sm:$0xff] %v7118_v20 }
 0x35e   : > { %v7096_v23 = vpop.xlane.xlu1 %2333  ;;  %5377 = vpow2.f32 %v1224_v56 }
 0x35f   : > { %5379 = vpow2.f32 %v1226_v63 }
 0x360   : > { %v7102_v31 = vpop.xlane.xlu0 %1307 }
 0x362   : > { %v7104_v47 = vpop.xlane.xlu1 %2336 }
 0x364   : > { %v7106_v18 = vpop.xlane.xlu0 %1310  ;;  %v7120_v1 = vpop.eup %5371 }
 0x365   : > { %9494 = vst [vmem:[#allocation92_spill] sm:$0xff] %v7120_v1  ;;  %v7122_v60 = vpop.eup %5373  ;;  %v1339_v35 = vadd.f32 %v7120_v1, %v7118_v20 }
 0x366   : > { %v7108_v54 = vpop.xlane.xlu1 %2339  ;;  %9495 = vst [vmem:[#allocation93_spill] sm:$0xff] %v7122_v60  ;;  %v7126_v24 = vpop.eup %5375 }
 0x367   : > { %v2368_v57 = vadd.f32 %v7126_v24, %v7122_v60 }
 0x368   : > { %v7110_v43 = vpop.xlane.xlu0 %1313 }
 0x36a   : > { %v7112_v15 = vpop.xlane.xlu1 %2342 }
 0x36b   : > { %v7128_v63 = vpop.eup %5377 }
 0x36c   : > { %v7114_v38 = vpop.xlane.xlu0 %1316  ;;  %9496 = vst [vmem:[#allocation94_spill] sm:$0xff] %v7128_v63  ;;  %v7132_v61 = vpop.eup %5379 }
 0x36d   : > { %v1336_v55 = vadd.f32 %v7132_v61, %v7128_v63 }
 0x36e   : > { %v7116_v29 = vpop.xlane.xlu1 %2345 }
 0x370   : > { %v1320_v11 = vpop.xlane.xlu0 %1319 }
 0x372   : > { %v7124_v59 = vpop.xlane.xlu1 %2348 }
 0x374   : > { %v1323_v6 = vpop.xlane.xlu0 %1322 }
 0x376   : > { %1340 = vadd.xlane.f32.xlu1 %v1339_v35  ;;  %v2352_v56 = vpop.xlane.xlu1 %2351  ;;  %v281_v35 = vld [vmem:[%s8883_s2 + $0x48] sm:$0xff] }
 0x378   : > { %v1326_v41 = vpop.xlane.xlu0 %1325  ;;  %2369 = vadd.xlane.f32.xlu0 %v2368_v57  ;;  %v280_v57 = vld [vmem:[%s8883_s2 + $0x40] sm:$0xff] }
 0x37a   : > { %1337 = vadd.xlane.f32.xlu1 %v1336_v55  ;;  %v2355_v37 = vpop.xlane.xlu1 %2354 }
 0x37c   : > { %v1329_v8 = vpop.xlane.xlu0 %1328 }
 0x37e   : > { %v2358_v32 = vpop.xlane.xlu1 %2357 }
 0x380   : > { %v1332_v53 = vpop.xlane.xlu0 %1331 }
 0x381   : > { %5381 = vrcp.f32 %v1332_v53  ;;  %v279_v53 = vld [vmem:[%s8883_s2 + $0x38] sm:$0xff] }
 0x382   : > { %v2361_v12 = vpop.xlane.xlu1 %2360 }
 0x386   : > { %v1335_v20 = vpop.xlane.xlu0 %1334  ;;  %v2364_v1 = vpop.xlane.xlu1 %2363 }
 0x387   : > { %5383 = vrcp.f32 %v1335_v20 }
 0x388   : > { %5385 = vrcp.f32 %v1329_v8  ;;  %v278_v8 = vld [vmem:[%s8883_s2 + $0x30] sm:$0xff] }
 0x389   : > { %5387 = vrcp.f32 %v2364_v1 }
 0x38a   : > { %v2367_v60 = vpop.xlane.xlu1 %2366  ;;  %v7147_v55 = vpop.xlane.xlu0 %1289 }
 0x38b   : > { %331 = vperm.xlu1 %5124, %v281_v35   ;;  %5389 = vrcp.f32 %v2367_v60 }
 0x38c   : > { %5391 = vrcp.f32 %v1326_v41 }
 0x38d   : > { %5393 = vrcp.f32 %v2361_v12 }
 0x38e   : > { %326 = vperm.xlu0 %5123, %v280_v57   ;;  %v5382_v20 = vpop.eup %5381  ;;  %5395 = vrcp.f32 %v1323_v6 }
 0x38f   : > { %321 = vperm.xlu1 %5124, %v279_v53   ;;  %5397 = vrcp.f32 %v2358_v32  ;;  %v1428_v53 = vmul.f32 %v5382_v20, %v6804_v50 }
 0x390   : > { %5399 = vrcp.f32 %v1320_v11 }
 0x391   : > { %5401 = vrcp.f32 %v2355_v37 }
 0x392   : > { %5403 = vrcp.f32 %v7114_v38 }
 0x393   : > { %316 = vperm.xlu1 %5124, %v278_v8   ;;  %5405 = vrcp.f32 %v2352_v56 }
 0x394   : > { %v5384_v1 = vpop.eup %5383  ;;  %v7152_v60 = vpop.xlane.xlu0 %1343  ;;  %5407 = vrcp.f32 %v7110_v43 }
 0x395   : > { %v1431_v35 = vmul.f32 %v5384_v1, %v6826_v40  ;;  %v1430_v57 = vmul.f32 %v5384_v1, %v6822_v9  ;;  %v5386_v12 = vpop.eup %5385  ;;  %v1427_v9 = vmul.f32 %v5382_v20, %v6799_v58  ;;  %5409 = vrcp.f32 %v7124_v59 }
 0x396   : > { %v7156_v41 = vpop.xlane.xlu1 %2375  ;;  %v5388_v63 = vpop.eup %5387  ;;  %v1425_v11 = vmul.f32 %v5386_v12, %v6788_v10  ;;  %v1424_v58 = vmul.f32 %v5386_v12, %v6784_v36  ;;  %5411 = vrcp.f32 %v7106_v18 }
 0x397   : > { %1480 = vmatprep.subr.mxu1 %v1431_v35  ;;  %v2460_v37 = vmul.f32 %v5388_v63, %v6820_v42  ;;  %v2459_v10 = vmul.f32 %v5388_v63, %v6815_v7  ;;  %5413 = vrcp.f32 %v7116_v29 }
 0x398   : > { %1481 = vmatpush1.xpose.msra.mxu1 %v1430_v57  ;;  %v7159_v6 = vpop.xlane.xlu0 %1346  ;;  %v5390_v8 = vpop.eup %5389  ;;  %5415 = vrcp.f32 %v7102_v31 }
 0x399   : > { %1482 = vmatprep.subr.mxu1 %v1428_v53  ;;  %v2463_v40 = vmul.f32 %v5390_v8, %v6836_v28  ;;  %v2462_v1 = vmul.f32 %v5390_v8, %v6831_v0  ;;  %v5392_v50 = vpop.eup %5391  ;;  %5417 = vrcp.f32 %v7112_v15 }
 0x39a   : > { %v7161_v32 = vpop.xlane.xlu1 %2378  ;;  %v5394_v57 = vpop.eup %5393  ;;  %v1422_v0 = vmul.f32 %v5392_v50, %v6772_v49  ;;  %v1421_v36 = vmul.f32 %v5392_v50, %v6768_v2  ;;  %5419 = vrcp.f32 %v7090_v51 }
 0x39b   : > { %2512 = vmatprep.subr.mxu0 %v2463_v40  ;;  %v5396_v38 = vpop.eup %5395  ;;  %v2457_v42 = vmul.f32 %v5394_v57, %v6810_v4  ;;  %v2456_v7 = vmul.f32 %v5394_v57, %v6806_v14  ;;  %5421 = vrcp.f32 %v7108_v54 }
 0x39c   : > { %1483 = vmatpush1.xpose.msra.mxu1 %v1427_v9  ;;  %v7169_v35 = vpop.xlane.xlu0 %1349  ;;  %2513 = vmatpush1.xpose.msra.mxu0 %v2462_v1  ;;  %v5398_v20 = vpop.eup %5397  ;;  %v1419_v49 = vmul.f32 %v5396_v38, %v6758_v25  ;;  %v1418_v2 = vmul.f32 %v5396_v38, %v6753_v3  ;;  %5423 = vrcp.f32 %v7082_v52 }
 0x39d   : > { %1484 = vmatprep.subr.mxu1 %v1425_v11  ;;  %2514 = vmatprep.subr.mxu0 %v2460_v37  ;;  %v5400_v43 = vpop.eup %5399  ;;  %v2454_v4 = vmul.f32 %v5398_v20, %v6796_v27  ;;  %v2453_v14 = vmul.f32 %v5398_v20, %v6790_v39  ;;  %5425 = vrcp.f32 %v7104_v47 }
 0x39e   : > { %v7171_v28 = vpop.xlane.xlu1 %2381  ;;  %v5402_v63 = vpop.eup %5401  ;;  %v1416_v25 = vmul.f32 %v5400_v43, %v6742_v26  ;;  %v1415_v3 = vmul.f32 %v5400_v43, %v6737_v21  ;;  %5427 = vrcp.f32 %v7075_v16  ;;  %v9497_v16 = vld [vmem:[#allocation87_spill] sm:$0xff]  ;;  %v9504_v43 = vld [vmem:[#allocation18_spill] sm:$0xff] }
 0x39f   : > { %v5404_v18 = vpop.eup %5403  ;;  %v2451_v27 = vmul.f32 %v5402_v63, %v6782_v30  ;;  %v2450_v26 = vmul.f32 %v5402_v63, %v6774_v44  ;;  %5429 = vrcp.f32 %v7096_v23  ;;  %v9505_v63 = vld [vmem:[#allocation116_spill] sm:$0xff] }
 0x3a0   : > { %1485 = vmatpush1.xpose.msra.mxu1 %v1424_v58  ;;  %v7179_v56 = vpop.xlane.xlu0 %1352  ;;  %2515 = vmatpush1.xpose.msra.mxu0 %v2459_v10  ;;  %v5406_v8 = vpop.eup %5405  ;;  %v1413_v39 = vmul.f32 %v5404_v18, %v6726_v62  ;;  %v1412_v21 = vmul.f32 %v5404_v18, %v6721_v34  ;;  %5431 = vrcp.f32 %v9497_v16  ;;  %v9499_v58 = vld [vmem:[#allocation120_spill] sm:$0xff] }
 0x3a1   : > { %1486 = vmatprep.subr.mxu1 %v1422_v0  ;;  %2516 = vmatprep.subr.mxu0 %v2457_v42  ;;  %v5408_v31 = vpop.eup %5407  ;;  %v2448_v30 = vmul.f32 %v5406_v8, %v6764_v17  ;;  %v2447_v62 = vmul.f32 %v5406_v8, %v6760_v45  ;;  %v9500_v0 = vld [vmem:[#allocation90_spill] sm:$0xff]  ;;  %v9507_v18 = vld [vmem:[#allocation124_spill] sm:$0xff] }
 0x3a2   : > { %v7181_v53 = vpop.xlane.xlu1 %2384  ;;  %v5410_v9 = vpop.eup %5409  ;;  %v1410_v44 = vmul.f32 %v5408_v31, %v6710_v46  ;;  %v1409_v34 = vmul.f32 %v5408_v31, %v6705_v13  ;;  %5433 = vrcp.f32 %v9500_v0 }
 0x3a3   : > { %v5412_v51 = vpop.eup %5411  ;;  %v2445_v17 = vmul.f32 %v5410_v9, %v6748_v33  ;;  %v2444_v46 = vmul.f32 %v5410_v9, %v6744_v5  ;;  %v9498_v5 = vld [vmem:[#allocation19_spill] sm:$0xff] }
 0x3a4   : > { %1487 = vmatpush1.xpose.msra.mxu1 %v1421_v36  ;;  %v7189_v59 = vpop.xlane.xlu0 %1355  ;;  %2517 = vmatpush1.xpose.msra.mxu0 %v2456_v7  ;;  %v5414_v11 = vpop.eup %5413  ;;  %v1407_v45 = vmul.f32 %v5412_v51, %v6694_v22  ;;  %v1406_v13 = vmul.f32 %v5412_v51, %v6689_v19  ;;  %v9502_v19 = vld [vmem:[#allocation119_spill] sm:$0xff]  ;;  %v9511_v51 = vld [vmem:[#allocation88_spill] sm:$0xff] }
 0x3a5   : > { %1488 = vmatprep.subr.mxu1 %v1419_v49  ;;  %2518 = vmatprep.subr.mxu0 %v2454_v4  ;;  %v5416_v52 = vpop.eup %5415  ;;  %v2442_v33 = vmul.f32 %v5414_v11, %v6732_v48  ;;  %v2441_v22 = vmul.f32 %v5414_v11, %v9498_v5  ;;  %v9501_v48 = vld [vmem:[#allocation20_spill] sm:$0xff]  ;;  %v9503_v49 = vld [vmem:[#allocation85_spill] sm:$0xff] }
 0x3a6   : > { %v7191_v12 = vpop.xlane.xlu1 %2387  ;;  %v5418_v37 = vpop.eup %5417  ;;  %v1404_v10 = vmul.f32 %v5416_v52, %v9499_v58  ;;  %v1403_v7 = vmul.f32 %v5416_v52, %v9502_v19  ;;  %5435 = vrcp.f32 %v9503_v49  ;;  %v9513_v52 = vld [vmem:[#allocation111_spill] sm:$0xff]  ;;  %v9517_v58 = vld [vmem:[#allocation118_spill] sm:$0xff]  ;;  %v9519_v19 = vld [vmem:[#allocation117_spill] sm:$0xff] }
 0x3a7   : > { %v5420_v23 = vpop.eup %5419  ;;  %v2439_v38 = vmul.f32 %v5418_v37, %v9501_v48  ;;  %v2438_v4 = vmul.f32 %v5418_v37, %v9504_v43  ;;  %v9514_v37 = vld [vmem:[#allocation121_spill] sm:$0xff]  ;;  %v9520_v49 = vld [vmem:[#allocation104_spill] sm:$0xff] }
 0x3a8   : > { %1489 = vmatpush1.xpose.msra.mxu1 %v1418_v2  ;;  %v7199_v29 = vpop.xlane.xlu0 %1358  ;;  %2519 = vmatpush1.xpose.msra.mxu0 %v2453_v14  ;;  %v5422_v20 = vpop.eup %5421  ;;  %v1401_v2 = vmul.f32 %v5420_v23, %v9505_v63  ;;  %v9521_v63 = vld [vmem:[#allocation114_spill] sm:$0xff] }
 0x3a9   : > { %1490 = vmatprep.subr.mxu1 %v1416_v25  ;;  %2520 = vmatprep.subr.mxu0 %v2451_v27  ;;  %v5424_v14 = vpop.eup %5423  ;;  %v9506_v25 = vld [vmem:[#allocation89_spill] sm:$0xff]  ;;  %v2436_v27 = vmul.f32 %v5422_v20, %v9507_v18 }
 0x3aa   : > { %v7201_v40 = vpop.xlane.xlu1 %2390  ;;  %5437 = vrcp.f32 %v9506_v25 }
 0x3ab   : > { %5439 = vrcp.f32 %v7147_v55 }
 0x3ac   : > { %1491 = vmatpush1.xpose.msra.mxu1 %v1415_v3  ;;  %v7209_v15 = vpop.xlane.xlu0 %1361  ;;  %2521 = vmatpush1.xpose.msra.mxu0 %v2450_v26  ;;  %v5426_v3 = vpop.eup %5425  ;;  %5441 = vrcp.f32 %v9511_v51 }
 0x3ad   : > { %1492 = vmatprep.subr.mxu1 %v1413_v39  ;;  %2522 = vmatprep.subr.mxu0 %v2448_v30  ;;  %v9508_v39 = vld [vmem:[#allocation115_spill] sm:$0xff]  ;;  %v2432_v55 = vmul.f32 %v5426_v3, %v9514_v37  ;;  %v9528_v37 = vld [vmem:[#allocation109_spill] sm:$0xff] }
 0x3ae   : > { %v7211_v1 = vpop.xlane.xlu1 %2393  ;;  %v1400_v31 = vmul.f32 %v5420_v23, %v9508_v39  ;;  %v9509_v30 = vld [vmem:[#allocation123_spill] sm:$0xff]  ;;  %v9523_v39 = vld [vmem:[#allocation113_spill] sm:$0xff] }
 0x3af   : > { %v2435_v9 = vmul.f32 %v5422_v20, %v9509_v30  ;;  %v9524_v30 = vld [vmem:[#allocation100_spill] sm:$0xff] }
 0x3b0   : > { %1493 = vmatpush1.xpose.msra.mxu1 %v1412_v21  ;;  %v7219_v54 = vpop.xlane.xlu0 %1364  ;;  %2523 = vmatpush1.xpose.msra.mxu0 %v2447_v62  ;;  %v9510_v21 = vld [vmem:[#allocation112_spill] sm:$0xff] }
 0x3b1   : > { %1494 = vmatprep.subr.mxu1 %v1410_v44  ;;  %2524 = vmatprep.subr.mxu0 %v2445_v17  ;;  %v1398_v62 = vmul.f32 %v5424_v14, %v9510_v21  ;;  %v5428_v44 = vpop.eup %5427  ;;  %v9512_v17 = vld [vmem:[#allocation122_spill] sm:$0xff] }
 0x3b2   : > { %v7221_v50 = vpop.xlane.xlu1 %2396  ;;  %v2433_v11 = vmul.f32 %v5426_v3, %v9512_v17 }
 0x3b4   : > { %1495 = vmatpush1.xpose.msra.mxu1 %v1409_v34  ;;  %v7229_v47 = vpop.xlane.xlu0 %1367  ;;  %2525 = vmatpush1.xpose.msra.mxu0 %v2444_v46  ;;  %v5430_v46 = vpop.eup %5429 }
 0x3b5   : > { %1496 = vmatprep.subr.mxu1 %v1407_v45  ;;  %2526 = vmatprep.subr.mxu0 %v2442_v33  ;;  %v1397_v33 = vmul.f32 %v5424_v14, %v9513_v52  ;;  %v5432_v5 = vpop.eup %5431  ;;  %v9527_v52 = vld [vmem:[#allocation4_spill] sm:$0xff] }
 0x3b6   : > { %v7231_v57 = vpop.xlane.xlu1 %2399  ;;  %v5434_v0 = vpop.eup %5433  ;;  %v1392_v43 = vmul.f32 %v5432_v5, %v9520_v49 }
 0x3b8   : > { %1497 = vmatpush1.xpose.msra.mxu1 %v1406_v13  ;;  %v7239_v42 = vpop.xlane.xlu0 %1370  ;;  %2527 = vmatpush1.xpose.msra.mxu0 %v2441_v22  ;;  %v9515_v13 = vld [vmem:[#allocation108_spill] sm:$0xff]  ;;  %v9516_v22 = vld [vmem:[#allocation86_spill] sm:$0xff] }
 0x3b9   : > { %1498 = vmatprep.subr.mxu1 %v1404_v10  ;;  %2528 = vmatprep.subr.mxu0 %v2439_v38  ;;  %v1395_v16 = vmul.f32 %v5428_v44, %v9515_v13  ;;  %5443 = vrcp.f32 %v9516_v22  ;;  %v2430_v10 = vmul.f32 %v5430_v46, %v9517_v58  ;;  %v9518_v38 = vld [vmem:[#allocation107_spill] sm:$0xff]  ;;  %v9529_v13 = vld [vmem:[#allocation98_spill] sm:$0xff] }
 0x3ba   : > { %v7241_v36 = vpop.xlane.xlu1 %2402  ;;  %v1394_v20 = vmul.f32 %v5428_v44, %v9518_v38  ;;  %v9530_v22 = vld [vmem:[#allocation106_spill] sm:$0xff] }
 0x3bc   : > { %1499 = vmatpush1.xpose.msra.mxu1 %v1403_v7  ;;  %v7249_v8 = vpop.xlane.xlu0 %1373  ;;  %2529 = vmatpush1.xpose.msra.mxu0 %v2438_v4  ;;  %v2429_v7 = vmul.f32 %v5430_v46, %v9519_v19  ;;  %v5436_v4 = vpop.eup %5435 }
 0x3bd   : > { %1500 = vmatprep.subr.mxu1 %v1401_v2  ;;  %2530 = vmatprep.subr.mxu0 %v2436_v27  ;;  %v2427_v2 = vmul.f32 %v5434_v0, %v9521_v63  ;;  %v5438_v25 = vpop.eup %5437  ;;  %v9522_v27 = vld [vmem:[#allocation103_spill] sm:$0xff]  ;;  %v9536_v63 = vld [vmem:[#allocation82_spill] sm:$0xff] }
 0x3be   : > { %v7251_v26 = vpop.xlane.xlu1 %2405  ;;  %v1391_v3 = vmul.f32 %v5432_v5, %v9522_v27  ;;  %v5440_v21 = vpop.eup %5439 }
 0x3bf   : > { %v5442_v51 = vpop.eup %5441 }
 0x3c0   : > { %1501 = vmatpush1.xpose.msra.mxu1 %v1400_v31  ;;  %v1377_v34 = vpop.xlane.xlu0 %1376  ;;  %2531 = vmatpush1.xpose.msra.mxu0 %v2435_v9  ;;  %v2426_v31 = vmul.f32 %v5434_v0, %v9523_v39  ;;  %v1389_v9 = vmul.f32 %v5436_v4, %v9524_v30  ;;  %v9532_v0 = vld [vmem:[#allocation105_spill] sm:$0xff] }
 0x3c1   : > { %1502 = vmatprep.subr.mxu1 %v1398_v62  ;;  %2532 = vmatprep.subr.mxu0 %v2433_v11  ;;  %v9525_v62 = vld [vmem:[#allocation110_spill] sm:$0xff]  ;;  %v9526_v11 = vld [vmem:[#allocation99_spill] sm:$0xff] }
 0x3c2   : > { %v2409_v45 = vpop.xlane.xlu1 %2408  ;;  %v2424_v44 = vmul.f32 %v5438_v25, %v9525_v62  ;;  %v1388_v46 = vmul.f32 %v5436_v4, %v9526_v11 }
 0x3c4   : > { %1503 = vmatpush1.xpose.msra.mxu1 %v1397_v33  ;;  %v1380_v23 = vpop.xlane.xlu0 %1379  ;;  %2533 = vmatpush1.xpose.msra.mxu0 %v2432_v55  ;;  %v2423_v55 = vmul.f32 %v5438_v25, %v9528_v37  ;;  %v9545_v37 = vld [vmem:[#allocation76_spill] sm:$0xff] }
 0x3c5   : > { %1504 = vmatprep.subr.mxu1 %v1395_v16  ;;  %2534 = vmatprep.subr.mxu0 %v2430_v10  ;;  %5445 = vrcp.f32 %v1380_v23  ;;  %v1386_v16 = vmul.f32 %v5440_v21, %v9529_v13  ;;  %v9531_v10 = vld [vmem:[#allocation97_spill] sm:$0xff] }
 0x3c6   : > { %v2412_v48 = vpop.xlane.xlu1 %2411  ;;  %v5444_v58 = vpop.eup %5443  ;;  %v1385_v23 = vmul.f32 %v5440_v21, %v9531_v10  ;;  %v9541_v21 = vld [vmem:[#allocation80_spill] sm:$0xff] }
 0x3c8   : > { %1505 = vmatpush1.xpose.msra.mxu1 %v1394_v20  ;;  %v1383_v14 = vpop.xlane.xlu0 %1382  ;;  %2535 = vmatpush1.xpose.msra.mxu0 %v2429_v7 }
 0x3c9   : > { %1506 = vmatprep.subr.mxu1 %v1392_v43  ;;  %5447 = vrcp.f32 %v1383_v14  ;;  %2536 = vmatprep.subr.mxu0 %v2427_v2  ;;  %v9535_v43 = vld [vmem:[#allocation101_spill] sm:$0xff] }
 0x3ca   : > { %v2415_v18 = vpop.xlane.xlu1 %2414  ;;  %v2417_v4 = vmul.f32 %v5444_v58, %v9535_v43  ;;  %v9554_v43 = vld [vmem:[#allocation65_spill] sm:$0xff] }
 0x3cb   : > { %5449 = vrcp.f32 %v2415_v18 }
 0x3cc   : > { %5451 = vrcp.f32 %v2412_v48  ;;  %1507 = vmatpush1.xpose.msra.mxu1 %v1391_v3  ;;  %2537 = vmatpush1.xpose.msra.mxu0 %v2426_v31  ;;  %v7279_v5 = vpop.xlane.xlu0 %2372  ;;  %v2420_v48 = vmul.f32 %v5442_v51, %v9532_v0  ;;  %v9539_v3 = vld [vmem:[#allocation83_spill] sm:$0xff]  ;;  %v9540_v31 = vld [vmem:[#allocation78_spill] sm:$0xff]  ;;  %v9550_v0 = vld [vmem:[#allocation69_spill] sm:$0xff] }
 0x3cd   : > { %5453 = vrcp.f32 %v1377_v34  ;;  %1508 = vmatprep.subr.mxu1 %v1389_v9  ;;  %2538 = vmatprep.subr.mxu0 %v2424_v44  ;;  %v2421_v34 = vmul.f32 %v5442_v51, %v9530_v22 }
 0x3ce   : > { %v7272_v17 = vpop.permute.xlu1 %301  ;;  %5455 = vrcp.f32 %v2409_v45  ;;  %v9533_v45 = vld [vmem:[#allocation102_spill] sm:$0xff] }
 0x3cf   : > { %v466_v33 = vadd.f32 %v9527_v52, %v7272_v17  ;;  %5457 = vrcp.f32 %v7249_v8  ;;  %v2418_v38 = vmul.f32 %v5444_v58, %v9533_v45  ;;  %v9534_v8 = vld [vmem:[#allocation2_spill] sm:$0xff]  ;;  %v9544_v52 = vld [vmem:[#allocation79_spill] sm:$0xff] }
 0x3d0   : > { %1509 = vmatpush1.xpose.msra.mxu1 %v1388_v46  ;;  %2539 = vmatpush1.xpose.msra.mxu0 %v2423_v55  ;;  %5459 = vrcp.f32 %v7251_v26  ;;  %v9537_v26 = vld [vmem:[#allocation81_spill] sm:$0xff]  ;;  %v9548_v58 = vld [vmem:[#allocation75_spill] sm:$0xff] }
 0x3d1   : > { %1510 = vmatprep.subr.mxu1 %v1386_v16  ;;  %2540 = vmatprep.subr.mxu0 %v2421_v34  ;;  %5461 = vrcp.f32 %v7239_v42  ;;  %v9538_v42 = vld [vmem:[#allocation84_spill] sm:$0xff]  ;;  %v9546_v55 = vld [vmem:[#allocation73_spill] sm:$0xff] }
 0x3d2   : > { %3615 = vxpose.xlu0.b32.start.end [1/1] (short) %v466_v33, 128  ;;  %v5446_v19 = vpop.eup %5445  ;;  %5463 = vrcp.f32 %v7241_v36  ;;  %v9542_v36 = vld [vmem:[#allocation77_spill] sm:$0xff] }
 0x3d3   : > { %5465 = vrcp.f32 %v7229_v47  ;;  %v1476_v30 = vmul.f32 %v5446_v19, %v9540_v31  ;;  %v1475_v44 = vmul.f32 %v5446_v19, %v9542_v36  ;;  %v9543_v47 = vld [vmem:[#allocation74_spill] sm:$0xff] }
 0x3d4   : > { %1511 = vmatpush1.xpose.msra.mxu1 %v1385_v23  ;;  %v7287_v20 = vpop.permute.xlu0 %296  ;;  %2541 = vmatpush1.xpose.msra.mxu0 %v2420_v48  ;;  %5467 = vrcp.f32 %v7231_v57  ;;  %v9549_v23 = vld [vmem:[#allocation72_spill] sm:$0xff] }
 0x3d5   : > { %v460_v7 = vadd.f32 %v9534_v8, %v7287_v20  ;;  %2542 = vmatprep.subr.mxu0 %v2418_v38  ;;  %5469 = vrcp.f32 %v7219_v54  ;;  %v9547_v54 = vld [vmem:[#allocation70_spill] sm:$0xff]  ;;  %v9552_v8 = vld [vmem:[#allocation71_spill] sm:$0xff] }
 0x3d6   : > { %v5448_v49 = vpop.eup %5447  ;;  %5471 = vrcp.f32 %v7221_v50 }
 0x3d7   : > { %2583 = vxpose.xlu1.b32.start.end [1/1] (short) %v460_v7, 128  ;;  %v1479_v2 = vmul.f32 %v5448_v49, %v9536_v63  ;;  %v1478_v14 = vmul.f32 %v5448_v49, %v9537_v26  ;;  %5473 = vrcp.f32 %v7209_v15  ;;  %v9551_v15 = vld [vmem:[#allocation66_spill] sm:$0xff]  ;;  %v9553_v49 = vld [vmem:[#allocation68_spill] sm:$0xff] }
 0x3d8   : > { %v5450_v25 = vpop.eup %5449  ;;  %2543 = vmatpush1.xpose.msra.mxu0 %v2417_v4  ;;  %5475 = vrcp.f32 %v7211_v1 }
 0x3d9   : > { %v5452_v18 = vpop.eup %5451  ;;  %1512 = vmatprep.subr.mxu1 %v1479_v2  ;;  %v2511_v27 = vmul.f32 %v5450_v25, %v9538_v42  ;;  %v2510_v39 = vmul.f32 %v5450_v25, %v9539_v3  ;;  %5477 = vrcp.f32 %v7199_v29  ;;  %v9555_v29 = vld [vmem:[#allocation62_spill] sm:$0xff]  ;;  %v9558_v42 = vld [vmem:[#allocation61_spill] sm:$0xff] }
 0x3da   : > { %v5454_v9 = vpop.eup %5453  ;;  %1513 = vmatpush2.xpose.msra.mxu1 %v1478_v14  ;;  %v2508_v62 = vmul.f32 %v5452_v18, %v9541_v21  ;;  %v2507_v33 = vmul.f32 %v5452_v18, %v9544_v52  ;;  %5479 = vrcp.f32 %v7201_v40  ;;  %v9556_v14 = vld [vmem:[#allocation67_spill] sm:$0xff]  ;;  %v9557_v18 = vld [vmem:[#allocation64_spill] sm:$0xff] }
 0x3db   : > { %2544 = vmatprep.subr.mxu0 %v2511_v27  ;;  %1514 = vmatprep.subr.mxu1 %v1476_v30  ;;  %v5456_v51 = vpop.eup %5455  ;;  %v1473_v11 = vmul.f32 %v5454_v9, %v9543_v47  ;;  %v1472_v13 = vmul.f32 %v5454_v9, %v9546_v55  ;;  %5481 = vrcp.f32 %v7189_v59  ;;  %v9559_v59 = vld [vmem:[#allocation58_spill] sm:$0xff]  ;;  %v9560_v30 = vld [vmem:[#allocation63_spill] sm:$0xff]  ;;  %v9561_v21 = vld [vmem:[#allocation60_spill] sm:$0xff] }
 0x3dc   : > { %2545 = vmatpush2.xpose.msra.mxu0 %v2510_v39  ;;  %v5458_v46 = vpop.eup %5457  ;;  %v2505_v57 = vmul.f32 %v5456_v51, %v9545_v37  ;;  %v2504_v10 = vmul.f32 %v5456_v51, %v9548_v58  ;;  %5483 = vrcp.f32 %v7191_v12  ;;  %v9565_v52 = vld [vmem:[#allocation56_spill] sm:$0xff] }
 0x3dd   : > { %2546 = vmatprep.subr.mxu0 %v2508_v62  ;;  %v5460_v16 = vpop.eup %5459  ;;  %v1470_v22 = vmul.f32 %v5458_v46, %v9547_v54  ;;  %v1469_v48 = vmul.f32 %v5458_v46, %v9550_v0  ;;  %5485 = vrcp.f32 %v7179_v56  ;;  %v9562_v62 = vld [vmem:[#allocation57_spill] sm:$0xff]  ;;  %v9563_v56 = vld [vmem:[#allocation54_spill] sm:$0xff]  ;;  %v9572_v0 = vld [vmem:[#allocation51_spill] sm:$0xff] }
 0x3de   : > { %1515 = vmatpush2.xpose.msra.mxu1 %v1475_v44  ;;  %v5462_v34 = vpop.eup %5461  ;;  %v2502_v50 = vmul.f32 %v5460_v16, %v9549_v23  ;;  %v2501_v7 = vmul.f32 %v5460_v16, %v9552_v8  ;;  %5487 = vrcp.f32 %v7181_v53  ;;  %v9568_v16 = vld [vmem:[#allocation55_spill] sm:$0xff]  ;;  %v9571_v23 = vld [vmem:[#allocation46_spill] sm:$0xff] }
 0x3df   : > { %1516 = vmatprep.subr.mxu1 %v1473_v11  ;;  %v5464_v45 = vpop.eup %5463  ;;  %v1467_v38 = vmul.f32 %v5462_v34, %v9551_v15  ;;  %v1466_v4 = vmul.f32 %v5462_v34, %v9554_v43  ;;  %5489 = vrcp.f32 %v7169_v35  ;;  %v9564_v11 = vld [vmem:[#allocation59_spill] sm:$0xff]  ;;  %v9567_v35 = vld [vmem:[#allocation50_spill] sm:$0xff]  ;;  %v9570_v34 = vld [vmem:[#allocation49_spill] sm:$0xff] }
 0x3e0   : > { %2547 = vmatpush2.xpose.msra.mxu0 %v2507_v33  ;;  %v5466_v19 = vpop.eup %5465  ;;  %v2499_v1 = vmul.f32 %v5464_v45, %v9553_v49  ;;  %v2498_v25 = vmul.f32 %v5464_v45, %v9556_v14  ;;  %5491 = vrcp.f32 %v7171_v28  ;;  %v9566_v33 = vld [vmem:[#allocation53_spill] sm:$0xff]  ;;  %v9573_v45 = vld [vmem:[#allocation48_spill] sm:$0xff]  ;;  %v9575_v8 = vld [vmem:[#allocation42_spill] sm:$0xff] }
 0x3e1   : > { %2548 = vmatprep.subr.mxu0 %v2505_v57  ;;  %v5468_v63 = vpop.eup %5467  ;;  %v1464_v2 = vmul.f32 %v5466_v19, %v9555_v29  ;;  %v1463_v27 = vmul.f32 %v5466_v19, %v9558_v42  ;;  %5493 = vrcp.f32 %v7159_v6  ;;  %v9574_v15 = vld [vmem:[#allocation45_spill] sm:$0xff]  ;;  %v9579_v14 = vld [vmem:[#allocation30_spill] sm:$0xff] }
 0x3e2   : > { %1517 = vmatpush2.xpose.msra.mxu1 %v1472_v13  ;;  %v5470_v26 = vpop.eup %5469  ;;  %v2496_v40 = vmul.f32 %v5468_v63, %v9557_v18  ;;  %v2495_v9 = vmul.f32 %v5468_v63, %v9560_v30  ;;  %5495 = vrcp.f32 %v7161_v32  ;;  %v9578_v63 = vld [vmem:[#allocation35_spill] sm:$0xff] }
 0x3e3   : > { %1518 = vmatprep.subr.mxu1 %v1470_v22  ;;  %v5472_v3 = vpop.eup %5471  ;;  %v1461_v39 = vmul.f32 %v5470_v26, %v9559_v59  ;;  %v1460_v36 = vmul.f32 %v5470_v26, %v9562_v62  ;;  %v9569_v22 = vld [vmem:[#allocation52_spill] sm:$0xff]  ;;  %5497 = vrcp.f32 %v7152_v60  ;;  %v9582_v59 = vld [vmem:[#allocation33_spill] sm:$0xff]  ;;  %v9583_v30 = vld [vmem:[#allocation27_spill] sm:$0xff] }
 0x3e4   : > { %2549 = vmatpush2.xpose.msra.mxu0 %v2504_v10  ;;  %v5474_v31 = vpop.eup %5473  ;;  %v2493_v12 = vmul.f32 %v5472_v3, %v9561_v21  ;;  %v2492_v46 = vmul.f32 %v5472_v3, %v9564_v11  ;;  %5499 = vrcp.f32 %v7156_v41  ;;  %v9584_v62 = vld [vmem:[#allocation32_spill] sm:$0xff] }
 0x3e5   : > { %2550 = vmatprep.subr.mxu0 %v2502_v50  ;;  %v5476_v44 = vpop.eup %5475  ;;  %v1458_v51 = vmul.f32 %v5474_v31, %v9563_v56  ;;  %v1457_v37 = vmul.f32 %v5474_v31, %v9566_v33  ;;  %5501 = vrcp.f32 %v7279_v5  ;;  %v9580_v5 = vld [vmem:[#allocation43_spill] sm:$0xff] }
 0x3e6   : > { %1519 = vmatpush2.xpose.msra.mxu1 %v1469_v48  ;;  %v5478_v47 = vpop.eup %5477  ;;  %v2490_v53 = vmul.f32 %v5476_v44, %v9565_v52  ;;  %v2489_v54 = vmul.f32 %v5476_v44, %v9568_v16  ;;  %v9585_v44 = vld [vmem:[#allocation14_spill] sm:$0xff]  ;;  %v9587_v52 = vld [vmem:[#allocation28_spill] sm:$0xff]  ;;  %v9588_v33 = vld [vmem:[#allocation11_spill] sm:$0xff] }
 0x3e7   : > { %1520 = vmatprep.subr.mxu1 %v1467_v38  ;;  %v5480_v57 = vpop.eup %5479  ;;  %v1455_v55 = vmul.f32 %v5478_v47, %v9567_v35  ;;  %v1454_v58 = vmul.f32 %v5478_v47, %v9570_v34  ;;  %v9592_v34 = vld [vmem:[#allocation5_spill] sm:$0xff] }
 0x3e8   : > { %2551 = vmatpush2.xpose.msra.mxu0 %v2501_v7  ;;  %v5482_v13 = vpop.eup %5481  ;;  %v2487_v28 = vmul.f32 %v5480_v57, %v9569_v22  ;;  %v2486_v48 = vmul.f32 %v5480_v57, %v9572_v0  ;;  %v9589_v57 = vld [vmem:[#allocation23_spill] sm:$0xff] }
 0x3e9   : > { %2552 = vmatprep.subr.mxu0 %v2499_v1  ;;  %v5484_v10 = vpop.eup %5483  ;;  %v1452_v50 = vmul.f32 %v5482_v13, %v9571_v23  ;;  %v1451_v38 = vmul.f32 %v5482_v13, %v9574_v15  ;;  %v9576_v1 = vld [vmem:[#allocation47_spill] sm:$0xff]  ;;  %v9593_v23 = vld [vmem:[#allocation24_spill] sm:$0xff]  ;;  %v9596_v15 = vld [vmem:[#allocation22_spill] sm:$0xff] }
 0x3ea   : > { %1521 = vmatpush2.xpose.msra.mxu1 %v1466_v4  ;;  %v5486_v6 = vpop.eup %5485  ;;  %v2484_v32 = vmul.f32 %v5484_v10, %v9573_v45  ;;  %v2483_v43 = vmul.f32 %v5484_v10, %v9576_v1  ;;  %v9577_v4 = vld [vmem:[#allocation44_spill] sm:$0xff]  ;;  %v9595_v45 = vld [vmem:[#allocation25_spill] sm:$0xff] }
 0x3eb   : > { %1522 = vmatprep.subr.mxu1 %v1464_v2  ;;  %v5488_v19 = vpop.eup %5487  ;;  %v1449_v7 = vmul.f32 %v5486_v6, %v9575_v8  ;;  %v1448_v29 = vmul.f32 %v5486_v6, %v9578_v63  ;;  %v9594_v6 = vld [vmem:[#allocation92_spill] sm:$0xff]  ;;  %v9597_v8 = vld [vmem:[#allocation91_spill] sm:$0xff]  ;;  %v9600_v63 = vld [vmem:[#allocation94_spill] sm:$0xff] }
 0x3ec   : > { %2553 = vmatpush2.xpose.msra.mxu0 %v2498_v25  ;;  %v5490_v49 = vpop.eup %5489  ;;  %v2481_v41 = vmul.f32 %v5488_v19, %v9577_v4  ;;  %v2480_v42 = vmul.f32 %v5488_v19, %v9580_v5  ;;  %v9599_v4 = vld [vmem:[#allocation21_spill] sm:$0xff] }
 0x3ed   : > { %2554 = vmatprep.subr.mxu0 %v2496_v40  ;;  %v5492_v2 = vpop.eup %5491  ;;  %v1446_v25 = vmul.f32 %v5490_v49, %v9579_v14  ;;  %v9602_v14 = vld [vmem:[#allocation93_spill] sm:$0xff] }
 0x3ee   : > { %1523 = vmatpush2.xpose.msra.mxu1 %v1463_v27  ;;  %v5494_v18 = vpop.eup %5493  ;;  %v9581_v27 = vld [vmem:[#allocation34_spill] sm:$0xff] }
 0x3ef   : > { %1524 = vmatprep.subr.mxu1 %v1461_v39  ;;  %v2478_v3 = vmul.f32 %v5492_v2, %v9581_v27  ;;  %v1445_v39 = vmul.f32 %v5490_v49, %v9582_v59  ;;  %v5496_v31 = vpop.eup %5495 }
 0x3f0   : > { %2555 = vmatpush2.xpose.msra.mxu0 %v2495_v9  ;;  %v1443_v9 = vmul.f32 %v5494_v18, %v9583_v30  ;;  %v5498_v21 = vpop.eup %5497 }
 0x3f1   : > { %2556 = vmatprep.subr.mxu0 %v2493_v12  ;;  %v5500_v11 = vpop.eup %5499  ;;  %v1440_v35 = vmul.f32 %v5498_v21, %v9589_v57 }
 0x3f2   : > { %1525 = vmatpush2.xpose.msra.mxu1 %v1460_v36  ;;  %v2477_v36 = vmul.f32 %v5492_v2, %v9584_v62  ;;  %v5502_v16 = vpop.eup %5501  ;;  %v9601_v2 = vld [vmem:[#allocation7_spill] sm:$0xff] }
 0x3f3   : > { %1526 = vmatprep.subr.mxu1 %v1458_v51  ;;  %v9586_v51 = vld [vmem:[#allocation31_spill] sm:$0xff] }
 0x3f4   : > { %2557 = vmatpush2.xpose.msra.mxu0 %v2492_v46  ;;  %v2475_v47 = vmul.f32 %v5496_v31, %v9586_v51 }
 0x3f5   : > { %2558 = vmatprep.subr.mxu0 %v2490_v53  ;;  %v1442_v53 = vmul.f32 %v5494_v18, %v9587_v52 }
 0x3f6   : > { %1527 = vmatpush2.xpose.msra.mxu1 %v1457_v37 }
 0x3f7   : > { %1528 = vmatprep.subr.mxu1 %v1455_v55  ;;  %v9590_v55 = vld [vmem:[#allocation29_spill] sm:$0xff] }
 0x3f8   : > { %2559 = vmatpush2.xpose.msra.mxu0 %v2489_v54  ;;  %v2474_v13 = vmul.f32 %v5496_v31, %v9590_v55  ;;  %v9591_v54 = vld [vmem:[#allocation26_spill] sm:$0xff] }
 0x3f9   : > { %2560 = vmatprep.subr.mxu0 %v2487_v28  ;;  %v2472_v22 = vmul.f32 %v5500_v11, %v9591_v54 }
 0x3fa   : > { %1529 = vmatpush2.xpose.msra.mxu1 %v1454_v58  ;;  %v468_v58 = vadd.f32 %v9592_v34, %v7272_v17  ;;  %v9598_v17 = vld [vmem:[#allocation3_spill] sm:$0xff] }
 0x3fb   : > { %1530 = vmatprep.subr.mxu1 %v1452_v50  ;;  %v1439_v50 = vmul.f32 %v5498_v21, %v9593_v23  ;;  %v462_v49 = vadd.f32 %v9598_v17, %v7287_v20 }
 0x3fc   : > { %2561 = vmatpush2.xpose.msra.mxu0 %v2486_v48 }
 0x3fd   : > { %2562 = vmatprep.subr.mxu0 %v2484_v32  ;;  %v2471_v32 = vmul.f32 %v5500_v11, %v9595_v45 }
 0x3fe   : > { %1531 = vmatpush2.xpose.msra.mxu1 %v1451_v38  ;;  %v2469_v38 = vmul.f32 %v5502_v16, %v9596_v15 }
 0x3ff   : > { %v1341_v60 = vpop.xlane.xlu1 %1340  ;;  %1532 = vmatprep.subr.mxu1 %v1449_v7 }
 0x400   : > { %5503 = vrcp.f32 %v1341_v60  ;;  %2563 = vmatpush2.xpose.msra.mxu0 %v2483_v43 }
 0x401   : > { %v2370_v26 = vpop.xlane.xlu0 %2369  ;;  %2564 = vmatprep.subr.mxu0 %v2481_v41  ;;  %v2468_v41 = vmul.f32 %v5502_v16, %v9599_v4 }
 0x402   : > { %5505 = vrcp.f32 %v2370_v26  ;;  %1533 = vmatpush2.xpose.msra.mxu1 %v1448_v29 }
 0x403   : > { %v1338_v40 = vpop.xlane.xlu1 %1337  ;;  %1534 = vmatprep.subr.mxu1 %v1446_v25  ;;  %v9603_v25 = vld [vmem:[#allocation10_spill] sm:$0xff] }
 0x404   : > { %5507 = vrcp.f32 %v1338_v40  ;;  %2565 = vmatpush2.xpose.msra.mxu0 %v2480_v42  ;;  %v9606_v42 = vld [vmem:[#allocation12_spill] sm:$0xff] }
 0x405   : > { %2566 = vmatprep.subr.mxu0 %v2478_v3  ;;  %v9607_v3 = vld [vmem:[#allocation8_spill] sm:$0xff] }
 0x406   : > { %1535 = vmatpush2.xpose.msra.mxu1 %v1445_v39  ;;  %v9608_v39 = vmov 0.0  }
 0x407   : > { %v332_v12 = vpop.permute.xlu1 %331  ;;  %1536 = vmatprep.subr.mxu1 %v1443_v9 }
 0x408   : > { %v504_v56 = vadd.f32 %v9585_v44, %v332_v12  ;;  %2567 = vmatpush2.xpose.msra.mxu0 %v2477_v36  ;;  %v502_v27 = vadd.f32 %v9606_v42, %v332_v12 }
 0x409   : > { %v327_v46 = vpop.permute.xlu0 %326  ;;  %2568 = vmatprep.subr.mxu0 %v2475_v47 }
 0x40a   : > { %2576 = vmatprep.mubr.f32.mxu0 %v504_v56  ;;  %v498_v37 = vadd.f32 %v9588_v33, %v327_v46  ;;  %1537 = vmatpush2.xpose.msra.mxu1 %v1442_v53  ;;  %v496_v18 = vadd.f32 %v9603_v25, %v327_v46 }
 0x40b   : > { %1538 = vmatprep.subr.mxu1 %v1440_v35  ;;  %v322_v10 = vpop.permute.xlu1 %321 }
 0x40c   : > { %1544 = vmatprep.mubr.f32.mxu1 %v498_v37  ;;  %2569 = vmatpush2.xpose.msra.mxu0 %v2474_v13  ;;  %v490_v59 = vadd.f32 %v9607_v3, %v322_v10 }
 0x40d   : > { %v5504_v28 = vpop.eup %5503  ;;  %2570 = vmatprep.subr.mxu0 %v2472_v22 }
 0x40e   : > { %v1437_v0 = vmul.f32 %v5504_v28, %v9594_v6  ;;  %1539 = vmatpush2.xpose.msra.mxu1 %v1439_v50  ;;  %v1436_v7 = vmul.f32 %v5504_v28, %v9597_v8 }
 0x40f   : > { %v5506_v48 = vpop.eup %5505  ;;  %3647 = vxpose.xlu0.b32.start.end [1/1] (short) %v468_v58, 128  ;;  %v317_v43 = vpop.permute.xlu1 %316 }
 0x410   : > { %1540 = vmatprep.subr.mxu1 %v1437_v0  ;;  %2571 = vmatpush2.xpose.msra.mxu0 %v2471_v32  ;;  %v2466_v1 = vmul.f32 %v5506_v48, %v7126_v24  ;;  %v486_v26 = vadd.f32 %v9601_v2, %v317_v43  ;;  %v2465_v20 = vmul.f32 %v5506_v48, %v9602_v14  ;;  %v9605_v24 = vld [vmem:[#allocation6_spill] sm:$0xff] }
 0x411   : > { %v5508_v19 = vpop.eup %5507  ;;  %2572 = vmatprep.subr.mxu0 %v2469_v38  ;;  %v484_v5 = vadd.f32 %v9605_v24, %v317_v43 }
 0x412   : > { %v1434_v60 = vmul.f32 %v5508_v19, %v7132_v61  ;;  %1541 = vmatpush2.xpose.msra.mxu1 %v1436_v7  ;;  %v1433_v29 = vmul.f32 %v5508_v19, %v9600_v63  ;;  %v9604_v61 = vld [vmem:[#allocation9_spill] sm:$0xff] }
 0x413   : > { %v492_v40 = vadd.f32 %v9604_v61, %v322_v10 }
 0x414   : > { %1542 = vmatprep.subr.mxu1 %v1434_v60  ;;  %2615 = vxpose.xlu1.b32.start.end [1/1] (short) %v462_v49, 128 }
 0x415   : > { %2573 = vmatpush2.xpose.msra.mxu0 %v2468_v41 }
 0x416   : > { %2574 = vmatprep.subr.mxu0 %v2466_v1  ;;  %1543 = vmatpush2.xpose.msra.mxu1 %v1433_v29 }
 0x417   : > { %2773 = vmatprep.subr.mxu1 %v486_v26 }
 0x419   : > { %2575 = vmatpush2.xpose.msra.mxu0 %v2465_v20  ;;  %1545 = vmatmul.mubr.f32.vlgmr.msra.gmra.mxu1 %v496_v18 }
 0x41a   : > { %3805 = vmatprep.subr.mxu0 %v492_v40  ;;  %2774 = vmatpush1.msra.mxu1 %v484_v5 }
 0x41b   : > { %2807 = vmatprep.mubr.f32.mxu1 %v9608_v39 }
 0x41c   : > { %2577 = vmatmul.mubr.f32.vlgmr.msra.gmra.mxu0 %v502_v27 }
 0x41d   : > { %3806 = vmatpush1.msra.mxu0 %v490_v59  ;;  %3839 = vmatprep.mubr.f32.mxu0 %v9608_v39 }
 0x44e   : > { %v3631_v31 = vpop.trf.xlu0 }
 0x44f   : > { %5061 = vmatmul.mubr.msk.f32.vlgmr.msra.gmra.mxu0 %vm582_vm1, %v3631_v31 }
 0x450   : > { %3845 = vmatprep.mubr.f32.mxu0 %v9608_v39 }
 0x452   : > { %v3632_v30 = vpop.trf.xlu0 }
 0x453   : > { %5062 = vmatmul.mubr.msk.f32.gmra.mxu0 %vm582_vm1, %v3632_v30  ;;  %v2599_v9 = vpop.trf.xlu1 }
 0x454   : > { %3851 = vmatprep.mubr.f32.mxu0 %v9608_v39  ;;  %5029 = vmatmul.mubr.msk.f32.vlgmr.msra.gmra.mxu1 %vm582_vm1, %v2599_v9 }
 0x455   : > { %2813 = vmatprep.mubr.f32.mxu1 %v9608_v39 }
 0x456   : > { %v3633_v21 = vpop.trf.xlu0 }
 0x457   : > { %5063 = vmatmul.mubr.msk.f32.gmra.mxu0 %vm582_vm1, %v3633_v21  ;;  %v2600_v12 = vpop.trf.xlu1 }
 0x458   : > { %3857 = vmatprep.mubr.f32.mxu0 %v9608_v39  ;;  %5030 = vmatmul.mubr.msk.f32.gmra.mxu1 %vm582_vm1, %v2600_v12 }
 0x459   : > { %2819 = vmatprep.mubr.f32.mxu1 %v9608_v39 }
 0x45a   : > { %v3634_v62 = vpop.trf.xlu0 }
 0x45b   : > { %5064 = vmatmul.mubr.msk.f32.gmra.mxu0 %vm582_vm1, %v3634_v62  ;;  %v2601_v36 = vpop.trf.xlu1 }
 0x45c   : > { %3863 = vmatprep.mubr.f32.mxu0 %v9608_v39  ;;  %5031 = vmatmul.mubr.msk.f32.gmra.mxu1 %vm582_vm1, %v2601_v36 }
 0x45d   : > { %2825 = vmatprep.mubr.f32.mxu1 %v9608_v39 }
 0x45e   : > { %v3635_v44 = vpop.trf.xlu0 }
 0x45f   : > { %5065 = vmatmul.mubr.msk.f32.gmra.mxu0 %vm582_vm1, %v3635_v44  ;;  %v2602_v56 = vpop.trf.xlu1 }
 0x460   : > { %3869 = vmatprep.mubr.f32.mxu0 %v9608_v39  ;;  %5032 = vmatmul.mubr.msk.f32.gmra.mxu1 %vm582_vm1, %v2602_v56 }
 0x461   : > { %2831 = vmatprep.mubr.f32.mxu1 %v9608_v39 }
 0x462   : > { %v3636_v51 = vpop.trf.xlu0 }
 0x463   : > { %5066 = vmatmul.mubr.msk.f32.gmra.mxu0 %vm582_vm1, %v3636_v51  ;;  %v2603_v47 = vpop.trf.xlu1 }
 0x464   : > { %3875 = vmatprep.mubr.f32.mxu0 %v9608_v39  ;;  %5033 = vmatmul.mubr.msk.f32.gmra.mxu1 %vm582_vm1, %v2603_v47 }
 0x465   : > { %2837 = vmatprep.mubr.f32.mxu1 %v9608_v39 }
 0x466   : > { %v3637_v11 = vpop.trf.xlu0 }
 0x467   : > { %5067 = vmatmul.mubr.msk.f32.gmra.mxu0 %vm582_vm1, %v3637_v11  ;;  %v2604_v46 = vpop.trf.xlu1 }
 0x468   : > { %3881 = vmatprep.mubr.f32.mxu0 %v9608_v39  ;;  %5034 = vmatmul.mubr.msk.f32.gmra.mxu1 %vm582_vm1, %v2604_v46 }
 0x469   : > { %2843 = vmatprep.mubr.f32.mxu1 %v9608_v39 }
 0x46a   : > { %v3638_v52 = vpop.trf.xlu0 }
 0x46b   : > { %5068 = vmatmul.mubr.msk.f32.gmra.mxu0 %vm582_vm1, %v3638_v52  ;;  %v2605_v53 = vpop.trf.xlu1 }
 0x46c   : > { %3887 = vmatprep.mubr.f32.mxu0 %v9608_v39  ;;  %5035 = vmatmul.mubr.msk.f32.gmra.mxu1 %vm582_vm1, %v2605_v53 }
 0x46d   : > { %2849 = vmatprep.mubr.f32.mxu1 %v9608_v39 }
 0x46e   : > { %v3639_v33 = vpop.trf.xlu0 }
 0x46f   : > { %5069 = vmatmul.mubr.msk.f32.gmra.mxu0 %vm582_vm1, %v3639_v33  ;;  %v2606_v37 = vpop.trf.xlu1 }
 0x470   : > { %3893 = vmatprep.mubr.f32.mxu0 %v9608_v39  ;;  %5036 = vmatmul.mubr.msk.f32.gmra.mxu1 %vm582_vm1, %v2606_v37 }
 0x471   : > { %2855 = vmatprep.mubr.f32.mxu1 %v9608_v39 }
 0x472   : > { %v3640_v57 = vpop.trf.xlu0 }
 0x473   : > { %5070 = vmatmul.mubr.msk.f32.gmra.mxu0 %vm582_vm1, %v3640_v57  ;;  %v2607_v35 = vpop.trf.xlu1 }
 0x474   : > { %3899 = vmatprep.mubr.f32.mxu0 %v9608_v39  ;;  %5037 = vmatmul.mubr.msk.f32.gmra.mxu1 %vm582_vm1, %v2607_v35 }
 0x475   : > { %2861 = vmatprep.mubr.f32.mxu1 %v9608_v39 }
 0x476   : > { %v3641_v55 = vpop.trf.xlu0 }
 0x477   : > { %5071 = vmatmul.mubr.msk.f32.gmra.mxu0 %vm582_vm1, %v3641_v55  ;;  %v2608_v13 = vpop.trf.xlu1 }
 0x478   : > { %3905 = vmatprep.mubr.f32.mxu0 %v9608_v39  ;;  %5038 = vmatmul.mubr.msk.f32.gmra.mxu1 %vm582_vm1, %v2608_v13 }
 0x479   : > { %2867 = vmatprep.mubr.f32.mxu1 %v9608_v39 }
 0x47a   : > { %v3642_v16 = vpop.trf.xlu0 }
 0x47b   : > { %5072 = vmatmul.mubr.msk.f32.gmra.mxu0 %vm582_vm1, %v3642_v16  ;;  %v2609_v54 = vpop.trf.xlu1 }
 0x47c   : > { %3911 = vmatprep.mubr.f32.mxu0 %v9608_v39  ;;  %5039 = vmatmul.mubr.msk.f32.gmra.mxu1 %vm582_vm1, %v2609_v54 }
 0x47d   : > { %2873 = vmatprep.mubr.f32.mxu1 %v9608_v39 }
 0x47e   : > { %v3643_v22 = vpop.trf.xlu0 }
 0x47f   : > { %5073 = vmatmul.mubr.msk.f32.gmra.mxu0 %vm582_vm1, %v3643_v22  ;;  %v2610_v28 = vpop.trf.xlu1 }
 0x480   : > { %3917 = vmatprep.mubr.f32.mxu0 %v9608_v39  ;;  %5040 = vmatmul.mubr.msk.f32.gmra.mxu1 %vm582_vm1, %v2610_v28 }
 0x481   : > { %2879 = vmatprep.mubr.f32.mxu1 %v9608_v39 }
 0x482   : > { %v3644_v34 = vpop.trf.xlu0 }
 0x483   : > { %5074 = vmatmul.mubr.msk.f32.gmra.mxu0 %vm582_vm1, %v3644_v34  ;;  %v2611_v58 = vpop.trf.xlu1 }
 0x484   : > { %5041 = vmatmul.mubr.msk.f32.gmra.mxu1 %vm582_vm1, %v2611_v58  ;;  %3923 = vmatprep.mubr.f32.mxu0 %v9608_v39 }
 0x485   : > { %2885 = vmatprep.mubr.f32.mxu1 %v9608_v39 }
 0x486   : > { %v3645_v10 = vpop.trf.xlu0 }
 0x487   : > { %v2612_v23 = vpop.trf.xlu1  ;;  %5075 = vmatmul.mubr.msk.f32.gmra.mxu0 %vm582_vm1, %v3645_v10 }
 0x488   : > { %5042 = vmatmul.mubr.msk.f32.gmra.mxu1 %vm582_vm1, %v2612_v23  ;;  %3929 = vmatprep.mubr.f32.mxu0 %v9608_v39 }
 0x489   : > { %2891 = vmatprep.mubr.f32.mxu1 %v9608_v39 }
 0x48a   : > { %v3646_v50 = vpop.trf.xlu0 }
 0x48b   : > { %v2613_v6 = vpop.trf.xlu1  ;;  %5076 = vmatmul.mubr.msk.f32.gmra.mxu0 %vm582_vm1, %v3646_v50 }
 0x48c   : > { %5043 = vmatmul.mubr.msk.f32.gmra.mxu1 %vm582_vm1, %v2613_v6  ;;  %3935 = vmatprep.mubr.f32.mxu0 %v9608_v39 }
 0x48d   : > { %2897 = vmatprep.mubr.f32.mxu1 %v9608_v39 }
 0x48e   : > { %v3663_v0 = vpop.trf.xlu0 }
 0x48f   : > { %v2614_v48 = vpop.trf.xlu1  ;;  %5077 = vmatmul.mubr.msk.f32.gmra.mxu0 %vm582_vm1, %v3663_v0 }
 0x490   : > { %5044 = vmatmul.mubr.msk.f32.gmra.mxu1 %vm582_vm1, %v2614_v48  ;;  %3941 = vmatprep.mubr.f32.mxu0 %v9608_v39 }
 0x491   : > { %2903 = vmatprep.mubr.f32.mxu1 %v9608_v39 }
 0x492   : > { %v3664_v45 = vpop.trf.xlu0 }
 0x493   : > { %v2631_v32 = vpop.trf.xlu1  ;;  %5078 = vmatmul.mubr.msk.f32.gmra.mxu0 %vm582_vm1, %v3664_v45 }
 0x494   : > { %5045 = vmatmul.mubr.msk.f32.gmra.mxu1 %vm582_vm1, %v2631_v32  ;;  %3947 = vmatprep.mubr.f32.mxu0 %v9608_v39 }
 0x495   : > { %2909 = vmatprep.mubr.f32.mxu1 %v9608_v39 }
 0x496   : > { %v3665_v15 = vpop.trf.xlu0 }
 0x497   : > { %v2632_v38 = vpop.trf.xlu1  ;;  %5079 = vmatmul.mubr.msk.f32.gmra.mxu0 %vm582_vm1, %v3665_v15 }
 0x498   : > { %5046 = vmatmul.mubr.msk.f32.gmra.mxu1 %vm582_vm1, %v2632_v38  ;;  %3953 = vmatprep.mubr.f32.mxu0 %v9608_v39 }
 0x499   : > { %2915 = vmatprep.mubr.f32.mxu1 %v9608_v39 }
 0x49a   : > { %v3666_v19 = vpop.trf.xlu0 }
 0x49b   : > { %v2633_v8 = vpop.trf.xlu1  ;;  %5080 = vmatmul.mubr.msk.f32.gmra.mxu0 %vm582_vm1, %v3666_v19 }
 0x49c   : > { %5047 = vmatmul.mubr.msk.f32.gmra.mxu1 %vm582_vm1, %v2633_v8  ;;  %3959 = vmatprep.mubr.f32.mxu0 %v9608_v39 }
 0x49d   : > { %2921 = vmatprep.mubr.f32.mxu1 %v9608_v39 }
 0x49e   : > { %v3667_v7 = vpop.trf.xlu0 }
 0x49f   : > { %v2634_v17 = vpop.trf.xlu1  ;;  %5081 = vmatmul.mubr.msk.f32.gmra.mxu0 %vm582_vm1, %v3667_v7 }
 0x4a0   : > { %5048 = vmatmul.mubr.msk.f32.gmra.mxu1 %vm582_vm1, %v2634_v17  ;;  %3965 = vmatprep.mubr.f32.mxu0 %v9608_v39 }
 0x4a1   : > { %2927 = vmatprep.mubr.f32.mxu1 %v9608_v39 }
 0x4a2   : > { %v3668_v49 = vpop.trf.xlu0 }
 0x4a3   : > { %v2635_v60 = vpop.trf.xlu1  ;;  %5082 = vmatmul.mubr.msk.f32.gmra.mxu0 %vm582_vm1, %v3668_v49 }
 0x4a4   : > { %5049 = vmatmul.mubr.msk.f32.gmra.mxu1 %vm582_vm1, %v2635_v60  ;;  %3971 = vmatprep.mubr.f32.mxu0 %v9608_v39 }
 0x4a5   : > { %2933 = vmatprep.mubr.f32.mxu1 %v9608_v39 }
 0x4a6   : > { %v3669_v1 = vpop.trf.xlu0 }
 0x4a7   : > { %v2636_v43 = vpop.trf.xlu1  ;;  %5083 = vmatmul.mubr.msk.f32.gmra.mxu0 %vm582_vm1, %v3669_v1 }
 0x4a8   : > { %5050 = vmatmul.mubr.msk.f32.gmra.mxu1 %vm582_vm1, %v2636_v43  ;;  %3977 = vmatprep.mubr.f32.mxu0 %v9608_v39 }
 0x4a9   : > { %2939 = vmatprep.mubr.f32.mxu1 %v9608_v39 }
 0x4aa   : > { %v3670_v4 = vpop.trf.xlu0 }
 0x4ab   : > { %v2637_v41 = vpop.trf.xlu1  ;;  %5084 = vmatmul.mubr.msk.f32.gmra.mxu0 %vm582_vm1, %v3670_v4 }
 0x4ac   : > { %5051 = vmatmul.mubr.msk.f32.gmra.mxu1 %vm582_vm1, %v2637_v41  ;;  %3983 = vmatprep.mubr.f32.mxu0 %v9608_v39 }
 0x4ad   : > { %2945 = vmatprep.mubr.f32.mxu1 %v9608_v39 }
 0x4ae   : > { %v3671_v63 = vpop.trf.xlu0 }
 0x4af   : > { %v2638_v29 = vpop.trf.xlu1  ;;  %5085 = vmatmul.mubr.msk.f32.gmra.mxu0 %vm582_vm1, %v3671_v63 }
 0x4b0   : > { %5052 = vmatmul.mubr.msk.f32.gmra.mxu1 %vm582_vm1, %v2638_v29  ;;  %3989 = vmatprep.mubr.f32.mxu0 %v9608_v39 }
 0x4b1   : > { %2951 = vmatprep.mubr.f32.mxu1 %v9608_v39 }
 0x4b2   : > { %v3672_v2 = vpop.trf.xlu0 }
 0x4b3   : > { %v2639_v26 = vpop.trf.xlu1  ;;  %5086 = vmatmul.mubr.msk.f32.gmra.mxu0 %vm582_vm1, %v3672_v2 }
 0x4b4   : > { %5053 = vmatmul.mubr.msk.f32.gmra.mxu1 %vm582_vm1, %v2639_v26  ;;  %3995 = vmatprep.mubr.f32.mxu0 %v9608_v39 }
 0x4b5   : > { %2957 = vmatprep.mubr.f32.mxu1 %v9608_v39 }
 0x4b6   : > { %v3673_v14 = vpop.trf.xlu0 }
 0x4b7   : > { %v2640_v20 = vpop.trf.xlu1  ;;  %5087 = vmatmul.mubr.msk.f32.gmra.mxu0 %vm582_vm1, %v3673_v14 }
 0x4b8   : > { %5054 = vmatmul.mubr.msk.f32.gmra.mxu1 %vm582_vm1, %v2640_v20  ;;  %4001 = vmatprep.mubr.f32.mxu0 %v9608_v39 }
 0x4b9   : > { %2963 = vmatprep.mubr.f32.mxu1 %v9608_v39 }
 0x4ba   : > { %v3674_v25 = vpop.trf.xlu0 }
 0x4bb   : > { %v2641_v18 = vpop.trf.xlu1  ;;  %5088 = vmatmul.mubr.msk.f32.gmra.mxu0 %vm582_vm1, %v3674_v25 }
 0x4bc   : > { %5055 = vmatmul.mubr.msk.f32.gmra.mxu1 %vm582_vm1, %v2641_v18  ;;  %4007 = vmatprep.mubr.f32.mxu0 %v9608_v39 }
 0x4bd   : > { %2969 = vmatprep.mubr.f32.mxu1 %v9608_v39 }
 0x4be   : > { %v3675_v61 = vpop.trf.xlu0 }
 0x4bf   : > { %v2642_v40 = vpop.trf.xlu1  ;;  %5089 = vmatmul.mubr.msk.f32.gmra.mxu0 %vm582_vm1, %v3675_v61 }
 0x4c0   : > { %5056 = vmatmul.mubr.msk.f32.gmra.mxu1 %vm582_vm1, %v2642_v40  ;;  %4013 = vmatprep.mubr.f32.mxu0 %v9608_v39 }
 0x4c1   : > { %2975 = vmatprep.mubr.f32.mxu1 %v9608_v39 }
 0x4c2   : > { %v3676_v24 = vpop.trf.xlu0 }
 0x4c3   : > { %v2643_v5 = vpop.trf.xlu1  ;;  %5090 = vmatmul.mubr.msk.f32.gmra.mxu0 %vm582_vm1, %v3676_v24 }
 0x4c4   : > { %5057 = vmatmul.mubr.msk.f32.gmra.mxu1 %vm582_vm1, %v2643_v5  ;;  %4019 = vmatprep.mubr.f32.mxu0 %v9608_v39 }
 0x4c5   : > { %2981 = vmatprep.mubr.f32.mxu1 %v9608_v39 }
 0x4c6   : > { %v3677_v42 = vpop.trf.xlu0 }
 0x4c7   : > { %v2644_v27 = vpop.trf.xlu1  ;;  %5091 = vmatmul.mubr.msk.f32.gmra.mxu0 %vm582_vm1, %v3677_v42 }
 0x4c8   : > { %5058 = vmatmul.mubr.msk.f32.gmra.mxu1 %vm582_vm1, %v2644_v27  ;;  %4025 = vmatprep.mubr.f32.mxu0 %v9608_v39 }
 0x4c9   : > { %2987 = vmatprep.mubr.f32.mxu1 %v9608_v39 }
 0x4ca   : > { %v3678_v3 = vpop.trf.xlu0 }
 0x4cb   : > { %v2645_v59 = vpop.trf.xlu1  ;;  %5092 = vmatmul.mubr.msk.f32.gmra.mxu0 %vm582_vm1, %v3678_v3 }
 0x4cc   : > { %5059 = vmatmul.mubr.msk.f32.gmra.mxu1 %vm582_vm1, %v2645_v59 }
 0x4cd   : > { %2993 = vmatprep.mubr.f32.mxu1 %v9608_v39 }
 0x4cf   : > { %v2646_v31 = vpop.trf.xlu1 }
 0x4d0   : > { %5060 = vmatmul.mubr.msk.f32.gmra.mxu1 %vm582_vm1, %v2646_v31 }
 0x4d9   : > { %v7521_v21 = vpop.f32.mrf.mxu1 }
 0x4da   : > { %9611 = vst [vmem:[#allocation40_spill] sm:$0xff] %v7521_v21 }
 0x4db   : > { %v7527_v36 = vpop.f32.mrf.mxu1 }
 0x4dc   : > { %v7517_v30 = vpop.f32.mrf.mxu0  ;;  %9612 = vst [vmem:[#allocation41_spill] sm:$0xff] %v7527_v36 }
 0x4dd   : > { %9609 = vst [vmem:[#allocation95_spill] sm:$0xff] %v7517_v30 }
 0x4de   : > { %v7519_v9 = vpop.f32.mrf.mxu0 }
 0x4df   : > { %9610 = vst [vmem:[#allocation96_spill] sm:$0xff] %v7519_v9 }
 0x50f   : > { %v7523_v12 = vpop.f32.mrf.mxu0 }
 0x511   : > { %v7525_v62 = vpop.f32.mrf.mxu0 }
 0x513   : > { %v7529_v44 = vpop.f32.mrf.mxu0 }
 0x514   : > { %v7531_v56 = vpop.f32.mrf.mxu1 }
 0x515   : > { %v7533_v51 = vpop.f32.mrf.mxu0 }
 0x516   : > { %v7535_v47 = vpop.f32.mrf.mxu1 }
 0x517   : > { %v7537_v11 = vpop.f32.mrf.mxu0 }
 0x518   : > { %v7539_v46 = vpop.f32.mrf.mxu1 }
 0x519   : > { %v7541_v52 = vpop.f32.mrf.mxu0 }
 0x51a   : > { %v7543_v53 = vpop.f32.mrf.mxu1 }
 0x51b   : > { %v7545_v33 = vpop.f32.mrf.mxu0 }
 0x51c   : > { %v7547_v37 = vpop.f32.mrf.mxu1 }
 0x51d   : > { %v7549_v57 = vpop.f32.mrf.mxu0 }
 0x51e   : > { %v7551_v35 = vpop.f32.mrf.mxu1 }
 0x51f   : > { %v3865_v55 = vpop.f32.mrf.mxu0 }
 0x520   : > { %v7553_v13 = vmul.f32 0.35355338, %v3865_v55  ;;  %v7555_v16 = vpop.f32.mrf.mxu1 }
 0x521   : > { %v3867_v54 = vpop.f32.mrf.mxu0 }
 0x522   : > { %9613 = vst [vmem:[#allocation38_spill] sm:$0xff] %v7553_v13  ;;  %v7557_v22 = vmul.f32 0.35355338, %v3867_v54  ;;  %v7559_v28 = vpop.f32.mrf.mxu1 }
 0x523   : > { %v3871_v34 = vpop.f32.mrf.mxu0 }
 0x524   : > { %9614 = vst [vmem:[#allocation39_spill] sm:$0xff] %v7557_v22  ;;  %v4108_v58 = vmax.f32 %v7553_v13, %v7557_v22  ;;  %v7563_v10 = vmul.f32 0.35355338, %v3871_v34  ;;  %v7565_v23 = vpop.f32.mrf.mxu1 }
 0x525   : > { %v3873_v50 = vpop.f32.mrf.mxu0 }
 0x526   : > { %9615 = vst [vmem:[#allocation36_spill] sm:$0xff] %v7563_v10  ;;  %v7567_v6 = vmul.f32 0.35355338, %v3873_v50  ;;  %4109 = vmax.xlane.f32.xlu1 %v4108_v58  ;;  %v7569_v0 = vpop.f32.mrf.mxu1 }
 0x527   : > { %v3877_v48 = vpop.f32.mrf.mxu0 }
 0x528   : > { %9616 = vst [vmem:[#allocation37_spill] sm:$0xff] %v7567_v6  ;;  %v4111_v45 = vmax.f32 %v7563_v10, %v7567_v6  ;;  %v7573_v32 = vmul.f32 0.35355338, %v3877_v48  ;;  %v2839_v15 = vpop.f32.mrf.mxu1 }
 0x529   : > { %v3879_v38 = vpop.f32.mrf.mxu0  ;;  %v7577_v7 = vmul.f32 0.35355338, %v2839_v15 }
 0x52a   : > { %9617 = vst [vmem:[#allocation87_spill] sm:$0xff] %v7573_v32  ;;  %v7575_v19 = vmul.f32 0.35355338, %v3879_v38  ;;  %4112 = vmax.xlane.f32.xlu1 %v4111_v45  ;;  %v2841_v8 = vpop.f32.mrf.mxu1 }
 0x52b   : > { %9619 = vst [vmem:[#allocation120_spill] sm:$0xff] %v7577_v7  ;;  %v3883_v17 = vpop.f32.mrf.mxu0  ;;  %v7579_v49 = vmul.f32 0.35355338, %v2841_v8 }
 0x52c   : > { %9618 = vst [vmem:[#allocation19_spill] sm:$0xff] %v7575_v19  ;;  %v4114_v60 = vmax.f32 %v7573_v32, %v7575_v19  ;;  %v7583_v1 = vmul.f32 0.35355338, %v3883_v17  ;;  %v2845_v43 = vpop.f32.mrf.mxu1  ;;  %v7704_v32 = vmul.f32 0.35355338, %v7545_v33 }
 0x52d   : > { %9620 = vst [vmem:[#allocation90_spill] sm:$0xff] %v7579_v49  ;;  %v3079_v4 = vmax.f32 %v7577_v7, %v7579_v49  ;;  %v3885_v41 = vpop.f32.mrf.mxu0  ;;  %v7589_v2 = vmul.f32 0.35355338, %v2845_v43  ;;  %v7722_v33 = vmul.f32 0.35355338, %v7537_v11 }
 0x52e   : > { %v7587_v63 = vmul.f32 0.35355338, %v3885_v41  ;;  %4115 = vmax.xlane.f32.xlu1 %v4114_v60  ;;  %v2847_v29 = vpop.f32.mrf.mxu1  ;;  %9627 = vst [vmem:[#allocation124_spill] sm:$0xff] %v7704_v32 }
 0x52f   : > { %9621 = vst [vmem:[#allocation20_spill] sm:$0xff] %v7589_v2  ;;  %v3889_v26 = vpop.f32.mrf.mxu0  ;;  %v7591_v14 = vmul.f32 0.35355338, %v2847_v29  ;;  %3080 = vmax.xlane.f32.xlu0 %v3079_v4  ;;  %9632 = vst [vmem:[#allocation122_spill] sm:$0xff] %v7722_v33 }
 0x530   : > { %v4117_v20 = vmax.f32 %v7583_v1, %v7587_v63  ;;  %v7595_v25 = vmul.f32 0.35355338, %v3889_v26  ;;  %v2851_v18 = vpop.f32.mrf.mxu1 }
 0x531   : > { %9622 = vst [vmem:[#allocation119_spill] sm:$0xff] %v7591_v14  ;;  %v3082_v61 = vmax.f32 %v7589_v2, %v7591_v14  ;;  %v3891_v40 = vpop.f32.mrf.mxu0  ;;  %v7601_v42 = vmul.f32 0.35355338, %v2851_v18 }
 0x532   : > { %v7599_v24 = vmul.f32 0.35355338, %v3891_v40  ;;  %4118 = vmax.xlane.f32.xlu1 %v4117_v20  ;;  %v2853_v5 = vpop.f32.mrf.mxu1 }
 0x533   : > { %v3895_v27 = vpop.f32.mrf.mxu0  ;;  %v7603_v3 = vmul.f32 0.35355338, %v2853_v5  ;;  %3083 = vmax.xlane.f32.xlu0 %v3082_v61 }
 0x534   : > { %v4120_v59 = vmax.f32 %v7595_v25, %v7599_v24  ;;  %v7607_v31 = vmul.f32 0.35355338, %v3895_v27  ;;  %v2857_v55 = vpop.f32.mrf.mxu1 }
 0x535   : > { %v3085_v54 = vmax.f32 %v7601_v42, %v7603_v3  ;;  %v3897_v34 = vpop.f32.mrf.mxu0  ;;  %v7613_v48 = vmul.f32 0.35355338, %v2857_v55 }
 0x536   : > { %v7611_v58 = vmul.f32 0.35355338, %v3897_v34  ;;  %4121 = vmax.xlane.f32.xlu1 %v4120_v59  ;;  %v2859_v50 = vpop.f32.mrf.mxu1 }
 0x537   : > { %v3901_v45 = vpop.f32.mrf.mxu0  ;;  %v7615_v15 = vmul.f32 0.35355338, %v2859_v50  ;;  %3086 = vmax.xlane.f32.xlu0 %v3085_v54 }
 0x538   : > { %v4123_v38 = vmax.f32 %v7607_v31, %v7611_v58  ;;  %v7619_v8 = vmul.f32 0.35355338, %v3901_v45  ;;  %v2863_v17 = vpop.f32.mrf.mxu1 }
 0x539   : > { %v3088_v60 = vmax.f32 %v7613_v48, %v7615_v15  ;;  %v3903_v43 = vpop.f32.mrf.mxu0  ;;  %v7625_v29 = vmul.f32 0.35355338, %v2863_v17 }
 0x53a   : > { %v7623_v4 = vmul.f32 0.35355338, %v3903_v43  ;;  %4124 = vmax.xlane.f32.xlu1 %v4123_v38  ;;  %v2865_v41 = vpop.f32.mrf.mxu1 }
 0x53b   : > { %v3907_v26 = vpop.f32.mrf.mxu0  ;;  %v7627_v20 = vmul.f32 0.35355338, %v2865_v41  ;;  %3089 = vmax.xlane.f32.xlu0 %v3088_v60 }
 0x53c   : > { %v4126_v18 = vmax.f32 %v7619_v8, %v7623_v4  ;;  %v7631_v61 = vmul.f32 0.35355338, %v3907_v26  ;;  %v2869_v40 = vpop.f32.mrf.mxu1 }
 0x53d   : > { %v3091_v5 = vmax.f32 %v7625_v29, %v7627_v20  ;;  %v3909_v27 = vpop.f32.mrf.mxu0  ;;  %v7637_v54 = vmul.f32 0.35355338, %v2869_v40 }
 0x53e   : > { %v7635_v59 = vmul.f32 0.35355338, %v3909_v27  ;;  %4127 = vmax.xlane.f32.xlu1 %v4126_v18  ;;  %v2871_v55 = vpop.f32.mrf.mxu1 }
 0x53f   : > { %v3913_v34 = vpop.f32.mrf.mxu0  ;;  %v7639_v50 = vmul.f32 0.35355338, %v2871_v55  ;;  %3092 = vmax.xlane.f32.xlu0 %v3091_v5 }
 0x540   : > { %v4129_v45 = vmax.f32 %v7631_v61, %v7635_v59  ;;  %v7643_v38 = vmul.f32 0.35355338, %v3913_v34  ;;  %v2875_v17 = vpop.f32.mrf.mxu1 }
 0x541   : > { %v3094_v60 = vmax.f32 %v7637_v54, %v7639_v50  ;;  %v3915_v43 = vpop.f32.mrf.mxu0  ;;  %v7649_v18 = vmul.f32 0.35355338, %v2875_v17 }
 0x542   : > { %v7647_v41 = vmul.f32 0.35355338, %v3915_v43  ;;  %4130 = vmax.xlane.f32.xlu1 %v4129_v45  ;;  %v2877_v26 = vpop.f32.mrf.mxu1 }
 0x543   : > { %v3919_v40 = vpop.f32.mrf.mxu0  ;;  %v7651_v27 = vmul.f32 0.35355338, %v2877_v26  ;;  %3095 = vmax.xlane.f32.xlu0 %v3094_v60 }
 0x544   : > { %v4132_v5 = vmax.f32 %v7643_v38, %v7647_v41  ;;  %v7655_v55 = vmul.f32 0.35355338, %v3919_v40  ;;  %v2881_v34 = vpop.f32.mrf.mxu1 }
 0x545   : > { %v3097_v21 = vmax.f32 %v7649_v18, %v7651_v27  ;;  %v3921_v36 = vpop.f32.mrf.mxu0  ;;  %v7661_v17 = vmul.f32 0.35355338, %v2881_v34 }
 0x546   : > { %v7659_v43 = vmul.f32 0.35355338, %v3921_v36  ;;  %4133 = vmax.xlane.f32.xlu1 %v4132_v5  ;;  %v2883_v45 = vpop.f32.mrf.mxu1 }
 0x547   : > { %v7663_v30 = vmul.f32 0.35355338, %v2883_v45  ;;  %3098 = vmax.xlane.f32.xlu0 %v3097_v21  ;;  %v3925_v60 = vpop.f32.mrf.mxu0 }
 0x548   : > { %v4135_v26 = vmax.f32 %v7655_v55, %v7659_v43  ;;  %v2887_v40 = vpop.f32.mrf.mxu1  ;;  %v7675_v13 = vmul.f32 0.35355338, %v3925_v60 }
 0x549   : > { %v3100_v9 = vmax.f32 %v7661_v17, %v7663_v30  ;;  %v3927_v39 = vpop.f32.mrf.mxu0  ;;  %v7669_v36 = vmul.f32 0.35355338, %v2887_v40 }
 0x54a   : > { %4136 = vmax.xlane.f32.xlu1 %v4135_v26  ;;  %v2889_v49 = vpop.f32.mrf.mxu1  ;;  %v7681_v26 = vmul.f32 0.35355338, %v3927_v39 }
 0x54b   : > { %v7671_v5 = vmul.f32 0.35355338, %v2889_v49  ;;  %3101 = vmax.xlane.f32.xlu0 %v3100_v9  ;;  %v3931_v34 = vpop.f32.mrf.mxu0 }
 0x54c   : > { %v2893_v45 = vpop.f32.mrf.mxu1  ;;  %v7689_v19 = vmul.f32 0.35355338, %v3931_v34  ;;  %v7707_v34 = vmul.f32 0.35355338, %v7549_v57  ;;  %v7725_v57 = vmul.f32 0.35355338, %v7541_v52 }
 0x54d   : > { %v3103_v21 = vmax.f32 %v7669_v36, %v7671_v5  ;;  %v3933_v7 = vpop.f32.mrf.mxu0  ;;  %v7677_v14 = vmul.f32 0.35355338, %v2893_v45 }
 0x54e   : > { %v2895_v22 = vpop.f32.mrf.mxu1  ;;  %v7697_v39 = vmul.f32 0.35355338, %v3933_v7  ;;  %9628 = vst [vmem:[#allocation115_spill] sm:$0xff] %v7707_v34  ;;  %9633 = vst [vmem:[#allocation111_spill] sm:$0xff] %v7725_v57 }
 0x54f   : > { %v7679_v2 = vmul.f32 0.35355338, %v2895_v22  ;;  %3104 = vmax.xlane.f32.xlu0 %v3103_v21  ;;  %v7683_v40 = vpop.f32.mrf.mxu0  ;;  %v4138_v22 = vmax.f32 %v7675_v13, %v7681_v26 }
 0x550   : > { %9623 = vst [vmem:[#allocation85_spill] sm:$0xff] %v7683_v40  ;;  %v2899_v49 = vpop.f32.mrf.mxu1  ;;  %v4141_v7 = vmax.f32 %v7689_v19, %v7697_v39 }
 0x551   : > { %v3106_v9 = vmax.f32 %v7677_v14, %v7679_v2  ;;  %v7687_v6 = vpop.f32.mrf.mxu0  ;;  %v7691_v60 = vmul.f32 0.35355338, %v2899_v49 }
 0x552   : > { %9624 = vst [vmem:[#allocation18_spill] sm:$0xff] %v7687_v6  ;;  %v2901_v10 = vpop.f32.mrf.mxu1 }
 0x553   : > { %v7693_v45 = vmul.f32 0.35355338, %v2901_v10  ;;  %3107 = vmax.xlane.f32.xlu0 %v3106_v9  ;;  %v7699_v21 = vpop.f32.mrf.mxu0 }
 0x554   : > { %9625 = vst [vmem:[#allocation116_spill] sm:$0xff] %v7699_v21  ;;  %v7701_v40 = vpop.f32.mrf.mxu1 }
 0x555   : > { %9626 = vst [vmem:[#allocation89_spill] sm:$0xff] %v7701_v40  ;;  %v3109_v10 = vmax.f32 %v7691_v60, %v7693_v45  ;;  %v7711_v49 = vpop.f32.mrf.mxu0 }
 0x556   : > { %9629 = vst [vmem:[#allocation123_spill] sm:$0xff] %v7711_v49  ;;  %v7713_v6 = vpop.f32.mrf.mxu1  ;;  %v4105_v49 = vmax.f32 %v7704_v32, %v7707_v34  ;;  %v7745_v34 = vmul.f32 0.35355338, %v7533_v51  ;;  %v7750_v32 = vmul.f32 0.35355338, %v7559_v28 }
 0x557   : > { %9630 = vst [vmem:[#allocation112_spill] sm:$0xff] %v7713_v6  ;;  %4139 = vmax.xlane.f32.xlu0 %v4138_v22  ;;  %3110 = vmax.xlane.f32.xlu1 %v3109_v10  ;;  %v7717_v9 = vpop.f32.mrf.mxu0  ;;  %v7730_v6 = vmul.f32 0.35355338, %v7569_v0  ;;  %v7737_v10 = vmul.f32 0.35355338, %v7565_v23  ;;  %v4102_v0 = vmax.f32 %v7722_v33, %v7725_v57 }
 0x558   : > { %v7719_v40 = vpop.f32.mrf.mxu1  ;;  %9640 = vst [vmem:[#allocation104_spill] sm:$0xff] %v7745_v34  ;;  %9641 = vst [vmem:[#allocation114_spill] sm:$0xff] %v7750_v32  ;;  %v7760_v51 = vmul.f32 0.35355338, %v7523_v12  ;;  %v7765_v28 = vmul.f32 0.35355338, %v7525_v62 }
 0x559   : > { %9631 = vst [vmem:[#allocation88_spill] sm:$0xff] %v7719_v40  ;;  %9634 = vst [vmem:[#allocation121_spill] sm:$0xff] %v7730_v6  ;;  %v7732_v21 = vpop.f32.mrf.mxu0  ;;  %v7740_v40 = vmul.f32 0.35355338, %v7529_v44  ;;  %v3076_v23 = vmax.f32 %v7737_v10, %v7730_v6  ;;  %v7757_v44 = vmul.f32 0.35355338, %v7555_v16 }
 0x55a   : > { %9635 = vst [vmem:[#allocation108_spill] sm:$0xff] %v7732_v21  ;;  %v7734_v22 = vpop.f32.mrf.mxu1  ;;  %9637 = vst [vmem:[#allocation118_spill] sm:$0xff] %v7737_v10  ;;  %v7770_v33 = vmul.f32 0.35355338, %v7551_v35  ;;  %v7777_v12 = vmul.f32 0.35355338, %v7547_v37  ;;  %v4096_v35 = vmax.f32 %v7760_v51, %v7765_v28 }
 0x55b   : > { %9636 = vst [vmem:[#allocation86_spill] sm:$0xff] %v7734_v22  ;;  %4142 = vmax.xlane.f32.xlu0 %v4141_v7  ;;  %4106 = vmax.xlane.f32.xlu1 %v4105_v49  ;;  %v3955_v11 = vpop.f32.mrf.mxu0  ;;  %9638 = vst [vmem:[#allocation107_spill] sm:$0xff] %v7740_v40  ;;  %v4099_v57 = vmax.f32 %v7740_v40, %v7745_v34  ;;  %v3073_v16 = vmax.f32 %v7757_v44, %v7750_v32  ;;  %v7786_v40 = vmul.f32 0.35355338, %v7543_v53 }
 0x55c   : > { %v7742_v52 = vpop.f32.mrf.mxu1  ;;  %9643 = vst [vmem:[#allocation113_spill] sm:$0xff] %v7757_v44  ;;  %9644 = vst [vmem:[#allocation100_spill] sm:$0xff] %v7760_v51  ;;  %v7779_v6 = vmul.f32 0.35355338, %v3955_v11  ;;  %v3070_v32 = vmax.f32 %v7777_v12, %v7770_v33  ;;  %v7800_v51 = vmul.f32 0.35355338, %v7535_v47 }
 0x55d   : > { %9639 = vst [vmem:[#allocation117_spill] sm:$0xff] %v7742_v52  ;;  %v3957_v7 = vpop.f32.mrf.mxu0  ;;  %9645 = vst [vmem:[#allocation110_spill] sm:$0xff] %v7765_v28 }
 0x55e   : > { %v7754_v49 = vpop.f32.mrf.mxu1  ;;  %9646 = vst [vmem:[#allocation99_spill] sm:$0xff] %v7770_v33  ;;  %9647 = vst [vmem:[#allocation4_spill] sm:$0xff] %v7777_v12  ;;  %v7781_v62 = vmul.f32 0.35355338, %v3957_v7 }
 0x55f   : > { %9642 = vst [vmem:[#allocation103_spill] sm:$0xff] %v7754_v49  ;;  %3077 = vmax.xlane.f32.xlu0 %v3076_v23  ;;  %4103 = vmax.xlane.f32.xlu1 %v4102_v0  ;;  %v3961_v22 = vpop.f32.mrf.mxu0  ;;  %9648 = vst [vmem:[#allocation109_spill] sm:$0xff] %v7779_v6 }
 0x560   : > { %v7762_v52 = vpop.f32.mrf.mxu1  ;;  %9649 = vst [vmem:[#allocation98_spill] sm:$0xff] %v7781_v62  ;;  %9650 = vst [vmem:[#allocation106_spill] sm:$0xff] %v7786_v40  ;;  %v7795_v11 = vmul.f32 0.35355338, %v3961_v22 }
 0x561   : > { %v3963_v23 = vpop.f32.mrf.mxu0  ;;  %9654 = vst [vmem:[#allocation2_spill] sm:$0xff] %v7800_v51 }
 0x562   : > { %v7774_v0 = vpop.f32.mrf.mxu1  ;;  %9652 = vst [vmem:[#allocation105_spill] sm:$0xff] %v7795_v11  ;;  %v7797_v7 = vmul.f32 0.35355338, %v3963_v23 }
 0x563   : > { %3074 = vmax.xlane.f32.xlu0 %v3073_v16  ;;  %4100 = vmax.xlane.f32.xlu1 %v4099_v57  ;;  %v3967_v10 = vpop.f32.mrf.mxu0  ;;  %v7791_v16 = vmul.f32 0.35355338, %v7539_v46  ;;  %v4153_v57 = vmax.f32 %v7779_v6, %v7781_v62  ;;  %v7805_v46 = vmul.f32 0.35355338, %v7531_v56 }
 0x564   : > { %v2929_v34 = vpop.f32.mrf.mxu1  ;;  %9653 = vst [vmem:[#allocation102_spill] sm:$0xff] %v7797_v7  ;;  %v7807_v49 = vmul.f32 0.35355338, %v3967_v10  ;;  %v4156_v22 = vmax.f32 %v7795_v11, %v7797_v7 }
 0x565   : > { %v3969_v44 = vpop.f32.mrf.mxu0  ;;  %9651 = vst [vmem:[#allocation97_spill] sm:$0xff] %v7791_v16  ;;  %v3067_v33 = vmax.f32 %v7791_v16, %v7786_v40  ;;  %v7811_v23 = vmul.f32 0.35355338, %v2929_v34  ;;  %v3064_v56 = vmax.f32 %v7805_v46, %v7800_v51 }
 0x566   : > { %v2931_v37 = vpop.f32.mrf.mxu1  ;;  %9655 = vst [vmem:[#allocation101_spill] sm:$0xff] %v7807_v49  ;;  %v7815_v47 = vmul.f32 0.35355338, %v3969_v44 }
 0x567   : > { %3071 = vmax.xlane.f32.xlu0 %v3070_v32  ;;  %4097 = vmax.xlane.f32.xlu1 %v4096_v35  ;;  %v3973_v28 = vpop.f32.mrf.mxu0  ;;  %9656 = vst [vmem:[#allocation82_spill] sm:$0xff] %v7811_v23  ;;  %v7813_v35 = vmul.f32 0.35355338, %v2931_v37 }
 0x568   : > { %v2935_v53 = vpop.f32.mrf.mxu1  ;;  %9658 = vst [vmem:[#allocation84_spill] sm:$0xff] %v7815_v47  ;;  %v7819_v10 = vmul.f32 0.35355338, %v3973_v28  ;;  %v4159_v34 = vmax.f32 %v7807_v49, %v7815_v47 }
 0x569   : > { %v3975_v12 = vpop.f32.mrf.mxu0  ;;  %9657 = vst [vmem:[#allocation81_spill] sm:$0xff] %v7813_v35  ;;  %v7827_v44 = vmul.f32 0.35355338, %v2935_v53 }
 0x56a   : > { %v2937_v32 = vpop.f32.mrf.mxu1  ;;  %9659 = vst [vmem:[#allocation83_spill] sm:$0xff] %v7819_v10  ;;  %v7821_v16 = vmul.f32 0.35355338, %v3975_v12 }
 0x56b   : > { %3068 = vmax.xlane.f32.xlu0 %v3067_v33  ;;  %4154 = vmax.xlane.f32.xlu1 %v4153_v57  ;;  %v3979_v62 = vpop.f32.mrf.mxu0  ;;  %v3124_v33 = vmax.f32 %v7811_v23, %v7813_v35  ;;  %9661 = vst [vmem:[#allocation80_spill] sm:$0xff] %v7827_v44  ;;  %v7829_v37 = vmul.f32 0.35355338, %v2937_v32 }
 0x56c   : > { %v2941_v6 = vpop.f32.mrf.mxu1  ;;  %9660 = vst [vmem:[#allocation78_spill] sm:$0xff] %v7821_v16  ;;  %v4162_v28 = vmax.f32 %v7819_v10, %v7821_v16  ;;  %v7833_v12 = vmul.f32 0.35355338, %v3979_v62 }
 0x56d   : > { %v3981_v40 = vpop.f32.mrf.mxu0  ;;  %9662 = vst [vmem:[#allocation77_spill] sm:$0xff] %v7829_v37  ;;  %v3127_v35 = vmax.f32 %v7827_v44, %v7829_v37 }
 0x56e   : > { %v2943_v21 = vpop.f32.mrf.mxu1  ;;  %9663 = vst [vmem:[#allocation74_spill] sm:$0xff] %v7833_v12  ;;  %v7841_v32 = vmul.f32 0.35355338, %v3981_v40 }
 0x56f   : > { %3065 = vmax.xlane.f32.xlu0 %v3064_v56  ;;  %4157 = vmax.xlane.f32.xlu1 %v4156_v22  ;;  %v3985_v57 = vpop.f32.mrf.mxu0  ;;  %v7837_v56 = vmul.f32 0.35355338, %v2941_v6  ;;  %v7839_v53 = vmul.f32 0.35355338, %v2943_v21 }
 0x570   : > { %v2947_v7 = vpop.f32.mrf.mxu1  ;;  %9666 = vst [vmem:[#allocation73_spill] sm:$0xff] %v7841_v32  ;;  %v7843_v49 = vmul.f32 0.35355338, %v3985_v57 }
 0x571   : > { %v3987_v11 = vpop.f32.mrf.mxu0  ;;  %9664 = vst [vmem:[#allocation79_spill] sm:$0xff] %v7837_v56  ;;  %9665 = vst [vmem:[#allocation76_spill] sm:$0xff] %v7839_v53  ;;  %v3130_v10 = vmax.f32 %v7837_v56, %v7839_v53  ;;  %v7851_v6 = vmul.f32 0.35355338, %v2947_v7 }
 0x572   : > { %v2949_v51 = vpop.f32.mrf.mxu1  ;;  %9667 = vst [vmem:[#allocation70_spill] sm:$0xff] %v7843_v49  ;;  %v7845_v16 = vmul.f32 0.35355338, %v3987_v11 }
 0x573   : > { %4160 = vmax.xlane.f32.xlu1 %v4159_v34  ;;  %3125 = vmax.xlane.f32.xlu0 %v3124_v33  ;;  %v3991_v22 = vpop.f32.mrf.mxu0  ;;  %v4165_v33 = vmax.f32 %v7833_v12, %v7841_v32  ;;  %9669 = vst [vmem:[#allocation72_spill] sm:$0xff] %v7851_v6  ;;  %v7853_v40 = vmul.f32 0.35355338, %v2949_v51 }
 0x574   : > { %v2953_v23 = vpop.f32.mrf.mxu1  ;;  %9668 = vst [vmem:[#allocation75_spill] sm:$0xff] %v7845_v16  ;;  %v4168_v11 = vmax.f32 %v7843_v49, %v7845_v16  ;;  %v7857_v57 = vmul.f32 0.35355338, %v3991_v22 }
 0x575   : > { %v3993_v47 = vpop.f32.mrf.mxu0  ;;  %9670 = vst [vmem:[#allocation69_spill] sm:$0xff] %v7853_v40  ;;  %v3133_v53 = vmax.f32 %v7851_v6, %v7853_v40 }
 0x576   : > { %v2955_v62 = vpop.f32.mrf.mxu1  ;;  %9671 = vst [vmem:[#allocation66_spill] sm:$0xff] %v7857_v57  ;;  %v7865_v51 = vmul.f32 0.35355338, %v3993_v47 }
 0x577   : > { %4163 = vmax.xlane.f32.xlu1 %v4162_v28  ;;  %3128 = vmax.xlane.f32.xlu0 %v3127_v35  ;;  %v3997_v21 = vpop.f32.mrf.mxu0  ;;  %v7861_v28 = vmul.f32 0.35355338, %v2953_v23  ;;  %v7863_v7 = vmul.f32 0.35355338, %v2955_v62 }
 0x578   : > { %v2959_v34 = vpop.f32.mrf.mxu1  ;;  %9674 = vst [vmem:[#allocation65_spill] sm:$0xff] %v7865_v51  ;;  %v7867_v12 = vmul.f32 0.35355338, %v3997_v21 }
 0x579   : > { %v3999_v37 = vpop.f32.mrf.mxu0  ;;  %9672 = vst [vmem:[#allocation71_spill] sm:$0xff] %v7861_v28  ;;  %9673 = vst [vmem:[#allocation68_spill] sm:$0xff] %v7863_v7  ;;  %v3136_v49 = vmax.f32 %v7861_v28, %v7863_v7  ;;  %v7875_v23 = vmul.f32 0.35355338, %v2959_v34 }
 0x57a   : > { %v2961_v44 = vpop.f32.mrf.mxu1  ;;  %9675 = vst [vmem:[#allocation62_spill] sm:$0xff] %v7867_v12  ;;  %v7869_v16 = vmul.f32 0.35355338, %v3999_v37 }
 0x57b   : > { %4166 = vmax.xlane.f32.xlu1 %v4165_v33  ;;  %3131 = vmax.xlane.f32.xlu0 %v3130_v10  ;;  %v4003_v35 = vpop.f32.mrf.mxu0  ;;  %v4171_v10 = vmax.f32 %v7857_v57, %v7865_v51  ;;  %9677 = vst [vmem:[#allocation64_spill] sm:$0xff] %v7875_v23  ;;  %v7877_v47 = vmul.f32 0.35355338, %v2961_v44 }
 0x57c   : > { %v2965_v56 = vpop.f32.mrf.mxu1  ;;  %9676 = vst [vmem:[#allocation67_spill] sm:$0xff] %v7869_v16  ;;  %v4174_v37 = vmax.f32 %v7867_v12, %v7869_v16  ;;  %v7881_v21 = vmul.f32 0.35355338, %v4003_v35 }
 0x57d   : > { %v4005_v32 = vpop.f32.mrf.mxu0  ;;  %9678 = vst [vmem:[#allocation61_spill] sm:$0xff] %v7877_v47  ;;  %v3139_v7 = vmax.f32 %v7875_v23, %v7877_v47 }
 0x57e   : > { %v2967_v22 = vpop.f32.mrf.mxu1  ;;  %9679 = vst [vmem:[#allocation58_spill] sm:$0xff] %v7881_v21  ;;  %v7889_v44 = vmul.f32 0.35355338, %v4005_v32 }
 0x57f   : > { %4169 = vmax.xlane.f32.xlu1 %v4168_v11  ;;  %3134 = vmax.xlane.f32.xlu0 %v3133_v53  ;;  %v4009_v62 = vpop.f32.mrf.mxu0  ;;  %v7885_v11 = vmul.f32 0.35355338, %v2965_v56  ;;  %v7887_v53 = vmul.f32 0.35355338, %v2967_v22 }
 0x580   : > { %v2971_v33 = vpop.f32.mrf.mxu1  ;;  %9682 = vst [vmem:[#allocation57_spill] sm:$0xff] %v7889_v44  ;;  %v7891_v57 = vmul.f32 0.35355338, %v4009_v62 }
 0x581   : > { %v4011_v40 = vpop.f32.mrf.mxu0  ;;  %9680 = vst [vmem:[#allocation63_spill] sm:$0xff] %v7885_v11  ;;  %9681 = vst [vmem:[#allocation60_spill] sm:$0xff] %v7887_v53  ;;  %v3142_v12 = vmax.f32 %v7885_v11, %v7887_v53  ;;  %v7899_v56 = vmul.f32 0.35355338, %v2971_v33 }
 0x582   : > { %v2973_v6 = vpop.f32.mrf.mxu1  ;;  %9683 = vst [vmem:[#allocation54_spill] sm:$0xff] %v7891_v57  ;;  %v7893_v16 = vmul.f32 0.35355338, %v4011_v40 }
 0x583   : > { %4172 = vmax.xlane.f32.xlu1 %v4171_v10  ;;  %3137 = vmax.xlane.f32.xlu0 %v3136_v49  ;;  %v4015_v34 = vpop.f32.mrf.mxu0  ;;  %v4177_v49 = vmax.f32 %v7881_v21, %v7889_v44  ;;  %9685 = vst [vmem:[#allocation56_spill] sm:$0xff] %v7899_v56  ;;  %v7901_v32 = vmul.f32 0.35355338, %v2973_v6 }
 0x584   : > { %v2977_v28 = vpop.f32.mrf.mxu1  ;;  %9684 = vst [vmem:[#allocation59_spill] sm:$0xff] %v7893_v16  ;;  %v4180_v40 = vmax.f32 %v7891_v57, %v7893_v16  ;;  %v7905_v62 = vmul.f32 0.35355338, %v4015_v34 }
 0x585   : > { %v4017_v51 = vpop.f32.mrf.mxu0  ;;  %9686 = vst [vmem:[#allocation53_spill] sm:$0xff] %v7901_v32  ;;  %v3145_v53 = vmax.f32 %v7899_v56, %v7901_v32 }
 0x586   : > { %v2979_v35 = vpop.f32.mrf.mxu1  ;;  %9687 = vst [vmem:[#allocation50_spill] sm:$0xff] %v7905_v62  ;;  %v7913_v6 = vmul.f32 0.35355338, %v4017_v51 }
 0x587   : > { %4175 = vmax.xlane.f32.xlu1 %v4174_v37  ;;  %3140 = vmax.xlane.f32.xlu0 %v3139_v7  ;;  %v4021_v22 = vpop.f32.mrf.mxu0  ;;  %v7909_v37 = vmul.f32 0.35355338, %v2977_v28  ;;  %v7911_v7 = vmul.f32 0.35355338, %v2979_v35 }
 0x588   : > { %v2983_v10 = vpop.f32.mrf.mxu1  ;;  %9690 = vst [vmem:[#allocation49_spill] sm:$0xff] %v7913_v6  ;;  %v7915_v44 = vmul.f32 0.35355338, %v4021_v22 }
 0x589   : > { %v4023_v47 = vpop.f32.mrf.mxu0  ;;  %9688 = vst [vmem:[#allocation55_spill] sm:$0xff] %v7909_v37  ;;  %9689 = vst [vmem:[#allocation52_spill] sm:$0xff] %v7911_v7  ;;  %v3148_v16 = vmax.f32 %v7909_v37, %v7911_v7 }
 0x58a   : > { %v2985_v23 = vpop.f32.mrf.mxu1  ;;  %9691 = vst [vmem:[#allocation46_spill] sm:$0xff] %v7915_v44  ;;  %v7917_v21 = vmul.f32 0.35355338, %v4023_v47 }
 0x58b   : > { %4178 = vmax.xlane.f32.xlu1 %v4177_v49  ;;  %3143 = vmax.xlane.f32.xlu0 %v3142_v12  ;;  %v4027_v11 = vpop.f32.mrf.mxu0  ;;  %v4183_v49 = vmax.f32 %v7905_v62, %v7913_v6  ;;  %v7923_v12 = vmul.f32 0.35355338, %v2983_v10  ;;  %v7925_v28 = vmul.f32 0.35355338, %v2985_v23 }
 0x58c   : > { %v2989_v33 = vpop.f32.mrf.mxu1  ;;  %9692 = vst [vmem:[#allocation51_spill] sm:$0xff] %v7917_v21  ;;  %v4186_v22 = vmax.f32 %v7915_v44, %v7917_v21  ;;  %v7929_v47 = vmul.f32 0.35355338, %v4027_v11 }
 0x58d   : > { %9693 = vst [vmem:[#allocation48_spill] sm:$0xff] %v7923_v12  ;;  %9694 = vst [vmem:[#allocation45_spill] sm:$0xff] %v7925_v28  ;;  %v4029_v51 = vpop.f32.mrf.mxu0  ;;  %v3151_v32 = vmax.f32 %v7923_v12, %v7925_v28  ;;  %v7933_v56 = vmul.f32 0.35355338, %v2989_v33 }
 0x58e   : > { %v2991_v34 = vpop.f32.mrf.mxu1  ;;  %9695 = vst [vmem:[#allocation42_spill] sm:$0xff] %v7929_v47 }
 0x58f   : > { %4181 = vmax.xlane.f32.xlu1 %v4180_v40  ;;  %3146 = vmax.xlane.f32.xlu0 %v3145_v53  ;;  %9696 = vst [vmem:[#allocation47_spill] sm:$0xff] %v7933_v56  ;;  %v7935_v40 = vmul.f32 0.35355338, %v2991_v34  ;;  %v7937_v53 = vmul.f32 0.35355338, %v4029_v51 }
 0x590   : > { %v2995_v35 = vpop.f32.mrf.mxu1 }
 0x591   : > { %9697 = vst [vmem:[#allocation44_spill] sm:$0xff] %v7935_v40  ;;  %9698 = vst [vmem:[#allocation35_spill] sm:$0xff] %v7937_v53  ;;  %v3154_v10 = vmax.f32 %v7933_v56, %v7935_v40  ;;  %v4189_v7 = vmax.f32 %v7929_v47, %v7937_v53  ;;  %v7943_v11 = vmul.f32 0.35355338, %v2995_v35 }
 0x592   : > { %v2997_v23 = vpop.f32.mrf.mxu1 }
 0x593   : > { %4184 = vmax.xlane.f32.xlu1 %v4183_v49  ;;  %3149 = vmax.xlane.f32.xlu0 %v3148_v16  ;;  %9699 = vst [vmem:[#allocation30_spill] sm:$0xff] %v7943_v11  ;;  %v7945_v37 = vmul.f32 0.35355338, %v2997_v23 }
 0x595   : > { %9700 = vst [vmem:[#allocation43_spill] sm:$0xff] %v7945_v37  ;;  %v3157_v16 = vmax.f32 %v7943_v11, %v7945_v37 }
 0x597   : > { %4187 = vmax.xlane.f32.xlu1 %v4186_v22  ;;  %3152 = vmax.xlane.f32.xlu0 %v3151_v32 }
 0x59b   : > { %4190 = vmax.xlane.f32.xlu1 %v4189_v7  ;;  %3155 = vmax.xlane.f32.xlu0 %v3154_v10 }
 0x59f   : > { %3158 = vmax.xlane.f32.xlu0 %v3157_v16 }
 0x5af   : > { %v7949_v33 = vpop.xlane.xlu1 %4109 }
 0x5b3   : > { %v7951_v34 = vpop.xlane.xlu1 %4112 }
 0x5b7   : > { %v7953_v49 = vpop.xlane.xlu1 %4115 }
 0x5b8   : > { %v7955_v51 = vpop.xlane.xlu0 %3080 }
 0x5bb   : > { %v7957_v22 = vpop.xlane.xlu1 %4118 }
 0x5bc   : > { %v7959_v32 = vpop.xlane.xlu0 %3083 }
 0x5bf   : > { %v7961_v35 = vpop.xlane.xlu1 %4121 }
 0x5c0   : > { %v7963_v23 = vpop.xlane.xlu0 %3086 }
 0x5c3   : > { %v4125_v37 = vpop.xlane.xlu1 %4124 }
 0x5c4   : > { %v7965_v7 = vpop.xlane.xlu0 %3089  ;;  %v4210_v10 = vsub.f32 %v7607_v31, %v4125_v37 }
 0x5c6   : > { %v4292_v40 = vmul.f32 1.442695, %v4210_v10 }
 0x5c7   : > { %v4128_v16 = vpop.xlane.xlu1 %4127 }
 0x5c8   : > { %v4212_v11 = vsub.f32 %v7619_v8, %v4128_v16  ;;  %v4213_v28 = vsub.f32 %v7623_v4, %v4128_v16  ;;  %v7970_v53 = vpop.xlane.xlu0 %3092 }
 0x5ca   : > { %v4296_v12 = vmul.f32 1.442695, %v4212_v11  ;;  %v4298_v47 = vmul.f32 1.442695, %v4213_v28 }
 0x5cb   : > { %v4131_v56 = vpop.xlane.xlu1 %4130 }
 0x5cc   : > { %5509 = vpow2.f32 %v4296_v12  ;;  %v4214_v21 = vsub.f32 %v7631_v61, %v4131_v56  ;;  %v4215_v44 = vsub.f32 %v7635_v59, %v4131_v56  ;;  %v3096_v6 = vpop.xlane.xlu0 %3095 }
 0x5cd   : > { %5511 = vpow2.f32 %v4298_v47  ;;  %v3180_v31 = vsub.f32 %v7637_v54, %v3096_v6  ;;  %v3181_v62 = vsub.f32 %v7639_v50, %v3096_v6 }
 0x5ce   : > { %v4300_v8 = vmul.f32 1.442695, %v4214_v21  ;;  %v4302_v57 = vmul.f32 1.442695, %v4215_v44  ;;  %5513 = vpow2.f32 %v4292_v40 }
 0x5cf   : > { %v3264_v4 = vmul.f32 1.442695, %v3180_v31  ;;  %v3266_v16 = vmul.f32 1.442695, %v3181_v62  ;;  %v4134_v11 = vpop.xlane.xlu1 %4133  ;;  %v4211_v62 = vsub.f32 %v7611_v58, %v4125_v37 }
 0x5d0   : > { %5515 = vpow2.f32 %v4300_v8  ;;  %v4216_v28 = vsub.f32 %v7643_v38, %v4134_v11  ;;  %v4217_v12 = vsub.f32 %v7647_v41, %v4134_v11  ;;  %v3099_v61 = vpop.xlane.xlu0 %3098 }
 0x5d1   : > { %5517 = vpow2.f32 %v4302_v57  ;;  %v3182_v59 = vsub.f32 %v7649_v18, %v3099_v61  ;;  %v3183_v56 = vsub.f32 %v7651_v27, %v3099_v61  ;;  %v4294_v8 = vmul.f32 1.442695, %v4211_v62 }
 0x5d2   : > { %5519 = vpow2.f32 %v3264_v4  ;;  %v4304_v54 = vmul.f32 1.442695, %v4216_v28  ;;  %v4306_v50 = vmul.f32 1.442695, %v4217_v12 }
 0x5d3   : > { %5521 = vpow2.f32 %v3266_v16  ;;  %v3268_v21 = vmul.f32 1.442695, %v3182_v59  ;;  %v3270_v44 = vmul.f32 1.442695, %v3183_v56  ;;  %v4137_v6 = vpop.xlane.xlu1 %4136 }
 0x5d4   : > { %5523 = vpow2.f32 %v4304_v54  ;;  %v4218_v38 = vsub.f32 %v7655_v55, %v4137_v6  ;;  %v4219_v41 = vsub.f32 %v7659_v43, %v4137_v6  ;;  %v3102_v47 = vpop.xlane.xlu0 %3101 }
 0x5d5   : > { %5525 = vpow2.f32 %v4306_v50  ;;  %v3184_v18 = vsub.f32 %v7661_v17, %v3102_v47  ;;  %v3185_v27 = vsub.f32 %v7663_v30, %v3102_v47 }
 0x5d6   : > { %5527 = vpow2.f32 %v3268_v21  ;;  %v4308_v57 = vmul.f32 1.442695, %v4218_v38  ;;  %v4310_v40 = vmul.f32 1.442695, %v4219_v41 }
 0x5d7   : > { %5529 = vpow2.f32 %v3270_v44  ;;  %v3272_v10 = vmul.f32 1.442695, %v3184_v18  ;;  %v3274_v31 = vmul.f32 1.442695, %v3185_v27 }
 0x5d8   : > { %5531 = vpow2.f32 %v4308_v57  ;;  %v3105_v58 = vpop.xlane.xlu0 %3104 }
 0x5d9   : > { %v7985_v37 = vpop.eup %5509  ;;  %5533 = vpow2.f32 %v4310_v40  ;;  %v3186_v55 = vsub.f32 %v7669_v36, %v3105_v58  ;;  %v3187_v43 = vsub.f32 %v7671_v5, %v3105_v58 }
 0x5da   : > { %9701 = vst [vmem:[#allocation34_spill] sm:$0xff] %v7985_v37  ;;  %v7989_v4 = vpop.eup %5511  ;;  %5535 = vpow2.f32 %v3272_v10 }
 0x5db   : > { %9702 = vst [vmem:[#allocation33_spill] sm:$0xff] %v7989_v4  ;;  %5537 = vpow2.f32 %v3274_v31  ;;  %v3276_v30 = vmul.f32 1.442695, %v3186_v55  ;;  %v3278_v17 = vmul.f32 1.442695, %v3187_v43  ;;  %v4414_v16 = vadd.f32 %v7989_v4, %v7985_v37  ;;  %v7993_v11 = vpop.eup %5513  ;;  %v9728_v37 = vld [vmem:[#allocation20_spill] sm:$0xff] }
 0x5dc   : > { %9703 = vst [vmem:[#allocation27_spill] sm:$0xff] %v7993_v11  ;;  %5539 = vpow2.f32 %v4294_v8  ;;  %v3108_v28 = vpop.xlane.xlu0 %3107  ;;  %v9729_v4 = vld [vmem:[#allocation103_spill] sm:$0xff] }
 0x5dd   : > { %v7995_v12 = vpop.eup %5515  ;;  %5541 = vpow2.f32 %v3276_v30  ;;  %4415 = vadd.xlane.f32.xlu1 %v4414_v16  ;;  %v3188_v36 = vsub.f32 %v7677_v14, %v3108_v28  ;;  %v3189_v5 = vsub.f32 %v7679_v2, %v3108_v28 }
 0x5de   : > { %9704 = vst [vmem:[#allocation32_spill] sm:$0xff] %v7995_v12  ;;  %v7999_v61 = vpop.eup %5517  ;;  %5543 = vpow2.f32 %v3278_v17  ;;  %v3179_v17 = vsub.f32 %v7627_v20, %v7970_v53 }
 0x5df   : > { %9705 = vst [vmem:[#allocation14_spill] sm:$0xff] %v7999_v61  ;;  %v8001_v59 = vpop.eup %5519  ;;  %v3280_v56 = vmul.f32 1.442695, %v3188_v36  ;;  %v3282_v54 = vmul.f32 1.442695, %v3189_v5  ;;  %v4417_v50 = vadd.f32 %v7999_v61, %v7995_v12 }
 0x5e0   : > { %9706 = vst [vmem:[#allocation31_spill] sm:$0xff] %v8001_v59  ;;  %v8005_v21 = vpop.eup %5521  ;;  %v4140_v44 = vpop.xlane.xlu0 %4139 }
 0x5e1   : > { %9707 = vst [vmem:[#allocation28_spill] sm:$0xff] %v8005_v21  ;;  %v3111_v6 = vpop.xlane.xlu1 %3110  ;;  %v8007_v62 = vpop.eup %5523  ;;  %5545 = vpow2.f32 %v3280_v56  ;;  %4418 = vadd.xlane.f32.xlu1 %v4417_v50  ;;  %v4220_v2 = vsub.f32 %v7675_v13, %v4140_v44  ;;  %v4221_v14 = vsub.f32 %v7681_v26, %v4140_v44  ;;  %v3382_v18 = vadd.f32 %v8005_v21, %v8001_v59 }
 0x5e2   : > { %9708 = vst [vmem:[#allocation11_spill] sm:$0xff] %v8007_v62  ;;  %v3190_v38 = vsub.f32 %v7691_v60, %v3111_v6  ;;  %v8012_v41 = vpop.eup %5525  ;;  %5547 = vpow2.f32 %v3282_v54  ;;  %v3191_v47 = vsub.f32 %v7693_v45, %v3111_v6  ;;  %v3178_v45 = vsub.f32 %v7625_v29, %v7970_v53 }
 0x5e3   : > { %9709 = vst [vmem:[#allocation23_spill] sm:$0xff] %v8012_v41  ;;  %v8017_v27 = vpop.eup %5527  ;;  %v4312_v57 = vmul.f32 1.442695, %v4220_v2  ;;  %v4314_v40 = vmul.f32 1.442695, %v4221_v14  ;;  %v4420_v13 = vadd.f32 %v8012_v41, %v8007_v62  ;;  %3383 = vadd.xlane.f32.xlu0 %v3382_v18  ;;  %v4208_v29 = vsub.f32 %v7595_v25, %v7961_v35 }
 0x5e4   : > { %9710 = vst [vmem:[#allocation29_spill] sm:$0xff] %v8017_v27  ;;  %v3284_v10 = vmul.f32 1.442695, %v3190_v38  ;;  %v8021_v31 = vpop.eup %5529  ;;  %v3286_v26 = vmul.f32 1.442695, %v3191_v47  ;;  %v4143_v60 = vpop.xlane.xlu0 %4142  ;;  %v3172_v59 = vsub.f32 %v9728_v37, %v7959_v32  ;;  %v9733_v37 = vld [vmem:[#allocation39_spill] sm:$0xff] }
 0x5e5   : > { %9711 = vst [vmem:[#allocation26_spill] sm:$0xff] %v8021_v31  ;;  %v8023_v8 = vpop.xlane.xlu1 %4106  ;;  %v8025_v58 = vpop.eup %5531  ;;  %5549 = vpow2.f32 %v4312_v57  ;;  %4421 = vadd.xlane.f32.xlu1 %v4420_v13  ;;  %v4222_v55 = vsub.f32 %v7689_v19, %v4143_v60  ;;  %v4223_v43 = vsub.f32 %v7697_v39, %v4143_v60  ;;  %v3385_v16 = vadd.f32 %v8021_v31, %v8017_v27 }
 0x5e6   : > { %9712 = vst [vmem:[#allocation5_spill] sm:$0xff] %v8025_v58  ;;  %v8031_v30 = vpop.eup %5533  ;;  %5551 = vpow2.f32 %v4314_v40  ;;  %v4209_v39 = vsub.f32 %v7599_v24, %v7961_v35  ;;  %v3260_v25 = vmul.f32 1.442695, %v3178_v45  ;;  %v3262_v44 = vmul.f32 1.442695, %v3179_v17 }
 0x5e7   : > { %v8037_v28 = vpop.eup %5535  ;;  %5553 = vpow2.f32 %v3284_v10  ;;  %v4316_v36 = vmul.f32 1.442695, %v4222_v55  ;;  %v4318_v5 = vmul.f32 1.442695, %v4223_v43  ;;  %3386 = vadd.xlane.f32.xlu0 %v3385_v16  ;;  %v4423_v20 = vadd.f32 %v8031_v30, %v8025_v58 }
 0x5e8   : > { %9713 = vst [vmem:[#allocation24_spill] sm:$0xff] %v8037_v28  ;;  %v8041_v19 = vpop.eup %5537  ;;  %5555 = vpow2.f32 %v3286_v26  ;;  %v8047_v53 = vpop.xlane.xlu0 %3077  ;;  %v4288_v6 = vmul.f32 1.442695, %v4208_v29  ;;  %v4290_v2 = vmul.f32 1.442695, %v4209_v39  ;;  %v3176_v57 = vsub.f32 %v7613_v48, %v7965_v7 }
 0x5e9   : > { %9714 = vst [vmem:[#allocation92_spill] sm:$0xff] %v8041_v19  ;;  %v8049_v56 = vpop.xlane.xlu1 %4103  ;;  %v8051_v54 = vpop.eup %5539  ;;  %5557 = vpow2.f32 %v4316_v36  ;;  %4424 = vadd.xlane.f32.xlu1 %v4423_v20  ;;  %v3388_v24 = vadd.f32 %v8041_v19, %v8037_v28  ;;  %v3177_v10 = vsub.f32 %v7615_v15, %v7965_v7  ;;  %v4206_v26 = vsub.f32 %v7583_v1, %v7957_v22 }
 0x5ea   : > { %9715 = vst [vmem:[#allocation25_spill] sm:$0xff] %v8051_v54  ;;  %v8053_v50 = vpop.eup %5541  ;;  %5559 = vpow2.f32 %v4318_v5  ;;  %v4411_v14 = vadd.f32 %v8051_v54, %v7993_v11  ;;  %v4207_v60 = vsub.f32 %v7587_v63, %v7957_v22  ;;  %v3256_v7 = vmul.f32 1.442695, %v3176_v57  ;;  %v9719_v57 = vld [vmem:[#allocation19_spill] sm:$0xff]  ;;  %v9726_v11 = vld [vmem:[#allocation116_spill] sm:$0xff] }
 0x5eb   : > { %9716 = vst [vmem:[#allocation22_spill] sm:$0xff] %v8053_v50  ;;  %v8057_v35 = vpop.eup %5543  ;;  %3389 = vadd.xlane.f32.xlu0 %v3388_v24  ;;  %5561 = vpow2.f32 %v3260_v25  ;;  %v3258_v43 = vmul.f32 1.442695, %v3177_v10  ;;  %v4284_v1 = vmul.f32 1.442695, %v4206_v26  ;;  %v3174_v20 = vsub.f32 %v7601_v42, %v7963_v23  ;;  %v9717_v42 = vld [vmem:[#allocation87_spill] sm:$0xff] }
 0x5ec   : > { %v8061_v38 = vpop.xlane.xlu0 %3074  ;;  %v3391_v18 = vadd.f32 %v8057_v35, %v8053_v50  ;;  %5563 = vpow2.f32 %v3262_v44  ;;  %v4286_v29 = vmul.f32 1.442695, %v4207_v60  ;;  %v8100_v39 = vmul.f32 0.35355338, %v7762_v52  ;;  %v9766_v50 = vld [vmem:[#allocation100_spill] sm:$0xff] }
 0x5ed   : > { %v8063_v47 = vpop.xlane.xlu1 %4100  ;;  %4412 = vadd.xlane.f32.xlu1 %v4411_v14  ;;  %5565 = vpow2.f32 %v4288_v6  ;;  %v8107_v44 = vmul.f32 0.35355338, %v7774_v0  ;;  %v3175_v24 = vsub.f32 %v7603_v3, %v7963_v23  ;;  %v8116_v52 = vmul.f32 0.35355338, %v7717_v9 }
 0x5ee   : > { %v8069_v40 = vpop.eup %5545  ;;  %5567 = vpow2.f32 %v4290_v2  ;;  %v4204_v14 = vsub.f32 %v9717_v42, %v7953_v49  ;;  %v4205_v3 = vsub.f32 %v9719_v57, %v7953_v49  ;;  %v3252_v26 = vmul.f32 1.442695, %v3174_v20  ;;  %v9722_v49 = vld [vmem:[#allocation36_spill] sm:$0xff]  ;;  %v9724_v20 = vld [vmem:[#allocation37_spill] sm:$0xff] }
 0x5ef   : > { %v8073_v13 = vpop.eup %5547  ;;  %3392 = vadd.xlane.f32.xlu0 %v3391_v18  ;;  %5569 = vpow2.f32 %v3256_v7  ;;  %v9718_v18 = vld [vmem:[#allocation108_spill] sm:$0xff]  ;;  %v3254_v7 = vmul.f32 1.442695, %v3175_v24  ;;  %v4203_v42 = vsub.f32 %v9724_v20, %v7951_v34  ;;  %v8152_v54 = vmul.f32 0.35355338, %v9726_v11  ;;  %v9731_v11 = vld [vmem:[#allocation123_spill] sm:$0xff] }
 0x5f0   : > { %v8079_v48 = vpop.xlane.xlu0 %3071  ;;  %v3394_v15 = vadd.f32 %v8073_v13, %v8069_v40  ;;  %5571 = vpow2.f32 %v3258_v43  ;;  %v8121_v0 = vmul.f32 0.35355338, %v9718_v18  ;;  %v4282_v18 = vmul.f32 1.442695, %v4205_v3  ;;  %v9730_v3 = vld [vmem:[#allocation119_spill] sm:$0xff] }
 0x5f1   : > { %v8081_v45 = vpop.xlane.xlu1 %4097  ;;  %5573 = vpow2.f32 %v4284_v1  ;;  %v4202_v1 = vsub.f32 %v9722_v49, %v7951_v34  ;;  %v8160_v34 = vmul.f32 0.35355338, %v9729_v4  ;;  %v8167_v12 = vmul.f32 0.35355338, %v9731_v11 }
 0x5f2   : > { %v8085_v55 = vpop.eup %5549  ;;  %5575 = vpow2.f32 %v4286_v29  ;;  %v4280_v29 = vmul.f32 1.442695, %v4204_v14  ;;  %v9727_v14 = vld [vmem:[#allocation117_spill] sm:$0xff]  ;;  %v4201_v4 = vsub.f32 %v9733_v37, %v7949_v33 }
 0x5f3   : > { %v8087_v17 = vpop.eup %5551  ;;  %3395 = vadd.xlane.f32.xlu0 %v3394_v15  ;;  %v3121_v15 = vmax.f32 %v8100_v39, %v8107_v44  ;;  %v8155_v49 = vmul.f32 0.35355338, %v9727_v14  ;;  %5577 = vpow2.f32 %v3252_v26  ;;  %v9732_v14 = vld [vmem:[#allocation38_spill] sm:$0xff]  ;;  %v4276_v27 = vmul.f32 1.442695, %v4202_v1  ;;  %v9736_v1 = vld [vmem:[#allocation85_spill] sm:$0xff] }
 0x5f4   : > { %v8089_v16 = vpop.eup %5553  ;;  %v8091_v63 = vpop.xlane.xlu0 %3068  ;;  %v4426_v36 = vadd.f32 %v8087_v17, %v8085_v55  ;;  %5579 = vpow2.f32 %v3254_v7  ;;  %v4200_v21 = vsub.f32 %v9732_v14, %v7949_v33  ;;  %v4278_v26 = vmul.f32 1.442695, %v4203_v42  ;;  %v9738_v42 = vld [vmem:[#allocation90_spill] sm:$0xff] }
 0x5f5   : > { %v8093_v22 = vpop.xlane.xlu1 %4154  ;;  %v8097_v5 = vpop.eup %5555  ;;  %5581 = vpow2.f32 %v4280_v29  ;;  %v8184_v29 = vmul.f32 0.35355338, %v9736_v1  ;;  %v3118_v33 = vmax.f32 %v8155_v49, %v8160_v34  ;;  %v4274_v62 = vmul.f32 1.442695, %v4201_v4 }
 0x5f6   : > { %v8104_v25 = vpop.eup %5557  ;;  %4427 = vadd.xlane.f32.xlu1 %v4426_v36  ;;  %v3397_v6 = vadd.f32 %v8097_v5, %v8089_v16  ;;  %5583 = vpow2.f32 %v4282_v18  ;;  %v3171_v18 = vsub.f32 %v9738_v42, %v7955_v51 }
 0x5f7   : > { %v8113_v2 = vpop.eup %5559  ;;  %9737 = vst [vmem:[#allocation93_spill] sm:$0xff] %v8184_v29  ;;  %5585 = vpow2.f32 %v4276_v27  ;;  %v9745_v27 = vld [vmem:[#allocation86_spill] sm:$0xff] }
 0x5f8   : > { %3398 = vadd.xlane.f32.xlu0 %v3397_v6  ;;  %v8125_v23 = vpop.xlane.xlu0 %3065  ;;  %v4429_v9 = vadd.f32 %v8113_v2, %v8104_v25  ;;  %v8131_v60 = vpop.eup %5561  ;;  %v4150_v6 = vmax.f32 %v8116_v52, %v8121_v0  ;;  %5587 = vpow2.f32 %v4278_v26  ;;  %v8210_v31 = vmul.f32 0.35355338, %v9745_v27  ;;  %v9747_v26 = vld [vmem:[#allocation121_spill] sm:$0xff] }
 0x5f9   : > { %v8127_v10 = vpop.xlane.xlu1 %4157  ;;  %9720 = vst [vmem:[#allocation91_spill] sm:$0xff] %v8131_v60  ;;  %v8135_v43 = vpop.eup %5563  ;;  %v3246_v4 = vmul.f32 1.442695, %v3171_v18  ;;  %v9751_v18 = vld [vmem:[#allocation111_spill] sm:$0xff] }
 0x5fa   : > { %4430 = vadd.xlane.f32.xlu1 %v4429_v9  ;;  %9721 = vst [vmem:[#allocation3_spill] sm:$0xff] %v8135_v43  ;;  %v8139_v36 = vpop.eup %5565  ;;  %v3379_v20 = vadd.f32 %v8135_v43, %v8131_v60  ;;  %v3248_v60 = vmul.f32 1.442695, %v3172_v59  ;;  %v9740_v59 = vld [vmem:[#allocation124_spill] sm:$0xff] }
 0x5fb   : > { %9723 = vst [vmem:[#allocation21_spill] sm:$0xff] %v8139_v36  ;;  %v8149_v9 = vpop.eup %5567  ;;  %v9742_v43 = vld [vmem:[#allocation88_spill] sm:$0xff] }
 0x5fc   : > { %3122 = vmax.xlane.f32.xlu0 %v3121_v15  ;;  %v8145_v57 = vpop.xlane.xlu0 %3125  ;;  %9725 = vst [vmem:[#allocation94_spill] sm:$0xff] %v8149_v9  ;;  %v3173_v15 = vsub.f32 %v9730_v3, %v7959_v32  ;;  %v9734_v3 = vld [vmem:[#allocation120_spill] sm:$0xff]  ;;  %v8181_v14 = vpop.eup %5569  ;;  %v8199_v61 = vmul.f32 0.35355338, %v9742_v43  ;;  %5589 = vpow2.f32 %v3248_v60  ;;  %v9746_v43 = vld [vmem:[#allocation118_spill] sm:$0xff] }
 0x5fd   : > { %v8147_v24 = vpop.xlane.xlu1 %4160  ;;  %v3170_v11 = vsub.f32 %v9734_v3, %v7955_v51  ;;  %9735 = vst [vmem:[#allocation7_spill] sm:$0xff] %v8181_v14  ;;  %v8190_v37 = vpop.eup %5571  ;;  %v4272_v3 = vmul.f32 1.442695, %v4200_v21  ;;  %v9743_v51 = vld [vmem:[#allocation115_spill] sm:$0xff]  ;;  %v3168_v28 = vsub.f32 %v9746_v43, %v8047_v53 }
 0x5fe   : > { %4151 = vmax.xlane.f32.xlu1 %v4150_v6  ;;  %v4408_v6 = vadd.f32 %v8149_v9, %v8139_v36  ;;  %9739 = vst [vmem:[#allocation10_spill] sm:$0xff] %v8190_v37  ;;  %v4147_v36 = vmax.f32 %v8152_v54, %v8167_v12  ;;  %v4198_v9 = vsub.f32 %v9740_v59, %v8023_v8  ;;  %v8196_v1 = vpop.eup %5573 }
 0x5ff   : > { %9741 = vst [vmem:[#allocation9_spill] sm:$0xff] %v8196_v1  ;;  %v8207_v21 = vpop.eup %5575  ;;  %v3244_v59 = vmul.f32 1.442695, %v3170_v11  ;;  %v9750_v11 = vld [vmem:[#allocation122_spill] sm:$0xff] }
 0x600   : > { %3380 = vadd.xlane.f32.xlu0 %v3379_v20  ;;  %v8173_v32 = vpop.xlane.xlu0 %3128  ;;  %v3250_v20 = vmul.f32 1.442695, %v3173_v15  ;;  %v4199_v15 = vsub.f32 %v9743_v51, %v8023_v8  ;;  %9744 = vst [vmem:[#allocation6_spill] sm:$0xff] %v8207_v21  ;;  %v3169_v8 = vsub.f32 %v9747_v26, %v8047_v53  ;;  %v9748_v51 = vld [vmem:[#allocation18_spill] sm:$0xff]  ;;  %v4268_v27 = vmul.f32 1.442695, %v4198_v9 }
 0x601   : > { %v8175_v7 = vpop.xlane.xlu1 %4163  ;;  %v8219_v41 = vmul.f32 0.35355338, %v9748_v51  ;;  %v4196_v60 = vsub.f32 %v9750_v11, %v8049_v56  ;;  %v3240_v26 = vmul.f32 1.442695, %v3168_v28  ;;  %v9752_v9 = vld [vmem:[#allocation113_spill] sm:$0xff]  ;;  %v8233_v51 = vpop.eup %5577 }
 0x602   : > { %4409 = vadd.xlane.f32.xlu1 %v4408_v6  ;;  %5591 = vpow2.f32 %v3250_v20  ;;  %v4270_v58 = vmul.f32 1.442695, %v4199_v15  ;;  %v4197_v20 = vsub.f32 %v9751_v18, %v8049_v56  ;;  %9753 = vst [vmem:[#allocation8_spill] sm:$0xff] %v8233_v51  ;;  %v3242_v56 = vmul.f32 1.442695, %v3169_v8  ;;  %v9754_v15 = vld [vmem:[#allocation114_spill] sm:$0xff]  ;;  %v8239_v11 = vpop.eup %5579 }
 0x603   : > { %9749 = vst [vmem:[#allocation12_spill] sm:$0xff] %v8219_v41  ;;  %5593 = vpow2.f32 %v4272_v3  ;;  %v3166_v3 = vsub.f32 %v9752_v9, %v8061_v38  ;;  %9755 = vst [vmem:[#allocation87_spill] sm:$0xff] %v8239_v11  ;;  %v4264_v28 = vmul.f32 1.442695, %v4196_v60  ;;  %v9756_v18 = vld [vmem:[#allocation107_spill] sm:$0xff]  ;;  %v9762_v60 = vld [vmem:[#allocation112_spill] sm:$0xff] }
 0x604   : > { %3119 = vmax.xlane.f32.xlu0 %v3118_v33  ;;  %v8203_v6 = vpop.xlane.xlu0 %3131  ;;  %v3376_v33 = vadd.f32 %v8190_v37, %v8181_v14  ;;  %5595 = vpow2.f32 %v4274_v62  ;;  %v3115_v62 = vmax.f32 %v8199_v61, %v8210_v31  ;;  %v4194_v9 = vsub.f32 %v9756_v18, %v8063_v47 }
 0x605   : > { %v8205_v42 = vpop.xlane.xlu1 %4166  ;;  %5597 = vpow2.f32 %v3244_v59  ;;  %v4144_v59 = vmax.f32 %v8184_v29, %v8219_v41  ;;  %v8259_v37 = vmul.f32 0.35355338, %v9762_v60  ;;  %v3236_v18 = vmul.f32 1.442695, %v3166_v3  ;;  %v9768_v3 = vld [vmem:[#allocation110_spill] sm:$0xff] }
 0x606   : > { %4148 = vmax.xlane.f32.xlu1 %v4147_v36  ;;  %v4405_v36 = vadd.f32 %v8207_v21, %v8196_v1  ;;  %5599 = vpow2.f32 %v3246_v4  ;;  %v8245_v1 = vpop.eup %5581  ;;  %v9758_v21 = vld [vmem:[#allocation89_spill] sm:$0xff]  ;;  %v4266_v4 = vmul.f32 1.442695, %v4197_v20  ;;  %v9765_v20 = vld [vmem:[#allocation99_spill] sm:$0xff]  ;;  %v4192_v60 = vsub.f32 %v9766_v50, %v8081_v45 }
 0x607   : > { %5601 = vpow2.f32 %v4268_v27  ;;  %9757 = vst [vmem:[#allocation108_spill] sm:$0xff] %v8245_v1  ;;  %v8248_v14 = vmul.f32 0.35355338, %v9758_v21  ;;  %v8256_v27 = vpop.eup %5583  ;;  %9763 = vst [vmem:[#allocation37_spill] sm:$0xff] %v8259_v37  ;;  %v9764_v21 = vld [vmem:[#allocation4_spill] sm:$0xff]  ;;  %v9770_v50 = vld [vmem:[#allocation97_spill] sm:$0xff] }
 0x608   : > { %3377 = vadd.xlane.f32.xlu0 %v3376_v33  ;;  %v8225_v43 = vpop.xlane.xlu0 %3134  ;;  %v3167_v33 = vsub.f32 %v9754_v15, %v8061_v38  ;;  %5603 = vpow2.f32 %v4270_v58  ;;  %v9760_v38 = vld [vmem:[#allocation104_spill] sm:$0xff]  ;;  %9761 = vst [vmem:[#allocation36_spill] sm:$0xff] %v8256_v27  ;;  %v3164_v19 = vsub.f32 %v9764_v21, %v8079_v48  ;;  %v8269_v41 = vpop.eup %5585  ;;  %v3162_v21 = vsub.f32 %v9770_v50, %v8091_v63 }
 0x609   : > { %v8227_v53 = vpop.xlane.xlu1 %4169  ;;  %9759 = vst [vmem:[#allocation19_spill] sm:$0xff] %v8248_v14  ;;  %v4195_v8 = vsub.f32 %v9760_v38, %v8063_v47  ;;  %5605 = vpow2.f32 %v3240_v26  ;;  %v3165_v47 = vsub.f32 %v9765_v20, %v8079_v48  ;;  %v4260_v38 = vmul.f32 1.442695, %v4194_v9  ;;  %9767 = vst [vmem:[#allocation116_spill] sm:$0xff] %v8269_v41  ;;  %v9772_v20 = vld [vmem:[#allocation106_spill] sm:$0xff] }
 0x60a   : > { %4406 = vadd.xlane.f32.xlu1 %v4405_v36  ;;  %5607 = vpow2.f32 %v3242_v56  ;;  %v3238_v58 = vmul.f32 1.442695, %v3167_v33  ;;  %v4193_v56 = vsub.f32 %v9768_v3, %v8081_v45  ;;  %v3232_v9 = vmul.f32 1.442695, %v3164_v19 }
 0x60b   : > { %5609 = vpow2.f32 %v4264_v28  ;;  %v4262_v26 = vmul.f32 1.442695, %v4195_v8  ;;  %v8279_v28 = vpop.eup %5587  ;;  %v3112_v45 = vmax.f32 %v8248_v14, %v8259_v37  ;;  %v3234_v8 = vmul.f32 1.442695, %v3165_v47 }
 0x60c   : > { %3116 = vmax.xlane.f32.xlu0 %v3115_v62  ;;  %v8252_v36 = vpop.xlane.xlu0 %3137  ;;  %v3373_v62 = vadd.f32 %v8239_v11, %v8233_v51  ;;  %5611 = vpow2.f32 %v4266_v4  ;;  %9769 = vst [vmem:[#allocation117_spill] sm:$0xff] %v8279_v28  ;;  %v8283_v4 = vpop.eup %5589  ;;  %v4258_v19 = vmul.f32 1.442695, %v4193_v56  ;;  %v9777_v56 = vld [vmem:[#allocation2_spill] sm:$0xff] }
 0x60d   : > { %v8254_v15 = vpop.xlane.xlu1 %4172  ;;  %5613 = vpow2.f32 %v3236_v18  ;;  %9771 = vst [vmem:[#allocation20_spill] sm:$0xff] %v8283_v4 }
 0x60e   : > { %4145 = vmax.xlane.f32.xlu1 %v4144_v59  ;;  %v4402_v59 = vadd.f32 %v8256_v27, %v8245_v1  ;;  %5615 = vpow2.f32 %v3238_v58  ;;  %v4256_v1 = vmul.f32 1.442695, %v4192_v60  ;;  %v4399_v58 = vadd.f32 %v8279_v28, %v8269_v41 }
 0x60f   : > { %v8289_v3 = vpop.eup %5591  ;;  %5617 = vpow2.f32 %v4260_v38  ;;  %v3160_v38 = vsub.f32 %v7805_v46, %v8125_v23 }
 0x610   : > { %3374 = vadd.xlane.f32.xlu0 %v3373_v62  ;;  %v8273_v33 = vpop.xlane.xlu0 %3140  ;;  %v3163_v62 = vsub.f32 %v9772_v20, %v8091_v63  ;;  %9773 = vst [vmem:[#allocation103_spill] sm:$0xff] %v8289_v3  ;;  %v8291_v18 = vpop.eup %5593  ;;  %5619 = vpow2.f32 %v4262_v26  ;;  %v3228_v63 = vmul.f32 1.442695, %v3162_v21 }
 0x611   : > { %v8275_v48 = vpop.xlane.xlu1 %4175  ;;  %9774 = vst [vmem:[#allocation119_spill] sm:$0xff] %v8291_v18  ;;  %v8299_v47 = vpop.eup %5595  ;;  %5621 = vpow2.f32 %v3232_v9 }
 0x612   : > { %4403 = vadd.xlane.f32.xlu1 %v4402_v59  ;;  %9775 = vst [vmem:[#allocation123_spill] sm:$0xff] %v8299_v47  ;;  %v8303_v60 = vpop.eup %5597  ;;  %5623 = vpow2.f32 %v3234_v8  ;;  %v3230_v26 = vmul.f32 1.442695, %v3163_v62  ;;  %v3161_v59 = vsub.f32 %v9777_v56, %v8125_v23  ;;  %v4396_v21 = vadd.f32 %v8299_v47, %v8291_v18 }
 0x613   : > { %9776 = vst [vmem:[#allocation38_spill] sm:$0xff] %v8303_v60  ;;  %v8309_v20 = vpop.eup %5599  ;;  %5625 = vpow2.f32 %v4256_v1  ;;  %v3224_v23 = vmul.f32 1.442695, %v3160_v38 }
 0x614   : > { %3113 = vmax.xlane.f32.xlu0 %v3112_v45  ;;  %v8293_v50 = vpop.xlane.xlu0 %3143  ;;  %v3370_v45 = vadd.f32 %v8289_v3, %v8283_v4  ;;  %9778 = vst [vmem:[#allocation39_spill] sm:$0xff] %v8309_v20  ;;  %v8311_v41 = vpop.eup %5601  ;;  %5627 = vpow2.f32 %v4258_v19  ;;  %v3367_v1 = vadd.f32 %v8309_v20, %v8303_v60  ;;  %v9788_v60 = vld [vmem:[#allocation59_spill] sm:$0xff]  ;;  %v9789_v4 = vld [vmem:[#allocation49_spill] sm:$0xff] }
 0x615   : > { %v8295_v27 = vpop.xlane.xlu1 %4178  ;;  %9779 = vst [vmem:[#allocation120_spill] sm:$0xff] %v8311_v41  ;;  %v8317_v8 = vpop.eup %5603  ;;  %5629 = vpow2.f32 %v3228_v63 }
 0x616   : > { %4400 = vadd.xlane.f32.xlu1 %v4399_v58  ;;  %9780 = vst [vmem:[#allocation85_spill] sm:$0xff] %v8317_v8  ;;  %v8319_v62 = vpop.eup %5605  ;;  %5631 = vpow2.f32 %v3230_v26  ;;  %v3226_v58 = vmul.f32 1.442695, %v3161_v59  ;;  %v4393_v63 = vadd.f32 %v8317_v8, %v8311_v41  ;;  %v9785_v26 = vld [vmem:[#allocation54_spill] sm:$0xff] }
 0x617   : > { %9781 = vst [vmem:[#allocation90_spill] sm:$0xff] %v8319_v62  ;;  %v8323_v19 = vpop.eup %5607  ;;  %5633 = vpow2.f32 %v3224_v23 }
 0x618   : > { %3371 = vadd.xlane.f32.xlu0 %v3370_v45  ;;  %v8313_v9 = vpop.xlane.xlu0 %3146  ;;  %9782 = vst [vmem:[#allocation124_spill] sm:$0xff] %v8323_v19  ;;  %v8325_v56 = vpop.eup %5609  ;;  %5635 = vpow2.f32 %v3226_v58  ;;  %v3364_v3 = vadd.f32 %v8323_v19, %v8319_v62  ;;  %v9795_v62 = vld [vmem:[#allocation51_spill] sm:$0xff] }
 0x619   : > { %v4182_v46 = vpop.xlane.xlu1 %4181  ;;  %9783 = vst [vmem:[#allocation88_spill] sm:$0xff] %v8325_v56  ;;  %v8331_v38 = vpop.eup %5611 }
 0x61a   : > { %4397 = vadd.xlane.f32.xlu1 %v4396_v21  ;;  %9784 = vst [vmem:[#allocation115_spill] sm:$0xff] %v8331_v38  ;;  %v4248_v59 = vsub.f32 %v9785_v26, %v4182_v46  ;;  %v9786_v21 = vld [vmem:[#allocation50_spill] sm:$0xff]  ;;  %v8335_v28 = vpop.eup %5613  ;;  %v4249_v20 = vsub.f32 %v9788_v60, %v4182_v46  ;;  %v4390_v58 = vadd.f32 %v8331_v38, %v8325_v56 }
 0x61b   : > { %9787 = vst [vmem:[#allocation86_spill] sm:$0xff] %v8335_v28  ;;  %v8341_v51 = vpop.eup %5615 }
 0x61c   : > { %3368 = vadd.xlane.f32.xlu0 %v3367_v1  ;;  %v8327_v45 = vpop.xlane.xlu0 %3149  ;;  %9790 = vst [vmem:[#allocation118_spill] sm:$0xff] %v8341_v51  ;;  %v8343_v8 = vpop.eup %5617  ;;  %v4368_v60 = vmul.f32 1.442695, %v4248_v59 }
 0x61d   : > { %v4185_v18 = vpop.xlane.xlu1 %4184  ;;  %9791 = vst [vmem:[#allocation121_spill] sm:$0xff] %v8343_v8  ;;  %v8347_v11 = vpop.eup %5619 }
 0x61e   : > { %v4250_v47 = vsub.f32 %v9786_v21, %v4185_v18  ;;  %v4251_v1 = vsub.f32 %v9789_v4, %v4185_v18  ;;  %4394 = vadd.xlane.f32.xlu1 %v4393_v63  ;;  %9792 = vst [vmem:[#allocation18_spill] sm:$0xff] %v8347_v11  ;;  %v9793_v4 = vld [vmem:[#allocation46_spill] sm:$0xff]  ;;  %v8350_v46 = vpop.eup %5621  ;;  %v4370_v63 = vmul.f32 1.442695, %v4249_v20  ;;  %v4387_v20 = vadd.f32 %v8347_v11, %v8343_v8 }
 0x61f   : > { %9794 = vst [vmem:[#allocation122_spill] sm:$0xff] %v8350_v46 }
 0x620   : > { %v4372_v41 = vmul.f32 1.442695, %v4250_v47  ;;  %v4374_v23 = vmul.f32 1.442695, %v4251_v1  ;;  %3365 = vadd.xlane.f32.xlu0 %v3364_v3  ;;  %v3153_v26 = vpop.xlane.xlu0 %3152  ;;  %v3361_v47 = vadd.f32 %v8341_v51, %v8335_v28  ;;  %v8355_v3 = vpop.eup %5623  ;;  %v9800_v51 = vld [vmem:[#allocation42_spill] sm:$0xff] }
 0x621   : > { %v4188_v21 = vpop.xlane.xlu1 %4187  ;;  %9796 = vst [vmem:[#allocation111_spill] sm:$0xff] %v8355_v3  ;;  %v8357_v37 = vpop.eup %5625  ;;  %v3358_v29 = vadd.f32 %v8355_v3, %v8350_v46  ;;  %v9806_v3 = vld [vmem:[#allocation43_spill] sm:$0xff] }
 0x622   : > { %v4252_v18 = vsub.f32 %v9793_v4, %v4188_v21  ;;  %v4253_v19 = vsub.f32 %v9795_v62, %v4188_v21  ;;  %4391 = vadd.xlane.f32.xlu1 %v4390_v58  ;;  %5637 = vpow2.f32 %v4372_v41  ;;  %9797 = vst [vmem:[#allocation113_spill] sm:$0xff] %v8357_v37  ;;  %v8361_v38 = vpop.eup %5627  ;;  %v9798_v62 = vld [vmem:[#allocation47_spill] sm:$0xff]  ;;  %v9799_v58 = vld [vmem:[#allocation44_spill] sm:$0xff] }
 0x623   : > { %5639 = vpow2.f32 %v4374_v23  ;;  %v9801_v23 = vld [vmem:[#allocation48_spill] sm:$0xff] }
 0x624   : > { %v4376_v1 = vmul.f32 1.442695, %v4252_v18  ;;  %v4378_v56 = vmul.f32 1.442695, %v4253_v19  ;;  %3362 = vadd.xlane.f32.xlu0 %v3361_v47  ;;  %v3156_v59 = vpop.xlane.xlu0 %3155  ;;  %5641 = vpow2.f32 %v4368_v60  ;;  %v8366_v18 = vpop.eup %5629  ;;  %v3218_v19 = vsub.f32 %v9801_v23, %v3153_v26  ;;  %v9802_v47 = vld [vmem:[#allocation35_spill] sm:$0xff] }
 0x625   : > { %v4191_v4 = vpop.xlane.xlu1 %4190  ;;  %v3220_v21 = vsub.f32 %v9798_v62, %v3156_v59  ;;  %v3221_v28 = vsub.f32 %v9799_v58, %v3156_v59  ;;  %5643 = vpow2.f32 %v4370_v63  ;;  %v8372_v8 = vpop.eup %5631  ;;  %v9803_v59 = vld [vmem:[#allocation45_spill] sm:$0xff]  ;;  %v4384_v23 = vadd.f32 %v8361_v38, %v8357_v37 }
 0x626   : > { %v4254_v41 = vsub.f32 %v9800_v51, %v4191_v4  ;;  %v4255_v14 = vsub.f32 %v9802_v47, %v4191_v4  ;;  %4388 = vadd.xlane.f32.xlu1 %v4387_v20  ;;  %5645 = vpow2.f32 %v4376_v1  ;;  %v3219_v58 = vsub.f32 %v9803_v59, %v3153_v26  ;;  %v9804_v4 = vld [vmem:[#allocation58_spill] sm:$0xff] }
 0x627   : > { %v3344_v60 = vmul.f32 1.442695, %v3220_v21  ;;  %v3346_v62 = vmul.f32 1.442695, %v3221_v28  ;;  %5647 = vpow2.f32 %v4378_v56  ;;  %v4246_v47 = vsub.f32 %v9804_v4, %v8295_v27  ;;  %v9805_v20 = vld [vmem:[#allocation30_spill] sm:$0xff]  ;;  %v8381_v21 = vpop.eup %5633  ;;  %v9807_v28 = vld [vmem:[#allocation57_spill] sm:$0xff] }
 0x628   : > { %v4380_v11 = vmul.f32 1.442695, %v4254_v41  ;;  %v4382_v51 = vmul.f32 1.442695, %v4255_v14  ;;  %3359 = vadd.xlane.f32.xlu0 %v3358_v29  ;;  %v3159_v63 = vpop.xlane.xlu0 %3158  ;;  %v4247_v26 = vsub.f32 %v9807_v28, %v8295_v27  ;;  %v9808_v14 = vld [vmem:[#allocation55_spill] sm:$0xff]  ;;  %v3355_v56 = vadd.f32 %v8372_v8, %v8366_v18  ;;  %v8389_v41 = vpop.eup %5635  ;;  %v9810_v27 = vld [vmem:[#allocation62_spill] sm:$0xff] }
 0x629   : > { %5649 = vpow2.f32 %v3344_v60  ;;  %v3222_v46 = vsub.f32 %v9805_v20, %v3159_v63  ;;  %v3223_v1 = vsub.f32 %v9806_v3, %v3159_v63  ;;  %v3216_v29 = vsub.f32 %v9808_v14, %v8327_v45  ;;  %v9809_v3 = vld [vmem:[#allocation52_spill] sm:$0xff]  ;;  %v9811_v14 = vld [vmem:[#allocation67_spill] sm:$0xff] }
 0x62a   : > { %5651 = vpow2.f32 %v3346_v62  ;;  %4385 = vadd.xlane.f32.xlu1 %v4384_v23  ;;  %v3340_v60 = vmul.f32 1.442695, %v3218_v19  ;;  %v3217_v63 = vsub.f32 %v9809_v3, %v8327_v45  ;;  %v3342_v20 = vmul.f32 1.442695, %v3219_v58 }
 0x62b   : > { %5653 = vpow2.f32 %v4380_v11  ;;  %v3348_v59 = vmul.f32 1.442695, %v3222_v46  ;;  %v3350_v4 = vmul.f32 1.442695, %v3223_v1  ;;  %v4244_v28 = vsub.f32 %v9810_v27, %v8275_v48  ;;  %v9812_v46 = vld [vmem:[#allocation56_spill] sm:$0xff] }
 0x62c   : > { %5655 = vpow2.f32 %v4382_v51  ;;  %3356 = vadd.xlane.f32.xlu0 %v3355_v56  ;;  %v4364_v62 = vmul.f32 1.442695, %v4246_v47  ;;  %v4245_v23 = vsub.f32 %v9811_v14, %v8275_v48  ;;  %v4366_v37 = vmul.f32 1.442695, %v4247_v26  ;;  %v9814_v51 = vld [vmem:[#allocation53_spill] sm:$0xff]  ;;  %v9816_v48 = vld [vmem:[#allocation66_spill] sm:$0xff] }
 0x62d   : > { %5657 = vpow2.f32 %v3348_v59  ;;  %v3352_v11 = vadd.f32 %v8389_v41, %v8381_v21  ;;  %v3214_v19 = vsub.f32 %v9812_v46, %v8313_v9  ;;  %v3336_v45 = vmul.f32 1.442695, %v3216_v29  ;;  %v9818_v29 = vld [vmem:[#allocation65_spill] sm:$0xff] }
 0x62e   : > { %5659 = vpow2.f32 %v3350_v4  ;;  %v3215_v1 = vsub.f32 %v9814_v51, %v8313_v9  ;;  %v3338_v47 = vmul.f32 1.442695, %v3217_v63  ;;  %v4242_v26 = vsub.f32 %v9816_v48, %v8254_v15 }
 0x62f   : > { %5661 = vpow2.f32 %v3340_v60  ;;  %v8401_v58 = vpop.eup %5637  ;;  %v4360_v59 = vmul.f32 1.442695, %v4244_v28  ;;  %v4243_v60 = vsub.f32 %v9818_v29, %v8254_v15  ;;  %v4362_v3 = vmul.f32 1.442695, %v4245_v23  ;;  %v9822_v28 = vld [vmem:[#allocation60_spill] sm:$0xff] }
 0x630   : > { %9813 = vst [vmem:[#allocation114_spill] sm:$0xff] %v8401_v58  ;;  %5663 = vpow2.f32 %v3342_v20  ;;  %3353 = vadd.xlane.f32.xlu0 %v3352_v11  ;;  %v8405_v56 = vpop.eup %5639  ;;  %v9820_v20 = vld [vmem:[#allocation63_spill] sm:$0xff]  ;;  %v3332_v14 = vmul.f32 1.442695, %v3214_v19  ;;  %v3334_v46 = vmul.f32 1.442695, %v3215_v1 }
 0x631   : > { %9815 = vst [vmem:[#allocation107_spill] sm:$0xff] %v8405_v56  ;;  %5665 = vpow2.f32 %v4364_v62  ;;  %v8409_v4 = vpop.eup %5641  ;;  %v4471_v9 = vadd.f32 %v8405_v56, %v8401_v58  ;;  %v3212_v27 = vsub.f32 %v9820_v20, %v8293_v50  ;;  %v3213_v62 = vsub.f32 %v9822_v28, %v8293_v50  ;;  %v9825_v19 = vld [vmem:[#allocation75_spill] sm:$0xff] }
 0x632   : > { %9817 = vst [vmem:[#allocation89_spill] sm:$0xff] %v8409_v4  ;;  %5667 = vpow2.f32 %v4366_v37  ;;  %v8415_v63 = vpop.eup %5643  ;;  %v9823_v37 = vld [vmem:[#allocation70_spill] sm:$0xff]  ;;  %v4356_v51 = vmul.f32 1.442695, %v4242_v26  ;;  %v4358_v29 = vmul.f32 1.442695, %v4243_v60 }
 0x633   : > { %9819 = vst [vmem:[#allocation104_spill] sm:$0xff] %v8415_v63  ;;  %5669 = vpow2.f32 %v3336_v45  ;;  %v8419_v11 = vpop.eup %5645  ;;  %4472 = vadd.xlane.f32.xlu1 %v4471_v9  ;;  %v4240_v23 = vsub.f32 %v9823_v37, %v8227_v53  ;;  %v4241_v45 = vsub.f32 %v9825_v19, %v8227_v53  ;;  %v4468_v50 = vadd.f32 %v8415_v63, %v8409_v4  ;;  %v9827_v26 = vld [vmem:[#allocation61_spill] sm:$0xff] }
 0x634   : > { %9821 = vst [vmem:[#allocation112_spill] sm:$0xff] %v8419_v11  ;;  %5671 = vpow2.f32 %v3338_v47  ;;  %v8423_v15 = vpop.eup %5647  ;;  %v9826_v47 = vld [vmem:[#allocation64_spill] sm:$0xff]  ;;  %v3328_v20 = vmul.f32 1.442695, %v3212_v27  ;;  %v3330_v37 = vmul.f32 1.442695, %v3213_v62 }
 0x635   : > { %5673 = vpow2.f32 %v4360_v59  ;;  %v3210_v9 = vsub.f32 %v9826_v47, %v8273_v33  ;;  %v3211_v59 = vsub.f32 %v9827_v26, %v8273_v33  ;;  %v4352_v4 = vmul.f32 1.442695, %v4240_v23 }
 0x636   : > { %v8427_v48 = vpop.eup %5649  ;;  %5675 = vpow2.f32 %v4362_v3  ;;  %v9828_v3 = vld [vmem:[#allocation74_spill] sm:$0xff]  ;;  %v4354_v63 = vmul.f32 1.442695, %v4241_v45  ;;  %v4474_v33 = vadd.f32 %v8423_v15, %v8419_v11 }
 0x637   : > { %9824 = vst [vmem:[#allocation4_spill] sm:$0xff] %v8427_v48  ;;  %v8433_v1 = vpop.eup %5651  ;;  %5677 = vpow2.f32 %v3332_v14  ;;  %4469 = vadd.xlane.f32.xlu1 %v4468_v50  ;;  %v4238_v19 = vsub.f32 %v9828_v3, %v8205_v42  ;;  %v9829_v14 = vld [vmem:[#allocation73_spill] sm:$0xff]  ;;  %v3324_v26 = vmul.f32 1.442695, %v3210_v9  ;;  %v3326_v58 = vmul.f32 1.442695, %v3211_v59 }
 0x638   : > { %v8437_v28 = vpop.eup %5653  ;;  %5679 = vpow2.f32 %v3334_v46  ;;  %v3442_v53 = vadd.f32 %v8433_v1, %v8427_v48  ;;  %v4239_v47 = vsub.f32 %v9829_v14, %v8205_v42  ;;  %v9830_v46 = vld [vmem:[#allocation71_spill] sm:$0xff] }
 0x639   : > { %v8443_v60 = vpop.eup %5655  ;;  %5681 = vpow2.f32 %v4356_v51  ;;  %v3208_v50 = vsub.f32 %v9830_v46, %v8252_v36  ;;  %v9832_v51 = vld [vmem:[#allocation68_spill] sm:$0xff]  ;;  %v4348_v14 = vmul.f32 1.442695, %v4238_v19 }
 0x63a   : > { %v8447_v27 = vpop.eup %5657  ;;  %5683 = vpow2.f32 %v4358_v29  ;;  %3443 = vadd.xlane.f32.xlu0 %v3442_v53  ;;  %v3209_v3 = vsub.f32 %v9832_v51, %v8252_v36  ;;  %v9833_v29 = vld [vmem:[#allocation83_spill] sm:$0xff]  ;;  %v4350_v56 = vmul.f32 1.442695, %v4239_v47  ;;  %v4477_v36 = vadd.f32 %v8443_v60, %v8437_v28  ;;  %v9839_v47 = vld [vmem:[#allocation101_spill] sm:$0xff] }
 0x63b   : > { %v8453_v62 = vpop.eup %5659  ;;  %5685 = vpow2.f32 %v3328_v20  ;;  %4475 = vadd.xlane.f32.xlu1 %v4474_v33  ;;  %v4236_v53 = vsub.f32 %v9833_v29, %v8175_v7  ;;  %v9835_v20 = vld [vmem:[#allocation78_spill] sm:$0xff]  ;;  %v3320_v51 = vmul.f32 1.442695, %v3208_v50 }
 0x63c   : > { %v8457_v23 = vpop.eup %5661  ;;  %5687 = vpow2.f32 %v3330_v37  ;;  %v3445_v42 = vadd.f32 %v8453_v62, %v8447_v27  ;;  %v4237_v46 = vsub.f32 %v9835_v20, %v8175_v7  ;;  %v9837_v37 = vld [vmem:[#allocation72_spill] sm:$0xff]  ;;  %v3322_v11 = vmul.f32 1.442695, %v3209_v3  ;;  %v9843_v3 = vld [vmem:[#allocation79_spill] sm:$0xff] }
 0x63d   : > { %9831 = vst [vmem:[#allocation99_spill] sm:$0xff] %v8457_v23  ;;  %v8463_v45 = vpop.eup %5663  ;;  %5689 = vpow2.f32 %v4352_v4  ;;  %v3206_v33 = vsub.f32 %v9837_v37, %v8225_v43  ;;  %v9838_v4 = vld [vmem:[#allocation69_spill] sm:$0xff]  ;;  %v4344_v20 = vmul.f32 1.442695, %v4236_v53 }
 0x63e   : > { %v8467_v9 = vpop.eup %5665  ;;  %5691 = vpow2.f32 %v4354_v63  ;;  %3446 = vadd.xlane.f32.xlu0 %v3445_v42  ;;  %v3207_v29 = vsub.f32 %v9838_v4, %v8225_v43  ;;  %v3439_v7 = vadd.f32 %v8463_v45, %v8457_v23  ;;  %v4234_v42 = vsub.f32 %v9839_v47, %v8147_v24 }
 0x63f   : > { %9834 = vst [vmem:[#allocation100_spill] sm:$0xff] %v8467_v9  ;;  %v8473_v59 = vpop.eup %5667  ;;  %5693 = vpow2.f32 %v3324_v26  ;;  %4478 = vadd.xlane.f32.xlu1 %v4477_v36  ;;  %v9841_v26 = vld [vmem:[#allocation84_spill] sm:$0xff]  ;;  %v4346_v48 = vmul.f32 1.442695, %v4237_v46  ;;  %v3204_v36 = vsub.f32 %v9843_v3, %v8203_v6  ;;  %v3316_v4 = vmul.f32 1.442695, %v3206_v33 }
 0x640   : > { %9836 = vst [vmem:[#allocation110_spill] sm:$0xff] %v8473_v59  ;;  %v8477_v19 = vpop.eup %5669  ;;  %5695 = vpow2.f32 %v3326_v58  ;;  %v4235_v37 = vsub.f32 %v9841_v26, %v8147_v24  ;;  %v4465_v43 = vadd.f32 %v8473_v59, %v8467_v9  ;;  %v3318_v23 = vmul.f32 1.442695, %v3207_v29  ;;  %v9845_v46 = vld [vmem:[#allocation105_spill] sm:$0xff]  ;;  %v9847_v29 = vld [vmem:[#allocation80_spill] sm:$0xff] }
 0x641   : > { %v8483_v63 = vpop.eup %5671  ;;  %5697 = vpow2.f32 %v4348_v14  ;;  %v9844_v14 = vld [vmem:[#allocation76_spill] sm:$0xff]  ;;  %v4340_v26 = vmul.f32 1.442695, %v4234_v42 }
 0x642   : > { %v8487_v50 = vpop.eup %5673  ;;  %5699 = vpow2.f32 %v4350_v56  ;;  %3440 = vadd.xlane.f32.xlu0 %v3439_v7  ;;  %v3205_v47 = vsub.f32 %v9844_v14, %v8203_v6  ;;  %v3436_v24 = vadd.f32 %v8483_v63, %v8477_v19  ;;  %v4232_v7 = vsub.f32 %v9845_v46, %v8127_v10 }
 0x643   : > { %9840 = vst [vmem:[#allocation97_spill] sm:$0xff] %v8487_v50  ;;  %v8493_v58 = vpop.eup %5675  ;;  %5701 = vpow2.f32 %v3320_v51  ;;  %4466 = vadd.xlane.f32.xlu1 %v4465_v43  ;;  %v9846_v51 = vld [vmem:[#allocation102_spill] sm:$0xff]  ;;  %v4342_v9 = vmul.f32 1.442695, %v4235_v37  ;;  %v3202_v43 = vsub.f32 %v9847_v29, %v8173_v32  ;;  %v3312_v14 = vmul.f32 1.442695, %v3204_v36 }
 0x644   : > { %9842 = vst [vmem:[#allocation106_spill] sm:$0xff] %v8493_v58  ;;  %v8497_v53 = vpop.eup %5677  ;;  %5703 = vpow2.f32 %v3322_v11  ;;  %v4233_v3 = vsub.f32 %v9846_v51, %v8127_v10  ;;  %v4462_v6 = vadd.f32 %v8493_v58, %v8487_v50  ;;  %v3314_v59 = vmul.f32 1.442695, %v3205_v47  ;;  %v9849_v37 = vld [vmem:[#allocation109_spill] sm:$0xff]  ;;  %v9852_v47 = vld [vmem:[#allocation82_spill] sm:$0xff] }
 0x645   : > { %v8503_v56 = vpop.eup %5679  ;;  %5705 = vpow2.f32 %v4344_v20  ;;  %v9848_v20 = vld [vmem:[#allocation77_spill] sm:$0xff]  ;;  %v4336_v51 = vmul.f32 1.442695, %v4232_v7 }
 0x646   : > { %v8507_v33 = vpop.eup %5681  ;;  %5707 = vpow2.f32 %v4346_v48  ;;  %3437 = vadd.xlane.f32.xlu0 %v3436_v24  ;;  %v3203_v46 = vsub.f32 %v9848_v20, %v8173_v32  ;;  %v3433_v10 = vadd.f32 %v8503_v56, %v8497_v53  ;;  %v4230_v24 = vsub.f32 %v9849_v37, %v8093_v22 }
 0x647   : > { %v8513_v11 = vpop.eup %5683  ;;  %5709 = vpow2.f32 %v3316_v4  ;;  %4463 = vadd.xlane.f32.xlu1 %v4462_v6  ;;  %v9851_v4 = vld [vmem:[#allocation98_spill] sm:$0xff]  ;;  %v4338_v50 = vmul.f32 1.442695, %v4233_v3  ;;  %v3200_v6 = vsub.f32 %v9852_v47, %v8145_v57  ;;  %v3308_v20 = vmul.f32 1.442695, %v3202_v43 }
 0x648   : > { %v8517_v42 = vpop.eup %5685  ;;  %5711 = vpow2.f32 %v3318_v23  ;;  %v4231_v29 = vsub.f32 %v9851_v4, %v8093_v22  ;;  %v4459_v32 = vadd.f32 %v8513_v11, %v8507_v33  ;;  %v3310_v58 = vmul.f32 1.442695, %v3203_v46 }
 0x649   : > { %v8523_v48 = vpop.eup %5687  ;;  %5713 = vpow2.f32 %v4340_v26  ;;  %v9853_v26 = vld [vmem:[#allocation81_spill] sm:$0xff]  ;;  %v4332_v3 = vmul.f32 1.442695, %v4230_v24 }
 0x64a   : > { %v8527_v36 = vpop.eup %5689  ;;  %5715 = vpow2.f32 %v4342_v9  ;;  %3434 = vadd.xlane.f32.xlu0 %v3433_v10  ;;  %v3201_v37 = vsub.f32 %v9853_v26, %v8145_v57  ;;  %v3430_v22 = vadd.f32 %v8523_v48, %v8517_v42  ;;  %v4334_v4 = vmul.f32 1.442695, %v4231_v29 }
 0x64b   : > { %9850 = vst [vmem:[#allocation2_spill] sm:$0xff] %v8527_v36  ;;  %v8533_v23 = vpop.eup %5691  ;;  %5717 = vpow2.f32 %v3312_v14  ;;  %4460 = vadd.xlane.f32.xlu1 %v4459_v32  ;;  %v3304_v57 = vmul.f32 1.442695, %v3200_v6 }
 0x64c   : > { %v8537_v7 = vpop.eup %5693  ;;  %5719 = vpow2.f32 %v3314_v59  ;;  %v4456_v43 = vadd.f32 %v8533_v23, %v8527_v36  ;;  %v3306_v46 = vmul.f32 1.442695, %v3201_v37 }
 0x64d   : > { %v8543_v9 = vpop.eup %5695  ;;  %5721 = vpow2.f32 %v4336_v51 }
 0x64e   : > { %v8545_v10 = vpop.eup %5697  ;;  %5723 = vpow2.f32 %v4338_v50  ;;  %3431 = vadd.xlane.f32.xlu0 %v3430_v22  ;;  %v3427_v24 = vadd.f32 %v8543_v9, %v8537_v7 }
 0x64f   : > { %9854 = vst [vmem:[#allocation54_spill] sm:$0xff] %v8545_v10  ;;  %v8549_v14 = vpop.eup %5699  ;;  %5725 = vpow2.f32 %v3308_v20  ;;  %4457 = vadd.xlane.f32.xlu1 %v4456_v43 }
 0x650   : > { %9855 = vst [vmem:[#allocation50_spill] sm:$0xff] %v8549_v14  ;;  %v8551_v59 = vpop.eup %5701  ;;  %5727 = vpow2.f32 %v3310_v58  ;;  %v4453_v29 = vadd.f32 %v8549_v14, %v8545_v10 }
 0x651   : > { %9856 = vst [vmem:[#allocation59_spill] sm:$0xff] %v8551_v59  ;;  %v8555_v51 = vpop.eup %5703  ;;  %5729 = vpow2.f32 %v4332_v3 }
 0x652   : > { %v8557_v50 = vpop.eup %5705  ;;  %5731 = vpow2.f32 %v4334_v4  ;;  %3428 = vadd.xlane.f32.xlu0 %v3427_v24  ;;  %v3424_v58 = vadd.f32 %v8555_v51, %v8551_v59 }
 0x653   : > { %9857 = vst [vmem:[#allocation49_spill] sm:$0xff] %v8557_v50  ;;  %v8561_v32 = vpop.eup %5707  ;;  %5733 = vpow2.f32 %v3304_v57  ;;  %4454 = vadd.xlane.f32.xlu1 %v4453_v29 }
 0x654   : > { %9858 = vst [vmem:[#allocation46_spill] sm:$0xff] %v8561_v32  ;;  %v8563_v47 = vpop.eup %5709  ;;  %5735 = vpow2.f32 %v3306_v46  ;;  %v4450_v26 = vadd.f32 %v8561_v32, %v8557_v50 }
 0x655   : > { %9859 = vst [vmem:[#allocation51_spill] sm:$0xff] %v8563_v47  ;;  %v8567_v6 = vpop.eup %5711 }
 0x656   : > { %9860 = vst [vmem:[#allocation47_spill] sm:$0xff] %v8567_v6  ;;  %v8569_v20 = vpop.eup %5713  ;;  %3425 = vadd.xlane.f32.xlu0 %v3424_v58  ;;  %v3421_v3 = vadd.f32 %v8567_v6, %v8563_v47 }
 0x657   : > { %9861 = vst [vmem:[#allocation44_spill] sm:$0xff] %v8569_v20  ;;  %v8573_v37 = vpop.eup %5715  ;;  %4451 = vadd.xlane.f32.xlu1 %v4450_v26 }
 0x658   : > { %9862 = vst [vmem:[#allocation42_spill] sm:$0xff] %v8573_v37  ;;  %v8575_v22 = vpop.eup %5717  ;;  %v4447_v57 = vadd.f32 %v8573_v37, %v8569_v20 }
 0x659   : > { %9863 = vst [vmem:[#allocation48_spill] sm:$0xff] %v8575_v22  ;;  %v8579_v4 = vpop.eup %5719 }
 0x65a   : > { %9864 = vst [vmem:[#allocation35_spill] sm:$0xff] %v8579_v4  ;;  %v8581_v43 = vpop.eup %5721  ;;  %3422 = vadd.xlane.f32.xlu0 %v3421_v3  ;;  %v3418_v29 = vadd.f32 %v8579_v4, %v8575_v22 }
 0x65b   : > { %9865 = vst [vmem:[#allocation45_spill] sm:$0xff] %v8581_v43  ;;  %v8585_v46 = vpop.eup %5723  ;;  %4448 = vadd.xlane.f32.xlu1 %v4447_v57 }
 0x65c   : > { %9866 = vst [vmem:[#allocation58_spill] sm:$0xff] %v8585_v46  ;;  %v8587_v24 = vpop.eup %5725  ;;  %v4444_v50 = vadd.f32 %v8585_v46, %v8581_v43 }
 0x65d   : > { %9867 = vst [vmem:[#allocation30_spill] sm:$0xff] %v8587_v24  ;;  %v8591_v58 = vpop.eup %5727 }
 0x65e   : > { %9868 = vst [vmem:[#allocation43_spill] sm:$0xff] %v8591_v58  ;;  %v8593_v26 = vpop.eup %5729  ;;  %3419 = vadd.xlane.f32.xlu0 %v3418_v29  ;;  %v3415_v20 = vadd.f32 %v8591_v58, %v8587_v24 }
 0x65f   : > { %9869 = vst [vmem:[#allocation57_spill] sm:$0xff] %v8593_v26  ;;  %v8597_v3 = vpop.eup %5731  ;;  %4445 = vadd.xlane.f32.xlu1 %v4444_v50 }
 0x660   : > { %9870 = vst [vmem:[#allocation55_spill] sm:$0xff] %v8597_v3  ;;  %v8599_v32 = vpop.eup %5733  ;;  %v4441_v37 = vadd.f32 %v8597_v3, %v8593_v26 }
 0x661   : > { %9871 = vst [vmem:[#allocation52_spill] sm:$0xff] %v8599_v32  ;;  %v8603_v57 = vpop.eup %5735 }
 0x662   : > { %9872 = vst [vmem:[#allocation62_spill] sm:$0xff] %v8603_v57  ;;  %3416 = vadd.xlane.f32.xlu0 %v3415_v20  ;;  %v3412_v29 = vadd.f32 %v8603_v57, %v8599_v32 }
 0x663   : > { %4442 = vadd.xlane.f32.xlu1 %v4441_v37 }
 0x666   : > { %v4416_v22 = vpop.xlane.xlu1 %4415  ;;  %3413 = vadd.xlane.f32.xlu0 %v3412_v29 }
 0x667   : > { %5737 = vrcp.f32 %v4416_v22 }
 0x66a   : > { %v4419_v43 = vpop.xlane.xlu1 %4418 }
 0x66c   : > { %v3384_v46 = vpop.xlane.xlu0 %3383 }
 0x66e   : > { %v4422_v10 = vpop.xlane.xlu1 %4421 }
 0x670   : > { %v3387_v4 = vpop.xlane.xlu0 %3386 }
 0x672   : > { %v4425_v50 = vpop.xlane.xlu1 %4424 }
 0x674   : > { %v3390_v47 = vpop.xlane.xlu0 %3389 }
 0x676   : > { %v4413_v24 = vpop.xlane.xlu1 %4412 }
 0x678   : > { %v3393_v14 = vpop.xlane.xlu0 %3392 }
 0x67c   : > { %v3396_v58 = vpop.xlane.xlu0 %3395 }
 0x67d   : > { %5739 = vrcp.f32 %v3396_v58 }
 0x67f   : > { %v4428_v36 = vpop.xlane.xlu1 %4427 }
 0x681   : > { %v3399_v20 = vpop.xlane.xlu0 %3398 }
 0x682   : > { %5741 = vrcp.f32 %v3399_v20 }
 0x683   : > { %5743 = vrcp.f32 %v4428_v36  ;;  %v4431_v37 = vpop.xlane.xlu1 %4430 }
 0x684   : > { %5745 = vrcp.f32 %v4431_v37 }
 0x685   : > { %5747 = vrcp.f32 %v4419_v43  ;;  %v3123_v26 = vpop.xlane.xlu0 %3122 }
 0x686   : > { %5749 = vrcp.f32 %v4425_v50  ;;  %v3198_v29 = vsub.f32 %v8100_v39, %v3123_v26  ;;  %v3199_v3 = vsub.f32 %v8107_v44, %v3123_v26  ;;  %v8615_v39 = vpop.eup %5737 }
 0x687   : > { %5751 = vrcp.f32 %v3393_v14  ;;  %v4152_v32 = vpop.xlane.xlu1 %4151 }
 0x688   : > { %v3300_v57 = vmul.f32 1.442695, %v3198_v29  ;;  %v3302_v6 = vmul.f32 1.442695, %v3199_v3  ;;  %v4228_v59 = vsub.f32 %v8116_v52, %v4152_v32  ;;  %v4229_v22 = vsub.f32 %v8121_v0, %v4152_v32 }
 0x689   : > { %5753 = vrcp.f32 %v3390_v47  ;;  %v3381_v58 = vpop.xlane.xlu0 %3380 }
 0x68a   : > { %5755 = vpow2.f32 %v3300_v57  ;;  %v4328_v36 = vmul.f32 1.442695, %v4228_v59  ;;  %v4330_v20 = vmul.f32 1.442695, %v4229_v22  ;;  %v5740_v14 = vpop.eup %5739 }
 0x68b   : > { %5757 = vpow2.f32 %v3302_v6  ;;  %v8613_v43 = vpop.xlane.xlu1 %4409 }
 0x68c   : > { %5759 = vrcp.f32 %v4422_v10 }
 0x68d   : > { %5761 = vpow2.f32 %v4328_v36  ;;  %v3120_v44 = vpop.xlane.xlu0 %3119 }
 0x68e   : > { %5763 = vpow2.f32 %v4330_v20  ;;  %v3196_v26 = vsub.f32 %v8155_v49, %v3120_v44  ;;  %v3197_v52 = vsub.f32 %v8160_v34, %v3120_v44 }
 0x68f   : > { %v5742_v0 = vpop.eup %5741  ;;  %5765 = vrcp.f32 %v3387_v4  ;;  %v4149_v32 = vpop.xlane.xlu1 %4148 }
 0x690   : > { %v5744_v47 = vpop.eup %5743  ;;  %v3296_v59 = vmul.f32 1.442695, %v3196_v26  ;;  %v3298_v3 = vmul.f32 1.442695, %v3197_v52  ;;  %v4226_v6 = vsub.f32 %v8152_v54, %v4149_v32  ;;  %v4227_v10 = vsub.f32 %v8167_v12, %v4149_v32 }
 0x691   : > { %v5746_v57 = vpop.eup %5745  ;;  %5767 = vrcp.f32 %v3384_v46  ;;  %v3378_v50 = vpop.xlane.xlu0 %3377  ;;  %v3495_v37 = vmul.f32 %v5742_v0, %v8097_v5  ;;  %v3494_v29 = vmul.f32 %v5742_v0, %v8089_v16  ;;  %v3492_v54 = vmul.f32 %v5740_v14, %v8073_v13 }
 0x692   : > { %v8623_v49 = vpop.eup %5747  ;;  %5769 = vpow2.f32 %v3296_v59  ;;  %v4324_v34 = vmul.f32 1.442695, %v4226_v6  ;;  %v4326_v4 = vmul.f32 1.442695, %v4227_v10  ;;  %v4527_v22 = vmul.f32 %v5746_v57, %v8113_v2  ;;  %v9874_v6 = vld [vmem:[#allocation12_spill] sm:$0xff]  ;;  %v9875_v10 = vld [vmem:[#allocation22_spill] sm:$0xff] }
 0x693   : > { %v5750_v36 = vpop.eup %5749  ;;  %5771 = vpow2.f32 %v3298_v3  ;;  %3544 = vmatprep.subr.mxu1 %v3495_v37  ;;  %v8627_v12 = vpop.xlane.xlu1 %4406  ;;  %v4526_v46 = vmul.f32 %v5746_v57, %v8104_v25  ;;  %v4524_v16 = vmul.f32 %v5744_v47, %v8087_v17  ;;  %v3491_v26 = vmul.f32 %v5740_v14, %v8069_v40 }
 0x694   : > { %v5752_v20 = vpop.eup %5751  ;;  %5773 = vrcp.f32 %v4413_v24  ;;  %3545 = vmatpush1.xpose.msra.mxu1 %v3494_v29  ;;  %4576 = vmatprep.subr.mxu0 %v4527_v22  ;;  %v4523_v17 = vmul.f32 %v5744_v47, %v8085_v55  ;;  %v4521_v0 = vmul.f32 %v5750_v36, %v8031_v30  ;;  %v9876_v29 = vld [vmem:[#allocation92_spill] sm:$0xff] }
 0x695   : > { %5775 = vpow2.f32 %v4324_v34  ;;  %3546 = vmatprep.subr.mxu1 %v3492_v54  ;;  %v3117_v5 = vpop.xlane.xlu0 %3116  ;;  %4577 = vmatpush1.xpose.msra.mxu0 %v4526_v46  ;;  %v3489_v24 = vmul.f32 %v5752_v20, %v8057_v35  ;;  %v3488_v57 = vmul.f32 %v5752_v20, %v9875_v10 }
 0x696   : > { %v5754_v2 = vpop.eup %5753  ;;  %5777 = vpow2.f32 %v4326_v4  ;;  %v3194_v44 = vsub.f32 %v8199_v61, %v3117_v5  ;;  %v3195_v13 = vsub.f32 %v8210_v31, %v3117_v5  ;;  %4578 = vmatprep.subr.mxu0 %v4524_v16  ;;  %v9873_v61 = vld [vmem:[#allocation93_spill] sm:$0xff]  ;;  %v9878_v16 = vld [vmem:[#allocation23_spill] sm:$0xff] }
 0x697   : > { %v8634_v25 = vpop.eup %5755  ;;  %5779 = vrcp.f32 %v3381_v58  ;;  %v4146_v52 = vpop.xlane.xlu1 %4145  ;;  %v9877_v4 = vld [vmem:[#allocation5_spill] sm:$0xff] }
 0x698   : > { %v8639_v32 = vpop.eup %5757  ;;  %v3292_v59 = vmul.f32 1.442695, %v3194_v44  ;;  %v3294_v3 = vmul.f32 1.442695, %v3195_v13  ;;  %3547 = vmatpush1.xpose.msra.mxu1 %v3491_v26  ;;  %v4224_v31 = vsub.f32 %v9873_v61, %v4146_v52  ;;  %v4225_v40 = vsub.f32 %v9874_v6, %v4146_v52  ;;  %v9879_v13 = vld [vmem:[#allocation19_spill] sm:$0xff] }
 0x699   : > { %v5760_v14 = vpop.eup %5759  ;;  %5781 = vrcp.f32 %v3378_v50  ;;  %3548 = vmatprep.subr.mxu1 %v3489_v24  ;;  %v3375_v58 = vpop.xlane.xlu0 %3374  ;;  %v3409_v35 = vadd.f32 %v8639_v32, %v8634_v25  ;;  %4579 = vmatpush1.xpose.msra.mxu0 %v4523_v17  ;;  %v3486_v50 = vmul.f32 %v5754_v2, %v9876_v29  ;;  %v4520_v22 = vmul.f32 %v5750_v36, %v9877_v4  ;;  %v9880_v24 = vld [vmem:[#allocation37_spill] sm:$0xff]  ;;  %v9881_v36 = vld [vmem:[#allocation24_spill] sm:$0xff]  ;;  %v9883_v61 = vld [vmem:[#allocation11_spill] sm:$0xff] }
 0x69a   : > { %v8645_v55 = vpop.eup %5761  ;;  %5783 = vpow2.f32 %v3292_v59  ;;  %v4320_v30 = vmul.f32 1.442695, %v4224_v31  ;;  %v4322_v47 = vmul.f32 1.442695, %v4225_v40  ;;  %4580 = vmatprep.subr.mxu0 %v4521_v0  ;;  %v4518_v5 = vmul.f32 %v5760_v14, %v9878_v16  ;;  %v9882_v0 = vld [vmem:[#allocation26_spill] sm:$0xff] }
 0x69b   : > { %v8648_v37 = vpop.eup %5763  ;;  %5785 = vpow2.f32 %v3294_v3  ;;  %3410 = vadd.xlane.f32.xlu0 %v3409_v35  ;;  %v4404_v34 = vpop.xlane.xlu1 %4403  ;;  %v3485_v17 = vmul.f32 %v5754_v2, %v9881_v36  ;;  %v4517_v31 = vmul.f32 %v5760_v14, %v9883_v61  ;;  %v9885_v14 = vld [vmem:[#allocation29_spill] sm:$0xff] }
 0x69c   : > { %v5766_v54 = vpop.eup %5765  ;;  %5787 = vrcp.f32 %v8613_v43  ;;  %3549 = vmatpush1.xpose.msra.mxu1 %v3488_v57  ;;  %v4438_v46 = vadd.f32 %v8648_v37, %v8645_v55 }
 0x69d   : > { %5789 = vpow2.f32 %v4320_v30  ;;  %3550 = vmatprep.subr.mxu1 %v3486_v50  ;;  %v3114_v20 = vpop.xlane.xlu0 %3113  ;;  %4581 = vmatpush1.xpose.msra.mxu0 %v4520_v22  ;;  %v3483_v59 = vmul.f32 %v5766_v54, %v9882_v0  ;;  %v9884_v30 = vld [vmem:[#allocation14_spill] sm:$0xff]  ;;  %v3482_v29 = vmul.f32 %v5766_v54, %v9885_v14  ;;  %v9886_v50 = vld [vmem:[#allocation28_spill] sm:$0xff] }
 0x69e   : > { %v5768_v44 = vpop.eup %5767  ;;  %5791 = vpow2.f32 %v4322_v47  ;;  %v3192_v26 = vsub.f32 %v9879_v13, %v3114_v20  ;;  %v3193_v52 = vsub.f32 %v9880_v24, %v3114_v20  ;;  %4439 = vadd.xlane.f32.xlu1 %v4438_v46  ;;  %4582 = vmatprep.subr.mxu0 %v4518_v5  ;;  %v4515_v47 = vmul.f32 %v8623_v49, %v9884_v30  ;;  %v9888_v20 = vld [vmem:[#allocation33_spill] sm:$0xff]  ;;  %v9889_v24 = vld [vmem:[#allocation31_spill] sm:$0xff] }
 0x69f   : > { %v8659_v43 = vpop.eup %5769  ;;  %5793 = vrcp.f32 %v3375_v58  ;;  %v4401_v3 = vpop.xlane.xlu1 %4400  ;;  %v3480_v4 = vmul.f32 %v5768_v44, %v9886_v50  ;;  %v4512_v54 = vmul.f32 %v8615_v39, %v9888_v20  ;;  %v9895_v50 = vld [vmem:[#allocation27_spill] sm:$0xff] }
 0x6a0   : > { %v8663_v6 = vpop.eup %5771  ;;  %5795 = vrcp.f32 %v8627_v12  ;;  %v3288_v40 = vmul.f32 1.442695, %v3192_v26  ;;  %v3290_v35 = vmul.f32 1.442695, %v3193_v52  ;;  %3551 = vmatpush1.xpose.msra.mxu1 %v3485_v17  ;;  %v3479_v52 = vmul.f32 %v5768_v44, %v9889_v24 }
 0x6a1   : > { %v5774_v2 = vpop.eup %5773  ;;  %5797 = vrcp.f32 %v4404_v34  ;;  %3552 = vmatprep.subr.mxu1 %v3483_v59  ;;  %v3372_v10 = vpop.xlane.xlu0 %3371  ;;  %v3406_v58 = vadd.f32 %v8663_v6, %v8659_v43  ;;  %4583 = vmatpush1.xpose.msra.mxu0 %v4517_v31  ;;  %v9887_v34 = vld [vmem:[#allocation32_spill] sm:$0xff]  ;;  %v9891_v59 = vld [vmem:[#allocation34_spill] sm:$0xff] }
 0x6a2   : > { %v8670_v57 = vpop.eup %5775  ;;  %5799 = vpow2.f32 %v3288_v40  ;;  %4584 = vmatprep.subr.mxu0 %v4515_v47  ;;  %v4514_v46 = vmul.f32 %v8623_v49, %v9887_v34  ;;  %v9890_v49 = vld [vmem:[#allocation3_spill] sm:$0xff]  ;;  %v4511_v61 = vmul.f32 %v8615_v39, %v9891_v59  ;;  %v9892_v40 = vld [vmem:[#allocation25_spill] sm:$0xff]  ;;  %v9894_v39 = vld [vmem:[#allocation10_spill] sm:$0xff] }
 0x6a3   : > { %v8673_v12 = vpop.eup %5777  ;;  %5801 = vpow2.f32 %v3290_v35  ;;  %3407 = vadd.xlane.f32.xlu0 %v3406_v58  ;;  %v4398_v22 = vpop.xlane.xlu1 %4397  ;;  %v4509_v35 = vmul.f32 %v5774_v2, %v9892_v40  ;;  %v9893_v58 = vld [vmem:[#allocation91_spill] sm:$0xff]  ;;  %v9899_v59 = vld [vmem:[#allocation21_spill] sm:$0xff] }
 0x6a4   : > { %v5780_v16 = vpop.eup %5779  ;;  %5803 = vrcp.f32 %v3372_v10  ;;  %3553 = vmatpush1.xpose.msra.mxu1 %v3482_v29  ;;  %v4435_v5 = vadd.f32 %v8673_v12, %v8670_v57 }
 0x6a5   : > { %3554 = vmatprep.subr.mxu1 %v3480_v4  ;;  %v3369_v13 = vpop.xlane.xlu0 %3368  ;;  %4585 = vmatpush1.xpose.msra.mxu0 %v4514_v46  ;;  %v3477_v17 = vmul.f32 %v5780_v16, %v9890_v49  ;;  %v3476_v14 = vmul.f32 %v5780_v16, %v9893_v58  ;;  %v4508_v4 = vmul.f32 %v5774_v2, %v9895_v50  ;;  %v9898_v2 = vld [vmem:[#allocation87_spill] sm:$0xff] }
 0x6a6   : > { %v5782_v26 = vpop.eup %5781  ;;  %4436 = vadd.xlane.f32.xlu1 %v4435_v5  ;;  %4586 = vmatprep.subr.mxu0 %v4512_v54  ;;  %5805 = vrcp.f32 %v3369_v13  ;;  %v9896_v5 = vld [vmem:[#allocation94_spill] sm:$0xff] }
 0x6a7   : > { %v8683_v36 = vpop.eup %5783  ;;  %v4395_v0 = vpop.xlane.xlu1 %4394  ;;  %5807 = vrcp.f32 %v4401_v3  ;;  %v3474_v3 = vmul.f32 %v5782_v26, %v9894_v39 }
 0x6a8   : > { %v8688_v31 = vpop.eup %5785  ;;  %3555 = vmatpush1.xpose.msra.mxu1 %v3479_v52  ;;  %v9897_v52 = vld [vmem:[#allocation7_spill] sm:$0xff] }
 0x6a9   : > { %v5788_v30 = vpop.eup %5787  ;;  %3556 = vmatprep.subr.mxu1 %v3477_v17  ;;  %v3366_v47 = vpop.xlane.xlu0 %3365  ;;  %v3403_v44 = vadd.f32 %v8688_v31, %v8683_v36  ;;  %4587 = vmatpush1.xpose.msra.mxu0 %v4511_v61  ;;  %v3473_v49 = vmul.f32 %v5782_v26, %v9897_v52 }
 0x6aa   : > { %v8693_v10 = vpop.eup %5789  ;;  %4588 = vmatprep.subr.mxu0 %v4509_v35  ;;  %5809 = vrcp.f32 %v3366_v47  ;;  %v4506_v20 = vmul.f32 %v5788_v30, %v9896_v5  ;;  %v4505_v61 = vmul.f32 %v5788_v30, %v9899_v59  ;;  %v9900_v35 = vld [vmem:[#allocation6_spill] sm:$0xff]  ;;  %v9902_v30 = vld [vmem:[#allocation103_spill] sm:$0xff]  ;;  %v9904_v5 = vld [vmem:[#allocation36_spill] sm:$0xff] }
 0x6ab   : > { %v8696_v29 = vpop.eup %5791  ;;  %3404 = vadd.xlane.f32.xlu0 %v3403_v44  ;;  %5811 = vrcp.f32 %v4398_v22  ;;  %v4392_v13 = vpop.xlane.xlu1 %4391  ;;  %v9907_v59 = vld [vmem:[#allocation108_spill] sm:$0xff] }
 0x6ac   : > { %v5794_v34 = vpop.eup %5793  ;;  %3557 = vmatpush1.xpose.msra.mxu1 %v3476_v14  ;;  %v4432_v46 = vadd.f32 %v8696_v29, %v8693_v10  ;;  %v9901_v14 = vld [vmem:[#allocation8_spill] sm:$0xff] }
 0x6ad   : > { %v5796_v54 = vpop.eup %5795  ;;  %3558 = vmatprep.subr.mxu1 %v3474_v3  ;;  %v3363_v16 = vpop.xlane.xlu0 %3362  ;;  %4589 = vmatpush1.xpose.msra.mxu0 %v4508_v4  ;;  %v3471_v22 = vmul.f32 %v5794_v34, %v9898_v2  ;;  %v3470_v39 = vmul.f32 %v5794_v34, %v9901_v14  ;;  %v9903_v4 = vld [vmem:[#allocation9_spill] sm:$0xff]  ;;  %v9906_v34 = vld [vmem:[#allocation39_spill] sm:$0xff]  ;;  %v9909_v14 = vld [vmem:[#allocation38_spill] sm:$0xff] }
 0x6ae   : > { %v5798_v24 = vpop.eup %5797  ;;  %4433 = vadd.xlane.f32.xlu1 %v4432_v46  ;;  %4590 = vmatprep.subr.mxu0 %v4506_v20  ;;  %5813 = vrcp.f32 %v3363_v16  ;;  %v4503_v47 = vmul.f32 %v5796_v54, %v9900_v35 }
 0x6af   : > { %v8704_v17 = vpop.eup %5799  ;;  %5815 = vrcp.f32 %v4395_v0  ;;  %v4389_v3 = vpop.xlane.xlu1 %4388  ;;  %v4502_v0 = vmul.f32 %v5796_v54, %v9903_v4  ;;  %v4500_v20 = vmul.f32 %v5798_v24, %v9904_v5  ;;  %v9908_v54 = vld [vmem:[#allocation117_spill] sm:$0xff]  ;;  %v9912_v5 = vld [vmem:[#allocation123_spill] sm:$0xff] }
 0x6b0   : > { %v8708_v40 = vpop.eup %5801  ;;  %3559 = vmatpush1.xpose.msra.mxu1 %v3473_v49  ;;  %v9905_v49 = vld [vmem:[#allocation20_spill] sm:$0xff] }
 0x6b1   : > { %v5804_v44 = vpop.eup %5803  ;;  %3560 = vmatprep.subr.mxu1 %v3471_v22  ;;  %v3360_v58 = vpop.xlane.xlu0 %3359  ;;  %v3400_v26 = vadd.f32 %v8708_v40, %v8704_v17  ;;  %4591 = vmatpush1.xpose.msra.mxu0 %v4505_v61  ;;  %v4499_v61 = vmul.f32 %v5798_v24, %v9907_v59  ;;  %v283_v24 = vld [vmem:[%s8883_s2 + $0x58] sm:$0xff] }
 0x6b2   : > { %4592 = vmatprep.subr.mxu0 %v4503_v47  ;;  %5817 = vrcp.f32 %v3360_v58  ;;  %v3468_v50 = vmul.f32 %v5804_v44, %v9902_v30  ;;  %v3467_v2 = vmul.f32 %v5804_v44, %v9905_v49  ;;  %v9910_v44 = vld [vmem:[#allocation124_spill] sm:$0xff] }
 0x6b3   : > { %3401 = vadd.xlane.f32.xlu0 %v3400_v26  ;;  %v5806_v46 = vpop.eup %5805  ;;  %5819 = vrcp.f32 %v4392_v13  ;;  %v4386_v58 = vpop.xlane.xlu1 %4385 }
 0x6b4   : > { %3561 = vmatpush1.xpose.msra.mxu1 %v3470_v39  ;;  %v5808_v16 = vpop.eup %5807  ;;  %v3465_v22 = vmul.f32 %v5806_v46, %v9906_v34  ;;  %v3464_v39 = vmul.f32 %v5806_v46, %v9909_v14  ;;  %v9913_v46 = vld [vmem:[#allocation90_spill] sm:$0xff] }
 0x6b5   : > { %3562 = vmatprep.subr.mxu1 %v3468_v50  ;;  %v3357_v52 = vpop.xlane.xlu0 %3356  ;;  %4593 = vmatpush1.xpose.msra.mxu0 %v4502_v0  ;;  %v4497_v47 = vmul.f32 %v5808_v16, %v9908_v54  ;;  %v9911_v50 = vld [vmem:[#allocation116_spill] sm:$0xff]  ;;  %v9916_v54 = vld [vmem:[#allocation85_spill] sm:$0xff]  ;;  %v9917_v14 = vld [vmem:[#allocation86_spill] sm:$0xff] }
 0x6b6   : > { %4594 = vmatprep.subr.mxu0 %v4500_v20  ;;  %5821 = vrcp.f32 %v3357_v52  ;;  %v4496_v4 = vmul.f32 %v5808_v16, %v9911_v50  ;;  %v9915_v16 = vld [vmem:[#allocation119_spill] sm:$0xff] }
 0x6b7   : > { %v5810_v35 = vpop.eup %5809  ;;  %5823 = vrcp.f32 %v4389_v3 }
 0x6b8   : > { %3563 = vmatpush1.xpose.msra.mxu1 %v3467_v2  ;;  %v5812_v13 = vpop.eup %5811  ;;  %v3462_v30 = vmul.f32 %v5810_v35, %v9910_v44  ;;  %v3461_v49 = vmul.f32 %v5810_v35, %v9913_v46  ;;  %v9914_v2 = vld [vmem:[#allocation118_spill] sm:$0xff] }
 0x6b9   : > { %3564 = vmatprep.subr.mxu1 %v3465_v22  ;;  %v3354_v26 = vpop.xlane.xlu0 %3353  ;;  %4595 = vmatpush1.xpose.msra.mxu0 %v4499_v61  ;;  %v4494_v3 = vmul.f32 %v5812_v13, %v9912_v5  ;;  %v4493_v22 = vmul.f32 %v5812_v13, %v9915_v16  ;;  %v4654_v61 = vld [vmem:[%s8885_s4 + $0x18] sm:$0xff]  ;;  %v9919_v13 = vld [vmem:[#allocation120_spill] sm:$0xff]  ;;  %v9920_v5 = vld [vmem:[#allocation115_spill] sm:$0xff] }
 0x6ba   : > { %4596 = vmatprep.subr.mxu0 %v4497_v47  ;;  %5825 = vrcp.f32 %v3354_v26 }
 0x6bb   : > { %v5814_v0 = vpop.eup %5813  ;;  %5827 = vrcp.f32 %v4386_v58 }
 0x6bc   : > { %3565 = vmatpush1.xpose.msra.mxu1 %v3464_v39  ;;  %v5816_v20 = vpop.eup %5815  ;;  %v4473_v52 = vpop.xlane.xlu1 %4472  ;;  %v3459_v34 = vmul.f32 %v5814_v0, %v9914_v2  ;;  %v3458_v35 = vmul.f32 %v5814_v0, %v9917_v14  ;;  %v9918_v39 = vld [vmem:[#allocation111_spill] sm:$0xff]  ;;  %v9921_v0 = vld [vmem:[#allocation122_spill] sm:$0xff] }
 0x6bd   : > { %3566 = vmatprep.subr.mxu1 %v3462_v30  ;;  %4597 = vmatpush1.xpose.msra.mxu0 %v4496_v4  ;;  %v4491_v47 = vmul.f32 %v5816_v20, %v9916_v54  ;;  %v4490_v50 = vmul.f32 %v5816_v20, %v9919_v13  ;;  %v9922_v54 = vld [vmem:[#allocation88_spill] sm:$0xff]  ;;  %v9923_v14 = vld [vmem:[#allocation18_spill] sm:$0xff]  ;;  %v9924_v13 = vld [vmem:[#allocation121_spill] sm:$0xff] }
 0x6be   : > { %4598 = vmatprep.subr.mxu0 %v4494_v3 }
 0x6bf   : > { %341 = vperm.xlu1 %5124, %v283_v24   ;;  %v5818_v59 = vpop.eup %5817  ;;  %v4653_v24 = vld [vmem:[%s8885_s4 + $0x10] sm:$0xff] }
 0x6c0   : > { %3567 = vmatpush1.xpose.msra.mxu1 %v3461_v49  ;;  %v5820_v58 = vpop.eup %5819  ;;  %v4470_v26 = vpop.xlane.xlu1 %4469  ;;  %v3456_v44 = vmul.f32 %v5818_v59, %v9918_v39  ;;  %v3455_v2 = vmul.f32 %v5818_v59, %v9921_v0 }
 0x6c1   : > { %3568 = vmatprep.subr.mxu1 %v3459_v34  ;;  %4599 = vmatpush1.xpose.msra.mxu0 %v4493_v22  ;;  %v4488_v3 = vmul.f32 %v5820_v58, %v9920_v5  ;;  %v282_v34 = vld [vmem:[%s8883_s2 + $0x50] sm:$0xff] }
 0x6c2   : > { %4600 = vmatprep.subr.mxu0 %v4491_v47  ;;  %v4487_v47 = vmul.f32 %v5820_v58, %v9922_v54 }
 0x6c3   : > { %4672 = vperm.xlu1 %5124, %v4654_v61   ;;  %v3444_v30 = vpop.xlane.xlu0 %3443  ;;  %v5822_v4 = vpop.eup %5821  ;;  %v4651_v61 = vld [vmem:[%s8885_s4] sm:$0xff] }
 0x6c4   : > { %3569 = vmatpush1.xpose.msra.mxu1 %v3458_v35  ;;  %v4476_v46 = vpop.xlane.xlu1 %4475  ;;  %v5824_v49 = vpop.eup %5823  ;;  %5829 = vrcp.f32 %v3444_v30  ;;  %v3453_v20 = vmul.f32 %v5822_v4, %v8372_v8  ;;  %v3452_v8 = vmul.f32 %v5822_v4, %v8366_v18 }
 0x6c5   : > { %3570 = vmatprep.subr.mxu1 %v3456_v44  ;;  %4601 = vmatpush1.xpose.msra.mxu0 %v4490_v50  ;;  %v4485_v35 = vmul.f32 %v5824_v49, %v9923_v14  ;;  %v4652_v44 = vld [vmem:[%s8885_s4 + $0x8] sm:$0xff]  ;;  %v4484_v50 = vmul.f32 %v5824_v49, %v9924_v13  ;;  %v9926_v14 = vld [vmem:[#allocation4_spill] sm:$0xff] }
 0x6c6   : > { %4602 = vmatprep.subr.mxu0 %v4488_v3  ;;  %v9929_v13 = vld [vmem:[#allocation99_spill] sm:$0xff] }
 0x6c7   : > { %4667 = vperm.xlu1 %5124, %v4653_v24   ;;  %v3447_v16 = vpop.xlane.xlu0 %3446  ;;  %v5826_v22 = vpop.eup %5825 }
 0x6c8   : > { %3571 = vmatpush1.xpose.msra.mxu1 %v3455_v2  ;;  %5831 = vrcp.f32 %v3447_v16  ;;  %v4479_v59 = vpop.xlane.xlu1 %4478  ;;  %v5828_v39 = vpop.eup %5827  ;;  %v3450_v30 = vmul.f32 %v5826_v22, %v8389_v41  ;;  %v3449_v18 = vmul.f32 %v5826_v22, %v8381_v21  ;;  %v9925_v41 = vld [vmem:[#allocation113_spill] sm:$0xff] }
 0x6c9   : > { %5833 = vrcp.f32 %v4476_v46  ;;  %336 = vperm.xlu0 %5123, %v282_v34   ;;  %3572 = vmatprep.subr.mxu1 %v3453_v20  ;;  %v4482_v5 = vmul.f32 %v5828_v39, %v8361_v38  ;;  %v4481_v3 = vmul.f32 %v5828_v39, %v9925_v41  ;;  %v9931_v41 = vld [vmem:[#allocation104_spill] sm:$0xff] }
 0x6ca   : > { %5835 = vrcp.f32 %v4479_v59  ;;  %4603 = vmatpush1.xpose.msra.mxu0 %v4487_v47 }
 0x6cb   : > { %4657 = vperm.xlu1 %5124, %v4651_v61   ;;  %4604 = vmatprep.subr.mxu0 %v4485_v35  ;;  %v3441_v58 = vpop.xlane.xlu0 %3440 }
 0x6cc   : > { %3573 = vmatpush1.xpose.msra.mxu1 %v3452_v8  ;;  %5837 = vrcp.f32 %v3441_v58  ;;  %v4467_v24 = vpop.xlane.xlu1 %4466 }
 0x6cd   : > { %4662 = vperm.xlu0 %5123, %v4652_v44   ;;  %3574 = vmatprep.subr.mxu1 %v3450_v30  ;;  %5839 = vrcp.f32 %v4473_v52  ;;  %v9928_v44 = vld [vmem:[#allocation107_spill] sm:$0xff] }
 0x6ce   : > { %4605 = vmatpush1.xpose.msra.mxu0 %v4484_v50 }
 0x6cf   : > { %4606 = vmatprep.subr.mxu0 %v4482_v5  ;;  %v3438_v4 = vpop.xlane.xlu0 %3437 }
 0x6d0   : > { %3575 = vmatpush1.xpose.msra.mxu1 %v3449_v18  ;;  %5841 = vrcp.f32 %v3438_v4  ;;  %v4464_v46 = vpop.xlane.xlu1 %4463  ;;  %v9930_v18 = vld [vmem:[#allocation114_spill] sm:$0xff] }
 0x6d1   : > { %5843 = vrcp.f32 %v4470_v26  ;;  %v5830_v49 = vpop.eup %5829 }
 0x6d2   : > { %4607 = vmatpush1.xpose.msra.mxu0 %v4481_v3  ;;  %v3540_v61 = vmul.f32 %v5830_v49, %v8433_v1  ;;  %v3539_v35 = vmul.f32 %v5830_v49, %v9926_v14  ;;  %v9927_v1 = vld [vmem:[#allocation112_spill] sm:$0xff] }
 0x6d3   : > { %v3435_v0 = vpop.xlane.xlu0 %3434 }
 0x6d4   : > { %5845 = vrcp.f32 %v3435_v0  ;;  %v4461_v34 = vpop.xlane.xlu1 %4460 }
 0x6d5   : > { %v5832_v2 = vpop.eup %5831  ;;  %5847 = vrcp.f32 %v4467_v24 }
 0x6d6   : > { %v5834_v20 = vpop.eup %5833  ;;  %v3543_v38 = vmul.f32 %v5832_v2, %v8453_v62  ;;  %v3542_v21 = vmul.f32 %v5832_v2, %v8447_v27 }
 0x6d7   : > { %v5836_v52 = vpop.eup %5835  ;;  %v3432_v16 = vpop.xlane.xlu0 %3431  ;;  %v4572_v62 = vmul.f32 %v5834_v20, %v8423_v15  ;;  %v4571_v8 = vmul.f32 %v5834_v20, %v9927_v1 }
 0x6d8   : > { %5849 = vrcp.f32 %v3432_v16  ;;  %3576 = vmatprep.subr.mxu1 %v3543_v38  ;;  %v4575_v22 = vmul.f32 %v5836_v52, %v8443_v60  ;;  %v4574_v26 = vmul.f32 %v5836_v52, %v8437_v28  ;;  %v4458_v47 = vpop.xlane.xlu1 %4457  ;;  %v9933_v38 = vld [vmem:[#allocation110_spill] sm:$0xff] }
 0x6d9   : > { %v5838_v54 = vpop.eup %5837  ;;  %3577 = vmatpush2.xpose.msra.mxu1 %v3542_v21  ;;  %5851 = vrcp.f32 %v4464_v46 }
 0x6da   : > { %4608 = vmatprep.subr.mxu0 %v4575_v22  ;;  %3578 = vmatprep.subr.mxu1 %v3540_v61  ;;  %v5840_v59 = vpop.eup %5839  ;;  %v3537_v60 = vmul.f32 %v5838_v54, %v8463_v45  ;;  %v3536_v50 = vmul.f32 %v5838_v54, %v9929_v13 }
 0x6db   : > { %4609 = vmatpush2.xpose.msra.mxu0 %v4574_v26  ;;  %v3429_v27 = vpop.xlane.xlu0 %3428  ;;  %v4569_v30 = vmul.f32 %v5840_v59, %v9928_v44  ;;  %v4568_v4 = vmul.f32 %v5840_v59, %v9930_v18  ;;  %v9940_v18 = vld [vmem:[#allocation50_spill] sm:$0xff] }
 0x6dc   : > { %4610 = vmatprep.subr.mxu0 %v4572_v62  ;;  %5853 = vrcp.f32 %v3429_v27  ;;  %v4455_v39 = vpop.xlane.xlu1 %4454 }
 0x6dd   : > { %v5842_v28 = vpop.eup %5841  ;;  %3579 = vmatpush2.xpose.msra.mxu1 %v3539_v35  ;;  %5855 = vrcp.f32 %v4461_v34 }
 0x6de   : > { %3580 = vmatprep.subr.mxu1 %v3537_v60  ;;  %v5844_v58 = vpop.eup %5843  ;;  %v3534_v24 = vmul.f32 %v5842_v28, %v8483_v63  ;;  %v3533_v49 = vmul.f32 %v5842_v28, %v8477_v19  ;;  %v9932_v63 = vld [vmem:[#allocation89_spill] sm:$0xff] }
 0x6df   : > { %4611 = vmatpush2.xpose.msra.mxu0 %v4571_v8  ;;  %v3426_v15 = vpop.xlane.xlu0 %3425  ;;  %v4566_v3 = vmul.f32 %v5844_v58, %v9931_v41  ;;  %v4565_v20 = vmul.f32 %v5844_v58, %v9932_v63  ;;  %v9941_v41 = vld [vmem:[#allocation51_spill] sm:$0xff] }
 0x6e0   : > { %4612 = vmatprep.subr.mxu0 %v4569_v30  ;;  %5857 = vrcp.f32 %v3426_v15  ;;  %v4452_v45 = vpop.xlane.xlu1 %4451 }
 0x6e1   : > { %v5846_v5 = vpop.eup %5845  ;;  %3581 = vmatpush2.xpose.msra.mxu1 %v3536_v50  ;;  %5859 = vrcp.f32 %v4458_v47  ;;  %v9935_v47 = vld [vmem:[#allocation106_spill] sm:$0xff] }
 0x6e2   : > { %3582 = vmatprep.subr.mxu1 %v3534_v24  ;;  %v5848_v46 = vpop.eup %5847  ;;  %v3531_v2 = vmul.f32 %v5846_v5, %v8503_v56  ;;  %v3530_v26 = vmul.f32 %v5846_v5, %v8497_v53  ;;  %v9934_v56 = vld [vmem:[#allocation100_spill] sm:$0xff]  ;;  %v9938_v24 = vld [vmem:[#allocation47_spill] sm:$0xff] }
 0x6e3   : > { %4613 = vmatpush2.xpose.msra.mxu0 %v4568_v4  ;;  %v3423_v0 = vpop.xlane.xlu0 %3422  ;;  %v4563_v21 = vmul.f32 %v5848_v46, %v9933_v38  ;;  %v4562_v54 = vmul.f32 %v5848_v46, %v9934_v56  ;;  %v9945_v38 = vld [vmem:[#allocation48_spill] sm:$0xff] }
 0x6e4   : > { %4614 = vmatprep.subr.mxu0 %v4566_v3  ;;  %5861 = vrcp.f32 %v3423_v0  ;;  %v4449_v16 = vpop.xlane.xlu1 %4448  ;;  %v9942_v3 = vld [vmem:[#allocation35_spill] sm:$0xff] }
 0x6e5   : > { %v5850_v34 = vpop.eup %5849  ;;  %3583 = vmatpush2.xpose.msra.mxu1 %v3533_v49  ;;  %5863 = vrcp.f32 %v4455_v39  ;;  %v9943_v49 = vld [vmem:[#allocation54_spill] sm:$0xff] }
 0x6e6   : > { %3584 = vmatprep.subr.mxu1 %v3531_v2  ;;  %v5852_v52 = vpop.eup %5851  ;;  %v3528_v19 = vmul.f32 %v5850_v34, %v8523_v48  ;;  %v3527_v14 = vmul.f32 %v5850_v34, %v8517_v42  ;;  %v9936_v48 = vld [vmem:[#allocation97_spill] sm:$0xff]  ;;  %v9944_v34 = vld [vmem:[#allocation46_spill] sm:$0xff] }
 0x6e7   : > { %4615 = vmatpush2.xpose.msra.mxu0 %v4565_v20  ;;  %v3420_v22 = vpop.xlane.xlu0 %3419  ;;  %v4560_v62 = vmul.f32 %v5852_v52, %v9935_v47  ;;  %v4559_v28 = vmul.f32 %v5852_v52, %v9936_v48  ;;  %v9946_v52 = vld [vmem:[#allocation43_spill] sm:$0xff]  ;;  %v9949_v47 = vld [vmem:[#allocation30_spill] sm:$0xff] }
 0x6e8   : > { %4616 = vmatprep.subr.mxu0 %v4563_v21  ;;  %5865 = vrcp.f32 %v3420_v22  ;;  %v4446_v60 = vpop.xlane.xlu1 %4445 }
 0x6e9   : > { %v5854_v61 = vpop.eup %5853  ;;  %3585 = vmatpush2.xpose.msra.mxu1 %v3530_v26  ;;  %5867 = vrcp.f32 %v4452_v45  ;;  %v9939_v45 = vld [vmem:[#allocation2_spill] sm:$0xff]  ;;  %v9947_v26 = vld [vmem:[#allocation49_spill] sm:$0xff] }
 0x6ea   : > { %3586 = vmatprep.subr.mxu1 %v3528_v19  ;;  %v5856_v59 = vpop.eup %5855  ;;  %v3525_v53 = vmul.f32 %v5854_v61, %v8543_v9  ;;  %v3524_v44 = vmul.f32 %v5854_v61, %v8537_v7  ;;  %v9948_v61 = vld [vmem:[#allocation42_spill] sm:$0xff] }
 0x6eb   : > { %4617 = vmatpush2.xpose.msra.mxu0 %v4562_v54  ;;  %v3417_v27 = vpop.xlane.xlu0 %3416  ;;  %v4557_v39 = vmul.f32 %v5856_v59, %v8513_v11  ;;  %v4556_v9 = vmul.f32 %v5856_v59, %v8507_v33  ;;  %v9937_v11 = vld [vmem:[#allocation59_spill] sm:$0xff]  ;;  %v9950_v59 = vld [vmem:[#allocation62_spill] sm:$0xff] }
 0x6ec   : > { %4618 = vmatprep.subr.mxu0 %v4560_v62  ;;  %5869 = vrcp.f32 %v3417_v27  ;;  %v4443_v13 = vpop.xlane.xlu1 %4442 }
 0x6ed   : > { %v5858_v35 = vpop.eup %5857  ;;  %3587 = vmatpush2.xpose.msra.mxu1 %v3527_v14  ;;  %5871 = vrcp.f32 %v4449_v16  ;;  %v9951_v14 = vld [vmem:[#allocation44_spill] sm:$0xff] }
 0x6ee   : > { %3588 = vmatprep.subr.mxu1 %v3525_v53  ;;  %v5860_v1 = vpop.eup %5859  ;;  %v3522_v42 = vmul.f32 %v5858_v35, %v8555_v51  ;;  %v3521_v50 = vmul.f32 %v5858_v35, %v9937_v11  ;;  %v9952_v35 = vld [vmem:[#allocation58_spill] sm:$0xff] }
 0x6ef   : > { %4619 = vmatpush2.xpose.msra.mxu0 %v4559_v28  ;;  %v3414_v8 = vpop.xlane.xlu0 %3413  ;;  %v4554_v58 = vmul.f32 %v5860_v1, %v8533_v23  ;;  %v4553_v51 = vmul.f32 %v5860_v1, %v9939_v45  ;;  %v9953_v28 = vld [vmem:[#allocation52_spill] sm:$0xff]  ;;  %v9954_v1 = vld [vmem:[#allocation45_spill] sm:$0xff] }
 0x6f0   : > { %4620 = vmatprep.subr.mxu0 %v4557_v39  ;;  %5873 = vrcp.f32 %v3414_v8 }
 0x6f1   : > { %v5862_v30 = vpop.eup %5861  ;;  %3589 = vmatpush2.xpose.msra.mxu1 %v3524_v44  ;;  %5875 = vrcp.f32 %v4446_v60  ;;  %v9955_v44 = vld [vmem:[#allocation55_spill] sm:$0xff] }
 0x6f2   : > { %3590 = vmatprep.subr.mxu1 %v3522_v42  ;;  %v5864_v15 = vpop.eup %5863  ;;  %v3519_v7 = vmul.f32 %v5862_v30, %v9938_v24  ;;  %5877 = vrcp.f32 %v4443_v13  ;;  %v3518_v23 = vmul.f32 %v5862_v30, %v9941_v41  ;;  %v9956_v30 = vld [vmem:[#allocation57_spill] sm:$0xff] }
 0x6f3   : > { %4621 = vmatpush2.xpose.msra.mxu0 %v4556_v9  ;;  %v4551_v33 = vmul.f32 %v5864_v15, %v9940_v18  ;;  %v4550_v2 = vmul.f32 %v5864_v15, %v9943_v49 }
 0x6f4   : > { %4622 = vmatprep.subr.mxu0 %v4554_v58 }
 0x6f5   : > { %v5866_v5 = vpop.eup %5865  ;;  %3591 = vmatpush2.xpose.msra.mxu1 %v3521_v50 }
 0x6f6   : > { %3592 = vmatprep.subr.mxu1 %v3519_v7  ;;  %v5868_v4 = vpop.eup %5867  ;;  %v3516_v46 = vmul.f32 %v5866_v5, %v9942_v3  ;;  %v3515_v21 = vmul.f32 %v5866_v5, %v9945_v38  ;;  %v9957_v3 = vld [vmem:[#allocation15_spill] sm:$0xff] }
 0x6f7   : > { %4623 = vmatpush2.xpose.msra.mxu0 %v4553_v51  ;;  %v4548_v63 = vmul.f32 %v5868_v4, %v9944_v34  ;;  %v4547_v19 = vmul.f32 %v5868_v4, %v9947_v26  ;;  %v9961_v26 = vmov 0.0  }
 0x6f8   : > { %4624 = vmatprep.subr.mxu0 %v4551_v33 }
 0x6f9   : > { %v5870_v0 = vpop.eup %5869  ;;  %3593 = vmatpush2.xpose.msra.mxu1 %v3518_v23 }
 0x6fa   : > { %3594 = vmatprep.subr.mxu1 %v3516_v46  ;;  %v5872_v20 = vpop.eup %5871  ;;  %v3513_v16 = vmul.f32 %v5870_v0, %v9946_v52  ;;  %v3512_v62 = vmul.f32 %v5870_v0, %v9949_v47  ;;  %v9965_v47 = vld [vmem:[#allocation40_spill] sm:$0xff] }
 0x6fb   : > { %4625 = vmatpush2.xpose.msra.mxu0 %v4550_v2  ;;  %v4545_v56 = vmul.f32 %v5872_v20, %v9948_v61  ;;  %v4544_v53 = vmul.f32 %v5872_v20, %v9951_v14 }
 0x6fc   : > { %4626 = vmatprep.subr.mxu0 %v4548_v63  ;;  %v9958_v63 = vld [vmem:[#allocation17_spill] sm:$0xff] }
 0x6fd   : > { %v5874_v22 = vpop.eup %5873  ;;  %3595 = vmatpush2.xpose.msra.mxu1 %v3515_v21 }
 0x6fe   : > { %3596 = vmatprep.subr.mxu1 %v3513_v16  ;;  %v5876_v54 = vpop.eup %5875  ;;  %v3510_v27 = vmul.f32 %v5874_v22, %v9950_v59  ;;  %v3509_v39 = vmul.f32 %v5874_v22, %v9953_v28  ;;  %v9960_v16 = vld [vmem:[#allocation16_spill] sm:$0xff] }
 0x6ff   : > { %4627 = vmatpush2.xpose.msra.mxu0 %v4547_v19  ;;  %v4542_v60 = vmul.f32 %v5876_v54, %v9952_v35  ;;  %v5878_v48 = vpop.eup %5877  ;;  %v4541_v8 = vmul.f32 %v5876_v54, %v9954_v1  ;;  %v9964_v54 = vld [vmem:[#allocation41_spill] sm:$0xff]  ;;  %v4649_v59 = vld [vmem:[%s8884_s3 + $0x10] sm:$0xff] }
 0x700   : > { %4628 = vmatprep.subr.mxu0 %v4545_v56  ;;  %v4539_v42 = vmul.f32 %v5878_v48, %v9955_v44  ;;  %v4538_v9 = vmul.f32 %v5878_v48, %v9956_v30  ;;  %v9962_v56 = vld [vmem:[#allocation96_spill] sm:$0xff] }
 0x701   : > { %3597 = vmatpush2.xpose.msra.mxu1 %v3512_v62  ;;  %v4648_v62 = vld [vmem:[%s8884_s3 + $0x8] sm:$0xff] }
 0x702   : > { %3598 = vmatprep.subr.mxu1 %v3510_v27  ;;  %v4650_v27 = vld [vmem:[%s8884_s3 + $0x18] sm:$0xff] }
 0x703   : > { %4629 = vmatpush2.xpose.msra.mxu0 %v4544_v53 }
 0x704   : > { %4630 = vmatprep.subr.mxu0 %v4542_v60 }
 0x705   : > { %3599 = vmatpush2.xpose.msra.mxu1 %v3509_v39 }
 0x707   : > { %4631 = vmatpush2.xpose.msra.mxu0 %v4541_v8 }
 0x708   : > { %4632 = vmatprep.subr.mxu0 %v4539_v42 }
 0x70b   : > { %4633 = vmatpush2.xpose.msra.mxu0 %v4538_v9 }
 0x724   : > { %v3411_v58 = vpop.xlane.xlu0 %3410 }
 0x725   : > { %5879 = vrcp.f32 %v3411_v58 }
 0x727   : > { %v4440_v15 = vpop.xlane.xlu1 %4439 }
 0x728   : > { %5881 = vrcp.f32 %v4440_v15 }
 0x72c   : > { %v3408_v13 = vpop.xlane.xlu0 %3407 }
 0x72d   : > { %5883 = vrcp.f32 %v3408_v13 }
 0x72f   : > { %v4437_v11 = vpop.xlane.xlu1 %4436 }
 0x730   : > { %5885 = vrcp.f32 %v4437_v11 }
 0x732   : > { %v5880_v50 = vpop.eup %5879 }
 0x733   : > { %v3507_v24 = vmul.f32 %v5880_v50, %v8639_v32  ;;  %v3506_v7 = vmul.f32 %v5880_v50, %v8634_v25 }
 0x734   : > { %v3405_v5 = vpop.xlane.xlu0 %3404 }
 0x735   : > { %v5882_v45 = vpop.eup %5881  ;;  %5887 = vrcp.f32 %v3405_v5  ;;  %3600 = vmatprep.subr.mxu1 %v3507_v24  ;;  %v4776_v5 = vld [vmem:[%s8886_s5] sm:$0xff] }
 0x736   : > { %3601 = vmatpush2.xpose.msra.mxu1 %v3506_v7  ;;  %v4536_v51 = vmul.f32 %v5882_v45, %v8648_v37  ;;  %v4535_v18 = vmul.f32 %v5882_v45, %v8645_v55  ;;  %v4777_v45 = vld [vmem:[%s8886_s5 + $0x8] sm:$0xff] }
 0x737   : > { %v4434_v33 = vpop.xlane.xlu1 %4433 }
 0x738   : > { %5889 = vrcp.f32 %v4434_v33  ;;  %4634 = vmatprep.subr.mxu0 %v4536_v51  ;;  %v4778_v51 = vld [vmem:[%s8886_s5 + $0x10] sm:$0xff] }
 0x739   : > { %4635 = vmatpush2.xpose.msra.mxu0 %v4535_v18  ;;  %v4779_v18 = vld [vmem:[%s8886_s5 + $0x18] sm:$0xff] }
 0x73a   : > { %v5884_v4 = vpop.eup %5883 }
 0x73b   : > { %v342_v41 = vpop.permute.xlu1 %341  ;;  %v3504_v23 = vmul.f32 %v5884_v4, %v8663_v6  ;;  %v3503_v32 = vmul.f32 %v5884_v4, %v8659_v43 }
 0x73c   : > { %v3402_v25 = vpop.xlane.xlu0 %3401  ;;  %v516_v46 = vadd.f32 %v9957_v3, %v342_v41 }
 0x73d   : > { %v5886_v0 = vpop.eup %5885  ;;  %5891 = vrcp.f32 %v3402_v25  ;;  %3602 = vmatprep.subr.mxu1 %v3504_v23 }
 0x73e   : > { %3603 = vmatpush2.xpose.msra.mxu1 %v3503_v32  ;;  %4640 = vmatprep.mubr.f32.mxu0 %v516_v46  ;;  %v4533_v55 = vmul.f32 %v5886_v0, %v8673_v12  ;;  %v4532_v37 = vmul.f32 %v5886_v0, %v8670_v57  ;;  %v9959_v12 = vld [vmem:[#allocation13_spill] sm:$0xff] }
 0x73f   : > { %v514_v52 = vadd.f32 %v9959_v12, %v342_v41  ;;  %v4673_v48 = vpop.permute.xlu1 %4672 }
 0x740   : > { %4636 = vmatprep.subr.mxu0 %v4533_v55 }
 0x741   : > { %4637 = vmatpush2.xpose.msra.mxu0 %v4532_v37 }
 0x742   : > { %v5888_v49 = vpop.eup %5887 }
 0x743   : > { %v3501_v2 = vmul.f32 %v5888_v49, %v8688_v31  ;;  %v3500_v6 = vmul.f32 %v5888_v49, %v8683_v36  ;;  %v4668_v8 = vpop.permute.xlu1 %4667 }
 0x744   : > { %v337_v43 = vpop.permute.xlu0 %336 }
 0x745   : > { %v5890_v34 = vpop.eup %5889  ;;  %v510_v20 = vadd.f32 %v9958_v63, %v337_v43  ;;  %3604 = vmatprep.subr.mxu1 %v3501_v2  ;;  %v508_v22 = vadd.f32 %v9960_v16, %v337_v43 }
 0x746   : > { %3605 = vmatpush2.xpose.msra.mxu1 %v3500_v6  ;;  %v4530_v38 = vmul.f32 %v5890_v34, %v8696_v29  ;;  %v4529_v21 = vmul.f32 %v5890_v34, %v8693_v10 }
 0x747   : > { %3608 = vmatprep.mubr.f32.mxu1 %v510_v20  ;;  %v4658_v11 = vpop.permute.xlu1 %4657 }
 0x748   : > { %4638 = vmatprep.subr.mxu0 %v4530_v38  ;;  %v4663_v58 = vpop.permute.xlu0 %4662 }
 0x749   : > { %4639 = vmatpush2.xpose.msra.mxu0 %v4529_v21 }
 0x74a   : > { %v5892_v57 = vpop.eup %5891 }
 0x74b   : > { %v3498_v31 = vmul.f32 %v5892_v57, %v8708_v40  ;;  %v3497_v36 = vmul.f32 %v5892_v57, %v8704_v17  ;;  %v9963_v40 = vld [vmem:[#allocation95_spill] sm:$0xff]  ;;  %v4647_v17 = vld [vmem:[%s8884_s3] sm:$0xff] }
 0x74c   : > { %4641 = vmatmul.mubr.f32.vlgmr.msra.gmra.mxu0 %v514_v52 }
 0x74d   : > { %3606 = vmatprep.subr.mxu1 %v3498_v31 }
 0x74e   : > { %3607 = vmatpush2.xpose.msra.mxu1 %v3497_v36 }
 0x751   : > { %3609 = vmatmul.mubr.f32.vlgmr.msra.gmra.mxu1 %v508_v22 }
 0x752   : > { %4751 = vmatprep.mubr.f32.mxu1 %v9961_v26 }
 0x80c   : > { %v4642_v29 = vpop.f32.mrf.mxu0 }
 0x80e   : > { %v4644_v10 = vpop.f32.mrf.mxu0 }
 0x80f   : > { %4711 = vmatprep.subr.mxu1 %v4644_v10 }
 0x810   : > { %4712 = vmatpush1.msra.mxu1 %v4642_v29 }
 0x811   : > { %v3610_v19 = vpop.f32.mrf.mxu1 }
 0x813   : > { %v3612_v61 = vpop.f32.mrf.mxu1 }
 0x814   : > { %4713 = vmatprep.subr.mxu1 %v3612_v61 }
 0x815   : > { %4714 = vmatpush1.msra.mxu1 %v3610_v19 }
 0x816   : > { %4715 = vmatprep.subr.mxu1 %v9962_v56 }
 0x817   : > { %4716 = vmatpush1.msra.mxu1 %v9963_v40 }
 0x818   : > { %4717 = vmatprep.subr.mxu1 %v9964_v54 }
 0x819   : > { %4718 = vmatpush1.msra.mxu1 %v9965_v47 }
 0x81a   : > { %5093 = vmatmul.mubr.msk.f32.vlgmr.msra.gmra.mxu1 %vm344_vm0, %v4647_v17 }
 0x81b   : > { %4757 = vmatprep.mubr.f32.mxu1 %v9961_v26 }
 0x81e   : > { %5094 = vmatmul.mubr.msk.f32.gmra.mxu1 %vm344_vm0, %v4648_v62 }
 0x81f   : > { %4763 = vmatprep.mubr.f32.mxu1 %v9961_v26 }
 0x822   : > { %5095 = vmatmul.mubr.msk.f32.gmra.mxu1 %vm344_vm0, %v4649_v59 }
 0x823   : > { %4769 = vmatprep.mubr.f32.mxu1 %v9961_v26 }
 0x826   : > { %5096 = vmatmul.mubr.msk.f32.gmra.mxu1 %vm344_vm0, %v4650_v27 }
 0x827   : > { %4856 = vmatprep.mubr.f32.mxu1 %v9961_v26 }
 0x8da   : > { %v4753_v14 = vpop.f32.mrf.mxu1 }
 0x8db   : > { %v4754_v7 = vadd.f32 %v4753_v14, %v4658_v11 }
 0x8dc   : > { %v4755_v53 = vpop.f32.mrf.mxu1 }
 0x8dd   : > { %v4756_v24 = vadd.f32 %v4755_v53, %v4658_v11 }
 0x8de   : > { %v4759_v35 = vpop.f32.mrf.mxu1 }
 0x8df   : > { %v4760_v50 = vadd.f32 %v4759_v35, %v4663_v58 }
 0x8e0   : > { %v4761_v60 = vpop.f32.mrf.mxu1 }
 0x8e1   : > { %v4762_v13 = vadd.f32 %v4761_v60, %v4663_v58 }
 0x8e2   : > { %v4765_v28 = vpop.f32.mrf.mxu1 }
 0x8e3   : > { %v4766_v15 = vadd.f32 %v4765_v28, %v4668_v8 }
 0x8e4   : > { %v4767_v39 = vpop.f32.mrf.mxu1 }
 0x8e5   : > { %v4768_v9 = vadd.f32 %v4767_v39, %v4668_v8 }
 0x8e6   : > { %v4771_v1 = vpop.f32.mrf.mxu1 }
 0x8e7   : > { %v4772_v30 = vadd.f32 %v4771_v1, %v4673_v48 }
 0x8e8   : > { %v4773_v44 = vpop.f32.mrf.mxu1 }
 0x8e9   : > { %v4774_v42 = vadd.f32 %v4773_v44, %v4673_v48 }
 0x8eb   : > { %4816 = vmatprep.subr.mxu1 %v4774_v42 }
 0x8ec   : > { %4817 = vmatpush1.msra.mxu1 %v4772_v30 }
 0x8ed   : > { %4818 = vmatprep.subr.mxu1 %v4768_v9 }
 0x8ee   : > { %4819 = vmatpush1.msra.mxu1 %v4766_v15 }
 0x8ef   : > { %4820 = vmatprep.subr.mxu1 %v4762_v13 }
 0x8f0   : > { %4821 = vmatpush1.msra.mxu1 %v4760_v50 }
 0x8f1   : > { %4822 = vmatprep.subr.mxu1 %v4756_v24 }
 0x8f2   : > { %4823 = vmatpush1.msra.mxu1 %v4754_v7 }
 0x8f3   : > { %5097 = vmatmul.mubr.msk.f32.vlgmr.msra.gmra.mxu1 %vm344_vm0, %v4776_v5 }
 0x8f4   : > { %4862 = vmatprep.mubr.f32.mxu1 %v9961_v26 }
 0x8f7   : > { %5098 = vmatmul.mubr.msk.f32.gmra.mxu1 %vm344_vm0, %v4777_v45 }
 0x8f8   : > { %4868 = vmatprep.mubr.f32.mxu1 %v9961_v26 }
 0x8fb   : > { %5099 = vmatmul.mubr.msk.f32.gmra.mxu1 %vm344_vm0, %v4778_v51 }
 0x8fc   : > { %4874 = vmatprep.mubr.f32.mxu1 %v9961_v26 }
 0x8ff   : > { %5100 = vmatmul.mubr.msk.f32.gmra.mxu1 %vm344_vm0, %v4779_v18 }
 0x9b3   : > { %v4858_v33 = vpop.f32.mrf.mxu1 }
 0x9b4   : > { %4881 = vst [vmem:[%s251_s14] sm:$0xff] %v4858_v33 }
 0x9b5   : > { %v4860_v4 = vpop.f32.mrf.mxu1 }
 0x9b6   : > { %4882 = vst [vmem:[%s251_s14 + $0x8] sm:$0xff] %v4860_v4 }
 0x9b7   : > { %v4864_v41 = vpop.f32.mrf.mxu1 }
 0x9b8   : > { %4883 = vst [vmem:[%s251_s14 + $0x10] sm:$0xff] %v4864_v41 }
 0x9b9   : > { %v4866_v23 = vpop.f32.mrf.mxu1 }
 0x9ba   : > { %4884 = vst [vmem:[%s251_s14 + $0x18] sm:$0xff] %v4866_v23 }
 0x9bb   : > { %v4870_v32 = vpop.f32.mrf.mxu1 }
 0x9bc   : > { %4885 = vst [vmem:[%s251_s14 + $0x20] sm:$0xff] %v4870_v32 }
 0x9bd   : > { %v4872_v25 = vpop.f32.mrf.mxu1 }
 0x9be   : > { %4886 = vst [vmem:[%s251_s14 + $0x28] sm:$0xff] %v4872_v25 }
 0x9bf   : > { %v4876_v3 = vpop.f32.mrf.mxu1 }
 0x9c0   : > { %4887 = vst [vmem:[%s251_s14 + $0x30] sm:$0xff] %v4876_v3 }
 0x9c1   : > { %v4878_v46 = vpop.f32.mrf.mxu1 }
 0x9c2   : > { %4888 = vst [vmem:[%s251_s14 + $0x38] sm:$0xff] %v4878_v46 }
 0x9c3 PF: > { %s16_s21 = sadd.s32 1, %s5899_s21  }
 0x9c4   : > { %p13_p4 = scmp.ge.s32.totalorder %s16_s21, 4  }
 0x9c6   :  { %15 = sbr.rel (!%p13_p4) target bundleno = 1 (0x1), region = 74 }

</bundles_post_ra>
